<compile_context>
chip_gen: v7x
topology: tpu7x:2x2x1
jax: 0.10.0
libtpu: 0.0.40
codegen_flags: <defaults>
</compile_context>

<pallas_src>
import jax
import jax.numpy as jnp
import numpy as np
from jax import lax
from jax.experimental import pallas as pl
from jax.experimental.pallas import tpu as pltpu


def _rcab_kernel(x_ref, w1_ref, b1_ref, w2_ref, b2_ref,
                 wc1t_ref, bc1_ref, wc2_ref, bc2_ref,
                 o_ref, xpad_ref, col_ref):
    # x_ref   : (1, H, W, C)     bf16   un-padded input block
    # w1/w2   : (9*C, C)         bf16   conv weights (tap-major K)
    # b1/b2   : (1, C)           f32
    # wc1t    : (Cr, C)          f32    squeeze weights, pre-transposed
    # bc1     : (Cr, 1)          f32
    # wc2     : (Cr, C)          f32    excite weights
    # bc2     : (1, C)           f32
    # o_ref   : (1, C, H*W)      f32    lane-dense output (NCHW-flattened)
    # xpad_ref: (H+2, W+2, C)    bf16 scratch (reused for both convs)
    # col_ref : (H*W, 9*C)       bf16 scratch (im2col matrix, reused for both convs)
    _, H, W, C = x_ref.shape
    HW = H * W

    # ---- zero only the 1-wide border of the bf16 pad scratch (cheap, megacore-safe) ----
    xpad_ref[0:1, :, :] = jnp.zeros((1, W + 2, C), jnp.bfloat16)
    xpad_ref[H + 1:H + 2, :, :] = jnp.zeros((1, W + 2, C), jnp.bfloat16)
    xpad_ref[:, 0:1, :] = jnp.zeros((H + 2, 1, C), jnp.bfloat16)
    xpad_ref[:, W + 1:W + 2, :] = jnp.zeros((H + 2, 1, C), jnp.bfloat16)

    # interior <- x (bf16 straight through, no cast)
    xpad_ref[1:H + 1, 1:W + 1, :] = x_ref[0]

    # ---- channel attention from the ORIGINAL x, computed while its block is hot ----
    pooled = jnp.sum(x_ref[0].astype(jnp.float32).reshape(HW, C),
                     axis=0, keepdims=True) * (1.0 / HW)                       # (1, C)
    hca = jnp.maximum(
        jnp.sum(pooled * wc1t_ref[...], axis=1, keepdims=True) + bc1_ref[...], 0.0)  # (Cr, 1)
    ca = jax.nn.sigmoid(
        jnp.sum(hca * wc2_ref[...], axis=0, keepdims=True) + bc2_ref[...])     # (1, C)

    def build_col():
        # im2col: tap-major K layout matching the (9*C, C) weight reshape.
        # Concatenate the 9 tap slices along lanes and issue ONE full-width store.
        taps = [xpad_ref[k // 3:k // 3 + H, k % 3:k % 3 + W, :].reshape(HW, C)
                for k in range(9)]
        col_ref[...] = jnp.concatenate(taps, axis=-1)                          # (HW, 9C)

    # ---------------- body: conv3x3 -> ReLU (one K=9C matmul) ----------------
    build_col()
    h1 = jnp.dot(col_ref[...], w1_ref[...], preferred_element_type=jnp.float32)
    h1 = jnp.maximum(h1 + b1_ref[...], 0.0)                                    # (HW, C) f32

    # ---------------- body: conv3x3 (reuse pad + col scratches) ----------------
    xpad_ref[1:H + 1, 1:W + 1, :] = h1.astype(jnp.bfloat16).reshape(H, W, C)
    build_col()
    res = jnp.dot(col_ref[...], w2_ref[...], preferred_element_type=jnp.float32)
    res = res + b2_ref[...]                                                    # (HW, C)

    # ---- res * ca + x (residual rematerialized from the resident input block) ----
    out = res * ca + x_ref[0].reshape(HW, C).astype(jnp.float32)               # (HW, C)
    o_ref[0] = out.T.astype(o_ref.dtype)                                       # (C, HW) lane-dense


def rcab_forward(x_nchw, params):
    """RCAB forward.  x_nchw: (N, C, H, W) float32.  Returns (N, C, H, W) float32."""
    N, C, H, W = x_nchw.shape
    Cr = params["wc1"].shape[1]
    HW = H * W

    x = jnp.transpose(x_nchw, (0, 2, 3, 1)).astype(jnp.bfloat16)      # NHWC, bf16
    w1 = params["w1"].reshape(9 * C, C).astype(jnp.bfloat16)          # tap-major K
    w2 = params["w2"].reshape(9 * C, C).astype(jnp.bfloat16)
    b1 = params["b1"].reshape(1, C).astype(jnp.float32)
    b2 = params["b2"].reshape(1, C).astype(jnp.float32)
    wc1t = params["wc1"].T.astype(jnp.float32)                        # (Cr, C)
    bc1 = params["bc1"].reshape(Cr, 1).astype(jnp.float32)
    wc2 = params["wc2"].astype(jnp.float32)                           # (Cr, C)
    bc2 = params["bc2"].reshape(1, C).astype(jnp.float32)

    flops = N * (2 * (2 * HW * 9 * C * C) + 4 * C * Cr + 6 * HW * C)
    bytes_accessed = (x.size * 2 + N * HW * C * 4
                      + (w1.size + w2.size) * 2
                      + (b1.size + b2.size + wc1t.size + bc1.size + wc2.size + bc2.size) * 4)

    # Explicit VMEM budget: scratches + double-buffered I/O blocks + f32 temporaries,
    # with headroom; floor 32 MiB, cap 64 MiB (v7x-safe).
    vmem_needed = (2 * HW * C * 2                    # input blocks (bf16, double-buffered)
                   + 2 * HW * C * 4                  # output blocks (f32, double-buffered)
                   + (H + 2) * (W + 2) * C * 2       # padded activation scratch (bf16)
                   + HW * 9 * C * 2                  # im2col scratch (bf16)
                   + 4 * 9 * C * C * 2               # conv weights (bf16, double-buffered)
                   + 6 * HW * C * 4)                 # f32 temporaries (h1/res/out/concat)
    vmem_limit = int(min(max(2 * vmem_needed + (4 << 20), 32 << 20), 64 << 20))

    out = pl.pallas_call(
        _rcab_kernel,
        out_shape=jax.ShapeDtypeStruct((N, C, HW), jnp.float32),
        grid=(N,),
        in_specs=[
            pl.BlockSpec((1, H, W, C), lambda n: (n, 0, 0, 0)),       # x (bf16)
            pl.BlockSpec((9 * C, C), lambda n: (0, 0)),               # w1
            pl.BlockSpec((1, C), lambda n: (0, 0)),                   # b1
            pl.BlockSpec((9 * C, C), lambda n: (0, 0)),               # w2
            pl.BlockSpec((1, C), lambda n: (0, 0)),                   # b2
            pl.BlockSpec((Cr, C), lambda n: (0, 0)),                  # wc1^T
            pl.BlockSpec((Cr, 1), lambda n: (0, 0)),                  # bc1
            pl.BlockSpec((Cr, C), lambda n: (0, 0)),                  # wc2
            pl.BlockSpec((1, C), lambda n: (0, 0)),                   # bc2
        ],
        out_specs=pl.BlockSpec((1, C, HW), lambda n: (n, 0, 0)),      # lane-dense (C on sublanes)
        scratch_shapes=[
            pltpu.VMEM((H + 2, W + 2, C), jnp.bfloat16),              # padded activation
            pltpu.VMEM((HW, 9 * C), jnp.bfloat16),                    # im2col matrix
        ],
        compiler_params=pltpu.CompilerParams(
            dimension_semantics=("parallel",),
            vmem_limit_bytes=vmem_limit),
        cost_estimate=pl.CostEstimate(flops=flops, transcendentals=N * C,
                                      bytes_accessed=bytes_accessed),
    )(x, w1, b1, w2, b2, wc1t, bc1, wc2, bc2)

    return out.reshape(N, C, H, W)                                    # already NCHW-ordered


def init_params(key, n_feat, reduction=16):
    C, Cr = n_feat, n_feat // reduction
    ks = jax.random.split(key, 8)
    return {
        "w1":  0.1 * jax.random.normal(ks[0], (9, C, C), jnp.float32),
        "b1":  0.1 * jax.random.normal(ks[1], (1, 1, C), jnp.float32),
        "w2":  0.1 * jax.random.normal(ks[2], (9, C, C), jnp.float32),
        "b2":  0.1 * jax.random.normal(ks[3], (1, 1, C), jnp.float32),
        "wc1": 0.1 * jax.random.normal(ks[4], (C, Cr), jnp.float32),
        "bc1": 0.1 * jax.random.normal(ks[5], (1, Cr), jnp.float32),
        "wc2": 0.1 * jax.random.normal(ks[6], (Cr, C), jnp.float32),
        "bc2": 0.1 * jax.random.normal(ks[7], (1, C), jnp.float32),
    }


def rcab_reference(x_nchw, params):
    """Pure-JAX f32 reference mirroring the PyTorch RCAB forward (for verification)."""
    x = jnp.transpose(x_nchw, (0, 2, 3, 1)).astype(jnp.float32)       # NHWC
    N, H, W, C = x.shape
    dn = ("NHWC", "HWIO", "NHWC")
    w1 = params["w1"].reshape(3, 3, C, C)
    w2 = params["w2"].reshape(3, 3, C, C)
    res = lax.conv_general_dilated(x, w1, (1, 1), "SAME", dimension_numbers=dn) + params["b1"]
    res = jnp.maximum(res, 0.0)
    res = lax.conv_general_dilated(res, w2, (1, 1), "SAME", dimension_numbers=dn) + params["b2"]
    pooled = jnp.mean(x, axis=(1, 2))                                 # (N, C) — CA pools x, as in the spec
    h = jnp.maximum(pooled @ params["wc1"] + params["bc1"], 0.0)
    ca = jax.nn.sigmoid(h @ params["wc2"] + params["bc2"])            # (N, C)
    out = res * ca[:, None, None, :] + x
    return jnp.transpose(out, (0, 3, 1, 2))


if __name__ == "__main__":
    key = jax.random.PRNGKey(0)
    kx, kp = jax.random.split(key)

    n_feat, reduction = 32, 16          # n_feat // reduction = 2
    N, H, W = 2, 16, 16
    x = jax.random.normal(kx, (N, n_feat, H, W), jnp.float32)         # NCHW, like PyTorch
    params = init_params(kp, n_feat, reduction)

    out = jax.block_until_ready(rcab_forward(x, params))
    ref = jax.block_until_ready(rcab_reference(x, params))

    # bf16 MXU operands / bf16 activation scratch vs f32 reference: max |err| well below 5e-2.
    if np.allclose(np.asarray(out), np.asarray(ref), rtol=5e-2, atol=5e-2):
        print("KERNEL_OK")
    else:
        print("KERNEL_MISMATCH max_abs_err=",
              float(np.max(np.abs(np.asarray(out) - np.asarray(ref)))))
</pallas_src>

<mosaic_0001>
module attributes {stable_mosaic.version = 11 : i64} {
  func.func @_rcab_kernel(%arg0: i32, %arg1: memref<1x16x16x32xbf16, #tpu.memory_space<vmem>>, %arg2: memref<288x32xbf16, #tpu.memory_space<vmem>>, %arg3: memref<1x32xf32, #tpu.memory_space<vmem>>, %arg4: memref<288x32xbf16, #tpu.memory_space<vmem>>, %arg5: memref<1x32xf32, #tpu.memory_space<vmem>>, %arg6: memref<2x32xf32, #tpu.memory_space<vmem>>, %arg7: memref<2x1xf32, #tpu.memory_space<vmem>>, %arg8: memref<2x32xf32, #tpu.memory_space<vmem>>, %arg9: memref<1x32xf32, #tpu.memory_space<vmem>>, %arg10: memref<1x32x256xf32, #tpu.memory_space<vmem>>, %arg11: memref<18x18x32xbf16, #tpu.memory_space<vmem>>, %arg12: memref<256x288xbf16, #tpu.memory_space<vmem>>) attributes {dimension_semantics = [#tpu.dimension_semantics<parallel>], iteration_bounds = array<i64: 2>, scalar_prefetch = 0 : i64, scratch_operands = 2 : i64, tpu.core_type = #tpu.core_type<tc>, window_params = [{transform_indices = @transform_0, window_bounds = array<i64: 1, 16, 16, 32>}, {pipeline_mode = #tpu.pipeline_mode<synchronous>, transform_indices = @transform_1, window_bounds = array<i64: 288, 32>}, {pipeline_mode = #tpu.pipeline_mode<synchronous>, transform_indices = @transform_2, window_bounds = array<i64: 1, 32>}, {pipeline_mode = #tpu.pipeline_mode<synchronous>, transform_indices = @transform_3, window_bounds = array<i64: 288, 32>}, {pipeline_mode = #tpu.pipeline_mode<synchronous>, transform_indices = @transform_4, window_bounds = array<i64: 1, 32>}, {pipeline_mode = #tpu.pipeline_mode<synchronous>, transform_indices = @transform_5, window_bounds = array<i64: 2, 32>}, {pipeline_mode = #tpu.pipeline_mode<synchronous>, transform_indices = @transform_6, window_bounds = array<i64: 2, 1>}, {pipeline_mode = #tpu.pipeline_mode<synchronous>, transform_indices = @transform_7, window_bounds = array<i64: 2, 32>}, {pipeline_mode = #tpu.pipeline_mode<synchronous>, transform_indices = @transform_8, window_bounds = array<i64: 1, 32>}, {transform_indices = @transform_9, window_bounds = array<i64: 1, 32, 256>}]} {
    %cst = arith.constant 0.000000e+00 : bf16
    %0 = vector.broadcast %cst : bf16 to vector<1x18x32xbf16>
    %c0 = arith.constant 0 : index
    %c0_0 = arith.constant 0 : index
    %c0_1 = arith.constant 0 : index
    %1 = vector.load %arg11[%c0, %c0_0, %c0_1] : memref<18x18x32xbf16, #tpu.memory_space<vmem>>, vector<1x18x32xbf16>
    tpu.vector_store %arg11[%c0, %c0_0, %c0_1], %0 {strides = array<i32>} : memref<18x18x32xbf16, #tpu.memory_space<vmem>>, vector<1x18x32xbf16>,
    %cst_2 = arith.constant 0.000000e+00 : bf16
    %2 = vector.broadcast %cst_2 : bf16 to vector<1x18x32xbf16>
    %c17 = arith.constant 17 : index
    %c0_3 = arith.constant 0 : index
    %c0_4 = arith.constant 0 : index
    %3 = vector.load %arg11[%c17, %c0_3, %c0_4] : memref<18x18x32xbf16, #tpu.memory_space<vmem>>, vector<1x18x32xbf16>
    tpu.vector_store %arg11[%c17, %c0_3, %c0_4], %2 {strides = array<i32>} : memref<18x18x32xbf16, #tpu.memory_space<vmem>>, vector<1x18x32xbf16>,
    %cst_5 = arith.constant 0.000000e+00 : bf16
    %4 = vector.broadcast %cst_5 : bf16 to vector<18x1x32xbf16>
    %c0_6 = arith.constant 0 : index
    %c0_7 = arith.constant 0 : index
    %c0_8 = arith.constant 0 : index
    %5 = vector.load %arg11[%c0_6, %c0_7, %c0_8] : memref<18x18x32xbf16, #tpu.memory_space<vmem>>, vector<18x1x32xbf16>
    tpu.vector_store %arg11[%c0_6, %c0_7, %c0_8], %4 {strides = array<i32>} : memref<18x18x32xbf16, #tpu.memory_space<vmem>>, vector<18x1x32xbf16>,
    %cst_9 = arith.constant 0.000000e+00 : bf16
    %6 = vector.broadcast %cst_9 : bf16 to vector<18x1x32xbf16>
    %c0_10 = arith.constant 0 : index
    %c17_11 = arith.constant 17 : index
    %c0_12 = arith.constant 0 : index
    %7 = vector.load %arg11[%c0_10, %c17_11, %c0_12] : memref<18x18x32xbf16, #tpu.memory_space<vmem>>, vector<18x1x32xbf16>
    tpu.vector_store %arg11[%c0_10, %c17_11, %c0_12], %6 {strides = array<i32>} : memref<18x18x32xbf16, #tpu.memory_space<vmem>>, vector<18x1x32xbf16>,
    %c0_13 = arith.constant 0 : index
    %c0_14 = arith.constant 0 : index
    %c0_15 = arith.constant 0 : index
    %c0_16 = arith.constant 0 : index
    %8 = vector.load %arg1[%c0_13, %c0_14, %c0_15, %c0_16] : memref<1x16x16x32xbf16, #tpu.memory_space<vmem>>, vector<1x16x16x32xbf16>
    %9 = vector.shape_cast %8 : vector<1x16x16x32xbf16> to vector<16x16x32xbf16>
    %c1 = arith.constant 1 : index
    %c1_17 = arith.constant 1 : index
    %c0_18 = arith.constant 0 : index
    %10 = vector.load %arg11[%c1, %c1_17, %c0_18] : memref<18x18x32xbf16, #tpu.memory_space<vmem>>, vector<16x16x32xbf16>
    tpu.vector_store %arg11[%c1, %c1_17, %c0_18], %9 {strides = array<i32>} : memref<18x18x32xbf16, #tpu.memory_space<vmem>>, vector<16x16x32xbf16>,
    %c0_19 = arith.constant 0 : index
    %c0_20 = arith.constant 0 : index
    %c0_21 = arith.constant 0 : index
    %c0_22 = arith.constant 0 : index
    %11 = vector.load %arg1[%c0_19, %c0_20, %c0_21, %c0_22] : memref<1x16x16x32xbf16, #tpu.memory_space<vmem>>, vector<1x16x16x32xbf16>
    %12 = vector.shape_cast %11 : vector<1x16x16x32xbf16> to vector<16x16x32xbf16>
    %13 = arith.extf %12 : vector<16x16x32xbf16> to vector<16x16x32xf32>
    %14 = vector.shape_cast %13 : vector<16x16x32xf32> to vector<256x32xf32>
    %cst_23 = arith.constant dense<0.000000e+00> : vector<32xf32>
    %15 = vector.multi_reduction <add>, %14, %cst_23 [0] : vector<256x32xf32> to vector<32xf32>
    %16 = vector.shape_cast %15 : vector<32xf32> to vector<1x32xf32>
    %cst_24 = arith.constant 3.906250e-03 : f32
    %17 = vector.broadcast %cst_24 : f32 to vector<1x32xf32>
    %18 = arith.mulf %16, %17 : vector<1x32xf32>
    %c0_25 = arith.constant 0 : index
    %c0_26 = arith.constant 0 : index
    %19 = vector.load %arg6[%c0_25, %c0_26] : memref<2x32xf32, #tpu.memory_space<vmem>>, vector<2x32xf32>
    %20 = vector.broadcast %18 : vector<1x32xf32> to vector<2x32xf32>
    %21 = arith.mulf %20, %19 : vector<2x32xf32>
    %cst_27 = arith.constant dense<0.000000e+00> : vector<2xf32>
    %22 = vector.multi_reduction <add>, %21, %cst_27 [1] : vector<2x32xf32> to vector<2xf32>
    %23 = vector.shape_cast %22 : vector<2xf32> to vector<2x1xf32>
    %c0_28 = arith.constant 0 : index
    %c0_29 = arith.constant 0 : index
    %24 = vector.load %arg7[%c0_28, %c0_29] : memref<2x1xf32, #tpu.memory_space<vmem>>, vector<2x1xf32>
    %25 = arith.addf %23, %24 : vector<2x1xf32>
    %cst_30 = arith.constant 0.000000e+00 : f32
    %26 = vector.broadcast %cst_30 : f32 to vector<2x1xf32>
    %27 = arith.maximumf %25, %26 : vector<2x1xf32>
    %c0_31 = arith.constant 0 : index
    %c0_32 = arith.constant 0 : index
    %28 = vector.load %arg8[%c0_31, %c0_32] : memref<2x32xf32, #tpu.memory_space<vmem>>, vector<2x32xf32>
    %29 = vector.broadcast %27 : vector<2x1xf32> to vector<2x32xf32>
    %30 = arith.mulf %29, %28 : vector<2x32xf32>
    %cst_33 = arith.constant dense<0.000000e+00> : vector<32xf32>
    %31 = vector.multi_reduction <add>, %30, %cst_33 [0] : vector<2x32xf32> to vector<32xf32>
    %32 = vector.shape_cast %31 : vector<32xf32> to vector<1x32xf32>
    %c0_34 = arith.constant 0 : index
    %c0_35 = arith.constant 0 : index
    %33 = vector.load %arg9[%c0_34, %c0_35] : memref<1x32xf32, #tpu.memory_space<vmem>>, vector<1x32xf32>
    %34 = arith.addf %32, %33 : vector<1x32xf32>
    %35 = arith.negf %34 : vector<1x32xf32>
    %36 = math.exp %35 : vector<1x32xf32>
    %cst_36 = arith.constant 1.000000e+00 : f32
    %37 = vector.broadcast %cst_36 : f32 to vector<1x32xf32>
    %38 = arith.addf %37, %36 : vector<1x32xf32>
    %39 = arith.divf %37, %38 : vector<1x32xf32>
    %c0_37 = arith.constant 0 : index
    %c0_38 = arith.constant 0 : index
    %c0_39 = arith.constant 0 : index
    %40 = vector.load %arg11[%c0_37, %c0_38, %c0_39] : memref<18x18x32xbf16, #tpu.memory_space<vmem>>, vector<16x16x32xbf16>
    %41 = vector.shape_cast %40 : vector<16x16x32xbf16> to vector<256x32xbf16>
    %c0_40 = arith.constant 0 : index
    %c1_41 = arith.constant 1 : index
    %c0_42 = arith.constant 0 : index
    %42 = vector.load %arg11[%c0_40, %c1_41, %c0_42] : memref<18x18x32xbf16, #tpu.memory_space<vmem>>, vector<16x16x32xbf16>
    %43 = vector.shape_cast %42 : vector<16x16x32xbf16> to vector<256x32xbf16>
    %c0_43 = arith.constant 0 : index
    %c2 = arith.constant 2 : index
    %c0_44 = arith.constant 0 : index
    %44 = vector.load %arg11[%c0_43, %c2, %c0_44] : memref<18x18x32xbf16, #tpu.memory_space<vmem>>, vector<16x16x32xbf16>
    %45 = vector.shape_cast %44 : vector<16x16x32xbf16> to vector<256x32xbf16>
    %c1_45 = arith.constant 1 : index
    %c0_46 = arith.constant 0 : index
    %c0_47 = arith.constant 0 : index
    %46 = vector.load %arg11[%c1_45, %c0_46, %c0_47] : memref<18x18x32xbf16, #tpu.memory_space<vmem>>, vector<16x16x32xbf16>
    %47 = vector.shape_cast %46 : vector<16x16x32xbf16> to vector<256x32xbf16>
    %c1_48 = arith.constant 1 : index
    %c1_49 = arith.constant 1 : index
    %c0_50 = arith.constant 0 : index
    %48 = vector.load %arg11[%c1_48, %c1_49, %c0_50] : memref<18x18x32xbf16, #tpu.memory_space<vmem>>, vector<16x16x32xbf16>
    %49 = vector.shape_cast %48 : vector<16x16x32xbf16> to vector<256x32xbf16>
    %c1_51 = arith.constant 1 : index
    %c2_52 = arith.constant 2 : index
    %c0_53 = arith.constant 0 : index
    %50 = vector.load %arg11[%c1_51, %c2_52, %c0_53] : memref<18x18x32xbf16, #tpu.memory_space<vmem>>, vector<16x16x32xbf16>
    %51 = vector.shape_cast %50 : vector<16x16x32xbf16> to vector<256x32xbf16>
    %c2_54 = arith.constant 2 : index
    %c0_55 = arith.constant 0 : index
    %c0_56 = arith.constant 0 : index
    %52 = vector.load %arg11[%c2_54, %c0_55, %c0_56] : memref<18x18x32xbf16, #tpu.memory_space<vmem>>, vector<16x16x32xbf16>
    %53 = vector.shape_cast %52 : vector<16x16x32xbf16> to vector<256x32xbf16>
    %c2_57 = arith.constant 2 : index
    %c1_58 = arith.constant 1 : index
    %c0_59 = arith.constant 0 : index
    %54 = vector.load %arg11[%c2_57, %c1_58, %c0_59] : memref<18x18x32xbf16, #tpu.memory_space<vmem>>, vector<16x16x32xbf16>
    %55 = vector.shape_cast %54 : vector<16x16x32xbf16> to vector<256x32xbf16>
    %c2_60 = arith.constant 2 : index
    %c2_61 = arith.constant 2 : index
    %c0_62 = arith.constant 0 : index
    %56 = vector.load %arg11[%c2_60, %c2_61, %c0_62] : memref<18x18x32xbf16, #tpu.memory_space<vmem>>, vector<16x16x32xbf16>
    %57 = vector.shape_cast %56 : vector<16x16x32xbf16> to vector<256x32xbf16>
    %58 = tpu.concatenate %41, %43, %45, %47, %49, %51, %53, %55, %57 in 1 : vector<256x32xbf16>, vector<256x32xbf16>, vector<256x32xbf16>, vector<256x32xbf16>, vector<256x32xbf16>, vector<256x32xbf16>, vector<256x32xbf16>, vector<256x32xbf16>, vector<256x32xbf16> -> vector<256x288xbf16>
    %c0_63 = arith.constant 0 : index
    %c0_64 = arith.constant 0 : index
    %59 = vector.load %arg12[%c0_63, %c0_64] : memref<256x288xbf16, #tpu.memory_space<vmem>>, vector<256x288xbf16>
    tpu.vector_store %arg12[%c0_63, %c0_64], %58 {strides = array<i32>} : memref<256x288xbf16, #tpu.memory_space<vmem>>, vector<256x288xbf16>,
    %c0_65 = arith.constant 0 : index
    %c0_66 = arith.constant 0 : index
    %60 = vector.load %arg12[%c0_65, %c0_66] : memref<256x288xbf16, #tpu.memory_space<vmem>>, vector<256x288xbf16>
    %c0_67 = arith.constant 0 : index
    %c0_68 = arith.constant 0 : index
    %61 = vector.load %arg2[%c0_67, %c0_68] : memref<288x32xbf16, #tpu.memory_space<vmem>>, vector<288x32xbf16>
    %cst_69 = arith.constant dense<0.000000e+00> : vector<256x32xf32>
    %62 = tpu.matmul %60, %61, %cst_69 {dimension_numbers = #tpu.dot_dimension_numbers<[1], [0], [0], [1], [0, 0, 1, 1], [], []>} : vector<256x288xbf16>, vector<288x32xbf16>, vector<256x32xf32> -> vector<256x32xf32>
    %c0_70 = arith.constant 0 : index
    %c0_71 = arith.constant 0 : index
    %63 = vector.load %arg3[%c0_70, %c0_71] : memref<1x32xf32, #tpu.memory_space<vmem>>, vector<1x32xf32>
    %64 = vector.broadcast %63 : vector<1x32xf32> to vector<256x32xf32>
    %65 = arith.addf %62, %64 : vector<256x32xf32>
    %cst_72 = arith.constant 0.000000e+00 : f32
    %66 = vector.broadcast %cst_72 : f32 to vector<256x32xf32>
    %67 = arith.maximumf %65, %66 : vector<256x32xf32>
    %68 = arith.truncf %67 : vector<256x32xf32> to vector<256x32xbf16>
    %69 = vector.shape_cast %68 : vector<256x32xbf16> to vector<16x16x32xbf16>
    %c1_73 = arith.constant 1 : index
    %c1_74 = arith.constant 1 : index
    %c0_75 = arith.constant 0 : index
    %70 = vector.load %arg11[%c1_73, %c1_74, %c0_75] : memref<18x18x32xbf16, #tpu.memory_space<vmem>>, vector<16x16x32xbf16>
    tpu.vector_store %arg11[%c1_73, %c1_74, %c0_75], %69 {strides = array<i32>} : memref<18x18x32xbf16, #tpu.memory_space<vmem>>, vector<16x16x32xbf16>,
    %c0_76 = arith.constant 0 : index
    %c0_77 = arith.constant 0 : index
    %c0_78 = arith.constant 0 : index
    %71 = vector.load %arg11[%c0_76, %c0_77, %c0_78] : memref<18x18x32xbf16, #tpu.memory_space<vmem>>, vector<16x16x32xbf16>
    %72 = vector.shape_cast %71 : vector<16x16x32xbf16> to vector<256x32xbf16>
    %c0_79 = arith.constant 0 : index
    %c1_80 = arith.constant 1 : index
    %c0_81 = arith.constant 0 : index
    %73 = vector.load %arg11[%c0_79, %c1_80, %c0_81] : memref<18x18x32xbf16, #tpu.memory_space<vmem>>, vector<16x16x32xbf16>
    %74 = vector.shape_cast %73 : vector<16x16x32xbf16> to vector<256x32xbf16>
    %c0_82 = arith.constant 0 : index
    %c2_83 = arith.constant 2 : index
    %c0_84 = arith.constant 0 : index
    %75 = vector.load %arg11[%c0_82, %c2_83, %c0_84] : memref<18x18x32xbf16, #tpu.memory_space<vmem>>, vector<16x16x32xbf16>
    %76 = vector.shape_cast %75 : vector<16x16x32xbf16> to vector<256x32xbf16>
    %c1_85 = arith.constant 1 : index
    %c0_86 = arith.constant 0 : index
    %c0_87 = arith.constant 0 : index
    %77 = vector.load %arg11[%c1_85, %c0_86, %c0_87] : memref<18x18x32xbf16, #tpu.memory_space<vmem>>, vector<16x16x32xbf16>
    %78 = vector.shape_cast %77 : vector<16x16x32xbf16> to vector<256x32xbf16>
    %c1_88 = arith.constant 1 : index
    %c1_89 = arith.constant 1 : index
    %c0_90 = arith.constant 0 : index
    %79 = vector.load %arg11[%c1_88, %c1_89, %c0_90] : memref<18x18x32xbf16, #tpu.memory_space<vmem>>, vector<16x16x32xbf16>
    %80 = vector.shape_cast %79 : vector<16x16x32xbf16> to vector<256x32xbf16>
    %c1_91 = arith.constant 1 : index
    %c2_92 = arith.constant 2 : index
    %c0_93 = arith.constant 0 : index
    %81 = vector.load %arg11[%c1_91, %c2_92, %c0_93] : memref<18x18x32xbf16, #tpu.memory_space<vmem>>, vector<16x16x32xbf16>
    %82 = vector.shape_cast %81 : vector<16x16x32xbf16> to vector<256x32xbf16>
    %c2_94 = arith.constant 2 : index
    %c0_95 = arith.constant 0 : index
    %c0_96 = arith.constant 0 : index
    %83 = vector.load %arg11[%c2_94, %c0_95, %c0_96] : memref<18x18x32xbf16, #tpu.memory_space<vmem>>, vector<16x16x32xbf16>
    %84 = vector.shape_cast %83 : vector<16x16x32xbf16> to vector<256x32xbf16>
    %c2_97 = arith.constant 2 : index
    %c1_98 = arith.constant 1 : index
    %c0_99 = arith.constant 0 : index
    %85 = vector.load %arg11[%c2_97, %c1_98, %c0_99] : memref<18x18x32xbf16, #tpu.memory_space<vmem>>, vector<16x16x32xbf16>
    %86 = vector.shape_cast %85 : vector<16x16x32xbf16> to vector<256x32xbf16>
    %c2_100 = arith.constant 2 : index
    %c2_101 = arith.constant 2 : index
    %c0_102 = arith.constant 0 : index
    %87 = vector.load %arg11[%c2_100, %c2_101, %c0_102] : memref<18x18x32xbf16, #tpu.memory_space<vmem>>, vector<16x16x32xbf16>
    %88 = vector.shape_cast %87 : vector<16x16x32xbf16> to vector<256x32xbf16>
    %89 = tpu.concatenate %72, %74, %76, %78, %80, %82, %84, %86, %88 in 1 : vector<256x32xbf16>, vector<256x32xbf16>, vector<256x32xbf16>, vector<256x32xbf16>, vector<256x32xbf16>, vector<256x32xbf16>, vector<256x32xbf16>, vector<256x32xbf16>, vector<256x32xbf16> -> vector<256x288xbf16>
    %c0_103 = arith.constant 0 : index
    %c0_104 = arith.constant 0 : index
    %90 = vector.load %arg12[%c0_103, %c0_104] : memref<256x288xbf16, #tpu.memory_space<vmem>>, vector<256x288xbf16>
    tpu.vector_store %arg12[%c0_103, %c0_104], %89 {strides = array<i32>} : memref<256x288xbf16, #tpu.memory_space<vmem>>, vector<256x288xbf16>,
    %c0_105 = arith.constant 0 : index
    %c0_106 = arith.constant 0 : index
    %91 = vector.load %arg12[%c0_105, %c0_106] : memref<256x288xbf16, #tpu.memory_space<vmem>>, vector<256x288xbf16>
    %c0_107 = arith.constant 0 : index
    %c0_108 = arith.constant 0 : index
    %92 = vector.load %arg4[%c0_107, %c0_108] : memref<288x32xbf16, #tpu.memory_space<vmem>>, vector<288x32xbf16>
    %cst_109 = arith.constant dense<0.000000e+00> : vector<256x32xf32>
    %93 = tpu.matmul %91, %92, %cst_109 {dimension_numbers = #tpu.dot_dimension_numbers<[1], [0], [0], [1], [0, 0, 1, 1], [], []>} : vector<256x288xbf16>, vector<288x32xbf16>, vector<256x32xf32> -> vector<256x32xf32>
    %c0_110 = arith.constant 0 : index
    %c0_111 = arith.constant 0 : index
    %94 = vector.load %arg5[%c0_110, %c0_111] : memref<1x32xf32, #tpu.memory_space<vmem>>, vector<1x32xf32>
    %95 = vector.broadcast %94 : vector<1x32xf32> to vector<256x32xf32>
    %96 = arith.addf %93, %95 : vector<256x32xf32>
    %97 = vector.broadcast %39 : vector<1x32xf32> to vector<256x32xf32>
    %98 = arith.mulf %96, %97 : vector<256x32xf32>
    %c0_112 = arith.constant 0 : index
    %c0_113 = arith.constant 0 : index
    %c0_114 = arith.constant 0 : index
    %c0_115 = arith.constant 0 : index
    %99 = vector.load %arg1[%c0_112, %c0_113, %c0_114, %c0_115] : memref<1x16x16x32xbf16, #tpu.memory_space<vmem>>, vector<1x16x16x32xbf16>
    %100 = vector.shape_cast %99 : vector<1x16x16x32xbf16> to vector<16x16x32xbf16>
    %101 = vector.shape_cast %100 : vector<16x16x32xbf16> to vector<256x32xbf16>
    %102 = arith.extf %101 : vector<256x32xbf16> to vector<256x32xf32>
    %103 = arith.addf %98, %102 : vector<256x32xf32>
    %104 = tpu.transpose %103, [1, 0] : vector<256x32xf32> -> vector<32x256xf32>
    %c0_116 = arith.constant 0 : index
    %c0_117 = arith.constant 0 : index
    %c0_118 = arith.constant 0 : index
    %105 = vector.load %arg10[%c0_116, %c0_117, %c0_118] : memref<1x32x256xf32, #tpu.memory_space<vmem>>, vector<1x32x256xf32>
    %106 = vector.shape_cast %105 : vector<1x32x256xf32> to vector<32x256xf32>
    %107 = vector.shape_cast %104 : vector<32x256xf32> to vector<1x32x256xf32>
    tpu.vector_store %arg10[%c0_116, %c0_117, %c0_118], %107 {strides = array<i32>} : memref<1x32x256xf32, #tpu.memory_space<vmem>>, vector<1x32x256xf32>,
    return
  }
  func.func @transform_0(%arg0: i32) -> (i32, i32, i32, i32) {
    %c0_i32 = arith.constant 0 : i32
    %c0_i32_0 = arith.constant 0 : i32
    %c0_i32_1 = arith.constant 0 : i32
    %c0_i32_2 = arith.constant 0 : i32
    return %arg0, %c0_i32, %c0_i32_0, %c0_i32_1 : i32, i32, i32, i32
  }
  func.func @transform_1(%arg0: i32) -> (i32, i32) {
    %c0_i32 = arith.constant 0 : i32
    %c0_i32_0 = arith.constant 0 : i32
    %c0_i32_1 = arith.constant 0 : i32
    return %c0_i32, %c0_i32_0 : i32, i32
  }
  func.func @transform_2(%arg0: i32) -> (i32, i32) {
    %c0_i32 = arith.constant 0 : i32
    %c0_i32_0 = arith.constant 0 : i32
    %c0_i32_1 = arith.constant 0 : i32
    return %c0_i32, %c0_i32_0 : i32, i32
  }
  func.func @transform_3(%arg0: i32) -> (i32, i32) {
    %c0_i32 = arith.constant 0 : i32
    %c0_i32_0 = arith.constant 0 : i32
    %c0_i32_1 = arith.constant 0 : i32
    return %c0_i32, %c0_i32_0 : i32, i32
  }
  func.func @transform_4(%arg0: i32) -> (i32, i32) {
    %c0_i32 = arith.constant 0 : i32
    %c0_i32_0 = arith.constant 0 : i32
    %c0_i32_1 = arith.constant 0 : i32
    return %c0_i32, %c0_i32_0 : i32, i32
  }
  func.func @transform_5(%arg0: i32) -> (i32, i32) {
    %c0_i32 = arith.constant 0 : i32
    %c0_i32_0 = arith.constant 0 : i32
    %c0_i32_1 = arith.constant 0 : i32
    return %c0_i32, %c0_i32_0 : i32, i32
  }
  func.func @transform_6(%arg0: i32) -> (i32, i32) {
    %c0_i32 = arith.constant 0 : i32
    %c0_i32_0 = arith.constant 0 : i32
    %c0_i32_1 = arith.constant 0 : i32
    return %c0_i32, %c0_i32_0 : i32, i32
  }
  func.func @transform_7(%arg0: i32) -> (i32, i32) {
    %c0_i32 = arith.constant 0 : i32
    %c0_i32_0 = arith.constant 0 : i32
    %c0_i32_1 = arith.constant 0 : i32
    return %c0_i32, %c0_i32_0 : i32, i32
  }
  func.func @transform_8(%arg0: i32) -> (i32, i32) {
    %c0_i32 = arith.constant 0 : i32
    %c0_i32_0 = arith.constant 0 : i32
    %c0_i32_1 = arith.constant 0 : i32
    return %c0_i32, %c0_i32_0 : i32, i32
  }
  func.func @transform_9(%arg0: i32) -> (i32, i32, i32) {
    %c0_i32 = arith.constant 0 : i32
    %c0_i32_0 = arith.constant 0 : i32
    %c0_i32_1 = arith.constant 0 : i32
    return %arg0, %c0_i32, %c0_i32_0 : i32, i32, i32
  }
}

</mosaic_0001>

<bundles_post_ra>
// kernel: tpu_custom_call.1
= control target key start
LH: loop header
LB: loop body
LE: loop exit
PB: predicated region body
PF: predicated region fallthrough
CT: control target
= control target key end

     0   :  { %14 = vsyncpa [#allocation5], 0  ;;  %s14374_s0 = inlined_call_operand.vmem [shape: bf16[2,16,16,32], index: 0, kind: input, shape index: {}]   ;;  %s14375_s1 = inlined_call_operand.vmem [shape: bf16[288,32], index: 1, kind: input, shape index: {}]   ;;  %s14376_s2 = inlined_call_operand.vmem [shape: f32[1,32], index: 2, kind: input, shape index: {}]   ;;  %s14377_s3 = inlined_call_operand.vmem [shape: bf16[288,32], index: 3, kind: input, shape index: {}]   ;;  %s14378_s4 = inlined_call_operand.vmem [shape: f32[1,32], index: 4, kind: input, shape index: {}]   ;;  %s14379_s5 = inlined_call_operand.vmem [shape: f32[2,32], index: 5, kind: input, shape index: {}]   ;;  %s14380_s6 = inlined_call_operand.vmem [shape: f32[2,1], index: 6, kind: input, shape index: {}]   ;;  %s14381_s7 = inlined_call_operand.vmem [shape: f32[2,32], index: 7, kind: input, shape index: {}]   ;;  %s14382_s8 = inlined_call_operand.vmem [shape: f32[1,32], index: 8, kind: input, shape index: {}]   ;;  %s14383_s9 = inlined_call_operand.hbm [shape: f32[2,32,256], index: 9, kind: output, shape index: {}]  }
   0x1   :  { %16 = vsyncpa [#allocation5 + $0x1], 0  ;;  %s10140_s30 = smov 0   ;;  %s10142_s10 = smov 0  }
   0x2   :  { %s10144_s11 = smov 0   ;;  %s10146_s12 = smov 0  }
   0x3 LB: > { %s10161_s13 = sadd.s32 4294967295, %s10081_s12   ;;  %s8708_s14 = sadd.s32 4294967294, %s10081_s12   ;;  %s10081_s12 = sphi %s10146_s12, %s14518_s12   ;;  %s10077_s11 = sphi %s10144_s11, %s14517_s11   ;;  %s10073_s10 = sphi %s10142_s10, %s14516_s10   ;;  %s10069_s30 = sphi %s10140_s30, %s14515_s30  }
   0x4   : > { %s10165_s15 = sadd.s32 1, %s10081_s12   ;;  %s223_s16 = sadd.s32 1, %s10077_s11 }
   0x5   : > { %s220_s17 = ssub.s32 %s10081_s12, %s10165_s15  ;;  %p233_p0 = scmp.ne.s32.totalorder %s10077_s11, %s10073_s10 }
   0x6   : > { %p221_p1 = scmp.eq.s32.totalorder %s220_s17, 0  ;;  %p234_p2 = scmp.eq.s32.totalorder %s10161_s13, 1 }
   0x7   : > { %p239_p3 = scmp.ne.s32.totalorder %s10073_s10, %s10069_s30  ;;  %p240_p4 = scmp.eq.s32.totalorder %s8708_s14, 1 }
   0x8   : > { %s10176_s18 = scalar_select %p221_p1, %s10077_s11, %s223_s16  }
   0x9   : > { %p10178_p5 = por %p234_p2, %p233_p0  ;;  %p10182_p6 = por %p240_p4, %p239_p3 }
   0xa   : > { %p8711_p7 = scmp.ge.s32.totalorder %s10081_s12, 1  ;;  %p290_p8 = scmp.lt.s32.totalorder %s10081_s12, 3 }
   0xc   : > { %p291_p9 = pnand %p8711_p7, %p290_p8 }
   0xe   : > { %294 = sbr.rel (%p291_p9) target bundleno = 1436 (0x59c), region = 56 }
  0x15   : > { %vm332_vm0 = vcmask 257024   ;;  %vm335_vm1 = vcmask 253952   ;;  %vm342_vm2 = vsmask.f32 256  ;;  %v14384_v0 = vmov 0   ;;  %p326_p10 = scmp.lt.s32.totalorder %s10161_s13, 1 }
  0x16   : > { %333 = vst.msk [vmem:[#allocation2] sm:$0xf] %vm332_vm0, %v14384_v0  ;;  %334 = vst.msk [vmem:[#allocation2 + $0x4] sm:$0xf] %vm332_vm0, %v14384_v0  ;;  %v14405_v1 = vmov 0  ;;  %9780 = vset.pattern.permute.xlu1 %v14384_v0  ;;  %vm1588_vm7 = vcmask 1042432  }
  0x17   : > { %336 = vst.msk [vmem:[#allocation2 + $0x8] sm:$0x1] %vm335_vm1, %v14384_v0  ;;  %vm10194_vm3 = vmand %vm335_vm1, %vm342_vm2  ;;  %vm398_vm4 = vsmask.f32 7938  ;;  %v353_v3 = vld [vmem:[#allocation2 + $0x24] sm:$0x1] }
  0x18   : > { %v14406_v1 = vsel %vm10194_vm3, 4294967295, %v14405_v1  ;;  %338 = vst.msk [vmem:[#allocation2 + $0xcc] sm:$0xf] %vm332_vm0, %v14384_v0  ;;  %339 = vst.msk [vmem:[#allocation2 + $0xd0] sm:$0xf] %vm332_vm0, %v14384_v0  ;;  %s327_s21 = scalar_select %p326_p10, %s10161_s13, 1 }
  0x19   : > { %14407 = vst [vmem:[#allocation7_spill] sm:$0xff] %v14406_v1  ;;  %340 = vst.msk [vmem:[#allocation2 + $0xd4] sm:$0x1] %vm335_vm1, %v14384_v0  ;;  %v350_v4 = vld [vmem:[#allocation2 + $0x18] sm:$0x1]  ;;  %v354_v5 = vsel %vm10194_vm3, 0, %v353_v3 }
  0x1a   : > { %vm10206_vm5 = vmand %vm335_vm1, %vm398_vm4  ;;  %v351_v6 = vsel %vm10194_vm3, 0, %v350_v4  ;;  %v356_v7 = vld [vmem:[#allocation2 + $0x30] sm:$0x1]  ;;  %355 = vst [vmem:[#allocation2 + $0x24] sm:$0x1] %v354_v5  ;;  %s9207_s22 = sshll.u32 %s327_s21, 7 }
  0x1b   : > { %352 = vst [vmem:[#allocation2 + $0x18] sm:$0x1] %v351_v6  ;;  %v357_v8 = vsel %vm10194_vm3, 0, %v356_v7  ;;  %v347_v9 = vld [vmem:[#allocation2 + $0xc] sm:$0x1]  ;;  %s10224_s25 = scalar_lea.vmem %s14374_s0, %s9207_s22  ;;  %vm1589_vm8 = vcmask 1046532   ;;  %vm10238_vm9 = vmand %vm332_vm0, %vm398_vm4 }
  0x1c   : > { %v403_v10 = vld [vmem:[#allocation2 + $0x14] sm:$0x1]  ;;  %358 = vst [vmem:[#allocation2 + $0x30] sm:$0x1] %v357_v8  ;;  %v348_v11 = vsel %vm10194_vm3, 0, %v347_v9  ;;  %v14410_v32 = vmov 0  ;;  %vm10253_vm11 = vmor %vm1588_vm7, %vm1589_vm8 }
  0x1d   : > { %v404_v12 = vsel %vm10206_vm5, 0, %v403_v10  ;;  %vm486_vm6 = vsmask.f32 4368  ;;  %349 = vst [vmem:[#allocation2 + $0xc] sm:$0x1] %v348_v11  ;;  %v14411_v32 = vsel %vm10238_vm9, 4294967295, %v14410_v32 }
  0x1e   : > { %405 = vst [vmem:[#allocation2 + $0x14] sm:$0x1] %v404_v12  ;;  %v458_v13 = vld [vmem:[%s10224_s25 + $0x10] sm:$0xf]  ;;  %v459_v14 = vld [vmem:[%s10224_s25 + $0x14] sm:$0xf]  ;;  %vm10246_vm10 = vmor %vm342_vm2, %vm486_vm6 }
  0x1f   : > { %v456_v15 = vld [vmem:[%s10224_s25 + $0x8] sm:$0xf]  ;;  %v10229_v17 = vld [vmem:[#allocation2 + $0x4] sm:$0xf]  ;;  %v1524_v18 = vld [vmem:[#allocation2] sm:$0xe] }
  0x20   : > { %v400_v16 = vld [vmem:[#allocation2 + $0x8] sm:$0x1]  ;;  %v1593_v20 = vrot.slane %v10229_v17, 5  ;;  %v523_v21 = vshrl.u32 %v458_v13, 16  ;;  %v457_v22 = vld [vmem:[%s10224_s25 + $0xc] sm:$0xf] }
  0x21   : > { %v401_v19 = vsel %vm10206_vm5, 0, %v400_v16  ;;  %v526_v23 = vshll.u32 %v458_v13, 16  ;;  %v531_v24 = vshrl.u32 %v459_v14, 16  ;;  %v534_v25 = vshll.u32 %v459_v14, 16  ;;  %v460_v27 = vld [vmem:[%s10224_s25 + $0x18] sm:$0xf] }
  0x22   : > { %402 = vst [vmem:[#allocation2 + $0x8] sm:$0x1] %v401_v19  ;;  %v506_v26 = vshrl.u32 %v456_v15, 16  ;;  %v8716_v28 = vrot.slane %v1524_v18, 9  ;;  %v525_v29 = vrot.slane %v523_v21, 7  ;;  %v509_v31 = vshll.u32 %v456_v15, 16 }
  0x23   : > { %v825_v30 = vld [vmem:[#allocation2 + $0x24] sm:$0xf]  ;;  %14412 = vst [vmem:[#allocation8_spill] sm:$0xff] %v14411_v32  ;;  %v10242_v33 = vrot.slane %v531_v24, 7  ;;  %v514_v35 = vshrl.u32 %v457_v22, 16  ;;  %v517_v36 = vshll.u32 %v457_v22, 16 }
  0x24   : > { %v508_v34 = vrot.slane %v506_v26, 7  ;;  %v818_v37 = vld [vmem:[#allocation2 + $0x18] sm:$0xf]  ;;  %v14413_v38 = vmov 0  ;;  %v528_v39 = vor.u32 %v526_v23, %v525_v29  ;;  %v529_v40 = vrot.slane %v525_v29, 4  ;;  %s10084_s26 = smov 64  }
  0x25   : > { %v14414_v38 = vsel %vm10246_vm10, 4294967295, %v14413_v38  ;;  %v461_v41 = vld [vmem:[%s10224_s25 + $0x1c] sm:$0xf]  ;;  %v540_v42 = vshrl.u32 %v460_v27, 16  ;;  %v543_v43 = vshll.u32 %v460_v27, 16  ;;  %v1595_v45 = vrot.slane %v1593_v20, 4 }
  0x26   : > { %14415 = vst [vmem:[#allocation9_spill] sm:$0xff] %v14414_v38  ;;  %v536_v46 = vor.u32 %v534_v25, %v10242_v33  ;;  %v511_v47 = vor.u32 %v509_v31, %v508_v34  ;;  %v512_v48 = vrot.slane %v508_v34, 4  ;;  %v454_v49 = vld [vmem:[%s10224_s25] sm:$0xf]  ;;  %v826_v50 = vsel %vm10238_vm9, %v528_v39, %v825_v30  ;;  %v832_v57 = vld [vmem:[#allocation2 + $0x30] sm:$0xf] }
  0x27   : > { %v10261_v51 = vrot.slane %v514_v35, 7  ;;  %v542_v52 = vrot.slane %v540_v42, 7  ;;  %v548_v53 = vshrl.u32 %v461_v41, 16  ;;  %827 = vst [vmem:[#allocation2 + $0x24] sm:$0xf] %v826_v50  ;;  %v551_v56 = vshll.u32 %v461_v41, 16 }
  0x28   : > { %v537_v54 = vsel %vm10246_vm10, %v529_v40, %v536_v46  ;;  %v819_v55 = vsel %vm10238_vm9, %v511_v47, %v818_v37  ;;  %v455_v58 = vld [vmem:[%s10224_s25 + $0x4] sm:$0xf]  ;;  %v489_v59 = vshrl.u32 %v454_v49, 16  ;;  %v1594_v61 = vsel %vm10253_vm11, %v8716_v28, %v1593_v20  ;;  %v344_v11 = vld [vmem:[#allocation2] sm:$0x1]  ;;  %s10085_s27 = smov 96  }
  0x29   : > { %v10268_v60 = vld [vmem:[#allocation2 + $0x8] sm:$0x1]  ;;  %828 = vst.msk [vmem:[#allocation2 + $0x28] sm:$0xf] %vm332_vm0, %v537_v54  ;;  %v519_v62 = vor.u32 %v517_v36, %v10261_v51  ;;  %820 = vst [vmem:[#allocation2 + $0x18] sm:$0xf] %v819_v55  ;;  %v545_v63 = vor.u32 %v543_v43, %v542_v52 }
  0x2a   : > { %v1596_v3 = vrot.slane %v10268_v60, 5  ;;  %v546_v4 = vrot.slane %v542_v52, 4  ;;  %v10275_v5 = vrot.slane %v548_v53, 7  ;;  %v491_v6 = vrot.slane %v489_v59, 7  ;;  %v811_v15 = vld [vmem:[#allocation2 + $0xc] sm:$0xf] }
  0x2b   : > { %v520_v7 = vsel %vm10246_vm10, %v512_v48, %v519_v62  ;;  %v833_v8 = vsel %vm10238_vm9, %v545_v63, %v832_v57  ;;  %v492_v9 = vshll.u32 %v454_v49, 16  ;;  %v497_v10 = vshrl.u32 %v455_v58, 16  ;;  %v815_v22 = vld [vmem:[#allocation2 + $0x14] sm:$0x1]  ;;  %s10086_s28 = smov 32  }
  0x2c   : > { %v1597_v12 = vsel %vm10253_vm11, %v1595_v45, %v1596_v3  ;;  %821 = vst.msk [vmem:[#allocation2 + $0x1c] sm:$0xf] %vm332_vm0, %v520_v7  ;;  %v553_v13 = vor.u32 %v551_v56, %v10275_v5  ;;  %834 = vst [vmem:[#allocation2 + $0x30] sm:$0xf] %v833_v8  ;;  %v495_v14 = vrot.slane %v491_v6, 4  ;;  %v500_v20 = vshll.u32 %v455_v58, 16 }
  0x2d   : > { %v8796_v16 = vcombine.low %v1594_v61, %v1597_v12  ;;  %v494_v18 = vor.u32 %v492_v9, %v491_v6  ;;  %v499_v19 = vrot.slane %v497_v10, 7  ;;  %v345_v23 = vsel %vm10194_vm3, 0, %v344_v11  ;;  %v406_v8 = vld [vmem:[#allocation2 + $0x20] sm:$0x1] }
  0x2e   : > { %v554_v21 = vsel %vm10246_vm10, %v546_v4, %v553_v13  ;;  %v2314_v24 = vld [vmem:[#allocation2 + $0x24] sm:$0xf]  ;;  %346 = vst [vmem:[#allocation2] sm:$0x1] %v345_v23  ;;  %v1150_v28 = vshll.u32 %v10229_v17, 16  ;;  %v1154_v36 = vshrl.u32 %v10229_v17, 16 }
  0x2f   : > { %3112 = vrot.lane.b32.xlu1 %v8796_v16, %s10084_s26  ;;  %835 = vst.msk [vmem:[#allocation2 + $0x34] sm:$0xf] %vm332_vm0, %v554_v21  ;;  %v502_v25 = vor.u32 %v500_v20, %v499_v19  ;;  %v504_v26 = vrot.slane %v499_v19, 4  ;;  %v812_v27 = vsel %vm10238_vm9, %v494_v18, %v811_v15  ;;  %v1160_v37 = vshll.u32 %v10268_v60, 16  ;;  %v2745_v39 = vld [vmem:[#allocation2 + $0x24] sm:$0xe] }
  0x30   : > { %v10294_v29 = vld [vmem:[#allocation2 + $0x28] sm:$0xf]  ;;  %813 = vst [vmem:[#allocation2 + $0xc] sm:$0xf] %v812_v27  ;;  %v10297_v31 = vld [vmem:[#allocation2 + $0x18] sm:$0xf] }
  0x31   : > { %v8861_v30 = vcombine.low %v2314_v24, %v10294_v29  ;;  %v503_v34 = vsel %vm10246_vm10, %v495_v14, %v502_v25  ;;  %v816_v35 = vsel %vm10194_vm3, %v504_v26, %v815_v22  ;;  %vm1137_vm12 = vsmask.f32 3328  ;;  %v10332_v61 = vld [vmem:[#allocation2 + $0x18] sm:$0xf]  ;;  %v409_v26 = vld [vmem:[#allocation2 + $0x2c] sm:$0x1] }
  0x32   : > { %814 = vst.msk [vmem:[#allocation2 + $0x10] sm:$0xf] %vm332_vm0, %v503_v34  ;;  %817 = vst [vmem:[#allocation2 + $0x14] sm:$0x1] %v816_v35  ;;  %v2385_v40 = vshrl.u32 %v2314_v24, 16  ;;  %v2388_v41 = vshll.u32 %v2314_v24, 16 }
  0x33   : > { %3434 = vrot.lane.b32.xlu0 %v8861_v30, %s10084_s26  ;;  %v10307_v42 = vld [vmem:[#allocation2 + $0x1c] sm:$0xf]  ;;  %v10309_v43 = vrot.slane %v1150_v28, 5  ;;  %v538_v45 = vrot.slane %v10242_v33, 4  ;;  %v10314_v46 = vld [vmem:[#allocation2 + $0x30] sm:$0xf] }
  0x34   : > { %v8860_v17 = vcombine.low %v10297_v31, %v10307_v42  ;;  %vm1138_vm13 = vsmask.f32 7440  ;;  %v8749_v47 = vrot.slane %v2745_v39, 9  ;;  %v2817_v48 = vrot.slane %v10294_v29, 5  ;;  %v10337_v6 = vld [vmem:[#allocation2 + $0x1c] sm:$0xf] }
  0x35   : > { %v521_v49 = vrot.slane %v10261_v51, 4  ;;  %v1156_v50 = vrot.slane %v1154_v36, 4  ;;  %v555_v52 = vrot.slane %v10275_v5, 4  ;;  %v1089_v54 = vld [vmem:[#allocation2] sm:$0xf]  ;;  %v10322_v55 = vrot.slane %v1160_v37, 5  ;;  %vm10351_vm14 = vmor %vm1137_vm12, %vm1138_vm13 }
  0x36   : > { %3432 = vrot.lane.b32.xlu1 %v8860_v17, %s10084_s26  ;;  %v10320_v53 = vld [vmem:[#allocation2 + $0x34] sm:$0xf]  ;;  %v10324_v56 = vrot.slane %v2385_v40, 4  ;;  %v10326_v57 = vrot.slane %v2388_v41, 5  ;;  %v2361_v63 = vshrl.u32 %v10297_v31, 16  ;;  %v2364_v3 = vshll.u32 %v10297_v31, 16 }
  0x37   : > { %v8862_v58 = vcombine.low %v10314_v46, %v10320_v53  ;;  %v10330_v59 = vld [vmem:[#allocation2 + $0xc] sm:$0xf]  ;;  %v1157_v62 = vor.u32 %v1156_v50, %v10309_v43  ;;  %v1141_v7 = vshrl.u32 %v1089_v54, 16  ;;  %v10341_v9 = vsel %vm10253_vm11, %v8749_v47, %v2817_v48  ;;  %v2136_v20 = vld [vmem:[#allocation2 + $0x18] sm:$0xe] }
  0x38   : > { %v2135_v60 = vld [vmem:[#allocation2 + $0xc] sm:$0xe]  ;;  %v10343_v10 = vrot.slane %v2817_v48, 4  ;;  %v1144_v13 = vshll.u32 %v1089_v54, 16  ;;  %v2810_v14 = vrot.slane %v10307_v42, 5  ;;  %v1776_v18 = vshrl.u32 %v10332_v61, 16 }
  0x39   : > { %v8732_v4 = vrot.slane %v2135_v60, 9  ;;  %3436 = vrot.lane.b32.xlu0 %v8862_v58, %s10084_s26  ;;  %v1704_v11 = vld [vmem:[#allocation2 + $0x10] sm:$0xf]  ;;  %v1735_v12 = vld [vmem:[#allocation2 + $0x14] sm:$0x1]  ;;  %v1143_v22 = vrot.slane %v1141_v7, 4  ;;  %v8813_v34 = vcombine.low %v10332_v61, %v10337_v6 }
  0x3a   : > { %v8812_v15 = vcombine.low %v10330_v59, %v1704_v11  ;;  %v2201_v16 = vrot.slane %v1704_v11, 5  ;;  %v2204_v21 = vrot.slane %v1735_v12, 5  ;;  %v1146_v23 = vrot.slane %v1144_v13, 5  ;;  %v10355_v25 = vld [vmem:[#allocation2 + $0x10] sm:$0xf] }
  0x3b   : > { %v1158_v24 = vrot.slane %v1157_v62, 4  ;;  %v2409_v27 = vshrl.u32 %v10314_v46, 16  ;;  %v10363_v35 = vld [vmem:[#allocation2 + $0x14] sm:$0x1]  ;;  %v1525_v36 = vld [vmem:[#allocation2 + $0xc] sm:$0xe]  ;;  %v2391_v12 = vor.u32 %v10326_v57, %v10324_v56 }
  0x3c   : > { %3208 = vrot.lane.b32.xlu1 %v8812_v15, %s10085_s27  ;;  %v2202_v28 = vsel %vm10253_vm11, %v8732_v4, %v2201_v16  ;;  %v2203_v30 = vrot.slane %v2201_v16, 4  ;;  %v2412_v37 = vshll.u32 %v10314_v46, 16  ;;  %v1147_v39 = vor.u32 %v1146_v23, %v1143_v22  ;;  %v10369_v41 = vld [vmem:[#allocation2 + $0x24] sm:$0xf]  ;;  %v10371_v17 = vld [vmem:[#allocation2 + $0x28] sm:$0xf] }
  0x3d   : > { %v1163_v40 = vsel %vm10351_vm14, %v1158_v24, %v10322_v55  ;;  %v407_v47 = vsel %vm10206_vm5, 0, %v406_v8  ;;  %v8733_v50 = vrot.slane %v2136_v20, 9  ;;  %v2208_v54 = vrot.slane %v10337_v6, 5  ;;  %v10389_v6 = vld [vmem:[#allocation2 + $0x1c] sm:$0xf] }
  0x3e   : > { %v2205_v48 = vsel %vm10253_vm11, %v2203_v30, %v2204_v21  ;;  %408 = vst [vmem:[#allocation2 + $0x20] sm:$0x1] %v407_v47  ;;  %v8717_v58 = vrot.slane %v1525_v36, 9  ;;  %v1148_v62 = vrot.slane %v1147_v39, 4  ;;  %v1600_v4 = vrot.slane %v10355_v25, 5 }
  0x3f   : > { %v8844_v60 = vcombine.low %v2202_v28, %v2205_v48  ;;  %v1603_v55 = vrot.slane %v10363_v35, 5  ;;  %v10382_v7 = vrot.slane %v2810_v14, 4  ;;  %v8814_v8 = vcombine.low %v10369_v41, %v10371_v17  ;;  %v10399_v20 = vld [vmem:[#allocation2 + $0x24] sm:$0xe]  ;;  %v10402_v22 = vld [vmem:[#allocation2 + $0x18] sm:$0xe] }
  0x40   : > { %3210 = vrot.lane.b32.xlu1 %v8813_v34, %s10085_s27  ;;  %v410_v11 = vsel %vm10206_vm5, 0, %v409_v26  ;;  %v1153_v13 = vsel %vm10351_vm14, %v1148_v62, %v10309_v43  ;;  %v1601_v15 = vsel %vm10253_vm11, %v8717_v58, %v1600_v4  ;;  %v1602_v16 = vrot.slane %v1600_v4, 4  ;;  %v1091_v24 = vld [vmem:[#allocation2 + $0xc] sm:$0xf]  ;;  %v2744_v47 = vld [vmem:[#allocation2 + $0x18] sm:$0xe] }
  0x41   : > { %3336 = vrot.lane.b32.xlu0 %v8844_v60, %s10086_s28  ;;  %411 = vst [vmem:[#allocation2 + $0x2c] sm:$0x1] %v410_v11  ;;  %v2215_v21 = vrot.slane %v10371_v17, 5  ;;  %v2824_v56 = vrot.slane %v10320_v53, 5  ;;  %v8780_v57 = vcombine.low %v1153_v13, %v1163_v40  ;;  %v10407_v23 = vsel %vm10253_vm11, %v8733_v50, %v2208_v54  ;;  %v10519_v46 = vld [vmem:[#allocation2 + $0x34] sm:$0xf] }
  0x42   : > { %v2363_v43 = vrot.slane %v2361_v63, 4  ;;  %v10411_v26 = vrot.slane %v2208_v54, 4  ;;  %v1604_v28 = vsel %vm10253_vm11, %v1602_v16, %v1603_v55  ;;  %v1607_v30 = vrot.slane %v10389_v6, 5 }
  0x43   : > { %v2366_v34 = vrot.slane %v2364_v3, 5  ;;  %v8797_v36 = vcombine.low %v1601_v15, %v1604_v28  ;;  %v8734_v39 = vrot.slane %v10399_v20, 9  ;;  %v8718_v40 = vrot.slane %v10402_v22, 9  ;;  %v1093_v15 = vld [vmem:[#allocation2 + $0x18] sm:$0xf] }
  0x44   : > { %3212 = vrot.lane.b32.xlu1 %v8814_v8, %s10085_s27  ;;  %v2370_v63 = vshll.u32 %v10307_v42, 16  ;;  %v10425_v50 = vrot.slane %v2215_v21, 4  ;;  %v2374_v31 = vshrl.u32 %v10307_v42, 16  ;;  %v1165_v3 = vshrl.u32 %v1091_v24, 16 }
  0x45   : > { %3032 = vrot.lane.b32.xlu0 %v8780_v57, %s10086_s28  ;;  %v822_v48 = vld [vmem:[#allocation2 + $0x20] sm:$0x1]  ;;  %v2367_v54 = vor.u32 %v2366_v34, %v2363_v43  ;;  %v1168_v62 = vshll.u32 %v1091_v24, 16  ;;  %v1174_v4 = vshll.u32 %v10355_v25, 16  ;;  %v1609_v55 = vrot.slane %v1607_v30, 4 }
  0x46   : > { %v823_v58 = vsel %vm10194_vm3, %v521_v49, %v822_v48  ;;  %v10432_v60 = vrot.slane %v2370_v63, 5  ;;  %v2376_v8 = vrot.slane %v2374_v31, 4  ;;  %v8748_v11 = vrot.slane %v2744_v47, 9 }
  0x47   : > { %824 = vst [vmem:[#allocation2 + $0x20] sm:$0x1] %v823_v58  ;;  %v1167_v13 = vrot.slane %v1165_v3, 4  ;;  %v1170_v20 = vrot.slane %v1168_v62, 5  ;;  %v1176_v22 = vrot.slane %v1174_v4, 5  ;;  %v1178_v51 = vshrl.u32 %v10355_v25, 16 }
  0x48   : > { %3114 = vrot.lane.b32.xlu1 %v8797_v36, %s10084_s26  ;;  %v829_v16 = vld [vmem:[#allocation2 + $0x2c] sm:$0x1]  ;;  %v1184_v49 = vshll.u32 %v10363_v35, 16  ;;  %v10442_v43 = vrot.slane %v2367_v54, 4  ;;  %v2377_v24 = vor.u32 %v2376_v8, %v10432_v60  ;;  %v10445_v28 = vrot.slane %v2391_v12, 4 }
  0x49   : > { %v830_v57 = vsel %vm10194_vm3, %v538_v45, %v829_v16  ;;  %v1171_v34 = vor.u32 %v1170_v20, %v1167_v13  ;;  %v1180_v36 = vrot.slane %v1178_v51, 4  ;;  %v2394_v47 = vshll.u32 %v10294_v29, 16 }
  0x4a   : > { %831 = vst [vmem:[#allocation2 + $0x2c] sm:$0x1] %v830_v57  ;;  %v1186_v63 = vrot.slane %v1184_v49, 5  ;;  %vm987_vm15 = vcmask 261120   ;;  %v10448_v25 = vrot.slane %v2377_v24, 4  ;;  %v2398_v33 = vshrl.u32 %v10294_v29, 16 }
  0x4b   : > { %v1189_v35 = vshrl.u32 %v1093_v15, 16  ;;  %v1192_v48 = vshll.u32 %v1093_v15, 16  ;;  %v1172_v45 = vrot.slane %v1171_v34, 4  ;;  %v1181_v54 = vor.u32 %v1180_v36, %v1176_v22 }
  0x4c   : > { %v10451_v31 = vrot.slane %v2394_v47, 5  ;;  %v1198_v12 = vshll.u32 %v10389_v6, 16  ;;  %v2400_v3 = vrot.slane %v2398_v33, 4  ;;  %v1202_v4 = vshrl.u32 %v10389_v6, 16 }
  0x4d   : > { %v1191_v58 = vrot.slane %v1189_v35, 4  ;;  %v1194_v62 = vrot.slane %v1192_v48, 5  ;;  %v2216_v13 = vsel %vm10253_vm11, %v8734_v39, %v2215_v21  ;;  %v1608_v15 = vsel %vm10253_vm11, %v8718_v40, %v1607_v30  ;;  %v412_v48 = vld [vmem:[#allocation2 + $0x38] sm:$0x1] }
  0x4e   : > { %v1736_v8 = vld [vmem:[#allocation2 + $0x20] sm:$0x1]  ;;  %v2373_v20 = vsel %vm10351_vm14, %v10442_v43, %v10432_v60  ;;  %v2811_v6 = vsel %vm10253_vm11, %v8748_v11, %v2810_v14  ;;  %v1177_v21 = vsel %vm10351_vm14, %v1172_v45, %v1176_v22  ;;  %v1182_v39 = vrot.slane %v1181_v54, 4 }
  0x4f   : > { %v1123_v29 = vld [vmem:[#allocation2 + $0x20] sm:$0x1]  ;;  %v2211_v51 = vrot.slane %v1736_v8, 5  ;;  %v2401_v30 = vor.u32 %v2400_v3, %v10451_v31  ;;  %v1195_v40 = vor.u32 %v1194_v62, %v1191_v58  ;;  %v413_v8 = vsel %vm10206_vm5, 0, %v412_v48 }
  0x50   : > { %v2344_v16 = vld [vmem:[#allocation2 + $0x20] sm:$0x1]  ;;  %v1610_v17 = vrot.slane %v1123_v29, 5  ;;  %414 = vst [vmem:[#allocation2 + $0x38] sm:$0x1] %v413_v8  ;;  %vm3656_vm1 = vcmask 523264  }
  0x51   : > { %v2380_v49 = vshll.u32 %v2344_v16, 16  ;;  %v2813_v57 = vrot.slane %v2344_v16, 5  ;;  %v2212_v60 = vsel %vm10253_vm11, %v10411_v26, %v2211_v51  ;;  %v1737_v43 = vld [vmem:[#allocation2 + $0x2c] sm:$0x1]  ;;  %v1187_v26 = vsel %vm10351_vm14, %v1182_v39, %v1186_v63  ;;  %v1095_v51 = vld [vmem:[#allocation2 + $0x24] sm:$0xf] }
  0x52   : > { %v1611_v42 = vsel %vm10253_vm11, %v1609_v55, %v1610_v17  ;;  %v2345_v24 = vld [vmem:[#allocation2 + $0x2c] sm:$0x1]  ;;  %v8845_v22 = vcombine.low %v10407_v23, %v2212_v60  ;;  %v2218_v34 = vrot.slane %v1737_v43, 5  ;;  %v1200_v55 = vrot.slane %v1198_v12, 5 }
  0x53   : > { %v2382_v14 = vrot.slane %v2380_v49, 5  ;;  %v2814_v11 = vsel %vm10253_vm11, %v10382_v7, %v2813_v57  ;;  %v8798_v36 = vcombine.low %v1608_v15, %v1611_v42  ;;  %v2404_v35 = vshll.u32 %v2345_v24, 16  ;;  %v359_v57 = vld [vmem:[#allocation2 + $0x3c] sm:$0x1]  ;;  %v10525_v43 = vld [vmem:[#allocation2 + $0x2c] sm:$0x1] }
  0x54   : > { %v8892_v47 = vcombine.low %v2811_v6, %v2814_v11  ;;  %3338 = vrot.lane.b32.xlu0 %v8845_v22, %s10086_s28  ;;  %v2219_v7 = vsel %vm10253_vm11, %v10425_v50, %v2218_v34  ;;  %v8781_v23 = vcombine.low %v1177_v21, %v1187_v26  ;;  %v2402_v45 = vrot.slane %v2401_v30, 4  ;;  %v2746_v6 = vld [vmem:[#allocation2 + $0x30] sm:$0xe] }
  0x55   : > { %v2383_v33 = vsel %vm10351_vm14, %v10448_v25, %v2382_v14  ;;  %3116 = vrot.lane.b32.xlu1 %v8798_v36, %s10084_s26  ;;  %v2820_v54 = vrot.slane %v2345_v24, 5  ;;  %v8846_v25 = vcombine.low %v2216_v13, %v2219_v7  ;;  %v2406_v3 = vrot.slane %v2404_v35, 5  ;;  %v462_v14 = vld [vmem:[%s10224_s25 + $0x20] sm:$0xf]  ;;  %v463_v36 = vld [vmem:[%s10224_s25 + $0x24] sm:$0xf] }
  0x56   : > { %3868 = vst.msk [vmem:[#allocation3 + $0x10] sm:$0xff] %vm987_vm15, %v8892_v47  ;;  %v1196_v58 = vrot.slane %v1195_v40, 4  ;;  %v1204_v63 = vrot.slane %v1202_v4, 4  ;;  %v10494_v12 = vrot.slane %v2824_v56, 4  ;;  %v1208_v50 = vshll.u32 %v1123_v29, 16 }
  0x57   : > { %v2821_v62 = vsel %vm10253_vm11, %v10343_v10, %v2820_v54  ;;  %v2397_v13 = vsel %vm10351_vm14, %v10445_v28, %v10451_v31  ;;  %v2411_v16 = vrot.slane %v2409_v27, 4  ;;  %v8876_v10 = vcombine.low %v2373_v20, %v2383_v33  ;;  %v2138_v31 = vld [vmem:[#allocation2 + $0x30] sm:$0xe]  ;;  %v836_v48 = vld [vmem:[#allocation2 + $0x38] sm:$0x1] }
  0x58   : > { %v8893_v15 = vcombine.low %v10341_v9, %v2821_v62  ;;  %v1205_v4 = vor.u32 %v1204_v63, %v1200_v55  ;;  %3340 = vrot.lane.b32.xlu0 %v8846_v25, %s10086_s28  ;;  %v1210_v29 = vrot.slane %v1208_v50, 5  ;;  %v2414_v17 = vrot.slane %v2412_v37, 5  ;;  %v10521_v37 = vld [vmem:[#allocation2 + $0x28] sm:$0xf]  ;;  %v415_v25 = vld [vmem:[#allocation2 + $0x44] sm:$0x1] }
  0x59   : > { %3034 = vrot.lane.b32.xlu1 %v8781_v23, %s10086_s28  ;;  %v2418_v28 = vshll.u32 %v10320_v53, 16  ;;  %v2407_v9 = vsel %vm10351_vm14, %v2402_v45, %v2406_v3  ;;  %v1201_v27 = vsel %vm10351_vm14, %v1196_v58, %v1200_v55  ;;  %v2422_v20 = vshrl.u32 %v10320_v53, 16  ;;  %v1527_v55 = vld [vmem:[#allocation2 + $0x24] sm:$0xe] }
  0x5a   : > { %3871 = vst.msk [vmem:[#allocation3 + $0x28] sm:$0xff] %vm987_vm15, %v8893_v15  ;;  %v1206_v49 = vrot.slane %v1205_v4, 4  ;;  %v8750_v21 = vrot.slane %v2746_v6, 9  ;;  %v1213_v39 = vshrl.u32 %v1095_v51, 16  ;;  %v2415_v40 = vor.u32 %v2414_v17, %v2411_v16  ;;  %v1097_v16 = vld [vmem:[#allocation2 + $0x30] sm:$0xf] }
  0x5b   : > { %v8735_v60 = vrot.slane %v2138_v31, 9  ;;  %v1216_v42 = vshll.u32 %v1095_v51, 16  ;;  %v8877_v11 = vcombine.low %v2397_v13, %v2407_v9  ;;  %v10529_v22 = vrot.slane %v2418_v28, 5 }
  0x5c   : > { %v1211_v30 = vsel %vm10351_vm14, %v1206_v49, %v1210_v29  ;;  %3512 = vrot.lane.b32.xlu0 %v8876_v10, %s10085_s27  ;;  %v2424_v34 = vrot.slane %v2422_v20, 4  ;;  %v2222_v47 = vrot.slane %v10519_v46, 5  ;;  %v1215_v33 = vrot.slane %v1213_v39, 4 }
  0x5d   : > { %v8782_v24 = vcombine.low %v1201_v27, %v1211_v30  ;;  %v1218_v26 = vrot.slane %v1216_v42, 5  ;;  %v1222_v35 = vshll.u32 %v10521_v37, 16  ;;  %v10539_v7 = vsel %vm10253_vm11, %v8750_v21, %v2824_v56 }
  0x5e   : > { %v1226_v23 = vshrl.u32 %v10521_v37, 16  ;;  %v1232_v45 = vshll.u32 %v10525_v43, 16  ;;  %v360_v54 = vsel %vm10194_vm3, 0, %v359_v57  ;;  %v837_v3 = vsel %vm10194_vm3, %v555_v52, %v836_v48 }
  0x5f   : > { %3036 = vrot.lane.b32.xlu1 %v8782_v24, %s10086_s28  ;;  %v10549_v58 = vrot.slane %v2415_v40, 4  ;;  %v1219_v53 = vor.u32 %v1218_v26, %v1215_v33  ;;  %v1224_v63 = vrot.slane %v1222_v35, 5  ;;  %361 = vst [vmem:[#allocation2 + $0x3c] sm:$0x1] %v360_v54  ;;  %838 = vst [vmem:[#allocation2 + $0x38] sm:$0x1] %v837_v3  ;;  %v2425_v56 = vor.u32 %v2424_v34, %v10529_v22 }
  0x60   : > { %3514 = vrot.lane.b32.xlu0 %v8877_v11, %s10085_s27  ;;  %v1228_v62 = vrot.slane %v1226_v23, 4  ;;  %v557_v50 = vshrl.u32 %v462_v14, 16  ;;  %v560_v8 = vshll.u32 %v462_v14, 16  ;;  %v1234_v15 = vrot.slane %v1232_v45, 5  ;;  %v362_v45 = vld [vmem:[#allocation2 + $0x48] sm:$0x1] }
  0x61   : > { %v1220_v13 = vrot.slane %v1219_v53, 4  ;;  %v565_v4 = vshrl.u32 %v463_v36, 16  ;;  %v568_v5 = vshll.u32 %v463_v36, 16  ;;  %v8719_v51 = vrot.slane %v1527_v55, 9 }
  0x62   : > { %v1229_v6 = vor.u32 %v1228_v62, %v1224_v63  ;;  %v559_v52 = vrot.slane %v557_v50, 7  ;;  %v1614_v10 = vrot.slane %v10521_v37, 5  ;;  %v10556_v29 = vsel %vm10253_vm11, %v8735_v60, %v2222_v47 }
  0x63   : > { %v567_v17 = vrot.slane %v565_v4, 7  ;;  %v1617_v28 = vrot.slane %v10525_v43, 5  ;;  %v416_v31 = vsel %vm10206_vm5, 0, %v415_v25  ;;  %v1225_v9 = vsel %vm10351_vm14, %v1220_v13, %v1224_v63  ;;  %v10567_v43 = vld [vmem:[#allocation2 + $0x34] sm:$0xf] }
  0x64   : > { %v1230_v27 = vrot.slane %v1229_v6, 4  ;;  %v562_v49 = vor.u32 %v560_v8, %v559_v52  ;;  %v563_v20 = vrot.slane %v559_v52, 4  ;;  %417 = vst [vmem:[#allocation2 + $0x44] sm:$0x1] %v416_v31  ;;  %v2426_v57 = vrot.slane %v2425_v56, 4 }
  0x65   : > { %v2224_v21 = vrot.slane %v2222_v47, 4  ;;  %v570_v37 = vor.u32 %v568_v5, %v567_v17  ;;  %v1616_v39 = vrot.slane %v1614_v10, 4  ;;  %v1615_v60 = vsel %vm10253_vm11, %v8719_v51, %v1614_v10  ;;  %v10581_v63 = vld [vmem:[%s10224_s25 + $0x28] sm:$0xf]  ;;  %v10590_v8 = vld [vmem:[#allocation2 + $0x30] sm:$0xf] }
  0x66   : > { %v1235_v30 = vsel %vm10351_vm14, %v1230_v27, %v1234_v15  ;;  %v839_v40 = vld [vmem:[#allocation2 + $0x3c] sm:$0xf]  ;;  %v1237_v42 = vshrl.u32 %v1097_v16, 16  ;;  %v1240_v14 = vshll.u32 %v1097_v16, 16  ;;  %v2346_v11 = vld [vmem:[#allocation2 + $0x38] sm:$0x1]  ;;  %v2421_v56 = vsel %vm10351_vm14, %v10549_v58, %v10529_v22 }
  0x67   : > { %v1738_v24 = vld [vmem:[#allocation2 + $0x38] sm:$0x1]  ;;  %v8783_v34 = vcombine.low %v1225_v9, %v1235_v30  ;;  %v571_v36 = vsel %vm10246_vm10, %v563_v20, %v570_v37  ;;  %v840_v47 = vsel %vm10238_vm9, %v562_v49, %v839_v40  ;;  %v1618_v33 = vsel %vm10253_vm11, %v1616_v39, %v1617_v28  ;;  %v10594_v15 = vld [vmem:[%s10224_s25 + $0x2c] sm:$0xf] }
  0x68   : > { %v2428_v26 = vshll.u32 %v2346_v11, 16  ;;  %v2827_v35 = vrot.slane %v2346_v11, 5  ;;  %v2225_v55 = vrot.slane %v1738_v24, 5  ;;  %v572_v48 = vrot.slane %v567_v17, 4  ;;  %841 = vst [vmem:[#allocation2 + $0x3c] sm:$0xf] %v840_v47 }
  0x69   : > { %842 = vst.msk [vmem:[#allocation2 + $0x40] sm:$0xf] %vm332_vm0, %v571_v36  ;;  %v10576_v23 = vld [vmem:[#allocation2 + $0x38] sm:$0x1]  ;;  %3038 = vrot.lane.b32.xlu1 %v8783_v34, %s10086_s28  ;;  %v8799_v54 = vcombine.low %v1615_v60, %v1618_v33  ;;  %v1239_v25 = vrot.slane %v1237_v42, 4  ;;  %v1242_v3 = vrot.slane %v1240_v14, 5 }
  0x6a   : > { %v1246_v53 = vshll.u32 %v10567_v43, 16  ;;  %v2430_v62 = vrot.slane %v2428_v26, 5  ;;  %v2828_v50 = vsel %vm10253_vm11, %v10494_v12, %v2827_v35  ;;  %v1250_v13 = vshrl.u32 %v10567_v43, 16  ;;  %v9795_v14 = vld [vmem:[%s14375_s1 + $0x40] sm:$0xff]  }
  0x6b   : > { %v8894_v4 = vcombine.low %v10539_v7, %v2828_v50  ;;  %v2226_v5 = vsel %vm10253_vm11, %v2224_v21, %v2225_v55  ;;  %v843_v16 = vld [vmem:[#allocation2 + $0x44] sm:$0x1]  ;;  %v1243_v6 = vor.u32 %v1242_v3, %v1239_v25  ;;  %v1256_v51 = vshll.u32 %v10576_v23, 16  ;;  %9399 = vmatprep.subr.bf16.mxu0 %v9795_v14 }
  0x6c   : > { %v10599_v52 = vrot.slane %v1246_v53, 5  ;;  %v2431_v22 = vsel %vm10351_vm14, %v2426_v57, %v2430_v62  ;;  %v844_v12 = vsel %vm10194_vm3, %v572_v48, %v843_v16  ;;  %v1252_v58 = vrot.slane %v1250_v13, 4  ;;  %v9796_v25 = vld [vmem:[%s14375_s1] sm:$0xff]  }
  0x6d   : > { %v8878_v10 = vcombine.low %v2421_v56, %v2431_v22  ;;  %3874 = vst.msk [vmem:[#allocation3 + $0x40] sm:$0xff] %vm987_vm15, %v8894_v4  ;;  %3118 = vrot.lane.b32.xlu1 %v8799_v54, %s10084_s26  ;;  %845 = vst [vmem:[#allocation2 + $0x44] sm:$0x1] %v844_v12  ;;  %v8815_v7 = vcombine.low %v10590_v8, %v10519_v46  ;;  %v10610_v17 = vrot.slane %v1243_v6, 4  ;;  %v363_v28 = vsel %vm10194_vm3, 0, %v362_v45  ;;  %v9797_v6 = vld [vmem:[%s14375_s1 + $0x48] sm:$0xff]  }
  0x6e   : > { %v10614_v31 = vrot.slane %v1256_v51, 5  ;;  %364 = vst [vmem:[#allocation2 + $0x48] sm:$0x1] %v363_v28  ;;  %v574_v9 = vshrl.u32 %v10581_v63, 16  ;;  %v577_v27 = vshll.u32 %v10581_v63, 16  ;;  %v582_v49 = vshrl.u32 %v10594_v15, 16  ;;  %9400 = vmatpush3.bf16.msra.mxu0 %v9796_v25 }
  0x6f   : > { %3516 = vrot.lane.b32.xlu0 %v8878_v10, %s10085_s27  ;;  %v8847_v20 = vcombine.low %v10556_v29, %v2226_v5  ;;  %v2318_v57 = vld [vmem:[#allocation2 + $0x3c] sm:$0xf]  ;;  %v1253_v37 = vor.u32 %v1252_v58, %v10599_v52  ;;  %v1249_v42 = vsel %vm10351_vm14, %v10610_v17, %v10599_v52  ;;  %v1528_v10 = vld [vmem:[#allocation2 + $0x30] sm:$0xe]  ;;  %9401 = vmatprep.subr.bf16.mxu0 %v9797_v6  ;;  %vm3689_vm2 = vcmask 785408  }
  0x70   : > { %v2319_v46 = vld [vmem:[#allocation2 + $0x40] sm:$0xf]  ;;  %v2747_v21 = vld [vmem:[#allocation2 + $0x3c] sm:$0xe]  ;;  %v2433_v39 = vshrl.u32 %v2318_v57, 16  ;;  %v2436_v30 = vshll.u32 %v2318_v57, 16 }
  0x71   : > { %v2831_v40 = vrot.slane %v2319_v46, 5  ;;  %v10622_v60 = vld [vmem:[#allocation2 + $0x40] sm:$0xf]  ;;  %v2442_v29 = vshll.u32 %v2319_v46, 16  ;;  %v2446_v11 = vshrl.u32 %v2319_v46, 16  ;;  %v8751_v24 = vrot.slane %v2747_v21, 9  ;;  %3214 = vrot.lane.b32.xlu1 %v8815_v7, %s10085_s27 }
  0x72   : > { %v2139_v34 = vld [vmem:[#allocation2 + $0x3c] sm:$0xe]  ;;  %v2229_v36 = vrot.slane %v10622_v60, 5  ;;  %v8863_v47 = vcombine.low %v2318_v57, %v2319_v46  ;;  %v2435_v33 = vrot.slane %v2433_v39, 4  ;;  %v2438_v26 = vrot.slane %v2436_v30, 5  ;;  %v9798_v57 = vld [vmem:[%s14375_s1 + $0x8] sm:$0xff]  }
  0x73   : > { %v8736_v35 = vrot.slane %v2139_v34, 9  ;;  %3342 = vrot.lane.b32.xlu0 %v8847_v20, %s10086_s28  ;;  %v2833_v55 = vrot.slane %v2831_v40, 4  ;;  %v2444_v48 = vrot.slane %v2442_v29, 5  ;;  %v2448_v45 = vrot.slane %v2446_v11, 4  ;;  %v418_v20 = vld [vmem:[#allocation2 + $0x50] sm:$0x1]  ;;  %9402 = vmatpush3.bf16.msra.mxu0 %v9798_v57 }
  0x74   : > { %v2231_v54 = vrot.slane %v2229_v36, 4  ;;  %v2347_v3 = vld [vmem:[#allocation2 + $0x44] sm:$0x1]  ;;  %v2439_v53 = vor.u32 %v2438_v26, %v2435_v33  ;;  %v2832_v63 = vsel %vm10253_vm11, %v8751_v24, %v2831_v40  ;;  %v1254_v62 = vrot.slane %v1253_v37, 4  ;;  %v1099_v37 = vld [vmem:[#allocation2 + $0x3c] sm:$0xf] }
  0x75   : > { %v1739_v56 = vld [vmem:[#allocation2 + $0x44] sm:$0x1]  ;;  %v576_v50 = vrot.slane %v574_v9, 7  ;;  %v2449_v13 = vor.u32 %v2448_v45, %v2444_v48  ;;  %v2452_v4 = vshll.u32 %v2347_v3, 16  ;;  %v2834_v5 = vrot.slane %v2347_v3, 5  ;;  %v9800_v6 = vld [vmem:[%s14375_s1 + $0x50] sm:$0xff]  }
  0x76   : > { %v2232_v16 = vrot.slane %v1739_v56, 5  ;;  %v2440_v52 = vrot.slane %v2439_v53, 4  ;;  %v2230_v22 = vsel %vm10253_vm11, %v8736_v35, %v2229_v36  ;;  %v1259_v12 = vsel %vm10351_vm14, %v1254_v62, %v10614_v31  ;;  %v846_v51 = vld [vmem:[#allocation2 + $0x48] sm:$0xf]  ;;  %v10666_v29 = vld [vmem:[#allocation2 + $0x40] sm:$0xf]  ;;  %9403 = vmatprep.subr.bf16.mxu0 %v9800_v6 }
  0x77   : > { %v579_v58 = vor.u32 %v577_v27, %v576_v50  ;;  %3438 = vrot.lane.b32.xlu0 %v8863_v47, %s10084_s26  ;;  %v2450_v7 = vrot.slane %v2449_v13, 4  ;;  %v2454_v17 = vrot.slane %v2452_v4, 5  ;;  %v2835_v28 = vsel %vm10253_vm11, %v2833_v55, %v2834_v5  ;;  %v10679_v47 = vld [vmem:[#allocation2 + $0x44] sm:$0x1]  ;;  %v365_v33 = vld [vmem:[#allocation2 + $0x54] sm:$0x1] }
  0x78   : > { %v580_v9 = vrot.slane %v576_v50, 4  ;;  %v2445_v31 = vsel %vm10351_vm14, %v2440_v52, %v2444_v48  ;;  %v8895_v27 = vcombine.low %v2832_v63, %v2835_v28  ;;  %v2233_v46 = vsel %vm10253_vm11, %v2231_v54, %v2232_v16  ;;  %v10682_v26 = vld [vmem:[%s10224_s25 + $0x30] sm:$0xf]  ;;  %v10690_v48 = vld [vmem:[#allocation2 + $0x3c] sm:$0xf] }
  0x79   : > { %v8784_v21 = vcombine.low %v1249_v42, %v1259_v12  ;;  %v2455_v39 = vsel %vm10351_vm14, %v2450_v7, %v2454_v17  ;;  %v10661_v30 = vrot.slane %v582_v49, 7  ;;  %v585_v40 = vshll.u32 %v10594_v15, 16 }
  0x7a   : > { %v847_v14 = vsel %vm10238_vm9, %v579_v58, %v846_v51  ;;  %v8879_v11 = vcombine.low %v2445_v31, %v2455_v39  ;;  %3877 = vst.msk [vmem:[#allocation3 + $0x58] sm:$0xff] %vm987_vm15, %v8895_v27  ;;  %v8720_v42 = vrot.slane %v1528_v10, 9  ;;  %v1621_v24 = vrot.slane %v10567_v43, 5 }
  0x7b   : > { %3040 = vrot.lane.b32.xlu1 %v8784_v21, %s10086_s28  ;;  %848 = vst [vmem:[#allocation2 + $0x48] sm:$0xf] %v847_v14  ;;  %v1624_v49 = vrot.slane %v10576_v23, 5  ;;  %v10674_v15 = vrot.slane %v1776_v18, 4  ;;  %v587_v34 = vor.u32 %v585_v40, %v10661_v30  ;;  %v419_v36 = vsel %vm10206_vm5, 0, %v418_v20 }
  0x7c   : > { %v1779_v35 = vshll.u32 %v10332_v61, 16  ;;  %3518 = vrot.lane.b32.xlu0 %v8879_v11, %s10085_s27  ;;  %v8848_v43 = vcombine.low %v2230_v22, %v2233_v46  ;;  %v1622_v23 = vsel %vm10253_vm11, %v8720_v42, %v1621_v24  ;;  %v1623_v18 = vrot.slane %v1621_v24, 4  ;;  %420 = vst [vmem:[#allocation2 + $0x50] sm:$0x1] %v419_v36 }
  0x7d   : > { %v588_v55 = vsel %vm10246_vm10, %v580_v9, %v587_v34  ;;  %v1261_v45 = vshrl.u32 %v1099_v37, 16  ;;  %v1264_v54 = vshll.u32 %v1099_v37, 16  ;;  %v589_v25 = vrot.slane %v10661_v30, 4 }
  0x7e   : > { %849 = vst.msk [vmem:[#allocation2 + $0x4c] sm:$0xf] %vm332_vm0, %v588_v55  ;;  %v1625_v61 = vsel %vm10253_vm11, %v1623_v18, %v1624_v49  ;;  %v1270_v3 = vshll.u32 %v10666_v29, 16  ;;  %v1274_v53 = vshrl.u32 %v10666_v29, 16  ;;  %v1280_v50 = vshll.u32 %v10679_v47, 16 }
  0x7f   : > { %v8800_v63 = vcombine.low %v1622_v23, %v1625_v61  ;;  %v1263_v56 = vrot.slane %v1261_v45, 4  ;;  %v1266_v62 = vrot.slane %v1264_v54, 5  ;;  %v366_v5 = vsel %vm10194_vm3, 0, %v365_v33  ;;  %v1529_v45 = vld [vmem:[#allocation2 + $0x3c] sm:$0xe] }
  0x80   : > { %3344 = vrot.lane.b32.xlu0 %v8848_v43, %s10086_s28  ;;  %v1272_v13 = vrot.slane %v1270_v3, 5  ;;  %v1276_v4 = vrot.slane %v1274_v53, 4  ;;  %v591_v16 = vshrl.u32 %v10682_v26, 16  ;;  %v1752_v52 = vshrl.u32 %v10330_v59, 16  ;;  %367 = vst [vmem:[#allocation2 + $0x54] sm:$0x1] %v366_v5 }
  0x81   : > { %v1800_v22 = vshrl.u32 %v10369_v41, 16  ;;  %3120 = vrot.lane.b32.xlu1 %v8800_v63, %s10084_s26  ;;  %v8816_v58 = vcombine.low %v10690_v48, %v10622_v60  ;;  %v1267_v51 = vor.u32 %v1266_v62, %v1263_v56  ;;  %v1755_v10 = vshll.u32 %v10330_v59, 16  ;;  %v9801_v60 = vld [vmem:[%s14375_s1 + $0x10] sm:$0xff]   ;;  %v421_v54 = vld [vmem:[#allocation2 + $0x5c] sm:$0x1] }
  0x82   : > { %v2320_v12 = vld [vmem:[#allocation2 + $0x48] sm:$0xf]  ;;  %v10712_v7 = vrot.slane %v1779_v35, 5  ;;  %v1277_v31 = vor.u32 %v1276_v4, %v1272_v13  ;;  %v1282_v27 = vrot.slane %v1280_v50, 5  ;;  %v10714_v46 = vrot.slane %v591_v16, 7  ;;  %9404 = vmatpush3.bf16.msra.mxu0 %v9801_v60  ;;  %v9802_v4 = vld [vmem:[%s14375_s1 + $0x58] sm:$0xff]  }
  0x83   : > { %v2457_v17 = vshrl.u32 %v2320_v12, 16  ;;  %v2460_v28 = vshll.u32 %v2320_v12, 16  ;;  %v850_v9 = vld [vmem:[#allocation2 + $0x50] sm:$0x1]  ;;  %v2748_v20 = vld [vmem:[#allocation2 + $0x48] sm:$0xe]  ;;  %9405 = vmatprep.subr.bf16.mxu0 %v9802_v4 }
  0x84   : > { %v1268_v57 = vrot.slane %v1267_v51, 4  ;;  %v851_v21 = vsel %vm10194_vm3, %v589_v25, %v850_v9  ;;  %v10721_v30 = vld [vmem:[#allocation2 + $0x48] sm:$0xe]  ;;  %v594_v40 = vshll.u32 %v10682_v26, 16  ;;  %v10724_v14 = vrot.slane %v1752_v52, 4 }
  0x85   : > { %v2459_v37 = vrot.slane %v2457_v17, 4  ;;  %v2462_v39 = vrot.slane %v2460_v28, 5  ;;  %v2321_v11 = vld [vmem:[#allocation2 + $0x4c] sm:$0xf]  ;;  %852 = vst [vmem:[#allocation2 + $0x50] sm:$0x1] %v851_v21  ;;  %3216 = vrot.lane.b32.xlu1 %v8816_v58, %s10085_s27 }
  0x86   : > { %v10727_v42 = vld [vmem:[#allocation2 + $0x4c] sm:$0xf]  ;;  %v1273_v24 = vsel %vm10351_vm14, %v1268_v57, %v1272_v13  ;;  %v1278_v49 = vrot.slane %v1277_v31, 4  ;;  %v2838_v34 = vrot.slane %v2321_v11, 5  ;;  %v8864_v36 = vcombine.low %v2320_v12, %v2321_v11  ;;  %v467_v43 = vld [vmem:[%s10224_s25 + $0x34] sm:$0xf] }
  0x87   : > { %v2463_v33 = vor.u32 %v2462_v39, %v2459_v37  ;;  %v2466_v35 = vshll.u32 %v2321_v11, 16  ;;  %v2470_v23 = vshrl.u32 %v2321_v11, 16  ;;  %v2236_v26 = vrot.slane %v10727_v42, 5  ;;  %v853_v63 = vld [vmem:[#allocation2 + $0x54] sm:$0xf]  ;;  %v9803_v12 = vld [vmem:[%s14375_s1 + $0x18] sm:$0xff]  }
  0x88   : > { %v1283_v18 = vsel %vm10351_vm14, %v1278_v49, %v1282_v27  ;;  %v596_v55 = vor.u32 %v594_v40, %v10714_v46  ;;  %3440 = vrot.lane.b32.xlu0 %v8864_v36, %s10084_s26  ;;  %v8752_v61 = vrot.slane %v2748_v20, 9  ;;  %v8737_v3 = vrot.slane %v10721_v30, 9  ;;  %9406 = vmatpush3.bf16.msra.mxu0 %v9803_v12  ;;  %v10760_v40 = vld [vmem:[#allocation2 + $0x48] sm:$0xf]  ;;  %v9804_v11 = vld [vmem:[%s14375_s1 + $0x60] sm:$0xff]  }
  0x89   : > { %v2468_v25 = vrot.slane %v2466_v35, 5  ;;  %v597_v53 = vrot.slane %v10714_v46, 4  ;;  %v2840_v56 = vrot.slane %v2838_v34, 4  ;;  %v2464_v62 = vrot.slane %v2463_v33, 4  ;;  %v1101_v36 = vld [vmem:[#allocation2 + $0x48] sm:$0xf]  ;;  %9407 = vmatprep.subr.bf16.mxu0 %v9804_v11 }
  0x8a   : > { %v2472_v50 = vrot.slane %v2470_v23, 4  ;;  %v8785_v13 = vcombine.low %v1273_v24, %v1283_v18  ;;  %v2238_v5 = vrot.slane %v2236_v26, 4  ;;  %v599_v16 = vshrl.u32 %v467_v43, 16  ;;  %v9805_v24 = vld [vmem:[%s14375_s1 + $0x20] sm:$0xff]   ;;  %v10774_v33 = vld [vmem:[#allocation2 + $0x4c] sm:$0xf] }
  0x8b   : > { %v602_v6 = vshll.u32 %v467_v43, 16  ;;  %v854_v52 = vsel %vm10238_vm9, %v596_v55, %v853_v63  ;;  %v8721_v51 = vrot.slane %v1529_v45, 9  ;;  %v1628_v17 = vrot.slane %v10666_v29, 5  ;;  %v468_v4 = vld [vmem:[%s10224_s25 + $0x38] sm:$0xf] }
  0x8c   : > { %v2473_v58 = vor.u32 %v2472_v50, %v2468_v25  ;;  %3042 = vrot.lane.b32.xlu1 %v8785_v13, %s10086_s28  ;;  %855 = vst [vmem:[#allocation2 + $0x54] sm:$0xf] %v854_v52  ;;  %v1631_v28 = vrot.slane %v10679_v47, 5  ;;  %v2348_v9 = vld [vmem:[#allocation2 + $0x50] sm:$0x1]  ;;  %v2839_v20 = vsel %vm10253_vm11, %v8752_v61, %v2838_v34  ;;  %v601_v31 = vrot.slane %v599_v16, 7  ;;  %9408 = vmatpush3.bf16.msra.mxu0 %v9805_v24 }
  0x8d   : > { %v1740_v57 = vld [vmem:[#allocation2 + $0x50] sm:$0x1]  ;;  %v422_v27 = vsel %vm10206_vm5, 0, %v421_v54  ;;  %v2476_v60 = vshll.u32 %v2348_v9, 16  ;;  %v2841_v21 = vrot.slane %v2348_v9, 5  ;;  %v10756_v29 = vrot.slane %v1755_v10, 5 }
  0x8e   : > { %v2474_v46 = vrot.slane %v2473_v58, 4  ;;  %v2239_v37 = vrot.slane %v1740_v57, 5  ;;  %423 = vst [vmem:[#allocation2 + $0x5c] sm:$0x1] %v422_v27  ;;  %v604_v47 = vor.u32 %v602_v6, %v601_v31  ;;  %v1629_v39 = vsel %vm10253_vm11, %v8721_v51, %v1628_v17  ;;  %v10790_v13 = vld [vmem:[#allocation2 + $0x50] sm:$0x1] }
  0x8f   : > { %v1630_v30 = vrot.slane %v1628_v17, 4  ;;  %v2469_v59 = vsel %vm10351_vm14, %v2464_v62, %v2468_v25  ;;  %v2478_v10 = vrot.slane %v2476_v60, 5  ;;  %v2842_v49 = vsel %vm10253_vm11, %v2840_v56, %v2841_v21 }
  0x90   : > { %v2237_v34 = vsel %vm10253_vm11, %v8737_v3, %v2236_v26  ;;  %v8896_v35 = vcombine.low %v2839_v20, %v2842_v49  ;;  %v2240_v43 = vsel %vm10253_vm11, %v2238_v5, %v2239_v37  ;;  %v605_v23 = vsel %vm10246_vm10, %v597_v53, %v604_v47  ;;  %v368_v53 = vld [vmem:[#allocation2 + $0x60] sm:$0x1] }
  0x91   : > { %v1632_v18 = vsel %vm10253_vm11, %v1630_v30, %v1631_v28  ;;  %v1803_v55 = vshll.u32 %v10369_v41, 16  ;;  %v2479_v45 = vsel %vm10351_vm14, %v2474_v46, %v2478_v10  ;;  %v606_v26 = vrot.slane %v601_v31, 4  ;;  %856 = vst.msk [vmem:[#allocation2 + $0x58] sm:$0xf] %vm332_vm0, %v605_v23  ;;  %v469_v23 = vld [vmem:[%s10224_s25 + $0x3c] sm:$0xf] }
  0x92   : > { %v8801_v54 = vcombine.low %v1629_v39, %v1632_v18  ;;  %v8880_v25 = vcombine.low %v2469_v59, %v2479_v45  ;;  %3880 = vst.msk [vmem:[#allocation3 + $0x70] sm:$0xff] %vm987_vm15, %v8896_v35  ;;  %v8849_v63 = vcombine.low %v2237_v34, %v2240_v43  ;;  %v8817_v50 = vcombine.low %v10760_v40, %v10727_v42 }
  0x93   : > { %v2322_v61 = vld [vmem:[#allocation2 + $0x54] sm:$0xf]  ;;  %v1285_v6 = vshrl.u32 %v1101_v36, 16  ;;  %v1288_v52 = vshll.u32 %v1101_v36, 16  ;;  %v1294_v12 = vshll.u32 %v10774_v33, 16  ;;  %v1298_v9 = vshrl.u32 %v10774_v33, 16 }
  0x94   : > { %v2749_v3 = vld [vmem:[#allocation2 + $0x54] sm:$0xe]  ;;  %v2481_v56 = vshrl.u32 %v2322_v61, 16  ;;  %v2484_v62 = vshll.u32 %v2322_v61, 16  ;;  %3122 = vrot.lane.b32.xlu1 %v8801_v54, %s10084_s26  ;;  %3520 = vrot.lane.b32.xlu0 %v8880_v25, %s10085_s27  ;;  %v1304_v31 = vshll.u32 %v10790_v13, 16  ;;  %v369_v60 = vsel %vm10194_vm3, 0, %v368_v53 }
  0x95   : > { %v857_v5 = vld [vmem:[#allocation2 + $0x5c] sm:$0x1]  ;;  %v8753_v16 = vrot.slane %v2749_v3, 9  ;;  %v2141_v28 = vld [vmem:[#allocation2 + $0x54] sm:$0xe]  ;;  %v1287_v42 = vrot.slane %v1285_v6, 4 }
  0x96   : > { %v858_v58 = vsel %vm10194_vm3, %v606_v26, %v857_v5  ;;  %v2483_v51 = vrot.slane %v2481_v56, 4  ;;  %v2486_v17 = vrot.slane %v2484_v62, 5  ;;  %v1290_v20 = vrot.slane %v1288_v52, 5  ;;  %370 = vst [vmem:[#allocation2 + $0x60] sm:$0x1] %v369_v60  ;;  %v9807_v56 = vld [vmem:[%s14375_s1 + $0x68] sm:$0xff]  }
  0x97   : > { %859 = vst [vmem:[#allocation2 + $0x5c] sm:$0x1] %v858_v58  ;;  %v1296_v57 = vrot.slane %v1294_v12, 5  ;;  %v1300_v46 = vrot.slane %v1298_v9, 4  ;;  %v608_v21 = vshrl.u32 %v468_v4, 16  ;;  %v8738_v39 = vrot.slane %v2141_v28, 9  ;;  %9409 = vmatprep.subr.bf16.mxu0 %v9807_v56 }
  0x98   : > { %v2487_v27 = vor.u32 %v2486_v17, %v2483_v51  ;;  %3218 = vrot.lane.b32.xlu1 %v8817_v50, %s10085_s27  ;;  %3346 = vrot.lane.b32.xlu0 %v8849_v63, %s10086_s28  ;;  %v2323_v37 = vld [vmem:[#allocation2 + $0x58] sm:$0xf]  ;;  %v1291_v30 = vor.u32 %v1290_v20, %v1287_v42  ;;  %v611_v11 = vshll.u32 %v468_v4, 16  ;;  %v1306_v26 = vrot.slane %v1304_v31, 5  ;;  %v1530_v63 = vld [vmem:[#allocation2 + $0x48] sm:$0xe] }
  0x99   : > { %v10803_v47 = vld [vmem:[#allocation2 + $0x58] sm:$0xf]  ;;  %v2845_v24 = vrot.slane %v2323_v37, 5  ;;  %v8865_v59 = vcombine.low %v2322_v61, %v2323_v37  ;;  %v2490_v49 = vshll.u32 %v2323_v37, 16  ;;  %v2494_v34 = vshrl.u32 %v2323_v37, 16  ;;  %v9808_v28 = vld [vmem:[%s14375_s1 + $0x28] sm:$0xff]  }
  0x9a   : > { %v2488_v10 = vrot.slane %v2487_v27, 4  ;;  %v2243_v36 = vrot.slane %v10803_v47, 5  ;;  %v1292_v35 = vrot.slane %v1291_v30, 4  ;;  %v1301_v43 = vor.u32 %v1300_v46, %v1296_v57  ;;  %v424_v17 = vld [vmem:[#allocation2 + $0x68] sm:$0x1]  ;;  %9410 = vmatpush3.bf16.msra.mxu0 %v9808_v28 }
  0x9b   : > { %v2847_v18 = vrot.slane %v2845_v24, 4  ;;  %v2492_v45 = vrot.slane %v2490_v49, 5  ;;  %v610_v54 = vrot.slane %v608_v21, 7  ;;  %v2496_v25 = vrot.slane %v2494_v34, 4  ;;  %v1103_v37 = vld [vmem:[#allocation2 + $0x54] sm:$0xf] }
  0x9c   : > { %3442 = vrot.lane.b32.xlu0 %v8865_v59, %s10084_s26  ;;  %v2846_v3 = vsel %vm10253_vm11, %v8753_v16, %v2845_v24  ;;  %v10812_v61 = vsel %vm10253_vm11, %v8738_v39, %v2243_v36  ;;  %v2245_v53 = vrot.slane %v2243_v36, 4  ;;  %v1297_v5 = vsel %vm10351_vm14, %v1292_v35, %v1296_v57  ;;  %v9809_v36 = vld [vmem:[%s14375_s1 + $0x70] sm:$0xff]   ;;  %v9814_v28 = vld [vmem:[%s14375_s1 + $0x88] sm:$0xff]  }
  0x9d   : > { %v2493_v50 = vsel %vm10351_vm14, %v2488_v10, %v2492_v45  ;;  %v1302_v6 = vrot.slane %v1301_v43, 4  ;;  %v613_v16 = vor.u32 %v611_v11, %v610_v54  ;;  %v2497_v52 = vor.u32 %v2496_v25, %v2492_v45  ;;  %v860_v27 = vld [vmem:[#allocation2 + $0x60] sm:$0xf]  ;;  %v9810_v45 = vld [vmem:[%s14375_s1 + $0x30] sm:$0xff]   ;;  %9411 = vmatprep.subr.bf16.mxu0 %v9809_v36 }
  0x9e   : > { %v2349_v62 = vld [vmem:[#allocation2 + $0x5c] sm:$0x1]  ;;  %v614_v42 = vrot.slane %v610_v54, 4  ;;  %v616_v20 = vshrl.u32 %v469_v23, 16  ;;  %v619_v31 = vshll.u32 %v469_v23, 16  ;;  %v8722_v21 = vrot.slane %v1530_v63, 9  ;;  %9412 = vmatpush3.bf16.msra.mxu0 %v9810_v45 }
  0x9f   : > { %v1741_v4 = vld [vmem:[#allocation2 + $0x5c] sm:$0x1]  ;;  %v2500_v12 = vshll.u32 %v2349_v62, 16  ;;  %v2848_v58 = vrot.slane %v2349_v62, 5  ;;  %v1307_v9 = vsel %vm10351_vm14, %v1302_v6, %v1306_v26  ;;  %v2498_v57 = vrot.slane %v2497_v52, 4  ;;  %v9811_v26 = vld [vmem:[%s14375_s1 + $0x80] sm:$0xff]  }
  0xa0   : > { %v2246_v51 = vrot.slane %v1741_v4, 5  ;;  %v8786_v11 = vcombine.low %v1297_v5, %v1307_v9  ;;  %v10830_v24 = vrot.slane %v616_v20, 7  ;;  %v861_v10 = vsel %vm10238_vm9, %v613_v16, %v860_v27  ;;  %v10867_v4 = vld [vmem:[#allocation2 + $0x54] sm:$0xf]  ;;  %v10871_v6 = vld [vmem:[%s10224_s25 + $0x40] sm:$0xf]  ;;  %9659 = vmatprep.subr.bf16.mxu1 %v9811_v26 }
  0xa1   : > { %v2502_v46 = vrot.slane %v2500_v12, 5  ;;  %v2849_v60 = vsel %vm10253_vm11, %v2847_v18, %v2848_v58  ;;  %v1635_v49 = vrot.slane %v10774_v33, 5  ;;  %v1638_v34 = vrot.slane %v10790_v13, 5  ;;  %862 = vst [vmem:[#allocation2 + $0x60] sm:$0xf] %v861_v10  ;;  %9660 = vmatpush3.bf16.msra.mxu1 %v9811_v26 }
  0xa2   : > { %v8897_v39 = vcombine.low %v2846_v3, %v2849_v60  ;;  %v2247_v30 = vsel %vm10253_vm11, %v2245_v53, %v2246_v51  ;;  %v1824_v35 = vshrl.u32 %v10590_v8, 16  ;;  %3044 = vrot.lane.b32.xlu1 %v8786_v11, %s10086_s28  ;;  %v621_v23 = vor.u32 %v619_v31, %v10830_v24  ;;  %v10847_v33 = vld [vmem:[#allocation2 + $0x58] sm:$0xf]  ;;  %v371_v13 = vld [vmem:[#allocation2 + $0x6c] sm:$0x1]  ;;  %9661 = vmatprep.subr.bf16.mxu1 %v9814_v28 }
  0xa3   : > { %v2503_v59 = vsel %vm10351_vm14, %v2498_v57, %v2502_v46  ;;  %v425_v18 = vsel %vm10206_vm5, 0, %v424_v17  ;;  %v1827_v54 = vshll.u32 %v10590_v8, 16  ;;  %v1636_v25 = vsel %vm10253_vm11, %v8722_v21, %v1635_v49  ;;  %v10858_v53 = vld [vmem:[#allocation2 + $0x5c] sm:$0x1]  ;;  %v10874_v16 = vld [vmem:[%s10224_s25 + $0x44] sm:$0xf] }
  0xa4   : > { %v8881_v43 = vcombine.low %v2493_v50, %v2503_v59  ;;  %3883 = vst.msk [vmem:[#allocation3 + $0x88] sm:$0xff] %vm987_vm15, %v8897_v39  ;;  %v1637_v3 = vrot.slane %v1635_v49, 4  ;;  %426 = vst [vmem:[#allocation2 + $0x68] sm:$0x1] %v425_v18  ;;  %v8850_v63 = vcombine.low %v10812_v61, %v2247_v30  ;;  %v622_v56 = vsel %vm10246_vm10, %v614_v42, %v621_v23  ;;  %v9812_v61 = vld [vmem:[%s14375_s1 + $0x78] sm:$0xff]  }
  0xa5   : > { %v1309_v62 = vshrl.u32 %v1103_v37, 16  ;;  %v1312_v50 = vshll.u32 %v1103_v37, 16  ;;  %863 = vst.msk [vmem:[#allocation2 + $0x64] sm:$0xf] %vm332_vm0, %v622_v56  ;;  %v1318_v5 = vshll.u32 %v10847_v33, 16  ;;  %v1322_v51 = vshrl.u32 %v10847_v33, 16  ;;  %9413 = vmatprep.subr.bf16.mxu0 %v9812_v61  ;;  %9662 = vmatpush3.bf16.msra.mxu1 %v9814_v28 }
  0xa6   : > { %3522 = vrot.lane.b32.xlu0 %v8881_v43, %s10085_s27  ;;  %v1639_v8 = vsel %vm10253_vm11, %v1637_v3, %v1638_v34  ;;  %v9813_v17 = vld [vmem:[%s14375_s1 + $0x38] sm:$0xff]   ;;  %v623_v9 = vrot.slane %v10830_v24, 4  ;;  %v1328_v20 = vshll.u32 %v10858_v53, 16  ;;  %v372_v31 = vsel %vm10194_vm3, 0, %v371_v13 }
  0xa7   : > { %v8802_v52 = vcombine.low %v1636_v25, %v1639_v8  ;;  %v1311_v12 = vrot.slane %v1309_v62, 4  ;;  %v1314_v58 = vrot.slane %v1312_v50, 5  ;;  %v1320_v42 = vrot.slane %v1318_v5, 5  ;;  %373 = vst [vmem:[#allocation2 + $0x6c] sm:$0x1] %v372_v31  ;;  %9414 = vmatpush3.bf16.msra.mxu0 %v9813_v17 }
  0xa8   : > { %v10892_v27 = vrot.slane %v1800_v22, 4  ;;  %v8818_v57 = vcombine.low %v10867_v4, %v10803_v47  ;;  %v1324_v60 = vrot.slane %v1322_v51, 4  ;;  %v10900_v21 = vrot.slane %v1803_v55, 5  ;;  %v2324_v30 = vld [vmem:[#allocation2 + $0x60] sm:$0xf] }
  0xa9   : > { %3124 = vrot.lane.b32.xlu1 %v8802_v52, %s10084_s26  ;;  %v1315_v46 = vor.u32 %v1314_v58, %v1311_v12  ;;  %v10902_v37 = vrot.slane %v1824_v35, 4  ;;  %v10904_v39 = vrot.slane %v1827_v54, 5  ;;  %v1848_v22 = vshrl.u32 %v10690_v48, 16  ;;  %v2750_v55 = vld [vmem:[#allocation2 + $0x60] sm:$0xe] }
  0xaa   : > { %3348 = vrot.lane.b32.xlu0 %v8850_v63, %s10086_s28  ;;  %v2505_v11 = vshrl.u32 %v2324_v30, 16  ;;  %v2508_v24 = vshll.u32 %v2324_v30, 16  ;;  %v625_v47 = vshrl.u32 %v10871_v6, 16  ;;  %v633_v10 = vshrl.u32 %v10874_v16, 16  ;;  %v2142_v25 = vld [vmem:[#allocation2 + $0x60] sm:$0xe] }
  0xab   : > { %v864_v59 = vld [vmem:[#allocation2 + $0x68] sm:$0x1]  ;;  %v1316_v49 = vrot.slane %v1315_v46, 4  ;;  %v1325_v34 = vor.u32 %v1324_v60, %v1320_v42  ;;  %v1330_v36 = vrot.slane %v1328_v20, 5  ;;  %v8754_v5 = vrot.slane %v2750_v55, 9  ;;  %v3919_v46 = vld [vmem:[#allocation3 + $0x28] sm:$0xff] }
  0xac   : > { %v865_v41 = vsel %vm10194_vm3, %v623_v9, %v864_v59  ;;  %v2325_v35 = vld [vmem:[#allocation2 + $0x64] sm:$0xf]  ;;  %v2507_v43 = vrot.slane %v2505_v11, 4  ;;  %v2510_v23 = vrot.slane %v2508_v24, 5  ;;  %v628_v61 = vshll.u32 %v10871_v6, 16  ;;  %v3916_v9 = vld [vmem:[#allocation3 + $0x10] sm:$0xff] }
  0xad   : > { %866 = vst [vmem:[#allocation2 + $0x68] sm:$0x1] %v865_v41  ;;  %3220 = vrot.lane.b32.xlu1 %v8818_v57, %s10085_s27  ;;  %v10912_v18 = vld [vmem:[#allocation2 + $0x64] sm:$0xf]  ;;  %v2852_v13 = vrot.slane %v2325_v35, 5  ;;  %v8866_v45 = vcombine.low %v2324_v30, %v2325_v35  ;;  %v2514_v26 = vshll.u32 %v2325_v35, 16  ;;  %v1321_v56 = vsel %vm10351_vm14, %v1316_v49, %v1320_v42  ;;  %9663 = vmatprep.mubr.msk.bf16.mxu1 %vm987_vm15, %v3916_v9 }
  0xae   : > { %v2518_v54 = vshrl.u32 %v2325_v35, 16  ;;  %v2511_v3 = vor.u32 %v2510_v23, %v2507_v43  ;;  %v2250_v63 = vrot.slane %v10912_v18, 5  ;;  %v1326_v62 = vrot.slane %v1325_v34, 4  ;;  %v1531_v52 = vld [vmem:[#allocation2 + $0x54] sm:$0xe]  ;;  %9664 = vmatmul.mubr.msk.bf16.vlgmr.msra.gmra.mrb[0].mxu1 %vm987_vm15, %v3919_v46 }
  0xaf   : > { %3444 = vrot.lane.b32.xlu0 %v8866_v45, %s10084_s26  ;;  %v2516_v50 = vrot.slane %v2514_v26, 5  ;;  %v2854_v12 = vrot.slane %v2852_v13, 4  ;;  %v8739_v51 = vrot.slane %v2142_v25, 9  ;;  %v867_v28 = vld [vmem:[#allocation2 + $0x6c] sm:$0xf]  ;;  %v627_v42 = vrot.slane %v625_v47, 7 }
  0xb0   : > { %v2520_v8 = vrot.slane %v2518_v54, 4  ;;  %v2512_v58 = vrot.slane %v2511_v3, 4  ;;  %v1331_v17 = vsel %vm10351_vm14, %v1326_v62, %v1330_v36  ;;  %v10921_v57 = vrot.slane %v633_v10, 7  ;;  %v427_v35 = vld [vmem:[#allocation2 + $0x74] sm:$0x1] }
  0xb1   : > { %v8787_v31 = vcombine.low %v1321_v56, %v1331_v17  ;;  %v2252_v60 = vrot.slane %v2250_v63, 4  ;;  %v636_v6 = vshll.u32 %v10874_v16, 16  ;;  %v8723_v30 = vrot.slane %v1531_v52, 9  ;;  %v1105_v45 = vld [vmem:[#allocation2 + $0x60] sm:$0xf] }
  0xb2   : > { %v2521_v20 = vor.u32 %v2520_v8, %v2516_v50  ;;  %v1642_v11 = vrot.slane %v10847_v33, 5  ;;  %v2853_v41 = vsel %vm10253_vm11, %v8754_v5, %v2852_v13  ;;  %v630_v47 = vor.u32 %v628_v61, %v627_v42  ;;  %v10934_v26 = vld [vmem:[#allocation2 + $0x64] sm:$0xf]  ;;  %v374_v5 = vld [vmem:[#allocation2 + $0x78] sm:$0x1] }
  0xb3   : > { %3046 = vrot.lane.b32.xlu1 %v8787_v31, %s10086_s28  ;;  %v631_v10 = vrot.slane %v627_v42, 4  ;;  %v638_v16 = vor.u32 %v636_v6, %v10921_v57  ;;  %v1851_v33 = vshll.u32 %v10690_v48, 16  ;;  %v2517_v13 = vsel %vm10351_vm14, %v2512_v58, %v2516_v50  ;;  %v10954_v58 = vld [vmem:[#allocation2 + $0x60] sm:$0xf] }
  0xb4   : > { %v2350_v24 = vld [vmem:[#allocation2 + $0x68] sm:$0x1]  ;;  %v2522_v59 = vrot.slane %v2521_v20, 4  ;;  %v868_v43 = vsel %vm10238_vm9, %v630_v47, %v867_v28  ;;  %v1644_v23 = vrot.slane %v1642_v11, 4  ;;  %v1643_v62 = vsel %vm10253_vm11, %v8723_v30, %v1642_v11 }
  0xb5   : > { %v1742_v55 = vld [vmem:[#allocation2 + $0x68] sm:$0x1]  ;;  %v2524_v49 = vshll.u32 %v2350_v24, 16  ;;  %v2855_v34 = vrot.slane %v2350_v24, 5  ;;  %v639_v3 = vsel %vm10246_vm10, %v631_v10, %v638_v16  ;;  %869 = vst [vmem:[#allocation2 + $0x6c] sm:$0xf] %v868_v43  ;;  %v2251_v52 = vsel %vm10253_vm11, %v8739_v51, %v2250_v63 }
  0xb6   : > { %v2253_v36 = vrot.slane %v1742_v55, 5  ;;  %870 = vst.msk [vmem:[#allocation2 + $0x70] sm:$0xf] %vm332_vm0, %v639_v3  ;;  %v1645_v8 = vrot.slane %v10858_v53, 5  ;;  %v428_v50 = vsel %vm10206_vm5, 0, %v427_v35  ;;  %v1333_v17 = vshrl.u32 %v1105_v45, 16 }
  0xb7   : > { %v2526_v54 = vrot.slane %v2524_v49, 5  ;;  %v2856_v25 = vsel %vm10253_vm11, %v2854_v12, %v2855_v34  ;;  %429 = vst [vmem:[#allocation2 + $0x74] sm:$0x1] %v428_v50  ;;  %v10957_v28 = vld [vmem:[%s10224_s25 + $0x48] sm:$0xf]  ;;  %v1336_v31 = vshll.u32 %v1105_v45, 16  ;;  %v8819_v11 = vcombine.low %v10954_v58, %v10912_v18 }
  0xb8   : > { %v8898_v56 = vcombine.low %v2853_v41, %v2856_v25  ;;  %v2254_v12 = vsel %vm10253_vm11, %v2252_v60, %v2253_v36  ;;  %v10960_v53 = vld [vmem:[%s10224_s25 + $0x4c] sm:$0xf]  ;;  %v1646_v20 = vsel %vm10253_vm11, %v1644_v23, %v1645_v8  ;;  %v1342_v63 = vshll.u32 %v10934_v26, 16  ;;  %v10970_v46 = vld [vmem:[#allocation2 + $0x68] sm:$0x1] }
  0xb9   : > { %v2527_v61 = vsel %vm10351_vm14, %v2522_v59, %v2526_v54  ;;  %v10968_v51 = vrot.slane %v1848_v22, 4  ;;  %v8803_v42 = vcombine.low %v1643_v62, %v1646_v20  ;;  %v1335_v60 = vrot.slane %v1333_v17, 4 }
  0xba   : > { %v8882_v9 = vcombine.low %v2517_v13, %v2527_v61  ;;  %3886 = vst.msk [vmem:[#allocation3 + $0xa0] sm:$0xff] %vm987_vm15, %v8898_v56  ;;  %v1872_v6 = vshrl.u32 %v10760_v40, 16  ;;  %v8851_v30 = vcombine.low %v2251_v52, %v2254_v12  ;;  %v1338_v24 = vrot.slane %v1336_v31, 5 }
  0xbb   : > { %14420 = vst [vmem:[#allocation10_spill] sm:$0xff] %v10968_v51  ;;  %v640_v59 = vrot.slane %v10921_v57, 4  ;;  %3126 = vrot.lane.b32.xlu1 %v8803_v42, %s10084_s26  ;;  %v10978_v41 = vrot.slane %v1342_v63, 5  ;;  %v1346_v22 = vshrl.u32 %v10934_v26, 16  ;;  %v375_v55 = vsel %vm10194_vm3, 0, %v374_v5 }
  0xbc   : > { %3524 = vrot.lane.b32.xlu0 %v8882_v9, %s10085_s27  ;;  %v2326_v47 = vld [vmem:[#allocation2 + $0x6c] sm:$0xf]  ;;  %v1339_v10 = vor.u32 %v1338_v24, %v1335_v60  ;;  %v1352_v49 = vshll.u32 %v10970_v46, 16  ;;  %376 = vst [vmem:[#allocation2 + $0x78] sm:$0x1] %v375_v55  ;;  %v642_v34 = vshrl.u32 %v10957_v28, 16 }
  0xbd   : > { %v650_v18 = vshrl.u32 %v10960_v53, 16  ;;  %v2327_v36 = vld [vmem:[#allocation2 + $0x70] sm:$0xf]  ;;  %v2529_v57 = vshrl.u32 %v2326_v47, 16  ;;  %v2532_v16 = vshll.u32 %v2326_v47, 16  ;;  %v645_v52 = vshll.u32 %v10957_v28, 16 }
  0xbe   : > { %v2751_v35 = vld [vmem:[#allocation2 + $0x6c] sm:$0xe]  ;;  %v8867_v43 = vcombine.low %v2326_v47, %v2327_v36  ;;  %v871_v23 = vld [vmem:[#allocation2 + $0x74] sm:$0x1]  ;;  %v2538_v45 = vshll.u32 %v2327_v36, 16  ;;  %v2542_v13 = vshrl.u32 %v2327_v36, 16 }
  0xbf   : > { %v10987_v54 = vld [vmem:[#allocation2 + $0x6c] sm:$0xe]  ;;  %v2859_v25 = vrot.slane %v2327_v36, 5  ;;  %v872_v3 = vsel %vm10194_vm3, %v640_v59, %v871_v23  ;;  %v2531_v56 = vrot.slane %v2529_v57, 4  ;;  %v2534_v62 = vrot.slane %v2532_v16, 5  ;;  %3222 = vrot.lane.b32.xlu1 %v8819_v11, %s10085_s27 }
  0xc0   : > { %3350 = vrot.lane.b32.xlu0 %v8851_v30, %s10086_s28  ;;  %v10992_v8 = vld [vmem:[#allocation2 + $0x70] sm:$0xf]  ;;  %873 = vst [vmem:[#allocation2 + $0x74] sm:$0x1] %v872_v3  ;;  %v10994_v50 = vrot.slane %v2538_v45, 5  ;;  %v2544_v5 = vrot.slane %v2542_v13, 4 }
  0xc1   : > { %v1340_v61 = vrot.slane %v1339_v10, 4  ;;  %v2535_v12 = vor.u32 %v2534_v62, %v2531_v56  ;;  %v8755_v17 = vrot.slane %v2751_v35, 9  ;;  %v2257_v9 = vrot.slane %v10992_v8, 5  ;;  %v1532_v30 = vld [vmem:[#allocation2 + $0x60] sm:$0xe] }
  0xc2   : > { %v1348_v20 = vrot.slane %v1346_v22, 4  ;;  %v2545_v31 = vor.u32 %v2544_v5, %v10994_v50  ;;  %v8740_v63 = vrot.slane %v10987_v54, 9  ;;  %v644_v42 = vrot.slane %v642_v34, 7  ;;  %v430_v36 = vld [vmem:[#allocation2 + $0x80] sm:$0x1] }
  0xc3   : > { %v11001_v60 = vrot.slane %v650_v18, 7  ;;  %v2861_v11 = vrot.slane %v2859_v25, 4  ;;  %v1354_v59 = vrot.slane %v1352_v49, 5  ;;  %v874_v28 = vld [vmem:[#allocation2 + $0x78] sm:$0xf]  ;;  %v2536_v55 = vrot.slane %v2535_v12, 4 }
  0xc4   : > { %3446 = vrot.lane.b32.xlu0 %v8867_v43, %s10084_s26  ;;  %v1349_v24 = vor.u32 %v1348_v20, %v10978_v41  ;;  %v1345_v22 = vsel %vm10351_vm14, %v1340_v61, %v10978_v41  ;;  %v647_v47 = vor.u32 %v645_v52, %v644_v42  ;;  %v653_v10 = vshll.u32 %v10960_v53, 16  ;;  %v11024_v20 = vld [vmem:[#allocation2 + $0x70] sm:$0xf] }
  0xc5   : > { %v2259_v57 = vrot.slane %v2257_v9, 4  ;;  %v648_v34 = vrot.slane %v644_v42, 4  ;;  %v8724_v18 = vrot.slane %v1532_v30, 9  ;;  %v2546_v35 = vrot.slane %v2545_v31, 4  ;;  %v11028_v31 = vpop.permute.xlu0 %3434 }
  0xc6   : > { %v1350_v16 = vrot.slane %v1349_v24, 4  ;;  %v655_v43 = vor.u32 %v653_v10, %v11001_v60  ;;  %v875_v49 = vsel %vm10238_vm9, %v647_v47, %v874_v28  ;;  %v1649_v23 = vrot.slane %v10934_v26, 5  ;;  %v1107_v26 = vld [vmem:[#allocation2 + $0x6c] sm:$0xf] }
  0xc7   : > { %v2351_v45 = vld [vmem:[#allocation2 + $0x74] sm:$0x1]  ;;  %v2860_v41 = vsel %vm10253_vm11, %v8755_v17, %v2859_v25  ;;  %876 = vst [vmem:[#allocation2 + $0x78] sm:$0xf] %v875_v49  ;;  %v1652_v54 = vrot.slane %v10970_v46, 5  ;;  %v431_v3 = vsel %vm10206_vm5, 0, %v430_v36  ;;  %v11026_v46 = vpop.permute.xlu1 %3112  ;;  %v2541_v42 = vsel %vm10351_vm14, %v2536_v55, %v10994_v50 }
  0xc8   : > { %v1743_v13 = vld [vmem:[#allocation2 + $0x74] sm:$0x1]  ;;  %v1355_v53 = vsel %vm10351_vm14, %v1350_v16, %v1354_v59  ;;  %v2548_v56 = vshll.u32 %v2351_v45, 16  ;;  %v2862_v62 = vrot.slane %v2351_v45, 5  ;;  %432 = vst [vmem:[#allocation2 + $0x80] sm:$0x1] %v431_v3  ;;  %v656_v25 = vsel %vm10246_vm10, %v648_v34, %v655_v43 }
  0xc9   : > { %v2260_v5 = vrot.slane %v1743_v13, 5  ;;  %v8788_v61 = vcombine.low %v1345_v22, %v1355_v53  ;;  %v1875_v52 = vshll.u32 %v10760_v40, 16  ;;  %v1650_v12 = vsel %vm10253_vm11, %v8724_v18, %v1649_v23  ;;  %877 = vst.msk [vmem:[#allocation2 + $0x7c] sm:$0xf] %vm332_vm0, %v656_v25  ;;  %v11042_v10 = vld [vmem:[#allocation2 + $0x6c] sm:$0xf] }
  0xca   : > { %v1651_v17 = vrot.slane %v1649_v23, 4  ;;  %v2550_v30 = vrot.slane %v2548_v56, 5  ;;  %v2863_v24 = vsel %vm10253_vm11, %v2861_v11, %v2862_v62  ;;  %v2258_v59 = vsel %vm10253_vm11, %v8740_v63, %v2257_v9  ;;  %v11080_v25 = vld [vmem:[#allocation2] sm:$0xf] }
  0xcb   : > { %3048 = vrot.lane.b32.xlu1 %v8788_v61, %s10086_s28  ;;  %v8899_v28 = vcombine.low %v2860_v41, %v2863_v24  ;;  %v657_v22 = vrot.slane %v11001_v60, 4  ;;  %v1357_v50 = vshrl.u32 %v1107_v26, 16  ;;  %v2261_v11 = vsel %vm10253_vm11, %v2259_v57, %v2260_v5  ;;  %v11066_v40 = vpop.permute.xlu1 %3432 }
  0xcc   : > { %v1653_v47 = vsel %vm10253_vm11, %v1651_v17, %v1652_v54  ;;  %v2551_v55 = vsel %vm10351_vm14, %v2546_v35, %v2550_v30  ;;  %v1360_v63 = vshll.u32 %v1107_v26, 16  ;;  %v11050_v36 = vrot.slane %v1851_v33, 5 }
  0xcd   : > { %v8804_v9 = vcombine.low %v1650_v12, %v1653_v47  ;;  %v8883_v16 = vcombine.low %v2541_v42, %v2551_v55  ;;  %3889 = vst.msk [vmem:[#allocation3 + $0xb8] sm:$0xff] %vm987_vm15, %v8899_v28  ;;  %v1366_v60 = vshll.u32 %v11024_v20, 16  ;;  %v1370_v34 = vshrl.u32 %v11024_v20, 16  ;;  %v3922_v28 = vld [vmem:[#allocation3 + $0x40] sm:$0xff]  ;;  %v1533_v12 = vld [vmem:[#allocation2 + $0x6c] sm:$0xe] }
  0xce   : > { %14421 = vst [vmem:[#allocation11_spill] sm:$0xff] %v11050_v36  ;;  %v11057_v18 = vrot.slane %v1872_v6, 4  ;;  %v11059_v35 = vrot.slane %v1875_v52, 5  ;;  %v1896_v57 = vshrl.u32 %v10867_v4, 16  ;;  %v2328_v43 = vld [vmem:[#allocation2 + $0x78] sm:$0xf]  ;;  %v8820_v48 = vcombine.low %v11042_v10, %v10992_v8  ;;  %v11068_v6 = vpop.permute.xlu0 %3436  ;;  %9667 = vmatprep.mubr.msk.bf16.mxu1 %vm987_vm15, %v3922_v28 }
  0xcf   : > { %3128 = vrot.lane.b32.xlu1 %v8804_v9, %s10084_s26  ;;  %3526 = vrot.lane.b32.xlu0 %v8883_v16, %s10085_s27  ;;  %v8852_v33 = vcombine.low %v2258_v59, %v2261_v11  ;;  %v2553_v49 = vshrl.u32 %v2328_v43, 16  ;;  %v2556_v23 = vshll.u32 %v2328_v43, 16  ;;  %v878_v45 = vld [vmem:[#allocation2 + $0x80] sm:$0x1]  ;;  %v1359_v41 = vrot.slane %v1357_v50, 4 }
  0xd0   : > { %14422 = vst [vmem:[#allocation12_spill] sm:$0xff] %v11057_v18  ;;  %14423 = vst [vmem:[#allocation13_spill] sm:$0xff] %v11059_v35  ;;  %v879_v13 = vsel %vm10194_vm3, %v657_v22, %v878_v45  ;;  %v2752_v53 = vld [vmem:[#allocation2 + $0x78] sm:$0xe]  ;;  %v1362_v54 = vrot.slane %v1360_v63, 5  ;;  %v11072_v3 = vrot.slane %v1366_v60, 5 }
  0xd1   : > { %v1372_v56 = vrot.slane %v1370_v34, 4  ;;  %v2329_v8 = vld [vmem:[#allocation2 + $0x7c] sm:$0xf]  ;;  %880 = vst [vmem:[#allocation2 + $0x80] sm:$0x1] %v879_v13  ;;  %v2555_v62 = vrot.slane %v2553_v49, 4 }
  0xd2   : > { %v2558_v5 = vrot.slane %v2556_v23, 5  ;;  %v11074_v61 = vld [vmem:[#allocation2 + $0x7c] sm:$0xf]  ;;  %v11078_v52 = vld [vmem:[#allocation2 + $0x4] sm:$0xf]  ;;  %v2866_v17 = vrot.slane %v2329_v8, 5  ;;  %v8868_v42 = vcombine.low %v2328_v43, %v2329_v8  ;;  %v1363_v55 = vor.u32 %v1362_v54, %v1359_v41  ;;  %v11096_v41 = vpop.permute.xlu1 %3208  ;;  %v11098_v13 = vpop.permute.xlu0 %3336 }
  0xd3   : > { %v2562_v30 = vshll.u32 %v2329_v8, 16  ;;  %v2566_v24 = vshrl.u32 %v2329_v8, 16  ;;  %3224 = vrot.lane.b32.xlu1 %v8820_v48, %s10085_s27  ;;  %v2144_v59 = vld [vmem:[#allocation2 + $0x78] sm:$0xe]  ;;  %3352 = vrot.lane.b32.xlu0 %v8852_v33, %s10086_s28  ;;  %v2264_v47 = vrot.slane %v11074_v61, 5  ;;  %v1373_v11 = vor.u32 %v1372_v56, %v11072_v3  ;;  %v3925_v63 = vld [vmem:[#allocation3 + $0x58] sm:$0xff] }
  0xd4   : > { %v2559_v22 = vor.u32 %v2558_v5, %v2555_v62  ;;  %v11087_v50 = vld [vmem:[#allocation2 + $0x74] sm:$0x1]  ;;  %v377_v9 = vld [vmem:[#allocation2 + $0x84] sm:$0x1]  ;;  %v1899_v16 = vshll.u32 %v10867_v4, 16  ;;  %v8756_v43 = vrot.slane %v2752_v53, 9  ;;  %9668 = vmatmul.mubr.msk.bf16.gmra.mrb[4].mxu1 %vm987_vm15, %v3925_v63 }
  0xd5   : > { %v2564_v60 = vrot.slane %v2562_v30, 5  ;;  %v2568_v34 = vrot.slane %v2566_v24, 4  ;;  %v474_v48 = vld [vmem:[%s10224_s25 + $0x50] sm:$0xf]  ;;  %v11094_v33 = vrot.slane %v1896_v57, 4  ;;  %v8741_v23 = vrot.slane %v2144_v59, 9 }
  0xd6   : > { %v2560_v49 = vrot.slane %v2559_v22, 4  ;;  %v1364_v45 = vrot.slane %v1363_v55, 4  ;;  %v1374_v56 = vrot.slane %v1373_v11, 4  ;;  %v1376_v8 = vshll.u32 %v11087_v50, 16  ;;  %v475_v57 = vld [vmem:[%s10224_s25 + $0x54] sm:$0xf] }
  0xd7   : > { %14424 = vst [vmem:[#allocation14_spill] sm:$0xff] %v11094_v33  ;;  %v2569_v54 = vor.u32 %v2568_v34, %v2564_v60  ;;  %v378_v53 = vsel %vm10194_vm3, 0, %v377_v9  ;;  %v2868_v62 = vrot.slane %v2866_v17, 4  ;;  %3448 = vrot.lane.b32.xlu0 %v8868_v42, %s10084_s26  ;;  %v2266_v5 = vrot.slane %v2264_v47, 4 }
  0xd8   : > { %379 = vst [vmem:[#allocation2 + $0x84] sm:$0x1] %v378_v53  ;;  %v659_v30 = vshrl.u32 %v474_v48, 16  ;;  %v662_v24 = vshll.u32 %v474_v48, 16  ;;  %v2352_v59 = vld [vmem:[#allocation2 + $0x80] sm:$0x1]  ;;  %v2867_v22 = vsel %vm10253_vm11, %v8756_v43, %v2866_v17  ;;  %v1369_v11 = vsel %vm10351_vm14, %v1364_v45, %v11072_v3 }
  0xd9   : > { %v2570_v28 = vrot.slane %v2569_v54, 4  ;;  %v1744_v55 = vld [vmem:[#allocation2 + $0x80] sm:$0x1]  ;;  %v1378_v63 = vrot.slane %v1376_v8, 5  ;;  %v2572_v9 = vshll.u32 %v2352_v59, 16  ;;  %v2869_v34 = vrot.slane %v2352_v59, 5 }
  0xda   : > { %v2267_v0 = vrot.slane %v1744_v55, 5  ;;  %v661_v42 = vrot.slane %v659_v30, 7  ;;  %v2565_v53 = vsel %vm10351_vm14, %v2560_v49, %v2564_v60  ;;  %v2265_v48 = vsel %vm10253_vm11, %v8741_v23, %v2264_v47  ;;  %v433_v59 = vld [vmem:[#allocation2 + $0x8c] sm:$0x1]  ;;  %v11118_v55 = vpop.permute.xlu1 %3210  ;;  %v11120_v30 = vpop.permute.xlu0 %3032 }
  0xdb   : > { %v1379_v17 = vsel %vm10351_vm14, %v1374_v56, %v1378_v63  ;;  %v667_v43 = vshrl.u32 %v475_v57, 16  ;;  %v2574_v54 = vrot.slane %v2572_v9, 5  ;;  %v2870_v3 = vsel %vm10253_vm11, %v2868_v62, %v2869_v34 }
  0xdc   : > { %v8789_v45 = vcombine.low %v1369_v11, %v1379_v17  ;;  %v670_v8 = vshll.u32 %v475_v57, 16  ;;  %v8900_v26 = vcombine.low %v2867_v22, %v2870_v3  ;;  %v2268_v60 = vsel %vm10253_vm11, %v2266_v5, %v2267_v0  ;;  %v1109_v11 = vld [vmem:[#allocation2 + $0x78] sm:$0xf] }
  0xdd   : > { %v664_v47 = vor.u32 %v662_v24, %v661_v42  ;;  %v8725_v49 = vrot.slane %v1533_v12, 9  ;;  %v2575_v23 = vsel %vm10351_vm14, %v2570_v28, %v2574_v54  ;;  %v665_v56 = vrot.slane %v661_v42, 4  ;;  %v11132_v12 = vld [vmem:[#allocation2 + $0x7c] sm:$0xf] }
  0xde   : > { %3050 = vrot.lane.b32.xlu1 %v8789_v45, %s10086_s28  ;;  %v669_v62 = vrot.slane %v667_v43, 7  ;;  %v1656_v57 = vrot.slane %v11024_v20, 5  ;;  %v8884_v63 = vcombine.low %v2565_v53, %v2575_v23  ;;  %3892 = vst.msk [vmem:[#allocation3 + $0xd0] sm:$0xff] %vm987_vm15, %v8900_v26  ;;  %v1659_v22 = vrot.slane %v11087_v50, 5  ;;  %v11139_v26 = vld [vmem:[#allocation2 + $0x80] sm:$0x1] }
  0xdf   : > { %v881_v9 = vld [vmem:[#allocation2 + $0x84] sm:$0xf]  ;;  %v434_v0 = vsel %vm10206_vm5, 0, %v433_v59  ;;  %v1920_v24 = vshrl.u32 %v10954_v58, 16  ;;  %v8853_v28 = vcombine.low %v2265_v48, %v2268_v60  ;;  %v1381_v17 = vshrl.u32 %v1109_v11, 16  ;;  %v11152_v59 = vpop.permute.xlu0 %3338 }
  0xe0   : > { %v672_v34 = vor.u32 %v670_v8, %v669_v62  ;;  %v882_v20 = vsel %vm10238_vm9, %v664_v47, %v881_v9  ;;  %435 = vst [vmem:[#allocation2 + $0x8c] sm:$0x1] %v434_v0  ;;  %3528 = vrot.lane.b32.xlu0 %v8884_v63, %s10085_s27  ;;  %v674_v50 = vrot.slane %v669_v62, 4  ;;  %v1657_v42 = vsel %vm10253_vm11, %v8725_v49, %v1656_v57  ;;  %v11146_v48 = vld [vmem:[#allocation2 + $0x78] sm:$0xf]  ;;  %v11150_v8 = vpop.permute.xlu1 %3212 }
  0xe1   : > { %883 = vst [vmem:[#allocation2 + $0x84] sm:$0xf] %v882_v20  ;;  %v1658_v53 = vrot.slane %v1656_v57, 4  ;;  %14425 = vst [vmem:[#allocation15_spill] sm:$0xff] %v11146_v48  ;;  %v1384_v54 = vshll.u32 %v1109_v11, 16  ;;  %v1390_v3 = vshll.u32 %v11132_v12, 16 }
  0xe2   : > { %v673_v43 = vsel %vm10246_vm10, %v665_v56, %v672_v34  ;;  %v1394_v45 = vshrl.u32 %v11132_v12, 16  ;;  %14426 = vst [vmem:[#allocation16_spill] sm:$0xff] %v11150_v8  ;;  %v1383_v47 = vrot.slane %v1381_v17, 4  ;;  %v1400_v49 = vshll.u32 %v11139_v26, 16  ;;  %v9876_v23 = vld [vmem:[#allocation2 + $0x10] sm:$0xf] }
  0xe3   : > { %884 = vst.msk [vmem:[#allocation2 + $0x88] sm:$0xf] %vm332_vm0, %v673_v43  ;;  %v1660_v60 = vsel %vm10253_vm11, %v1658_v53, %v1659_v22  ;;  %v1761_v56 = vshll.u32 %v9876_v23, 16  ;;  %v380_v62 = vld [vmem:[#allocation2 + $0x90] sm:$0x1]  ;;  %v1386_v11 = vrot.slane %v1384_v54, 5  ;;  %v8821_v22 = vcombine.low %v11146_v48, %v11074_v61 }
  0xe4   : > { %v8805_v57 = vcombine.low %v1657_v42, %v1660_v60  ;;  %v11158_v63 = vrot.slane %v1390_v3, 5  ;;  %v1396_v9 = vrot.slane %v1394_v45, 4  ;;  %v11162_v0 = vrot.slane %v1899_v16, 5  ;;  %3354 = vrot.lane.b32.xlu0 %v8853_v28, %s10086_s28  ;;  %v9877_v20 = vld [vmem:[#allocation2 + $0x14] sm:$0x1] }
  0xe5   : > { %v1765_v34 = vshrl.u32 %v9876_v23, 16  ;;  %v1771_v53 = vshll.u32 %v9877_v20, 16  ;;  %v1387_v17 = vor.u32 %v1386_v11, %v1383_v47  ;;  %v11169_v43 = vrot.slane %v1761_v56, 5  ;;  %v11174_v16 = vld [vmem:[%s10224_s25 + $0x58] sm:$0xf] }
  0xe6   : > { %14427 = vst [vmem:[#allocation17_spill] sm:$0xff] %v11162_v0  ;;  %3130 = vrot.lane.b32.xlu1 %v8805_v57, %s10084_s26  ;;  %v1397_v42 = vor.u32 %v1396_v9, %v11158_v63  ;;  %v381_v4 = vsel %vm10194_vm3, 0, %v380_v62  ;;  %v11176_v54 = vrot.slane %v1920_v24, 4  ;;  %v1402_v3 = vrot.slane %v1400_v49, 5  ;;  %v11188_v24 = vpop.permute.xlu1 %3114  ;;  %v11192_v49 = vpop.permute.xlu0 %3340  ;;  %v11199_v28 = vld [vmem:[#allocation2 + $0x10] sm:$0xf] }
  0xe7   : > { %v885_v61 = vld [vmem:[#allocation2 + $0x8c] sm:$0x1]  ;;  %v1767_v45 = vrot.slane %v1765_v34, 4  ;;  %382 = vst [vmem:[#allocation2 + $0x90] sm:$0x1] %v381_v4  ;;  %v11181_v56 = vrot.slane %v1771_v53, 5  ;;  %v14429_v62 = vor.u32 %v10756_v29, %v10724_v14 }
  0xe8   : > { %14428 = vst [vmem:[#allocation18_spill] sm:$0xff] %v11176_v54  ;;  %v2330_v60 = vld [vmem:[#allocation2 + $0x84] sm:$0xf]  ;;  %v886_v47 = vsel %vm10194_vm3, %v674_v50, %v885_v61  ;;  %v676_v53 = vshrl.u32 %v11174_v16, 16  ;;  %v1388_v29 = vrot.slane %v1387_v17, 4  ;;  %v1398_v61 = vrot.slane %v1397_v42, 4 }
  0xe9   : > { %v2753_v23 = vld [vmem:[#allocation2 + $0x84] sm:$0xe]  ;;  %v11186_v57 = vrot.slane %v14429_v62, 4  ;;  %v2577_v9 = vshrl.u32 %v2330_v60, 16  ;;  %v2580_v34 = vshll.u32 %v2330_v60, 16  ;;  %v1768_v62 = vor.u32 %v1767_v45, %v11169_v43 }
  0xea   : > { %887 = vst [vmem:[#allocation2 + $0x8c] sm:$0x1] %v886_v47  ;;  %v8757_v20 = vrot.slane %v2753_v23, 9  ;;  %v2145_v50 = vld [vmem:[#allocation2 + $0x84] sm:$0xe]  ;;  %3226 = vrot.lane.b32.xlu1 %v8821_v22, %s10085_s27  ;;  %v1393_v17 = vsel %vm10351_vm14, %v1388_v29, %v11158_v63  ;;  %v1403_v18 = vsel %vm10351_vm14, %v1398_v61, %v1402_v3  ;;  %v11218_v36 = vpop.permute.xlu1 %3116  ;;  %v11220_v63 = vpop.permute.xlu0 %3512 }
  0xeb   : > { %v2331_v4 = vld [vmem:[#allocation2 + $0x88] sm:$0xf]  ;;  %v11201_v11 = vld [vmem:[#allocation2 + $0xc] sm:$0xf]  ;;  %v2579_v54 = vrot.slane %v2577_v9, 4  ;;  %v2582_v0 = vrot.slane %v2580_v34, 5 }
  0xec   : > { %v11196_v14 = vld [vmem:[#allocation2 + $0x88] sm:$0xf]  ;;  %v2873_v23 = vrot.slane %v2331_v4, 5  ;;  %v8869_v5 = vcombine.low %v2330_v60, %v2331_v4  ;;  %v2586_v33 = vshll.u32 %v2331_v4, 16  ;;  %v2590_v22 = vshrl.u32 %v2331_v4, 16 }
  0xed   : > { %v2271_v35 = vrot.slane %v11196_v14, 5  ;;  %v2583_v42 = vor.u32 %v2582_v0, %v2579_v54  ;;  %v8742_v45 = vrot.slane %v2145_v50, 9  ;;  %v477_v47 = vld [vmem:[%s10224_s25 + $0x5c] sm:$0xf]  ;;  %v679_v60 = vshll.u32 %v11174_v16, 16 }
  0xee   : > { %3450 = vrot.lane.b32.xlu0 %v8869_v5, %s10084_s26  ;;  %v2875_v9 = vrot.slane %v2873_v23, 4  ;;  %v2588_v34 = vrot.slane %v2586_v33, 5  ;;  %v2592_v48 = vrot.slane %v2590_v22, 4  ;;  %v1764_v4 = vsel %vm10351_vm14, %v11186_v57, %v11169_v43 }
  0xef   : > { %v2584_v5 = vrot.slane %v2583_v42, 4  ;;  %v8790_v0 = vcombine.low %v1393_v17, %v1403_v18  ;;  %v1769_v54 = vrot.slane %v1768_v62, 4  ;;  %v678_v50 = vrot.slane %v676_v53, 7  ;;  %v888_v18 = vld [vmem:[#allocation2 + $0x90] sm:$0xf]  ;;  %v3928_v62 = vld [vmem:[#allocation3 + $0x70] sm:$0xff] }
  0xf0   : > { %v2593_v29 = vor.u32 %v2592_v48, %v2588_v34  ;;  %v2874_v16 = vsel %vm10253_vm11, %v8757_v20, %v2873_v23  ;;  %v2273_v61 = vrot.slane %v2271_v35, 4  ;;  %v684_v22 = vshrl.u32 %v477_v47, 16  ;;  %v1534_v17 = vld [vmem:[#allocation2 + $0x78] sm:$0xe]  ;;  %9671 = vmatprep.mubr.msk.bf16.mxu1 %vm987_vm15, %v3928_v62  ;;  %v3931_v42 = vld [vmem:[#allocation3 + $0x88] sm:$0xff] }
  0xf1   : > { %v2353_v3 = vld [vmem:[#allocation2 + $0x8c] sm:$0x1]  ;;  %v11226_v43 = vsel %vm10253_vm11, %v8742_v45, %v2271_v35  ;;  %3052 = vrot.lane.b32.xlu1 %v8790_v0, %s10086_s28  ;;  %v1774_v48 = vsel %vm10351_vm14, %v1769_v54, %v11181_v56  ;;  %v681_v20 = vor.u32 %v679_v60, %v678_v50  ;;  %v687_v23 = vshll.u32 %v477_v47, 16  ;;  %9672 = vmatmul.mubr.msk.bf16.gmra.mrb[8].mxu1 %vm987_vm15, %v3931_v42  ;;  %v3035_v54 = vpop.permute.xlu1 %3034 }
  0xf2   : > { %v1745_v33 = vld [vmem:[#allocation2 + $0x8c] sm:$0x1]  ;;  %v2596_v51 = vshll.u32 %v2353_v3, 16  ;;  %v2876_v8 = vrot.slane %v2353_v3, 5  ;;  %v2594_v53 = vrot.slane %v2593_v29, 4  ;;  %v2589_v35 = vsel %vm10351_vm14, %v2584_v5, %v2588_v34 }
  0xf3   : > { %v2274_v57 = vrot.slane %v1745_v33, 5  ;;  %v682_v3 = vrot.slane %v678_v50, 4  ;;  %v11240_v60 = vrot.slane %v684_v22, 7  ;;  %v889_v47 = vsel %vm10238_vm9, %v681_v20, %v888_v18  ;;  %v11244_v33 = vpop.permute.xlu0 %3514  ;;  %v436_v5 = vld [vmem:[#allocation2 + $0x98] sm:$0x1] }
  0xf4   : > { %v2598_v45 = vrot.slane %v2596_v51, 5  ;;  %v2877_v0 = vsel %vm10253_vm11, %v2875_v9, %v2876_v8  ;;  %v8828_v34 = vcombine.low %v1764_v4, %v1774_v48  ;;  %890 = vst [vmem:[#allocation2 + $0x90] sm:$0xf] %v889_v47  ;;  %v8726_v8 = vrot.slane %v1534_v17, 9  ;;  %v11267_v48 = vld [vmem:[#allocation2 + $0x18] sm:$0xf] }
  0xf5   : > { %v8901_v29 = vcombine.low %v2874_v16, %v2877_v0  ;;  %v2275_v56 = vsel %vm10253_vm11, %v2273_v61, %v2274_v57  ;;  %v1663_v9 = vrot.slane %v11132_v12, 5  ;;  %v689_v16 = vor.u32 %v687_v23, %v11240_v60  ;;  %v11284_v23 = vld [vmem:[#allocation2 + $0x84] sm:$0xf] }
  0xf6   : > { %v2599_v51 = vsel %vm10351_vm14, %v2594_v53, %v2598_v45  ;;  %v1666_v61 = vrot.slane %v11139_v26, 5  ;;  %v14430_v22 = vcombine.low %v11080_v25, %v11078_v52  ;;  %v14431_v12 = vcombine.low %v11201_v11, %v11199_v28  ;;  %v11265_v53 = vld [vmem:[#allocation2 + $0x1c] sm:$0xf]  ;;  %v1111_v28 = vld [vmem:[#allocation2 + $0x84] sm:$0xf] }
  0xf7   : > { %v8885_v50 = vcombine.low %v2589_v35, %v2599_v51  ;;  %3895 = vst.msk [vmem:[#allocation3 + $0xe8] sm:$0xff] %vm987_vm15, %v8901_v29  ;;  %v1664_v4 = vsel %vm10253_vm11, %v8726_v8, %v1663_v9  ;;  %v1665_v18 = vrot.slane %v1663_v9, 4  ;;  %v8766_v26 = vcombine.low %v11267_v48, %v11265_v53  ;;  %v9882_v35 = vld [vmem:[#allocation2 + $0x1c] sm:$0xf] }
  0xf8   : > { %v3610_v57 = vsel %vm987_vm15, %v14430_v22, %v11120_v30  ;;  %v11263_v62 = vsel %vm987_vm15, %v14431_v12, %v3035_v54  ;;  %v8854_v52 = vcombine.low %v11226_v43, %v2275_v56  ;;  %v690_v25 = vsel %vm10246_vm10, %v682_v3, %v689_v16  ;;  %v11287_v3 = vpop.permute.xlu0 %3516  ;;  %v9883_v56 = vld [vmem:[#allocation2 + $0x20] sm:$0x1]  ;;  %v11294_v54 = vld [vmem:[#allocation2 + $0x88] sm:$0xf] }
  0xf9   : > { %3530 = vrot.lane.b32.xlu0 %v8885_v50, %s10085_s27  ;;  %v437_v30 = vsel %vm10206_vm5, 0, %v436_v5  ;;  %v3740_v11 = vsel %vm987_vm15, %v8828_v34, %v11098_v13  ;;  %891 = vst.msk [vmem:[#allocation2 + $0x94] sm:$0xf] %vm332_vm0, %v690_v25  ;;  %v1667_v20 = vsel %vm10253_vm11, %v1665_v18, %v1666_v61  ;;  %v3658_v43 = vsel %vm3656_vm1, %v3610_v57, %v11026_v46 }
  0xfa   : > { %438 = vst [vmem:[#allocation2 + $0x98] sm:$0x1] %v437_v30  ;;  %v691_v17 = vrot.slane %v11240_v60, 4  ;;  %v8806_v42 = vcombine.low %v1664_v4, %v1667_v20  ;;  %v1785_v45 = vshll.u32 %v9882_v35, 16  ;;  %v1789_v0 = vshrl.u32 %v9882_v35, 16 }
  0xfb   : > { %v14432_v13 = vor.u32 %v10712_v7, %v10674_v15  ;;  %v1795_v47 = vshll.u32 %v9883_v56, 16  ;;  %v1405_v46 = vshrl.u32 %v1111_v28, 16  ;;  %v1408_v51 = vshll.u32 %v1111_v28, 16  ;;  %v2332_v60 = vld [vmem:[#allocation2 + $0x90] sm:$0xf] }
  0xfc   : > { %3132 = vrot.lane.b32.xlu1 %v8806_v42, %s10084_s26  ;;  %v3691_v34 = vsel %vm3689_vm2, %v3658_v43, %v11096_v41  ;;  %v2754_v8 = vld [vmem:[#allocation2 + $0x90] sm:$0xe]  ;;  %v8822_v15 = vcombine.low %v11284_v23, %v11196_v14  ;;  %v1787_v7 = vrot.slane %v1785_v45, 5  ;;  %v1791_v9 = vrot.slane %v1789_v0, 4  ;;  %v11314_v35 = vpop.permute.xlu0 %3342 }
  0xfd   : > { %v11292_v29 = vrot.slane %v14432_v13, 4  ;;  %3356 = vrot.lane.b32.xlu0 %v8854_v52, %s10086_s28  ;;  %v2601_v5 = vshrl.u32 %v2332_v60, 16  ;;  %v2604_v50 = vshll.u32 %v2332_v60, 16  ;;  %v8758_v16 = vrot.slane %v2754_v8, 9  ;;  %v2146_v61 = vld [vmem:[#allocation2 + $0x90] sm:$0xe]  ;;  %v11304_v52 = vpop.permute.xlu1 %3036 }
  0xfe   : > { %v3787_v22 = vsel %vm3656_vm1, %v3740_v11, %v11066_v40  ;;  %v1792_v57 = vor.u32 %v1791_v9, %v1787_v7  ;;  %v1797_v4 = vrot.slane %v1795_v47, 5  ;;  %v8743_v18 = vrot.slane %v2146_v61, 9 }
  0xff   : > { %v1407_v12 = vrot.slane %v1405_v46, 4  ;;  %v2603_v41 = vrot.slane %v2601_v5, 4  ;;  %v2606_v25 = vrot.slane %v2604_v50, 5  ;;  %v1410_v30 = vrot.slane %v1408_v51, 5  ;;  %v3934_v46 = vld [vmem:[#allocation3 + $0xa0] sm:$0xff] }
 0x100   : > { %v1414_v14 = vshll.u32 %v11294_v54, 16  ;;  %v2333_v28 = vld [vmem:[#allocation2 + $0x94] sm:$0xf]  ;;  %3228 = vrot.lane.b32.xlu1 %v8822_v15, %s10085_s27  ;;  %v1788_v43 = vsel %vm10351_vm14, %v11292_v29, %v1787_v7  ;;  %v1793_v40 = vrot.slane %v1792_v57, 4  ;;  %v1418_v11 = vshrl.u32 %v11294_v54, 16  ;;  %9675 = vmatprep.mubr.msk.bf16.mxu1 %vm987_vm15, %v3934_v46 }
 0x101   : > { %v892_v20 = vld [vmem:[#allocation2 + $0x98] sm:$0x1]  ;;  %v3819_v42 = vsel %vm3689_vm2, %v3787_v22, %v11220_v63  ;;  %v2880_v45 = vrot.slane %v2333_v28, 5  ;;  %v8870_v0 = vcombine.low %v2332_v60, %v2333_v28  ;;  %v2607_v56 = vor.u32 %v2606_v25, %v2603_v41  ;;  %v11318_v47 = vld [vmem:[#allocation2 + $0x94] sm:$0xf]  ;;  %v11323_v15 = vpop.permute.xlu1 %3038 }
 0x102   : > { %v893_v13 = vsel %vm10194_vm3, %v691_v17, %v892_v20  ;;  %4193 = vmatprep.mubr.bf16.mxu0 %v3819_v42  ;;  %v2610_v29 = vshll.u32 %v2333_v28, 16  ;;  %v2614_v51 = vshrl.u32 %v2333_v28, 16  ;;  %v1798_v8 = vsel %vm10351_vm14, %v1793_v40, %v1797_v4  ;;  %v3937_v60 = vld [vmem:[#allocation3 + $0xb8] sm:$0xff]  ;;  %v11329_v5 = vld [vmem:[#allocation2 + $0x8c] sm:$0x1] }
 0x103   : > { %894 = vst [vmem:[#allocation2 + $0x98] sm:$0x1] %v893_v13  ;;  %v2278_v63 = vrot.slane %v11318_v47, 5  ;;  %4194 = vmatmul.mubr.bf16.vlgmr.msra.gmra.mrb[0].mxu0 %v3691_v34  ;;  %v1944_v17 = vshrl.u32 %v11042_v10, 16  ;;  %v2882_v9 = vrot.slane %v2880_v45, 4  ;;  %3452 = vrot.lane.b32.xlu0 %v8870_v0, %s10084_s26  ;;  %v11334_v50 = vsel %vm3656_vm1, %v11263_v62, %v11188_v24  ;;  %v11346_v0 = vpop.permute.xlu0 %3438 }
 0x104   : > { %9676 = vmatmul.mubr.msk.bf16.gmra.mrb[12].mxu1 %vm987_vm15, %v3937_v60  ;;  %v11337_v34 = vrot.slane %v2607_v56, 4  ;;  %v2612_v61 = vrot.slane %v2610_v29, 5  ;;  %v2616_v22 = vrot.slane %v2614_v51, 4  ;;  %v2881_v57 = vsel %vm10253_vm11, %v8758_v16, %v2880_v45  ;;  %v383_v20 = vld [vmem:[#allocation2 + $0x9c] sm:$0x1] }
 0x105   : > { %v8829_v4 = vcombine.low %v1788_v43, %v1798_v8  ;;  %v1411_v41 = vor.u32 %v1410_v30, %v1407_v12  ;;  %v1416_v25 = vrot.slane %v1414_v14, 5  ;;  %v1420_v28 = vrot.slane %v1418_v11, 4  ;;  %v9884_v46 = vld [vmem:[#allocation2 + $0x28] sm:$0xf]  ;;  %v9885_v14 = vld [vmem:[#allocation2 + $0x2c] sm:$0x1] }
 0x106   : > { %v2617_v40 = vor.u32 %v2616_v22, %v2612_v61  ;;  %v11343_v24 = vsel %vm10253_vm11, %v8743_v18, %v2278_v63  ;;  %v2280_v62 = vrot.slane %v2278_v63, 4  ;;  %v1424_v42 = vshll.u32 %v11329_v5, 16  ;;  %v478_v29 = vld [vmem:[%s10224_s25 + $0x60] sm:$0xf]  ;;  %v11351_v18 = vpop.permute.xlu1 %3118  ;;  %v479_v7 = vld [vmem:[%s10224_s25 + $0x64] sm:$0xf] }
 0x107   : > { %v1412_v13 = vrot.slane %v1411_v41, 4  ;;  %v1421_v56 = vor.u32 %v1420_v28, %v1416_v25  ;;  %v1809_v16 = vshll.u32 %v9884_v46, 16  ;;  %v1813_v43 = vshrl.u32 %v9884_v46, 16 }
 0x108   : > { %v2618_v12 = vrot.slane %v2617_v40, 4  ;;  %v1426_v30 = vrot.slane %v1424_v42, 5  ;;  %v1819_v11 = vshll.u32 %v9885_v14, 16  ;;  %v384_v45 = vsel %vm10194_vm3, 0, %v383_v20 }
 0x109   : > { %v11355_v8 = vsel %vm987_vm15, %v8829_v4, %v11152_v59  ;;  %v1417_v60 = vsel %vm10351_vm14, %v1412_v13, %v1416_v25  ;;  %v1422_v22 = vrot.slane %v1421_v56, 4  ;;  %v1811_v41 = vrot.slane %v1809_v16, 5  ;;  %385 = vst [vmem:[#allocation2 + $0x9c] sm:$0x1] %v384_v45 }
 0x10a   : > { %v2354_v51 = vld [vmem:[#allocation2 + $0x98] sm:$0x1]  ;;  %v1815_v20 = vrot.slane %v1813_v43, 4  ;;  %v2613_v46 = vsel %vm10351_vm14, %v11337_v34, %v2612_v61  ;;  %v14433_v59 = vor.u32 %v10900_v21, %v10892_v27  ;;  %v693_v25 = vshrl.u32 %v478_v29, 16  ;;  %v1535_v43 = vld [vmem:[#allocation2 + $0x84] sm:$0xe] }
 0x10b   : > { %v1746_v63 = vld [vmem:[#allocation2 + $0x98] sm:$0x1]  ;;  %v2620_v28 = vshll.u32 %v2354_v51, 16  ;;  %v2883_v40 = vrot.slane %v2354_v51, 5  ;;  %v1427_v14 = vsel %vm10351_vm14, %v1422_v22, %v1426_v30  ;;  %v1821_v45 = vrot.slane %v1819_v11, 5  ;;  %v11370_v51 = vpop.permute.xlu0 %3518  ;;  %v3940_v22 = vld [vmem:[#allocation3 + $0xd0] sm:$0xff] }
 0x10c   : > { %v2281_v42 = vrot.slane %v1746_v63, 5  ;;  %v1807_v4 = vrot.slane %v14433_v59, 4  ;;  %v8791_v16 = vcombine.low %v1417_v60, %v1427_v14  ;;  %v1816_v61 = vor.u32 %v1815_v20, %v1811_v41  ;;  %v3943_v27 = vld [vmem:[#allocation3 + $0xe8] sm:$0xff]  ;;  %9679 = vmatprep.mubr.msk.bf16.mxu1 %vm987_vm15, %v3940_v22 }
 0x10d   : > { %v2622_v13 = vrot.slane %v2620_v28, 5  ;;  %v2884_v56 = vsel %vm10253_vm11, %v2882_v9, %v2883_v40  ;;  %v695_v30 = vrot.slane %v693_v25, 7  ;;  %v696_v28 = vshll.u32 %v478_v29, 16  ;;  %v439_v11 = vld [vmem:[#allocation2 + $0xa4] sm:$0x1]  ;;  %v11377_v40 = vpop.permute.xlu1 %3214  ;;  %9680 = vmatmul.mubr.msk.bf16.gmra.mrb[16].mxu1 %vm987_vm15, %v3943_v27 }
 0x10e   : > { %v8902_v63 = vcombine.low %v2881_v57, %v2884_v56  ;;  %v2282_v34 = vsel %vm10253_vm11, %v2280_v62, %v2281_v42  ;;  %3054 = vrot.lane.b32.xlu1 %v8791_v16, %s10086_s28  ;;  %v701_v9 = vshrl.u32 %v479_v7, 16  ;;  %v704_v60 = vshll.u32 %v479_v7, 16 }
 0x10f   : > { %v2623_v21 = vsel %vm10351_vm14, %v2618_v12, %v2622_v13  ;;  %v1812_v62 = vsel %vm10351_vm14, %v1807_v4, %v1811_v41  ;;  %v1817_v42 = vrot.slane %v1816_v61, 4  ;;  %v8727_v20 = vrot.slane %v1535_v43, 9  ;;  %v1113_v4 = vld [vmem:[#allocation2 + $0x90] sm:$0xf] }
 0x110   : > { %v8886_v57 = vcombine.low %v2613_v46, %v2623_v21  ;;  %3898 = vst.msk [vmem:[#allocation3 + $0x100] sm:$0xff] %vm987_vm15, %v8902_v63  ;;  %v698_v12 = vor.u32 %v696_v28, %v695_v30  ;;  %v699_v14 = vrot.slane %v695_v30, 4  ;;  %v703_v29 = vrot.slane %v701_v9, 7  ;;  %v895_v59 = vld [vmem:[#allocation2 + $0x9c] sm:$0xf] }
 0x111   : > { %v1670_v7 = vrot.slane %v11294_v54, 5  ;;  %v8855_v25 = vcombine.low %v11343_v24, %v2282_v34  ;;  %v1822_v46 = vsel %vm10351_vm14, %v1817_v42, %v1821_v45  ;;  %v1673_v13 = vrot.slane %v11329_v5, 5  ;;  %v11394_v54 = vld [vmem:[#allocation2 + $0x94] sm:$0xf]  ;;  %v11401_v45 = vpop.permute.xlu0 %3344  ;;  %v11408_v30 = vld [vmem:[#allocation2 + $0x98] sm:$0x1] }
 0x112   : > { %3532 = vrot.lane.b32.xlu0 %v8886_v57, %s10085_s27  ;;  %v440_v41 = vsel %vm10206_vm5, 0, %v439_v11  ;;  %v8830_v56 = vcombine.low %v1812_v62, %v1822_v46  ;;  %v706_v16 = vor.u32 %v704_v60, %v703_v29  ;;  %v896_v43 = vsel %vm10238_vm9, %v698_v12, %v895_v59  ;;  %v386_v60 = vld [vmem:[#allocation2 + $0xa8] sm:$0x1] }
 0x113   : > { %441 = vst [vmem:[#allocation2 + $0xa4] sm:$0x1] %v440_v41  ;;  %v3616_v24 = vsel %vm987_vm15, %v8766_v26, %v11304_v52  ;;  %v708_v5 = vrot.slane %v703_v29, 4  ;;  %897 = vst [vmem:[#allocation2 + $0x9c] sm:$0xf] %v896_v43  ;;  %v1671_v63 = vsel %vm10253_vm11, %v8727_v20, %v1670_v7  ;;  %v1672_v34 = vrot.slane %v1670_v7, 4  ;;  %v11417_v52 = vpop.permute.xlu1 %3040 }
 0x114   : > { %v3694_v61 = vsel %vm3689_vm2, %v11334_v50, %v11118_v55  ;;  %v3746_v22 = vsel %vm987_vm15, %v8830_v56, %v11192_v49  ;;  %v707_v53 = vsel %vm10246_vm10, %v699_v14, %v706_v16  ;;  %v3789_v48 = vsel %vm3656_vm1, %v11355_v8, %v11028_v31  ;;  %v11423_v50 = vld [vmem:[#allocation2 + $0x90] sm:$0xf]  ;;  %v11444_v29 = vld [vmem:[%s10224_s25 + $0x68] sm:$0xf] }
 0x115   : > { %v1429_v26 = vshrl.u32 %v1113_v4, 16  ;;  %898 = vst.msk [vmem:[#allocation2 + $0xa0] sm:$0xf] %vm332_vm0, %v707_v53  ;;  %v1674_v55 = vsel %vm10253_vm11, %v1672_v34, %v1673_v13  ;;  %v3822_v49 = vsel %vm3689_vm2, %v3789_v48, %v11244_v33  ;;  %v1432_v27 = vshll.u32 %v1113_v4, 16  ;;  %v11448_v59 = vpop.permute.xlu0 %3440  ;;  %v14436_v53 = vld [vmem:[#allocation16_spill] sm:$0xff] }
 0x116   : > { %3358 = vrot.lane.b32.xlu0 %v8855_v25, %s10086_s28  ;;  %v1438_v21 = vshll.u32 %v11394_v54, 16  ;;  %v8807_v31 = vcombine.low %v1671_v63, %v1674_v55  ;;  %v1442_v28 = vshrl.u32 %v11394_v54, 16  ;;  %v1448_v9 = vshll.u32 %v11408_v30, 16  ;;  %4201 = vmatprep.mubr.bf16.mxu0 %v3822_v49  ;;  %v9887_v55 = vld [vmem:[#allocation2 + $0x28] sm:$0xf] }
 0x117   : > { %v1431_v8 = vrot.slane %v1429_v26, 4  ;;  %v14434_v11 = vshll.u32 %v10954_v58, 16  ;;  %v1434_v62 = vrot.slane %v1432_v27, 5  ;;  %v3791_v33 = vsel %vm3656_vm1, %v3746_v22, %v11068_v6  ;;  %4202 = vmatmul.mubr.bf16.gmra.mrb[4].mxu0 %v3694_v61  ;;  %v11465_v43 = vpop.permute.xlu1 %3120  ;;  %v9886_v26 = vld [vmem:[#allocation2 + $0x24] sm:$0xf] }
 0x118   : > { %v11434_v42 = vrot.slane %v1438_v21, 5  ;;  %3134 = vrot.lane.b32.xlu1 %v8807_v31, %s10084_s26  ;;  %v8823_v20 = vcombine.low %v11423_v50, %v11318_v47  ;;  %v1444_v12 = vrot.slane %v1442_v28, 4  ;;  %v3825_v14 = vsel %vm3689_vm2, %v3791_v33, %v11287_v3 }
 0x119   : > { %v11432_v57 = vrot.slane %v14434_v11, 5  ;;  %v1830_v58 = vor.u32 %v10904_v39, %v10902_v37  ;;  %v11452_v6 = vrot.slane %v1944_v17, 4  ;;  %v1435_v25 = vor.u32 %v1434_v62, %v1431_v8  ;;  %4209 = vmatprep.mubr.bf16.mxu0 %v3825_v14 }
 0x11a   : > { %v899_v7 = vld [vmem:[#allocation2 + $0xa4] sm:$0x1]  ;;  %v3662_v47 = vsel %vm3656_vm1, %v3616_v24, %v11218_v36  ;;  %v387_v46 = vsel %vm10194_vm3, 0, %v386_v60  ;;  %v14435_v3 = vshll.u32 %v11042_v10, 16  ;;  %v2334_v41 = vld [vmem:[#allocation2 + $0x9c] sm:$0xf]  ;;  %v1445_v17 = vor.u32 %v1444_v12, %v11434_v42  ;;  %v11478_v12 = vpop.permute.xlu0 %3520 }
 0x11b   : > { %v900_v4 = vsel %vm10194_vm3, %v708_v5, %v899_v7  ;;  %v2755_v56 = vld [vmem:[#allocation2 + $0x9c] sm:$0xe]  ;;  %v1450_v16 = vrot.slane %v1448_v9, 5  ;;  %388 = vst [vmem:[#allocation2 + $0xa8] sm:$0x1] %v387_v46  ;;  %v2625_v36 = vshrl.u32 %v2334_v41, 16  ;;  %v3697_v48 = vsel %vm3689_vm2, %v3662_v47, %v14436_v53 }
 0x11c   : > { %v11460_v13 = vrot.slane %v14435_v3, 5  ;;  %v2628_v24 = vshll.u32 %v2334_v41, 16  ;;  %901 = vst [vmem:[#allocation2 + $0xa4] sm:$0x1] %v900_v4  ;;  %v8759_v63 = vrot.slane %v2755_v56, 9  ;;  %v710_v34 = vshrl.u32 %v11444_v29, 16  ;;  %3230 = vrot.lane.b32.xlu1 %v8823_v20, %s10085_s27 }
 0x11d   : > { %v2335_v10 = vld [vmem:[#allocation2 + $0xa0] sm:$0xf]  ;;  %v1436_v22 = vrot.slane %v1435_v25, 4  ;;  %v1446_v5 = vrot.slane %v1445_v17, 4  ;;  %v8767_v49 = vcombine.low %v9886_v26, %v9887_v55  ;;  %v2627_v31 = vrot.slane %v2625_v36, 4  ;;  %v3946_v9 = vld [vmem:[#allocation3 + $0x100] sm:$0xff]  ;;  %v11487_v36 = vpop.permute.xlu1 %3216 }
 0x11e   : > { %v11469_v61 = vld [vmem:[#allocation2 + $0xa0] sm:$0xf]  ;;  %v2887_v27 = vrot.slane %v2335_v10, 5  ;;  %v8871_v21 = vcombine.low %v2334_v41, %v2335_v10  ;;  %v2630_v8 = vrot.slane %v2628_v24, 5  ;;  %v2147_v28 = vld [vmem:[#allocation2 + $0x9c] sm:$0xe]  ;;  %9683 = vmatprep.mubr.msk.bf16.mxu1 %vm987_vm15, %v3946_v9 }
 0x11f   : > { %v2634_v60 = vshll.u32 %v2335_v10, 16  ;;  %v2638_v11 = vshrl.u32 %v2335_v10, 16  ;;  %v2285_v62 = vrot.slane %v11469_v61, 5  ;;  %v1441_v33 = vsel %vm10351_vm14, %v1436_v22, %v11434_v42  ;;  %v481_v20 = vld [vmem:[%s10224_s25 + $0x6c] sm:$0xf]  ;;  %v14437_v47 = vld [vmem:[#allocation10_spill] sm:$0xff]  ;;  %4210 = vmatmul.mubr.bf16.gmra.mrb[8].mxu0 %v3697_v48 }
 0x120   : > { %3454 = vrot.lane.b32.xlu0 %v8871_v21, %s10084_s26  ;;  %v2631_v14 = vor.u32 %v2630_v8, %v2627_v31  ;;  %v1451_v7 = vsel %vm10351_vm14, %v1446_v5, %v1450_v16  ;;  %v713_v25 = vshll.u32 %v11444_v29, 16  ;;  %v14438_v46 = vld [vmem:[#allocation11_spill] sm:$0xff]  ;;  %v2889_v41 = vrot.slane %v2887_v27, 4  ;;  %v1536_v17 = vld [vmem:[#allocation2 + $0x90] sm:$0xe] }
 0x121   : > { %v2636_v4 = vrot.slane %v2634_v60, 5  ;;  %v2640_v42 = vrot.slane %v2638_v11, 4  ;;  %v8744_v56 = vrot.slane %v2147_v28, 9  ;;  %v8792_v10 = vcombine.low %v1441_v33, %v1451_v7  ;;  %v1537_v3 = vld [vmem:[#allocation2 + $0x9c] sm:$0xe] }
 0x122   : > { %v2632_v24 = vrot.slane %v2631_v14, 4  ;;  %v712_v22 = vrot.slane %v710_v34, 7  ;;  %v718_v53 = vshrl.u32 %v481_v20, 16  ;;  %v2888_v29 = vsel %vm10253_vm11, %v8759_v63, %v2887_v27  ;;  %v902_v34 = vld [vmem:[#allocation2 + $0xa8] sm:$0xf]  ;;  %v11494_v14 = vpop.permute.xlu0 %3346 }
 0x123   : > { %v2355_v26 = vld [vmem:[#allocation2 + $0xa4] sm:$0x1]  ;;  %v2641_v55 = vor.u32 %v2640_v42, %v2636_v4  ;;  %v2287_v5 = vrot.slane %v2285_v62, 4  ;;  %v721_v21 = vshll.u32 %v481_v20, 16  ;;  %3056 = vrot.lane.b32.xlu1 %v8792_v10, %s10086_s28  ;;  %v8728_v28 = vrot.slane %v1536_v17, 9 }
 0x124   : > { %v1747_v16 = vld [vmem:[#allocation2 + $0xa4] sm:$0x1]  ;;  %v2644_v48 = vshll.u32 %v2355_v26, 16  ;;  %v2890_v31 = vrot.slane %v2355_v26, 5  ;;  %v715_v60 = vor.u32 %v713_v25, %v712_v22  ;;  %v716_v11 = vrot.slane %v712_v22, 4 }
 0x125   : > { %v2288_v8 = vrot.slane %v1747_v16, 5  ;;  %v2642_v9 = vrot.slane %v2641_v55, 4  ;;  %v11492_v33 = vrot.slane %v718_v53, 7  ;;  %v2637_v63 = vsel %vm10351_vm14, %v2632_v24, %v2636_v4  ;;  %v442_v22 = vld [vmem:[#allocation2 + $0xb0] sm:$0x1]  ;;  %v11506_v53 = vpop.permute.xlu1 %3042 }
 0x126   : > { %v2646_v27 = vrot.slane %v2644_v48, 5  ;;  %v2891_v20 = vsel %vm10253_vm11, %v2889_v41, %v2890_v31  ;;  %v1677_v7 = vrot.slane %v11394_v54, 5  ;;  %v2286_v17 = vsel %vm10253_vm11, %v8744_v56, %v2285_v62  ;;  %v1115_v26 = vld [vmem:[#allocation2 + $0x9c] sm:$0xf]  ;;  %v9888_v55 = vld [vmem:[#allocation2 + $0x34] sm:$0xf] }
 0x127   : > { %v8903_v42 = vcombine.low %v2888_v29, %v2891_v20  ;;  %v723_v25 = vor.u32 %v721_v21, %v11492_v33  ;;  %v3619_v10 = vsel %vm987_vm15, %v8767_v49, %v11323_v15  ;;  %v2289_v41 = vsel %vm10253_vm11, %v2287_v5, %v2288_v8  ;;  %v9889_v5 = vld [vmem:[#allocation2 + $0x38] sm:$0x1] }
 0x128   : > { %v2647_v4 = vsel %vm10351_vm14, %v2642_v9, %v2646_v27  ;;  %v903_v54 = vsel %vm10238_vm9, %v715_v60, %v902_v34  ;;  %v1679_v24 = vrot.slane %v1677_v7, 4  ;;  %v1678_v49 = vsel %vm10253_vm11, %v8728_v28, %v1677_v7  ;;  %v1727_v28 = vld [vmem:[#allocation2 + $0x9c] sm:$0xf]  ;;  %v11526_v60 = vld [vmem:[#allocation2 + $0x30] sm:$0xf] }
 0x129   : > { %v8887_v62 = vcombine.low %v2637_v63, %v2647_v4  ;;  %3901 = vst.msk [vmem:[#allocation3 + $0x118] sm:$0xff] %vm987_vm15, %v8903_v42  ;;  %v724_v15 = vsel %vm10246_vm10, %v716_v11, %v723_v25  ;;  %904 = vst [vmem:[#allocation2 + $0xa8] sm:$0xf] %v903_v54  ;;  %v1680_v56 = vrot.slane %v11408_v30, 5  ;;  %v1833_v29 = vshll.u32 %v9888_v55, 16  ;;  %v11532_v63 = vpop.permute.xlu0 %3442  ;;  %v14439_v25 = vld [vmem:[#allocation15_spill] sm:$0xff] }
 0x12a   : > { %905 = vst.msk [vmem:[#allocation2 + $0xac] sm:$0xf] %vm332_vm0, %v724_v15  ;;  %v1837_v16 = vshrl.u32 %v9888_v55, 16  ;;  %v1843_v21 = vshll.u32 %v9889_v5, 16  ;;  %v443_v48 = vsel %vm10206_vm5, 0, %v442_v22  ;;  %v8856_v31 = vcombine.low %v2286_v17, %v2289_v41 }
 0x12b   : > { %3534 = vrot.lane.b32.xlu0 %v8887_v62, %s10085_s27  ;;  %v1681_v8 = vsel %vm10253_vm11, %v1679_v24, %v1680_v56  ;;  %444 = vst [vmem:[#allocation2 + $0xb0] sm:$0x1] %v443_v48  ;;  %v1453_v9 = vshrl.u32 %v1115_v26, 16  ;;  %v389_v30 = vld [vmem:[#allocation2 + $0xb4] sm:$0x1]  ;;  %v1831_v20 = vrot.slane %v1830_v58, 4  ;;  %v3664_v4 = vsel %vm3656_vm1, %v3619_v10, %v11351_v18  ;;  %v11542_v24 = vpop.permute.xlu1 %3122 }
 0x12c   : > { %v11528_v11 = vld [vmem:[#allocation2 + $0x34] sm:$0xf]  ;;  %v8808_v27 = vcombine.low %v1678_v49, %v1681_v8  ;;  %v1835_v7 = vrot.slane %v1833_v29, 5  ;;  %v1839_v42 = vrot.slane %v1837_v16, 4  ;;  %v11537_v17 = vld [vmem:[#allocation2 + $0xa0] sm:$0xf]  ;;  %v8824_v58 = vcombine.low %v1727_v28, %v11469_v61 }
 0x12d   : > { %v1455_v41 = vrot.slane %v1453_v9, 4  ;;  %v1456_v54 = vshll.u32 %v1115_v26, 16  ;;  %v1845_v39 = vrot.slane %v1843_v21, 5  ;;  %v11547_v15 = vld [vmem:[#allocation2 + $0xa4] sm:$0x1]  ;;  %v725_v49 = vrot.slane %v11492_v33, 4  ;;  %v11565_v9 = vpop.permute.xlu0 %3522 }
 0x12e   : > { %3136 = vrot.lane.b32.xlu1 %v8808_v27, %s10084_s26  ;;  %v1840_v37 = vor.u32 %v1839_v42, %v1835_v7  ;;  %v1462_v18 = vshll.u32 %v11537_v17, 16  ;;  %v390_v10 = vsel %vm10194_vm3, 0, %v389_v30  ;;  %v11555_v26 = vld [vmem:[%s10224_s25 + $0x70] sm:$0xf]  ;;  %v1836_v29 = vsel %vm10351_vm14, %v1831_v20, %v1835_v7 }
 0x12f   : > { %3360 = vrot.lane.b32.xlu0 %v8856_v31, %s10086_s28  ;;  %v1458_v56 = vrot.slane %v1456_v54, 5  ;;  %v1466_v5 = vshrl.u32 %v11537_v17, 16  ;;  %v3700_v33 = vsel %vm3689_vm2, %v3664_v4, %v11377_v40  ;;  %391 = vst [vmem:[#allocation2 + $0xb4] sm:$0x1] %v390_v10  ;;  %v1472_v28 = vshll.u32 %v11547_v15, 16  ;;  %v11575_v10 = vpop.permute.xlu1 %3218 }
 0x130   : > { %v2336_v55 = vld [vmem:[#allocation2 + $0xa8] sm:$0xf]  ;;  %v1841_v16 = vrot.slane %v1840_v37, 4  ;;  %v3949_v30 = vld [vmem:[#allocation3 + $0x118] sm:$0xff]  ;;  %v727_v34 = vshrl.u32 %v11555_v26, 16 }
 0x131   : > { %v11559_v61 = vld [vmem:[#allocation2 + $0xa8] sm:$0xe]  ;;  %v2337_v21 = vld [vmem:[#allocation2 + $0xac] sm:$0xf]  ;;  %v2649_v48 = vshrl.u32 %v2336_v55, 16  ;;  %v2652_v31 = vshll.u32 %v2336_v55, 16  ;;  %v1459_v8 = vor.u32 %v1458_v56, %v1455_v41  ;;  %9684 = vmatmul.mubr.msk.bf16.gmra.mrb[20].mxu1 %vm987_vm15, %v3949_v30  ;;  %v11588_v22 = vpop.permute.xlu0 %3348 }
 0x132   : > { %v2894_v27 = vrot.slane %v2337_v21, 5  ;;  %v8872_v20 = vcombine.low %v2336_v55, %v2337_v21  ;;  %v1846_v7 = vsel %vm10351_vm14, %v1841_v16, %v1845_v39  ;;  %v906_v42 = vld [vmem:[#allocation2 + $0xb0] sm:$0x1]  ;;  %v2658_v54 = vshll.u32 %v2337_v21, 16  ;;  %3232 = vrot.lane.b32.xlu1 %v8824_v58, %s10085_s27  ;;  %v11570_v40 = vld [vmem:[#allocation2 + $0xac] sm:$0xf] }
 0x133   : > { %v8831_v4 = vcombine.low %v1836_v29, %v1846_v7  ;;  %v907_v41 = vsel %vm10194_vm3, %v725_v49, %v906_v42  ;;  %v2651_v37 = vrot.slane %v2649_v48, 4  ;;  %v2654_v56 = vrot.slane %v2652_v31, 5  ;;  %v2148_v58 = vld [vmem:[#allocation2 + $0xa8] sm:$0xe]  ;;  %14440 = vst [vmem:[#allocation16_spill] sm:$0xff] %v11588_v22 }
 0x134   : > { %3456 = vrot.lane.b32.xlu0 %v8872_v20, %s10084_s26  ;;  %908 = vst [vmem:[#allocation2 + $0xb0] sm:$0x1] %v907_v41  ;;  %v11578_v39 = vrot.slane %v2658_v54, 5  ;;  %v2662_v55 = vshrl.u32 %v2337_v21, 16  ;;  %v1464_v16 = vrot.slane %v1462_v18, 5  ;;  %v8760_v49 = vrot.slane %v11559_v61, 9 }
 0x135   : > { %v3749_v29 = vsel %vm987_vm15, %v8831_v4, %v11314_v35  ;;  %v2655_v30 = vor.u32 %v2654_v56, %v2651_v37  ;;  %v2292_v48 = vrot.slane %v11570_v40, 5  ;;  %v1460_v7 = vrot.slane %v1459_v8, 4  ;;  %v483_v54 = vld [vmem:[%s10224_s25 + $0x74] sm:$0xf] }
 0x136   : > { %v2664_v31 = vrot.slane %v2662_v55, 4  ;;  %v3793_v20 = vsel %vm3656_vm1, %v3749_v29, %v11346_v0  ;;  %v1468_v42 = vrot.slane %v1466_v5, 4  ;;  %v2896_v21 = vrot.slane %v2894_v27, 4  ;;  %v11596_v55 = vpop.permute.xlu1 %3044  ;;  %v909_v22 = vld [vmem:[#allocation2 + $0xb4] sm:$0xf] }
 0x137   : > { %v2656_v41 = vrot.slane %v2655_v30, 4  ;;  %v8745_v18 = vrot.slane %v2148_v58, 9  ;;  %v2294_v62 = vrot.slane %v2292_v48, 4  ;;  %v1474_v61 = vrot.slane %v1472_v28, 5 }
 0x138   : > { %v2665_v35 = vor.u32 %v2664_v31, %v11578_v39  ;;  %v1469_v4 = vor.u32 %v1468_v42, %v1464_v16  ;;  %v3828_v37 = vsel %vm3689_vm2, %v3793_v20, %v11370_v51  ;;  %v1465_v0 = vsel %vm10351_vm14, %v1460_v7, %v1464_v16 }
 0x139   : > { %v729_v8 = vrot.slane %v727_v34, 7  ;;  %v730_v5 = vshll.u32 %v11555_v26, 16  ;;  %v735_v56 = vshrl.u32 %v483_v54, 16  ;;  %4217 = vmatprep.mubr.bf16.mxu0 %v3828_v37  ;;  %v738_v30 = vshll.u32 %v483_v54, 16 }
 0x13a   : > { %v2666_v58 = vrot.slane %v2665_v35, 4  ;;  %v1470_v29 = vrot.slane %v1469_v4, 4  ;;  %v8729_v31 = vrot.slane %v1537_v3, 9  ;;  %4218 = vmatmul.mubr.bf16.gmra.mrb[12].mxu0 %v3700_v33  ;;  %v2895_v51 = vsel %vm10253_vm11, %v8760_v49, %v2894_v27  ;;  %v11609_v49 = vpop.permute.xlu0 %3444 }
 0x13b   : > { %v2356_v28 = vld [vmem:[#allocation2 + $0xb0] sm:$0x1]  ;;  %v732_v42 = vor.u32 %v730_v5, %v729_v8  ;;  %v733_v16 = vrot.slane %v729_v8, 4  ;;  %v11600_v34 = vrot.slane %v735_v56, 7  ;;  %v2293_v54 = vsel %vm10253_vm11, %v8745_v18, %v2292_v48  ;;  %v445_v56 = vld [vmem:[#allocation2 + $0xbc] sm:$0x1] }
 0x13c   : > { %v1748_v20 = vld [vmem:[#allocation2 + $0xb0] sm:$0x1]  ;;  %v2668_v26 = vshll.u32 %v2356_v28, 16  ;;  %v2897_v7 = vrot.slane %v2356_v28, 5  ;;  %v1475_v35 = vsel %vm10351_vm14, %v1470_v29, %v1474_v61  ;;  %v2661_v4 = vsel %vm10351_vm14, %v2656_v41, %v11578_v39  ;;  %v11623_v39 = vpop.permute.xlu1 %3124 }
 0x13d   : > { %v2295_v37 = vrot.slane %v1748_v20, 5  ;;  %v8793_v3 = vcombine.low %v1465_v0, %v1475_v35  ;;  %v740_v33 = vor.u32 %v738_v30, %v11600_v34  ;;  %v910_v27 = vsel %vm10238_vm9, %v732_v42, %v909_v22  ;;  %v9893_v20 = vld [vmem:[#allocation2 + $0x44] sm:$0x1] }
 0x13e   : > { %v2670_v8 = vrot.slane %v2668_v26, 5  ;;  %v2898_v5 = vsel %vm10253_vm11, %v2896_v21, %v2897_v7  ;;  %911 = vst [vmem:[#allocation2 + $0xb4] sm:$0xf] %v910_v27  ;;  %v1684_v61 = vrot.slane %v11537_v17, 5  ;;  %v1687_v0 = vrot.slane %v11547_v15, 5 }
 0x13f   : > { %v8904_v48 = vcombine.low %v2895_v51, %v2898_v5  ;;  %v2296_v18 = vsel %vm10253_vm11, %v2294_v62, %v2295_v37  ;;  %3058 = vrot.lane.b32.xlu1 %v8793_v3, %s10086_s28  ;;  %v741_v22 = vsel %vm10246_vm10, %v733_v16, %v740_v33  ;;  %v14441_v41 = vshrl.u32 %v14439_v25, 16  ;;  %v9892_v15 = vld [vmem:[#allocation2 + $0x40] sm:$0xf]  ;;  %v1729_v37 = vld [vmem:[#allocation2 + $0xa8] sm:$0xf] }
 0x140   : > { %v2671_v17 = vsel %vm10351_vm14, %v2666_v58, %v2670_v8  ;;  %912 = vst.msk [vmem:[#allocation2 + $0xb8] sm:$0xf] %vm332_vm0, %v741_v22  ;;  %v1685_v62 = vsel %vm10253_vm11, %v8729_v31, %v1684_v61  ;;  %v1686_v29 = vrot.slane %v1684_v61, 4  ;;  %v1857_v28 = vshll.u32 %v9892_v15, 16  ;;  %v11644_v8 = vpop.permute.xlu0 %3524  ;;  %v14446_v22 = vld [vmem:[#allocation13_spill] sm:$0xff] }
 0x141   : > { %v11627_v21 = vrot.slane %v14441_v41, 4  ;;  %v8888_v30 = vcombine.low %v2661_v4, %v2671_v17  ;;  %3904 = vst.msk [vmem:[#allocation3 + $0x130] sm:$0xff] %vm987_vm15, %v8904_v48  ;;  %v1861_v51 = vshrl.u32 %v9892_v15, 16  ;;  %v1867_v42 = vshll.u32 %v9893_v20, 16  ;;  %v1117_v4 = vld [vmem:[#allocation2 + $0xa8] sm:$0xf] }
 0x142   : > { %v1992_v16 = vshrl.u32 %v11284_v23, 16  ;;  %v8857_v26 = vcombine.low %v2293_v54, %v2296_v18  ;;  %v1688_v58 = vsel %vm10253_vm11, %v1686_v29, %v1687_v0  ;;  %v446_v7 = vsel %vm10206_vm5, 0, %v445_v56  ;;  %v14445_v18 = vld [vmem:[#allocation12_spill] sm:$0xff] }
 0x143   : > { %3536 = vrot.lane.b32.xlu0 %v8888_v30, %s10085_s27  ;;  %v8809_v31 = vcombine.low %v1685_v62, %v1688_v58  ;;  %v14442_v35 = vor.u32 %v14438_v46, %v14437_v47  ;;  %v1859_v33 = vrot.slane %v1857_v28, 5  ;;  %v1863_v27 = vrot.slane %v1861_v51, 4  ;;  %447 = vst [vmem:[#allocation2 + $0xbc] sm:$0x1] %v446_v7  ;;  %v11657_v46 = vld [vmem:[#allocation2 + $0x3c] sm:$0xf] }
 0x144   : > { %v14443_v54 = vshll.u32 %v14439_v25, 16  ;;  %v14444_v61 = vcombine.low %v11526_v60, %v11528_v11  ;;  %v11659_v0 = vld [vmem:[#allocation2 + $0x40] sm:$0xf]  ;;  %v1869_v62 = vrot.slane %v1867_v42, 5  ;;  %v8825_v60 = vcombine.low %v1729_v37, %v11570_v40 }
 0x145   : > { %v1855_v3 = vrot.slane %v14442_v35, 4  ;;  %v2338_v41 = vld [vmem:[#allocation2 + $0xb4] sm:$0xf]  ;;  %3138 = vrot.lane.b32.xlu1 %v8809_v31, %s10084_s26  ;;  %v1864_v17 = vor.u32 %v1863_v27, %v1859_v33  ;;  %v11668_v11 = vrot.slane %v1992_v16, 4  ;;  %v1477_v15 = vshrl.u32 %v1117_v4, 16 }
 0x146   : > { %v11648_v5 = vrot.slane %v14443_v54, 5  ;;  %v3622_v48 = vsel %vm987_vm15, %v14444_v61, %v11417_v52  ;;  %v11666_v52 = vpop.permute.xlu1 %3220  ;;  %v2673_v29 = vshrl.u32 %v2338_v41, 16  ;;  %v2676_v30 = vshll.u32 %v2338_v41, 16  ;;  %v11676_v42 = vld [vmem:[#allocation2 + $0xb4] sm:$0xe] }
 0x147   : > { %14447 = vst [vmem:[#allocation10_spill] sm:$0xff] %v11668_v11  ;;  %3362 = vrot.lane.b32.xlu0 %v8857_v26, %s10086_s28  ;;  %v742_v28 = vrot.slane %v11600_v34, 4  ;;  %v11672_v51 = vld [vmem:[#allocation2 + $0xb8] sm:$0xf]  ;;  %v1860_v20 = vsel %vm10351_vm14, %v1855_v3, %v1859_v33  ;;  %v1865_v58 = vrot.slane %v1864_v17, 4  ;;  %v3666_v40 = vsel %vm3656_vm1, %v3622_v48, %v11465_v43  ;;  %v11691_v43 = vpop.permute.xlu0 %3350 }
 0x148   : > { %v8873_v16 = vcombine.low %v2338_v41, %v11672_v51  ;;  %v2675_v7 = vrot.slane %v2673_v29, 4  ;;  %v2678_v37 = vrot.slane %v2676_v30, 5  ;;  %v11681_v31 = vld [vmem:[#allocation2 + $0xb4] sm:$0xe]  ;;  %v1480_v26 = vshll.u32 %v1117_v4, 16  ;;  %14448 = vst [vmem:[#allocation11_spill] sm:$0xff] %v11691_v43 }
 0x149   : > { %v2901_v34 = vrot.slane %v11672_v51, 5  ;;  %v1870_v35 = vsel %vm10351_vm14, %v1865_v58, %v1869_v62  ;;  %v2682_v3 = vshll.u32 %v11672_v51, 16  ;;  %v2686_v33 = vshrl.u32 %v11672_v51, 16  ;;  %3234 = vrot.lane.b32.xlu1 %v8825_v60, %s10085_s27  ;;  %v11689_v27 = vld [vmem:[#allocation2 + $0xb8] sm:$0xf] }
 0x14a   : > { %v8832_v54 = vcombine.low %v1860_v20, %v1870_v35  ;;  %v913_v61 = vld [vmem:[#allocation2 + $0xbc] sm:$0x1]  ;;  %v8761_v48 = vrot.slane %v11676_v42, 9  ;;  %v11694_v4 = vld [vmem:[#allocation2 + $0xac] sm:$0xf]  ;;  %v1479_v41 = vrot.slane %v1477_v15, 4  ;;  %v3703_v17 = vsel %vm3689_vm2, %v3666_v40, %v11487_v36  ;;  %v11705_v20 = vpop.permute.xlu1 %3046 }
 0x14b   : > { %3458 = vrot.lane.b32.xlu0 %v8873_v16, %s10084_s26  ;;  %v914_v62 = vsel %vm10194_vm3, %v742_v28, %v913_v61  ;;  %v2679_v60 = vor.u32 %v2678_v37, %v2675_v7  ;;  %v11701_v29 = vrot.slane %v2682_v3, 5  ;;  %v2688_v30 = vrot.slane %v2686_v33, 4  ;;  %v11703_v51 = vld [vmem:[#allocation2 + $0xb0] sm:$0x1]  ;;  %v392_v28 = vld [vmem:[#allocation2 + $0xc0] sm:$0x1]  ;;  %v11723_v47 = vpop.permute.xlu0 %3446 }
 0x14c   : > { %v3752_v15 = vsel %vm987_vm15, %v8832_v54, %v11401_v45  ;;  %915 = vst [vmem:[#allocation2 + $0xbc] sm:$0x1] %v914_v62  ;;  %v8746_v36 = vrot.slane %v11681_v31, 9  ;;  %v2299_v58 = vrot.slane %v11689_v27, 5  ;;  %v1482_v42 = vrot.slane %v1480_v26, 5  ;;  %v3952_v26 = vld [vmem:[#allocation3 + $0x130] sm:$0xff] }
 0x14d   : > { %v2903_v40 = vrot.slane %v2901_v34, 4  ;;  %v3795_v16 = vsel %vm3656_vm1, %v3752_v15, %v11448_v59  ;;  %v1486_v7 = vshll.u32 %v11694_v4, 16  ;;  %v1490_v37 = vshrl.u32 %v11694_v4, 16  ;;  %v484_v35 = vld [vmem:[%s10224_s25 + $0x78] sm:$0xf]  ;;  %14449 = vst [vmem:[#allocation15_spill] sm:$0xff] %v11723_v47  ;;  %9687 = vmatprep.mubr.msk.bf16.mxu1 %vm987_vm15, %v3952_v26 }
 0x14e   : > { %v2689_v3 = vor.u32 %v2688_v30, %v11701_v29  ;;  %v1483_v33 = vor.u32 %v1482_v42, %v1479_v41  ;;  %v1496_v45 = vshll.u32 %v11703_v51, 16  ;;  %v3831_v31 = vsel %vm3689_vm2, %v3795_v16, %v11478_v12  ;;  %v485_v54 = vld [vmem:[%s10224_s25 + $0x7c] sm:$0xf]  ;;  %v1538_v15 = vld [vmem:[#allocation2 + $0xa8] sm:$0xe] }
 0x14f   : > { %v2680_v61 = vrot.slane %v2679_v60, 4  ;;  %v1488_v62 = vrot.slane %v1486_v7, 5  ;;  %v1492_v25 = vrot.slane %v1490_v37, 4  ;;  %v393_v59 = vsel %vm10194_vm3, 0, %v392_v28  ;;  %4225 = vmatprep.mubr.bf16.mxu0 %v3831_v31  ;;  %v11726_v37 = vpop.permute.xlu1 %3126 }
 0x150   : > { %v2301_v41 = vrot.slane %v2299_v58, 4  ;;  %v1484_v30 = vrot.slane %v1483_v33, 4  ;;  %394 = vst [vmem:[#allocation2 + $0xc0] sm:$0x1] %v393_v59  ;;  %v744_v42 = vshrl.u32 %v484_v35, 16  ;;  %v747_v56 = vshll.u32 %v484_v35, 16  ;;  %4226 = vmatmul.mubr.bf16.gmra.mrb[16].mxu0 %v3703_v17 }
 0x151   : > { %v1493_v12 = vor.u32 %v1492_v25, %v1488_v62  ;;  %v1498_v16 = vrot.slane %v1496_v45, 5  ;;  %v752_v60 = vshrl.u32 %v485_v54, 16  ;;  %v755_v7 = vshll.u32 %v485_v54, 16 }
 0x152   : > { %v2690_v11 = vrot.slane %v2689_v3, 4  ;;  %v746_v28 = vrot.slane %v744_v42, 7  ;;  %v8730_v43 = vrot.slane %v1538_v15, 9  ;;  %v1691_v31 = vrot.slane %v11694_v4, 5  ;;  %v11744_v42 = vpop.permute.xlu0 %3526 }
 0x153   : > { %v2357_v47 = vld [vmem:[#allocation2 + $0xbc] sm:$0x1]  ;;  %v2902_v26 = vsel %vm10253_vm11, %v8761_v48, %v2901_v34  ;;  %v1489_v17 = vsel %vm10351_vm14, %v1484_v30, %v1488_v62  ;;  %v1494_v25 = vrot.slane %v1493_v12, 4  ;;  %v11735_v35 = vrot.slane %v752_v60, 7 }
 0x154   : > { %v11731_v33 = vld [vmem:[#allocation2 + $0xbc] sm:$0x1]  ;;  %v2692_v45 = vshll.u32 %v2357_v47, 16  ;;  %v2904_v54 = vrot.slane %v2357_v47, 5  ;;  %v749_v59 = vor.u32 %v747_v56, %v746_v28  ;;  %v2685_v4 = vsel %vm10351_vm14, %v2680_v61, %v11701_v29 }
 0x155   : > { %v2302_v3 = vrot.slane %v11731_v33, 5  ;;  %v1499_v34 = vsel %vm10351_vm14, %v1494_v25, %v1498_v16  ;;  %v750_v48 = vrot.slane %v746_v28, 4  ;;  %v757_v15 = vor.u32 %v755_v7, %v11735_v35  ;;  %v448_v7 = vld [vmem:[#allocation2 + $0xc8] sm:$0x1]  ;;  %v11755_v28 = vpop.permute.xlu1 %3222 }
 0x156   : > { %v2694_v62 = vrot.slane %v2692_v45, 5  ;;  %v2905_v30 = vsel %vm10253_vm11, %v2903_v40, %v2904_v54  ;;  %v8794_v47 = vcombine.low %v1489_v17, %v1499_v34  ;;  %v1694_v12 = vrot.slane %v11703_v51, 5  ;;  %v9897_v45 = vld [vmem:[#allocation2 + $0x50] sm:$0x1]  ;;  %v11766_v54 = vld [vmem:[#allocation2 + $0xb4] sm:$0xf] }
 0x157   : > { %v8905_v56 = vcombine.low %v2902_v26, %v2905_v30  ;;  %v2300_v60 = vsel %vm10253_vm11, %v8746_v36, %v2299_v58  ;;  %v2303_v29 = vsel %vm10253_vm11, %v2301_v41, %v2302_v3  ;;  %v758_v61 = vsel %vm10246_vm10, %v750_v48, %v757_v15  ;;  %v916_v16 = vld [vmem:[#allocation2 + $0xc0] sm:$0xf]  ;;  %v9896_v26 = vld [vmem:[#allocation2 + $0x4c] sm:$0xf]  ;;  %14450 = vst [vmem:[#allocation12_spill] sm:$0xff] %v11766_v54 }
 0x158   : > { %v2695_v40 = vsel %vm10351_vm14, %v2690_v11, %v2694_v62  ;;  %3060 = vrot.lane.b32.xlu1 %v8794_v47, %s10086_s28  ;;  %v917_v51 = vsel %vm10238_vm9, %v749_v59, %v916_v16  ;;  %919 = vst.msk [vmem:[#allocation2 + $0xc4] sm:$0xf] %vm332_vm0, %v758_v61  ;;  %v1692_v36 = vsel %vm10253_vm11, %v8730_v43, %v1691_v31  ;;  %v1693_v58 = vrot.slane %v1691_v31, 4  ;;  %v11777_v34 = vld [vmem:[#allocation2 + $0xb4] sm:$0xf] }
 0x159   : > { %v8889_v41 = vcombine.low %v2685_v4, %v2695_v40  ;;  %3907 = vst.msk [vmem:[#allocation3 + $0x148] sm:$0xff] %vm987_vm15, %v8905_v56  ;;  %918 = vst [vmem:[#allocation2 + $0xc0] sm:$0xf] %v917_v51  ;;  %v1881_v17 = vshll.u32 %v9896_v26, 16  ;;  %v1885_v25 = vshrl.u32 %v9896_v26, 16  ;;  %v1891_v11 = vshll.u32 %v9897_v45, 16  ;;  %v11783_v56 = vpop.permute.xlu0 %3352 }
 0x15a   : > { %v8858_v3 = vcombine.low %v2300_v60, %v2303_v29  ;;  %v1695_v59 = vsel %vm10253_vm11, %v1693_v58, %v1694_v12  ;;  %v14451_v43 = vcombine.low %v11657_v46, %v11659_v0  ;;  %v449_v4 = vsel %vm10206_vm5, 0, %v448_v7  ;;  %v395_v12 = vld [vmem:[#allocation2 + $0xcc] sm:$0x1]  ;;  %v11790_v60 = vld [vmem:[#allocation2 + $0xb8] sm:$0xf]  ;;  %v11799_v7 = vpop.permute.xlu1 %3048  ;;  %v14455_v58 = vld [vmem:[#allocation14_spill] sm:$0xff] }
 0x15b   : > { %3538 = vrot.lane.b32.xlu0 %v8889_v41, %s10085_s27  ;;  %v8810_v48 = vcombine.low %v1692_v36, %v1695_v59  ;;  %v14452_v15 = vor.u32 %v14446_v22, %v14445_v18  ;;  %v1883_v30 = vrot.slane %v1881_v17, 5  ;;  %v1887_v47 = vrot.slane %v1885_v25, 4  ;;  %450 = vst [vmem:[#allocation2 + $0xc8] sm:$0x1] %v449_v4  ;;  %14454 = vst [vmem:[#allocation13_spill] sm:$0xff] %v11790_v60  ;;  %v14456_v41 = vld [vmem:[#allocation17_spill] sm:$0xff] }
 0x15c   : > { %v3625_v31 = vsel %vm987_vm15, %v14451_v43, %v11506_v53  ;;  %v14453_v53 = vshll.u32 %v11284_v23, 16  ;;  %v1501_v29 = vshrl.u32 %v11766_v54, 16  ;;  %v1504_v61 = vshll.u32 %v11766_v54, 16  ;;  %v11802_v51 = vld [vmem:[#allocation2 + $0xbc] sm:$0x1] }
 0x15d   : > { %v1879_v62 = vrot.slane %v14452_v15, 4  ;;  %3140 = vrot.lane.b32.xlu1 %v8810_v48, %s10084_s26  ;;  %v1888_v18 = vor.u32 %v1887_v47, %v1883_v30  ;;  %v1893_v22 = vrot.slane %v1891_v11, 5  ;;  %v8826_v16 = vcombine.low %v11777_v34, %v11689_v27  ;;  %v9898_v17 = vld [vmem:[#allocation2 + $0x48] sm:$0xf]  ;;  %v9899_v25 = vld [vmem:[#allocation2 + $0x4c] sm:$0xf] }
 0x15e   : > { %v11787_v46 = vrot.slane %v14453_v53, 5  ;;  %v3668_v23 = vsel %vm3656_vm1, %v3625_v31, %v11542_v24  ;;  %v759_v40 = vrot.slane %v11735_v35, 4  ;;  %v396_v36 = vsel %vm10194_vm3, 0, %v395_v12  ;;  %v11826_v26 = vpop.permute.xlu1 %3128  ;;  %v9900_v54 = vld [vmem:[#allocation2 + $0x58] sm:$0xf] }
 0x15f   : > { %v8770_v45 = vcombine.low %v9898_v17, %v9899_v25  ;;  %3364 = vrot.lane.b32.xlu0 %v8858_v3, %s10086_s28  ;;  %v2341_v27 = vld [vmem:[#allocation2 + $0xc4] sm:$0xf]  ;;  %v1884_v24 = vsel %vm10351_vm14, %v1879_v62, %v1883_v30  ;;  %v1889_v11 = vrot.slane %v1888_v18, 4  ;;  %v1510_v35 = vshll.u32 %v11790_v60, 16  ;;  %397 = vst [vmem:[#allocation2 + $0xcc] sm:$0x1] %v396_v36  ;;  %v11818_v30 = vpop.permute.xlu0 %3448 }
 0x160   : > { %v1514_v59 = vshrl.u32 %v11790_v60, 16  ;;  %v2340_v43 = vld [vmem:[#allocation2 + $0xc0] sm:$0xf]  ;;  %v2706_v31 = vshll.u32 %v2341_v27, 16  ;;  %v2710_v4 = vshrl.u32 %v2341_v27, 16  ;;  %v1503_v48 = vrot.slane %v1501_v29, 4 }
 0x161   : > { %v1506_v15 = vrot.slane %v1504_v61, 5  ;;  %v2697_v47 = vshrl.u32 %v2340_v43, 16  ;;  %v2700_v12 = vshll.u32 %v2340_v43, 16  ;;  %v8874_v53 = vcombine.low %v2340_v43, %v2341_v27  ;;  %v2758_v17 = vld [vmem:[#allocation2 + $0xc0] sm:$0xe]  ;;  %3236 = vrot.lane.b32.xlu1 %v8826_v16, %s10085_s27 }
 0x162   : > { %v1894_v3 = vsel %vm10351_vm14, %v1889_v11, %v1893_v22  ;;  %v11816_v62 = vld [vmem:[#allocation2 + $0xc4] sm:$0xf]  ;;  %v920_v36 = vld [vmem:[#allocation2 + $0xc8] sm:$0x1]  ;;  %v11820_v25 = vrot.slane %v2706_v31, 5  ;;  %v2712_v0 = vrot.slane %v2710_v4, 4 }
 0x163   : > { %v8833_v18 = vcombine.low %v1884_v24, %v1894_v3  ;;  %v1520_v29 = vshll.u32 %v11802_v51, 16  ;;  %v3955_v61 = vld [vmem:[#allocation3 + $0x148] sm:$0xff]  ;;  %3460 = vrot.lane.b32.xlu0 %v8874_v53, %s10084_s26  ;;  %v921_v22 = vsel %vm10194_vm3, %v759_v40, %v920_v36  ;;  %v2699_v11 = vrot.slane %v2697_v47, 4  ;;  %v11839_v36 = vld [vmem:[#allocation2 + $0xd0] sm:$0xf] }
 0x164   : > { %v2702_v43 = vrot.slane %v2700_v12, 5  ;;  %v1512_v16 = vrot.slane %v1510_v35, 5  ;;  %9688 = vmatmul.mubr.msk.bf16.gmra.mrb[24].mxu1 %vm987_vm15, %v3955_v61  ;;  %v2908_v24 = vrot.slane %v2341_v27, 5  ;;  %922 = vst [vmem:[#allocation2 + $0xc8] sm:$0x1] %v921_v22  ;;  %v8762_v4 = vrot.slane %v2758_v17, 9 }
 0x165   : > { %v3755_v31 = vsel %vm987_vm15, %v8833_v18, %v11494_v14  ;;  %v2150_v3 = vld [vmem:[#allocation2 + $0xc0] sm:$0xe]  ;;  %v2306_v38 = vrot.slane %v11816_v62, 5  ;;  %v2713_v1 = vor.u32 %v2712_v0, %v11820_v25  ;;  %v1507_v35 = vor.u32 %v1506_v15, %v1503_v48  ;;  %v14457_v17 = vld [vmem:[#allocation18_spill] sm:$0xff]  ;;  %v11849_v48 = vpop.permute.xlu0 %3528 }
 0x166   : > { %v2703_v53 = vor.u32 %v2702_v43, %v2699_v11  ;;  %v3797_v40 = vsel %vm3656_vm1, %v3755_v31, %v11532_v63  ;;  %v1516_v47 = vrot.slane %v1514_v59, 4  ;;  %v3706_v12 = vsel %vm3689_vm2, %v3668_v23, %v11575_v10  ;;  %v11837_v27 = vld [vmem:[#allocation2 + $0xcc] sm:$0xf]  ;;  %v1539_v59 = vld [vmem:[#allocation2 + $0xb4] sm:$0xe] }
 0x167   : > { %v11843_v14 = vsel %vm987_vm15, %v8770_v45, %v11596_v55  ;;  %v8747_v61 = vrot.slane %v2150_v3, 9  ;;  %v1508_v22 = vrot.slane %v1507_v35, 4  ;;  %v3834_v63 = vsel %vm3689_vm2, %v3797_v40, %v11565_v9  ;;  %v11855_v3 = vpop.permute.xlu1 %3224 }
 0x168   : > { %v2704_v0 = vrot.slane %v2703_v53, 4  ;;  %v2910_v10 = vrot.slane %v2908_v24, 4  ;;  %v2308_v23 = vrot.slane %v2306_v38, 4  ;;  %v1517_v15 = vor.u32 %v1516_v47, %v1512_v16  ;;  %4233 = vmatprep.mubr.bf16.mxu0 %v3834_v63 }
 0x169   : > { %v1522_v11 = vrot.slane %v1520_v29, 5  ;;  %v2714_v43 = vrot.slane %v2713_v1, 4  ;;  %v2909_v55 = vsel %vm10253_vm11, %v8762_v4, %v2908_v24  ;;  %v2721_v45 = vshrl.u32 %v11837_v27, 16  ;;  %4234 = vmatmul.mubr.bf16.gmra.mrb[20].mxu0 %v3706_v12  ;;  %v11876_v32 = vpop.permute.xlu0 %3354 }
 0x16a   : > { %v2724_v31 = vshll.u32 %v11837_v27, 16  ;;  %v1513_v9 = vsel %vm10351_vm14, %v1508_v22, %v1512_v16  ;;  %v1518_v53 = vrot.slane %v1517_v15, 4  ;;  %v2734_v40 = vshrl.u32 %v11839_v36, 16 }
 0x16b   : > { %v8731_v35 = vrot.slane %v1539_v59, 9  ;;  %v2358_v29 = vld [vmem:[#allocation2 + $0xc8] sm:$0x1]  ;;  %v2709_v1 = vsel %vm10351_vm14, %v2704_v0, %v11820_v25  ;;  %v11867_v4 = vsel %vm10253_vm11, %v8747_v61, %v2306_v38  ;;  %v1698_v47 = vrot.slane %v11790_v60, 5  ;;  %v451_v60 = vld [vmem:[#allocation2 + $0xd4] sm:$0x1] }
 0x16c   : > { %v11863_v24 = vld [vmem:[#allocation2 + $0xc8] sm:$0x1]  ;;  %v1701_v12 = vrot.slane %v11802_v51, 5  ;;  %v2716_v16 = vshll.u32 %v2358_v29, 16  ;;  %v2911_v22 = vrot.slane %v2358_v29, 5  ;;  %v1523_v59 = vsel %vm10351_vm14, %v1518_v53, %v1522_v11 }
 0x16d   : > { %14458 = vst [vmem:[#allocation14_spill] sm:$0xff] %v11863_v24  ;;  %v2309_v63 = vrot.slane %v11863_v24, 5  ;;  %v8795_v15 = vcombine.low %v1513_v9, %v1523_v59  ;;  %v2723_v18 = vrot.slane %v2721_v45, 4  ;;  %v1699_v25 = vsel %vm10253_vm11, %v8731_v35, %v1698_v47  ;;  %v11885_v53 = vld [vmem:[#allocation2 + $0xc0] sm:$0xf]  ;;  %v11887_v35 = vpop.permute.xlu1 %3050 }
 0x16e   : > { %v1700_v0 = vrot.slane %v1698_v47, 4  ;;  %v2718_v38 = vrot.slane %v2716_v16, 5  ;;  %v2912_v61 = vsel %vm10253_vm11, %v2910_v10, %v2911_v22  ;;  %v2726_v51 = vrot.slane %v2724_v31, 5  ;;  %v9901_v16 = vld [vmem:[#allocation2 + $0x5c] sm:$0x1] }
 0x16f   : > { %v1905_v29 = vshll.u32 %v9900_v54, 16  ;;  %v8906_v24 = vcombine.low %v2909_v55, %v2912_v61  ;;  %v2310_v11 = vsel %vm10253_vm11, %v2308_v23, %v2309_v63  ;;  %3062 = vrot.lane.b32.xlu1 %v8795_v15, %s10086_s28  ;;  %v1909_v9 = vshrl.u32 %v9900_v54, 16  ;;  %v11897_v59 = vld [vmem:[#allocation2 + $0x90] sm:$0xf] }
 0x170   : > { %v1702_v45 = vsel %vm10253_vm11, %v1700_v0, %v1701_v12  ;;  %v2719_v10 = vsel %vm10351_vm14, %v2714_v43, %v2718_v38  ;;  %v1915_v55 = vshll.u32 %v9901_v16, 16  ;;  %v14459_v23 = vor.u32 %v14456_v41, %v14455_v58  ;;  %v9903_v38 = vld [vmem:[#allocation2 + $0x64] sm:$0xf] }
 0x171   : > { %v8811_v31 = vcombine.low %v1699_v25, %v1702_v45  ;;  %v1907_v47 = vrot.slane %v1905_v29, 5  ;;  %v8890_v22 = vcombine.low %v2709_v1, %v2719_v10  ;;  %3910 = vst.msk [vmem:[#allocation3 + $0x160] sm:$0xff] %vm987_vm15, %v8906_v24  ;;  %v1911_v12 = vrot.slane %v1909_v9, 4  ;;  %v11906_v24 = vpop.permute.xlu0 %3450  ;;  %v11918_v10 = vpop.permute.xlu1 %3130 }
 0x172   : > { %v1903_v63 = vrot.slane %v14459_v23, 4  ;;  %v452_v54 = vsel %vm10206_vm5, 0, %v451_v60  ;;  %v2019_v15 = vshll.u32 %v11897_v59, 16  ;;  %v2730_v43 = vshll.u32 %v11839_v36, 16 }
 0x173   : > { %453 = vst [vmem:[#allocation2 + $0xd4] sm:$0x1] %v452_v54  ;;  %v2736_v25 = vrot.slane %v2734_v40, 4  ;;  %v8827_v1 = vcombine.low %v11885_v53, %v11816_v62  ;;  %3540 = vrot.lane.b32.xlu0 %v8890_v22, %s10085_s27  ;;  %v8859_v58 = vcombine.low %v11867_v4, %v2310_v11  ;;  %3142 = vrot.lane.b32.xlu1 %v8811_v31, %s10084_s26  ;;  %v1917_v2 = vrot.slane %v1915_v55, 5 }
 0x174   : > { %v1912_v41 = vor.u32 %v1911_v12, %v1907_v47  ;;  %v2727_v60 = vor.u32 %v2726_v51, %v2723_v18  ;;  %v11908_v0 = vrot.slane %v2730_v43, 5  ;;  %v3670_v40 = vsel %vm3656_vm1, %v11843_v14, %v11623_v39  ;;  %v9904_v18 = vld [vmem:[#allocation2 + $0x68] sm:$0x1] }
 0x175   : > { %v1929_v61 = vshll.u32 %v9903_v38, 16  ;;  %v1933_v29 = vshrl.u32 %v9903_v38, 16  ;;  %v1908_v45 = vsel %vm10351_vm14, %v1903_v63, %v1907_v47  ;;  %v14460_v11 = vor.u32 %v11432_v57, %v14457_v17  ;;  %v9905_v57 = vld [vmem:[#allocation2 + $0x54] sm:$0xf]  ;;  %v9906_v17 = vld [vmem:[#allocation2 + $0x58] sm:$0xf]  ;;  %v11935_v38 = vpop.permute.xlu0 %3530 }
 0x176   : > { %v1913_v4 = vrot.slane %v1912_v41, 4  ;;  %v1939_v51 = vshll.u32 %v9904_v18, 16  ;;  %v8875_v31 = vcombine.low %v11837_v27, %v11839_v36  ;;  %v2737_v39 = vor.u32 %v2736_v25, %v11908_v0  ;;  %v11946_v18 = vpop.permute.xlu1 %3226 }
 0x177   : > { %v1927_v9 = vrot.slane %v14460_v11, 4  ;;  %v1931_v14 = vrot.slane %v1929_v61, 5  ;;  %v1935_v16 = vrot.slane %v1933_v29, 4  ;;  %3366 = vrot.lane.b32.xlu0 %v8859_v58, %s10086_s28  ;;  %v2728_v55 = vrot.slane %v2727_v60, 4  ;;  %3238 = vrot.lane.b32.xlu1 %v8827_v1, %s10085_s27  ;;  %v9907_v1 = vld [vmem:[#allocation2 + $0x70] sm:$0xf] }
 0x178   : > { %v1918_v47 = vsel %vm10351_vm14, %v1913_v4, %v1917_v2  ;;  %v8771_v22 = vcombine.low %v9905_v57, %v9906_v17  ;;  %v1950_v23 = vor.u32 %v11460_v13, %v11452_v6  ;;  %v2738_v27 = vrot.slane %v2737_v39, 4  ;;  %v3958_v43 = vld [vmem:[#allocation3 + $0x160] sm:$0xff]  ;;  %v14461_v6 = vld [vmem:[#allocation16_spill] sm:$0xff] }
 0x179   : > { %v8834_v63 = vcombine.low %v1908_v45, %v1918_v47  ;;  %v1936_v12 = vor.u32 %v1935_v16, %v1931_v14  ;;  %v1941_v54 = vrot.slane %v1939_v51, 5  ;;  %v1932_v58 = vsel %vm10351_vm14, %v1927_v9, %v1931_v14  ;;  %9691 = vmatprep.mubr.msk.bf16.mxu1 %vm987_vm15, %v3958_v43 }
 0x17a   : > { %v11929_v25 = vld [vmem:[#allocation2 + $0xd4] sm:$0x1]  ;;  %v3631_v41 = vsel %vm987_vm15, %v8771_v22, %v11705_v20  ;;  %v1953_v2 = vshll.u32 %v9907_v1, 16  ;;  %v1957_v60 = vshrl.u32 %v9907_v1, 16  ;;  %v1951_v45 = vrot.slane %v1950_v23, 4  ;;  %v14462_v23 = vld [vmem:[#allocation11_spill] sm:$0xff] }
 0x17b   : > { %v3758_v13 = vsel %vm987_vm15, %v8834_v63, %v14461_v6  ;;  %v2740_v61 = vshll.u32 %v11929_v25, 16  ;;  %v1937_v29 = vrot.slane %v1936_v12, 4  ;;  %3462 = vrot.lane.b32.xlu0 %v8875_v31, %s10084_s26  ;;  %v3709_v20 = vsel %vm3689_vm2, %v3670_v40, %v11666_v52  ;;  %v9908_v40 = vld [vmem:[#allocation2 + $0x74] sm:$0x1]  ;;  %v9910_v1 = vld [vmem:[#allocation2 + $0x60] sm:$0xf] }
 0x17c   : > { %v3799_v4 = vsel %vm3656_vm1, %v3758_v13, %v11609_v49  ;;  %v1955_v11 = vrot.slane %v1953_v2, 5  ;;  %v1959_v9 = vrot.slane %v1957_v60, 4  ;;  %v2733_v51 = vsel %vm10351_vm14, %v2728_v55, %v11908_v0  ;;  %v9909_v55 = vld [vmem:[#allocation2 + $0x7c] sm:$0xf]  ;;  %v9911_v2 = vld [vmem:[#allocation2 + $0x64] sm:$0xf] }
 0x17d   : > { %v2742_v39 = vrot.slane %v2740_v61, 5  ;;  %v3837_v14 = vsel %vm3689_vm2, %v3799_v4, %v11644_v8  ;;  %v1942_v31 = vsel %vm10351_vm14, %v1937_v29, %v1941_v54  ;;  %v3672_v49 = vsel %vm3656_vm1, %v3631_v41, %v11726_v37  ;;  %v11965_v54 = vpop.permute.xlu0 %3356  ;;  %v11978_v61 = vpop.permute.xlu1 %3052  ;;  %v9912_v4 = vld [vmem:[#allocation2 + $0x80] sm:$0x1] }
 0x17e   : > { %v8835_v16 = vcombine.low %v1932_v58, %v1942_v31  ;;  %4241 = vmatprep.mubr.bf16.mxu0 %v3837_v14  ;;  %v1960_v52 = vor.u32 %v1959_v9, %v1955_v11  ;;  %v1963_v47 = vshll.u32 %v9908_v40, 16  ;;  %v1956_v0 = vsel %vm10351_vm14, %v1951_v45, %v1955_v11  ;;  %v14464_v58 = vld [vmem:[#allocation15_spill] sm:$0xff] }
 0x17f   : > { %v2743_v57 = vsel %vm10351_vm14, %v2738_v27, %v2742_v39  ;;  %4242 = vmatmul.mubr.bf16.gmra.mrb[24].mxu0 %v3709_v20  ;;  %v1974_v8 = vor.u32 %v11648_v5, %v11627_v21  ;;  %v1977_v17 = vshll.u32 %v9909_v55, 16  ;;  %v14463_v43 = vshrl.u32 %v11423_v50, 16  ;;  %v9913_v39 = vld [vmem:[#allocation2 + $0x88] sm:$0xf] }
 0x180   : > { %v8891_v22 = vcombine.low %v2733_v51, %v2743_v57  ;;  %v3761_v37 = vsel %vm987_vm15, %v8835_v16, %v14462_v23  ;;  %v1961_v63 = vrot.slane %v1960_v52, 4  ;;  %v1965_v12 = vrot.slane %v1963_v47, 5  ;;  %v9914_v16 = vld [vmem:[#allocation2 + $0x8c] sm:$0x1] }
 0x181   : > { %v11969_v27 = vrot.slane %v14463_v43, 4  ;;  %v3801_v41 = vsel %vm3656_vm1, %v3761_v37, %v14464_v58  ;;  %v8772_v21 = vcombine.low %v9910_v1, %v9911_v2  ;;  %v1979_v6 = vrot.slane %v1977_v17, 5  ;;  %v3453_v47 = vpop.permute.xlu0 %3452  ;;  %v3133_v37 = vpop.permute.xlu1 %3132  ;;  %v9917_v58 = vld [vmem:[#allocation2 + $0x94] sm:$0xf] }
 0x182   : > { %3542 = vrot.lane.b32.xlu0 %v8891_v22, %s10085_s27  ;;  %v3840_v5 = vsel %vm3689_vm2, %v3801_v41, %v11744_v42  ;;  %v1966_v60 = vsel %vm10351_vm14, %v1961_v63, %v1965_v12  ;;  %v1981_v13 = vshrl.u32 %v9909_v55, 16  ;;  %v2021_v50 = vrot.slane %v2019_v15, 5  ;;  %v14465_v42 = vld [vmem:[#allocation10_spill] sm:$0xff] }
 0x183   : > { %v3712_v29 = vsel %vm3689_vm2, %v3672_v49, %v11755_v28  ;;  %v8836_v45 = vcombine.low %v1956_v0, %v1966_v60  ;;  %4249 = vmatprep.mubr.bf16.mxu0 %v3840_v5  ;;  %v1987_v20 = vshll.u32 %v9912_v4, 16  ;;  %v1975_v11 = vrot.slane %v1974_v8, 4  ;;  %v9916_v22 = vld [vmem:[#allocation2 + $0x70] sm:$0xf] }
 0x184   : > { %v1983_v9 = vrot.slane %v1981_v13, 4  ;;  %v1998_v51 = vor.u32 %v11787_v46, %v14465_v42  ;;  %v2001_v14 = vshll.u32 %v9913_v39, 16  ;;  %v3634_v59 = vsel %vm987_vm15, %v8772_v21, %v11799_v7  ;;  %v9918_v21 = vld [vmem:[#allocation2 + $0x98] sm:$0x1] }
 0x185   : > { %v3764_v31 = vsel %vm987_vm15, %v8836_v45, %v11783_v56  ;;  %v2005_v15 = vshrl.u32 %v9913_v39, 16  ;;  %v2011_v28 = vshll.u32 %v9914_v16, 16  ;;  %v1989_v40 = vrot.slane %v1987_v20, 5  ;;  %v11994_v56 = vpop.f32.mrb[0].mxu1  ;;  %v9919_v16 = vld [vmem:[#allocation2 + $0x78] sm:$0xf] }
 0x186   : > { %v3803_v49 = vsel %vm3656_vm1, %v3764_v31, %v11818_v30  ;;  %v1984_v52 = vor.u32 %v1983_v9, %v1979_v6  ;;  %v1999_v57 = vrot.slane %v1998_v51, 4  ;;  %v2003_v0 = vrot.slane %v2001_v14, 5  ;;  %v9915_v30 = vld [vmem:[#allocation2 + $0x6c] sm:$0xf]  ;;  %v12000_v63 = vpop.f32.mrb[1].mxu1  ;;  %v3229_v14 = vpop.permute.xlu1 %3228 }
 0x187   : > { %4250 = vmatmul.mubr.bf16.gmra.mrb[28].mxu0 %v3712_v29  ;;  %v3843_v46 = vsel %vm3689_vm2, %v3803_v49, %v11849_v48  ;;  %v2007_v8 = vrot.slane %v2005_v15, 4  ;;  %v3674_v7 = vsel %vm3656_vm1, %v3634_v59, %v11826_v26  ;;  %v1980_v55 = vsel %vm10351_vm14, %v1975_v11, %v1979_v6  ;;  %v12003_v1 = vpop.f32.mrb[2].mxu1 }
 0x188   : > { %v1985_v17 = vrot.slane %v1984_v52, 4  ;;  %v8773_v23 = vcombine.low %v9915_v30, %v9916_v22  ;;  %4257 = vmatprep.mubr.bf16.mxu0 %v3843_v46  ;;  %v2013_v12 = vrot.slane %v2011_v28, 5  ;;  %v2022_v43 = vor.u32 %v2021_v50, %v11969_v27  ;;  %v12007_v60 = vpop.f32.mrb[3].mxu1  ;;  %v3533_v50 = vpop.permute.xlu0 %3532  ;;  %v9920_v28 = vld [vmem:[#allocation2 + $0x7c] sm:$0xf] }
 0x189   : > { %v2008_v48 = vor.u32 %v2007_v8, %v2003_v0  ;;  %v2025_v41 = vshll.u32 %v9917_v58, 16  ;;  %v2029_v2 = vshrl.u32 %v9917_v58, 16  ;;  %v2035_v5 = vshll.u32 %v9918_v21, 16  ;;  %v9923_v30 = vld [vmem:[#allocation2 + $0x9c] sm:$0xf] }
 0x18a   : > { %v1990_v26 = vsel %vm10351_vm14, %v1985_v17, %v1989_v40  ;;  %v2004_v13 = vsel %vm10351_vm14, %v1999_v57, %v2003_v0  ;;  %v3715_v27 = vsel %vm3689_vm2, %v3674_v7, %v11855_v3  ;;  %v3637_v11 = vsel %vm987_vm15, %v8773_v23, %v11887_v35  ;;  %v3055_v46 = vpop.permute.xlu1 %3054  ;;  %v9922_v7 = vld [vmem:[#allocation2 + $0x88] sm:$0xf]  ;;  %v9924_v58 = vld [vmem:[#allocation2 + $0xa0] sm:$0xf] }
 0x18b   : > { %v8837_v6 = vcombine.low %v1980_v55, %v1990_v26  ;;  %v2009_v29 = vrot.slane %v2008_v48, 4  ;;  %v2027_v45 = vrot.slane %v2025_v41, 5  ;;  %v2031_v4 = vrot.slane %v2029_v2, 4  ;;  %v2759_v26 = vld [vmem:[#allocation2 + $0xcc] sm:$0xe] }
 0x18c   : > { %v2023_v42 = vrot.slane %v2022_v43, 4  ;;  %v2037_v3 = vrot.slane %v2035_v5, 5  ;;  %v3676_v15 = vsel %vm3656_vm1, %v3637_v11, %v11918_v10  ;;  %v8774_v49 = vcombine.low %v9919_v16, %v9920_v28 }
 0x18d   : > { %v3767_v20 = vsel %vm987_vm15, %v8837_v6, %v11876_v32  ;;  %v2014_v9 = vsel %vm10351_vm14, %v2009_v29, %v2013_v12  ;;  %v2032_v31 = vor.u32 %v2031_v4, %v2027_v45  ;;  %v2915_v10 = vrot.slane %v11839_v36, 5  ;;  %v6706_v29 = vld [vmem:[#allocation2 + $0xcc] sm:$0xe]  ;;  %v5043_v4 = vld [vmem:[#allocation2] sm:$0xf] }
 0x18e   : > { %v3805_v51 = vsel %vm3656_vm1, %v3767_v20, %v11906_v24  ;;  %v8838_v39 = vcombine.low %v2004_v13, %v2014_v9  ;;  %v2028_v52 = vsel %vm10351_vm14, %v2023_v42, %v2027_v45  ;;  %v3640_v8 = vsel %vm987_vm15, %v8774_v49, %v11978_v61  ;;  %v3135_v36 = vpop.permute.xlu1 %3134  ;;  %v6290_v9 = vld [vmem:[#allocation2 + $0xd0] sm:$0xf]  ;;  %v6306_v42 = vld [vmem:[#allocation2 + $0xd4] sm:$0x1]  ;;  %v9925_v49 = vld [vmem:[#allocation2 + $0xa4] sm:$0x1] }
 0x18f   : > { %4258 = vmatmul.mubr.bf16.gmra.mrb[32].mxu0 %v3715_v27  ;;  %v3846_v59 = vsel %vm3689_vm2, %v3805_v51, %v11935_v38  ;;  %v2033_v35 = vrot.slane %v2032_v31, 4  ;;  %v3359_v38 = vpop.permute.xlu0 %3358  ;;  %v2040_v22 = vshrl.u32 %v9923_v30, 16  ;;  %v2043_v23 = vshll.u32 %v9923_v30, 16  ;;  %v5044_v51 = vld [vmem:[#allocation2 + $0x4] sm:$0xf] }
 0x190   : > { %v3770_v32 = vsel %vm987_vm15, %v8838_v39, %v11965_v54  ;;  %4265 = vmatprep.mubr.bf16.mxu0 %v3846_v59  ;;  %v3718_v54 = vsel %vm3689_vm2, %v3676_v15, %v11946_v18  ;;  %v3678_v18 = vsel %vm3656_vm1, %v3640_v8, %v3133_v37  ;;  %v2917_v12 = vrot.slane %v2915_v10, 4  ;;  %v5475_v30 = vld [vmem:[#allocation2] sm:$0xe] }
 0x191   : > { %v3807_v24 = vsel %vm3656_vm1, %v3770_v32, %v3453_v47  ;;  %v2038_v40 = vsel %vm10351_vm14, %v2033_v35, %v2037_v3  ;;  %v9921_v47 = vld [vmem:[#allocation2 + $0x84] sm:$0xf]  ;;  %v2918_v43 = vrot.slane %v11929_v25, 5  ;;  %v2049_v41 = vshll.u32 %v9924_v58, 16 }
 0x192   : > { %v3849_v57 = vsel %vm3689_vm2, %v3807_v24, %v3533_v50  ;;  %v8839_v0 = vcombine.low %v2028_v52, %v2038_v40  ;;  %v8775_v55 = vcombine.low %v9921_v47, %v9922_v7  ;;  %v2053_v61 = vshrl.u32 %v9924_v58, 16  ;;  %v3231_v39 = vpop.permute.xlu1 %3230  ;;  %v5075_v40 = vld [vmem:[#allocation2 + $0x8] sm:$0x1] }
 0x193   : > { %v3455_v17 = vpop.permute.xlu0 %3454  ;;  %v3721_v2 = vsel %vm3689_vm2, %v3678_v18, %v3229_v14  ;;  %v2042_v6 = vrot.slane %v2040_v22, 4  ;;  %v2045_v13 = vrot.slane %v2043_v23, 5  ;;  %v12044_v27 = vrot.slane %v2049_v41, 5 }
 0x194   : > { %v3773_v48 = vsel %vm987_vm15, %v8839_v0, %v3359_v38  ;;  %v3643_v21 = vsel %vm987_vm15, %v8775_v55, %v3055_v46  ;;  %v2055_v50 = vrot.slane %v2053_v61, 4  ;;  %v8763_v45 = vrot.slane %v2759_v26, 9 }
 0x195   : > { %v3809_v5 = vsel %vm3656_vm1, %v3773_v48, %v3455_v17  ;;  %v2919_v25 = vsel %vm10253_vm11, %v2917_v12, %v2918_v43  ;;  %v3680_v20 = vsel %vm3656_vm1, %v3643_v21, %v3135_v36  ;;  %v9022_v31 = vrot.slane %v6706_v29, 9 }
 0x196   : > { %v2916_v14 = vsel %vm10253_vm11, %v8763_v45, %v2915_v10  ;;  %v6862_v3 = vrot.slane %v6290_v9, 5  ;;  %v6865_v59 = vrot.slane %v6306_v42, 5  ;;  %v2046_v32 = vor.u32 %v2045_v13, %v2042_v6  ;;  %v3057_v12 = vpop.permute.xlu1 %3056 }
 0x197   : > { %4266 = vmatmul.mubr.bf16.gmra.mrb[36].mxu0 %v3718_v54  ;;  %v8907_v35 = vcombine.low %v2916_v14, %v2919_v25  ;;  %v5092_v15 = vshrl.u32 %v5043_v4, 16  ;;  %v5095_v16 = vshll.u32 %v5043_v4, 16  ;;  %v2056_v28 = vor.u32 %v2055_v50, %v12044_v27  ;;  %v9926_v25 = vld [vmem:[#allocation2 + $0x90] sm:$0xf]  ;;  %v9927_v4 = vld [vmem:[#allocation2 + $0x94] sm:$0xf] }
 0x198   : > { %4273 = vmatprep.mubr.bf16.mxu0 %v3849_v57  ;;  %v2059_v24 = vshll.u32 %v9925_v49, 16  ;;  %v6864_v52 = vrot.slane %v6862_v3, 4  ;;  %v5101_v38 = vshll.u32 %v5044_v51, 16  ;;  %v3724_v54 = vsel %vm3689_vm2, %v3680_v20, %v3231_v39  ;;  %v9929_v49 = vld [vmem:[#allocation2 + $0xac] sm:$0xf] }
 0x199   : > { %3913 = vst.msk [vmem:[#allocation3 + $0x178] sm:$0xff] %vm987_vm15, %v8907_v35  ;;  %v5094_v46 = vrot.slane %v5092_v15, 4  ;;  %v5097_v57 = vrot.slane %v5095_v16, 5  ;;  %v6863_v0 = vsel %vm10253_vm11, %v9022_v31, %v6862_v3  ;;  %v5105_v47 = vshrl.u32 %v5044_v51, 16  ;;  %v9928_v35 = vld [vmem:[#allocation2 + $0xa8] sm:$0xf] }
 0x19a   : > { %v6866_v10 = vsel %vm10253_vm11, %v6864_v52, %v6865_v59  ;;  %v5103_v8 = vrot.slane %v5101_v38, 5  ;;  %v2047_v7 = vrot.slane %v2046_v32, 4  ;;  %v5111_v17 = vshll.u32 %v5075_v40, 16 }
 0x19b   : > { %v5098_v55 = vor.u32 %v5097_v57, %v5094_v46  ;;  %v2057_v22 = vrot.slane %v2056_v28, 4  ;;  %v2061_v23 = vrot.slane %v2059_v24, 5  ;;  %v5107_v18 = vrot.slane %v5105_v47, 4 }
 0x19c   : > { %v5541_v48 = vrot.slane %v5044_v51, 5  ;;  %v9166_v43 = vcombine.low %v6863_v0, %v6866_v10  ;;  %v5544_v58 = vrot.slane %v5075_v40, 5  ;;  %v5113_v61 = vrot.slane %v5111_v17, 5 }
 0x19d   : > { %v3535_v37 = vpop.permute.xlu0 %3534  ;;  %v5099_v36 = vrot.slane %v5098_v55, 4  ;;  %v5108_v41 = vor.u32 %v5107_v18, %v5103_v8  ;;  %v8975_v26 = vrot.slane %v5475_v30, 9  ;;  %v2052_v21 = vsel %vm10351_vm14, %v2047_v7, %v12044_v27  ;;  %v9930_v30 = vld [vmem:[#allocation2 + $0xb0] sm:$0x1] }
 0x19e   : > { %v3852_v11 = vsel %vm3689_vm2, %v3809_v5, %v3535_v37  ;;  %v2062_v5 = vsel %vm10351_vm14, %v2057_v22, %v2061_v23  ;;  %v8776_v27 = vcombine.low %v9926_v25, %v9927_v4  ;;  %v2064_v15 = vshrl.u32 %v9928_v35, 16 }
 0x19f   : > { %4274 = vmatmul.mubr.bf16.gmra.mrb[40].mxu0 %v3721_v2  ;;  %v5543_v2 = vrot.slane %v5541_v48, 4  ;;  %v5104_v37 = vsel %vm10351_vm14, %v5099_v36, %v5103_v8  ;;  %v5109_v50 = vrot.slane %v5108_v41, 4  ;;  %v5542_v9 = vsel %vm10253_vm11, %v8975_v26, %v5541_v48  ;;  %v9931_v41 = vld [vmem:[#allocation2 + $0x9c] sm:$0xf] }
 0x1a0   : > { %4281 = vmatprep.mubr.bf16.mxu0 %v3852_v11  ;;  %v3961_v13 = vld [vmem:[#allocation3 + $0x178] sm:$0xff]  ;;  %v8840_v51 = vcombine.low %v2052_v21, %v2062_v5  ;;  %v3137_v39 = vpop.permute.xlu1 %3136  ;;  %v3646_v59 = vsel %vm987_vm15, %v8776_v27, %v3057_v12  ;;  %v2067_v28 = vshll.u32 %v9928_v35, 16  ;;  %v2073_v24 = vshll.u32 %v9929_v49, 16  ;;  %v9933_v27 = vld [vmem:[#allocation2 + $0xb8] sm:$0xf] }
 0x1a1   : > { %v3361_v6 = vpop.permute.xlu0 %3360  ;;  %9692 = vmatmul.mubr.msk.bf16.gmra.mrb[28].mxu1 %vm987_vm15, %v3961_v13  ;;  %7858 = vst.msk [vmem:[#allocation3 + $0x178] sm:$0xff] %vm987_vm15, %v9166_v43  ;;  %v5114_v11 = vsel %vm10351_vm14, %v5109_v50, %v5113_v61  ;;  %v5545_v42 = vsel %vm10253_vm11, %v5543_v2, %v5544_v58  ;;  %v2077_v52 = vshrl.u32 %v9929_v49, 16  ;;  %v3682_v40 = vsel %vm3656_vm1, %v3646_v59, %v3137_v39  ;;  %v9932_v61 = vld [vmem:[#allocation2 + $0xa0] sm:$0xf] }
 0x1a2   : > { %v9039_v31 = vcombine.low %v5104_v37, %v5114_v11  ;;  %v9055_v3 = vcombine.low %v5542_v9, %v5545_v42  ;;  %v3776_v16 = vsel %vm987_vm15, %v8840_v51, %v3361_v6  ;;  %v2066_v46 = vrot.slane %v2064_v15, 4 }
 0x1a3   : > { %v2069_v57 = vrot.slane %v2067_v28, 5  ;;  %v2075_v8 = vrot.slane %v2073_v24, 5  ;;  %v2079_v47 = vrot.slane %v2077_v52, 4  ;;  %v2083_v22 = vshll.u32 %v9930_v30, 16  ;;  %v12124_v30 = vld [vmem:[%s14376_s2] ss:$0 sm:$0xff] }
 0x1a4   : > { %6979 = vrot.lane.b32.xlu1 %v9039_v31, %s10086_s28  ;;  %v3233_v38 = vpop.permute.xlu1 %3232  ;;  %v8777_v26 = vcombine.low %v9931_v41, %v9932_v61  ;;  %v2088_v37 = vshrl.u32 %v11777_v34, 16  ;;  %v2091_v4 = vshll.u32 %v11777_v34, 16  ;;  %v2097_v11 = vshll.u32 %v9933_v27, 16 }
 0x1a5   : > { %v3727_v10 = vsel %vm3689_vm2, %v3682_v40, %v3233_v38  ;;  %v2070_v55 = vor.u32 %v2069_v57, %v2066_v46  ;;  %v2080_v17 = vor.u32 %v2079_v47, %v2075_v8  ;;  %v2085_v48 = vrot.slane %v2083_v22, 5  ;;  %v9825_v38 = vld [vmem:[%s14377_s3 + $0x80] sm:$0xff]  }
 0x1a6   : > { %v3457_v32 = vpop.permute.xlu0 %3456  ;;  %v2101_v9 = vshrl.u32 %v9933_v27, 16  ;;  %v2090_v59 = vrot.slane %v2088_v37, 4  ;;  %v2107_v40 = vshll.u32 %v11731_v33, 16  ;;  %9695 = vmatprep.subr.bf16.mxu0 %v9825_v38 }
 0x1a7   : > { %4282 = vmatmul.mubr.bf16.gmra.mrb[44].mxu0 %v3724_v54  ;;  %v12064_v29 = vpop.f32.mrb[4].mxu1  ;;  %v3811_v54 = vsel %vm3656_vm1, %v3776_v16, %v3457_v32  ;;  %v2071_v23 = vrot.slane %v2070_v55, 4  ;;  %v2081_v18 = vrot.slane %v2080_v17, 4  ;;  %v2093_v32 = vrot.slane %v2091_v4, 5 }
 0x1a8   : > { %v12070_v45 = vpop.f32.mrb[5].mxu1  ;;  %7059 = vrot.lane.b32.xlu1 %v9055_v3, %s10084_s26  ;;  %v2099_v16 = vrot.slane %v2097_v11, 5  ;;  %v2103_v28 = vrot.slane %v2101_v9, 4  ;;  %9696 = vmatpush3.bf16.msra.mxu0 %v9825_v38  ;;  %v2125_v55 = vshrl.u32 %v11816_v62, 16 }
 0x1a9   : > { %v12072_v20 = vpop.f32.mrb[6].mxu1  ;;  %v2076_v43 = vsel %vm10351_vm14, %v2071_v23, %v2075_v8  ;;  %v2086_v36 = vsel %vm10351_vm14, %v2081_v18, %v2085_v48  ;;  %v2094_v24 = vor.u32 %v2093_v32, %v2090_v59  ;;  %v2115_v8 = vshll.u32 %v11885_v53, 16  ;;  %v14466_v32 = vld [vmem:[#allocation14_spill] sm:$0xff] }
 0x1aa   : > { %v12080_v14 = vpop.f32.mrb[7].mxu1  ;;  %v8841_v2 = vcombine.low %v2076_v43, %v2086_v36  ;;  %v2104_v52 = vor.u32 %v2103_v28, %v2099_v16 }
 0x1ab   : > { %v2095_v46 = vrot.slane %v2094_v24, 4  ;;  %v2117_v61 = vrot.slane %v2115_v8, 5 }
 0x1ac   : > { %v2105_v57 = vrot.slane %v2104_v52, 4 }
 0x1b1   : > { %v3059_v12 = vpop.permute.xlu1 %3058 }
 0x1b2   : > { %v3649_v5 = vsel %vm987_vm15, %v8777_v26, %v3059_v12  ;;  %v9934_v26 = vld [vmem:[#allocation2 + $0xa8] sm:$0xf] }
 0x1b5   : > { %v3537_v0 = vpop.permute.xlu0 %3536 }
 0x1b6   : > { %v3855_v7 = vsel %vm3689_vm2, %v3811_v54, %v3537_v0  ;;  %v9827_v54 = vld [vmem:[%s14377_s3 + $0x88] sm:$0xff]   ;;  %v2109_v0 = vrot.slane %v2107_v40, 5 }
 0x1b7   : > { %4289 = vmatprep.mubr.bf16.mxu0 %v3855_v7  ;;  %v3139_v21 = vpop.permute.xlu1 %3138  ;;  %9697 = vmatprep.subr.bf16.mxu0 %v9827_v54  ;;  %v2121_v7 = vshll.u32 %v11816_v62, 16 }
 0x1b8   : > { %4290 = vmatmul.mubr.bf16.gmra.mrb[48].mxu0 %v3727_v10  ;;  %v3684_v51 = vsel %vm3656_vm1, %v3649_v5, %v3139_v21  ;;  %v2112_v10 = vshrl.u32 %v11885_v53, 16  ;;  %v2100_v53 = vsel %vm10351_vm14, %v2095_v46, %v2099_v16  ;;  %v2110_v12 = vsel %vm10351_vm14, %v2105_v57, %v2109_v0 }
 0x1b9   : > { %v3363_v58 = vpop.permute.xlu0 %3362  ;;  %9698 = vmatpush3.bf16.msra.mxu0 %v9827_v54  ;;  %v2123_v5 = vrot.slane %v2121_v7, 5  ;;  %v8842_v37 = vcombine.low %v2100_v53, %v2110_v12  ;;  %v4931_v7 = vld [vmem:[#allocation2 + $0xc] sm:$0xf] }
 0x1ba   : > { %v3779_v50 = vsel %vm987_vm15, %v8841_v2, %v3363_v58  ;;  %v2114_v36 = vrot.slane %v2112_v10, 4  ;;  %v9935_v2 = vld [vmem:[#allocation2 + $0xac] sm:$0xf] }
 0x1bb   : > { %v3235_v39 = vpop.permute.xlu1 %3234  ;;  %v8778_v21 = vcombine.low %v9934_v26, %v9935_v2  ;;  %v14467_v12 = vld [vmem:[#allocation13_spill] sm:$0xff] }
 0x1bc   : > { %v3730_v15 = vsel %vm3689_vm2, %v3684_v51, %v3235_v39 }
 0x1bd   : > { %v3459_v6 = vpop.permute.xlu0 %3458 }
 0x1be   : > { %v3813_v3 = vsel %vm3656_vm1, %v3779_v50, %v3459_v6  ;;  %v2127_v6 = vrot.slane %v2125_v55, 4 }
 0x1c0   : > { %v2128_v59 = vor.u32 %v2127_v6, %v2123_v5 }
 0x1c2   : > { %v2129_v38 = vrot.slane %v2128_v59, 4 }
 0x1c4   : > { %v12095_v13 = vpop.f32.mrb[8].mxu1 }
 0x1c5   : > { %v12099_v25 = vpop.f32.mrb[9].mxu1 }
 0x1c6   : > { %v12102_v42 = vpop.f32.mrb[10].mxu1 }
 0x1c7   : > { %v12105_v31 = vpop.f32.mrb[11].mxu1 }
 0x1ca   : > { %v3061_v49 = vpop.permute.xlu1 %3060 }
 0x1cb   : > { %v3652_v51 = vsel %vm987_vm15, %v8778_v21, %v3061_v49 }
 0x1cd   : > { %v3539_v35 = vpop.permute.xlu0 %3538 }
 0x1ce   : > { %v3858_v34 = vsel %vm3689_vm2, %v3813_v3, %v3539_v35  ;;  %v2118_v3 = vor.u32 %v2117_v61, %v2114_v36  ;;  %v2131_v35 = vshll.u32 %v14466_v32, 16 }
 0x1cf   : > { %4297 = vmatprep.mubr.bf16.mxu0 %v3858_v34  ;;  %v3141_v47 = vpop.permute.xlu1 %3140 }
 0x1d0   : > { %4298 = vmatmul.mubr.bf16.gmra.mrb[52].mxu0 %v3730_v15  ;;  %v3686_v34 = vsel %vm3656_vm1, %v3652_v51, %v3141_v47  ;;  %v2119_v40 = vrot.slane %v2118_v3, 4 }
 0x1d1   : > { %v3365_v62 = vpop.permute.xlu0 %3364 }
 0x1d2   : > { %v3782_v15 = vsel %vm987_vm15, %v8842_v37, %v3365_v62  ;;  %v14468_v62 = vld [vmem:[#allocation12_spill] sm:$0xff] }
 0x1d3   : > { %v3237_v27 = vpop.permute.xlu1 %3236 }
 0x1d5   : > { %v3461_v39 = vpop.permute.xlu0 %3460 }
 0x1d6   : > { %v9415_v33 = vpop.f32.mrb[0].mxu0  ;;  %v3815_v52 = vsel %vm3656_vm1, %v3782_v15, %v3461_v39 }
 0x1d7   : > { %v9416_v17 = vpop.f32.mrb[1].mxu0  ;;  %v12126_v22 = vpop.f32.mrb[12].mxu1 }
 0x1d8   : > { %v9417_v23 = vadd.f32 %v9416_v17, %v9415_v33  ;;  %v9418_v18 = vpop.f32.mrb[2].mxu0  ;;  %v12128_v48 = vpop.f32.mrb[13].mxu1  ;;  %v3733_v33 = vsel %vm3689_vm2, %v3686_v34, %v3237_v27  ;;  %v2124_v17 = vsel %vm10351_vm14, %v2119_v40, %v2123_v5 }
 0x1d9   : > { %v9419_v43 = vpop.f32.mrb[3].mxu0  ;;  %v12143_v49 = vpop.f32.mrb[14].mxu1 }
 0x1da   : > { %v4196_v58 = vadd.f32 %v9417_v23, %v12124_v30  ;;  %v9420_v41 = vadd.f32 %v9419_v43, %v9418_v18  ;;  %v12145_v10 = vpop.f32.mrb[15].mxu1  ;;  %v8779_v43 = vcombine.low %v14468_v62, %v14467_v12 }
 0x1dc   : > { %v4357_v50 = vadd.f32 %v12000_v63, %v4196_v58  ;;  %v4199_v4 = vadd.f32 %v9420_v41, %v12124_v30  ;;  %v4935_v41 = vld [vmem:[#allocation2 + $0x14] sm:$0x1] }
 0x1de   : > { %v4483_v11 = vmax.f32 %v4357_v50, 0.0  ;;  %v4360_v9 = vadd.f32 %v12007_v60, %v4199_v4  ;;  %v2133_v60 = vrot.slane %v2131_v35, 5 }
 0x1e0   : > { %v9208_v16 = vpack.c.bf16 %v4483_v11, %v4483_v11  ;;  %v4484_v28 = vmax.f32 %v4360_v9, 0.0  ;;  %v2134_v23 = vsel %vm10351_vm14, %v2129_v38, %v2133_v60 }
 0x1e1   : > { %v3063_v54 = vpop.permute.xlu1 %3062  ;;  %v8843_v6 = vcombine.low %v2124_v17, %v2134_v23 }
 0x1e2   : > { %v4612_v63 = vshrl.u32 %v9208_v16, 16  ;;  %v9209_v24 = vpack.c.bf16 %v4484_v28, %v4484_v28  ;;  %v4615_v57 = vshll.u32 %v9208_v16, 16  ;;  %v3655_v9 = vsel %vm987_vm15, %v8779_v43, %v3063_v54 }
 0x1e4   : > { %v4614_v46 = vrot.slane %v4612_v63, 7  ;;  %v4620_v0 = vshrl.u32 %v9209_v24, 16  ;;  %v4623_v53 = vshll.u32 %v9209_v24, 16  ;;  %v12166_v63 = vpop.f32.mrb[16].mxu1 }
 0x1e5   : > { %v3541_v8 = vpop.permute.xlu0 %3540  ;;  %v3143_v26 = vpop.permute.xlu1 %3142 }
 0x1e6   : > { %v3861_v47 = vsel %vm3689_vm2, %v3815_v52, %v3541_v8  ;;  %v4617_v55 = vor.u32 %v4615_v57, %v4614_v46  ;;  %v4622_v18 = vrot.slane %v4620_v0, 7  ;;  %v4618_v2 = vrot.slane %v4614_v46, 4  ;;  %v12171_v54 = vpop.f32.mrb[17].mxu1 }
 0x1e7   : > { %4305 = vmatprep.mubr.bf16.mxu0 %v3861_v47  ;;  %v3688_v15 = vsel %vm3656_vm1, %v3655_v9, %v3143_v26 }
 0x1e8   : > { %4306 = vmatmul.mubr.bf16.gmra.mrb[56].mxu0 %v3733_v33  ;;  %v4932_v58 = vsel %vm10238_vm9, %v4617_v55, %v4931_v7  ;;  %v4625_v21 = vor.u32 %v4623_v53, %v4622_v18  ;;  %v4627_v5 = vrot.slane %v4622_v18, 4 }
 0x1e9   : > { %v3367_v61 = vpop.permute.xlu0 %3366  ;;  %4933 = vst [vmem:[#allocation2 + $0xc] sm:$0xf] %v4932_v58  ;;  %v3239_v16 = vpop.permute.xlu1 %3238 }
 0x1ea   : > { %v4626_v50 = vsel %vm10246_vm10, %v4618_v2, %v4625_v21  ;;  %v4936_v27 = vsel %vm10194_vm3, %v4627_v5, %v4935_v41  ;;  %v9421_v11 = vpop.f32.mrb[4].mxu0  ;;  %v3785_v32 = vsel %vm987_vm15, %v8843_v6, %v3367_v61  ;;  %v3736_v46 = vsel %vm3689_vm2, %v3688_v15, %v3239_v16  ;;  %v12186_v2 = vpop.f32.mrb[18].mxu1 }
 0x1eb   : > { %4934 = vst.msk [vmem:[#allocation2 + $0x10] sm:$0xf] %vm332_vm0, %v4626_v50  ;;  %4937 = vst [vmem:[#allocation2 + $0x14] sm:$0x1] %v4936_v27  ;;  %v9422_v51 = vpop.f32.mrb[5].mxu0 }
 0x1ec   : > { %v9423_v3 = vadd.f32 %v9422_v51, %v9421_v11  ;;  %v9424_v59 = vpop.f32.mrb[6].mxu0  ;;  %v12190_v11 = vpop.f32.mrb[19].mxu1 }
 0x1ed   : > { %v3463_v39 = vpop.permute.xlu0 %3462  ;;  %v9425_v35 = vpop.f32.mrb[7].mxu0 }
 0x1ee   : > { %v4204_v28 = vadd.f32 %v9423_v3, %v12124_v30  ;;  %v9426_v34 = vadd.f32 %v9425_v35, %v9424_v59  ;;  %v3817_v40 = vsel %vm3656_vm1, %v3785_v32, %v3463_v39 }
 0x1f0   : > { %v6083_v24 = vld [vmem:[#allocation2 + $0xc] sm:$0xe]  ;;  %v4365_v38 = vadd.f32 %v11994_v56, %v4204_v28  ;;  %v4207_v60 = vadd.f32 %v9426_v34, %v12124_v30 }
 0x1f1   : > { %v5476_v52 = vld [vmem:[#allocation2 + $0xc] sm:$0xe]  ;;  %v8991_v17 = vrot.slane %v6083_v24, 9 }
 0x1f2   : > { %v12174_v57 = vld [vmem:[#allocation2 + $0xc] sm:$0xf]  ;;  %v4485_v33 = vmax.f32 %v4365_v38, 0.0  ;;  %v4368_v7 = vadd.f32 %v12003_v1, %v4207_v60  ;;  %v9427_v47 = vpop.f32.mrb[8].mxu0  ;;  %v12179_v55 = vld [vmem:[#allocation2 + $0x10] sm:$0xf] }
 0x1f3   : > { %v12176_v0 = vld [vmem:[#allocation2 + $0xc] sm:$0xf]  ;;  %v8976_v23 = vrot.slane %v5476_v52, 9  ;;  %v9428_v18 = vpop.f32.mrb[9].mxu0  ;;  %v9071_v53 = vcombine.low %v12174_v57, %v12179_v55  ;;  %v5683_v12 = vld [vmem:[#allocation2 + $0x14] sm:$0x1] }
 0x1f4   : > { %v3543_v8 = vpop.permute.xlu0 %3542  ;;  %v6149_v62 = vrot.slane %v12179_v55, 5  ;;  %v5046_v43 = vld [vmem:[#allocation2 + $0x10] sm:$0xf]  ;;  %v9210_v58 = vpack.c.bf16 %v4485_v33, %v4485_v33  ;;  %v4486_v41 = vmax.f32 %v4368_v7, 0.0  ;;  %v9429_v61 = vadd.f32 %v9428_v18, %v9427_v47  ;;  %v9430_v1 = vpop.f32.mrb[10].mxu0 }
 0x1f5   : > { %v3864_v56 = vsel %vm3689_vm2, %v3817_v40, %v3543_v8  ;;  %v5116_v26 = vshrl.u32 %v12176_v0, 16  ;;  %v9431_v21 = vpop.f32.mrb[11].mxu0  ;;  %7155 = vrot.lane.b32.xlu1 %v9071_v53, %s10085_s27  ;;  %v6152_v6 = vrot.slane %v5683_v12, 5  ;;  %v5548_v50 = vrot.slane %v5046_v43, 5  ;;  %v12194_v59 = vld [vmem:[#allocation2 + $0x14] sm:$0x1] }
 0x1f6   : > { %4313 = vmatprep.mubr.bf16.mxu0 %v3864_v56  ;;  %v6151_v5 = vrot.slane %v6149_v62, 4  ;;  %v5119_v27 = vshll.u32 %v12176_v0, 16  ;;  %v4629_v9 = vshrl.u32 %v9210_v58, 16  ;;  %v9211_v51 = vpack.c.bf16 %v4486_v41, %v4486_v41  ;;  %v4938_v40 = vld [vmem:[#allocation2 + $0x18] sm:$0xf] }
 0x1f7   : > { %4314 = vmatmul.mubr.bf16.gmra.mrb[60].mxu0 %v3736_v46  ;;  %v9432_v39 = vadd.f32 %v9431_v21, %v9430_v1  ;;  %v6150_v3 = vsel %vm10253_vm11, %v8991_v17, %v6149_v62  ;;  %v4632_v32 = vshll.u32 %v9210_v58, 16  ;;  %v4212_v35 = vadd.f32 %v9429_v61, %v12124_v30  ;;  %v4942_v56 = vld [vmem:[#allocation2 + $0x20] sm:$0x1] }
 0x1f8   : > { %v6153_v15 = vsel %vm10253_vm11, %v6151_v5, %v6152_v6  ;;  %v5550_v16 = vrot.slane %v5548_v50, 4  ;;  %v4631_v28 = vrot.slane %v4629_v9, 7  ;;  %v4637_v34 = vshrl.u32 %v9211_v51, 16 }
 0x1f9   : > { %v4215_v24 = vadd.f32 %v9432_v39, %v12124_v30  ;;  %v5549_v52 = vsel %vm10253_vm11, %v8976_v23, %v5548_v50  ;;  %v4640_v38 = vshll.u32 %v9211_v51, 16  ;;  %v4373_v60 = vadd.f32 %v12070_v45, %v4212_v35 }
 0x1fa   : > { %v9103_v46 = vcombine.low %v6150_v3, %v6153_v15  ;;  %v5551_v0 = vrot.slane %v12194_v59, 5  ;;  %v4634_v8 = vor.u32 %v4632_v32, %v4631_v28  ;;  %v4639_v33 = vrot.slane %v4637_v34, 7  ;;  %v4945_v3 = vld [vmem:[#allocation2 + $0x24] sm:$0xf]  ;;  %v4949_v34 = vld [vmem:[#allocation2 + $0x2c] sm:$0x1] }
 0x1fb   : > { %v4376_v7 = vadd.f32 %v12080_v14, %v4215_v24  ;;  %v5118_v47 = vrot.slane %v5116_v26, 4  ;;  %v4635_v17 = vrot.slane %v4631_v28, 4  ;;  %v4487_v18 = vmax.f32 %v4373_v60, 0.0 }
 0x1fc   : > { %7283 = vrot.lane.b32.xlu0 %v9103_v46, %s10086_s28  ;;  %v5552_v23 = vsel %vm10253_vm11, %v5550_v16, %v5551_v0  ;;  %v5125_v53 = vshll.u32 %v5046_v43, 16  ;;  %v4939_v45 = vsel %vm10238_vm9, %v4634_v8, %v4938_v40  ;;  %v4642_v12 = vor.u32 %v4640_v38, %v4639_v33 }
 0x1fd   : > { %v4644_v62 = vrot.slane %v4639_v33, 4  ;;  %v4488_v58 = vmax.f32 %v4376_v7, 0.0  ;;  %4940 = vst [vmem:[#allocation2 + $0x18] sm:$0xf] %v4939_v45  ;;  %v9212_v41 = vpack.c.bf16 %v4487_v18, %v4487_v18  ;;  %v9056_v61 = vcombine.low %v5549_v52, %v5552_v23 }
 0x1fe   : > { %v5121_v14 = vrot.slane %v5119_v27, 5  ;;  %v12210_v1 = vrot.slane %v5125_v53, 5  ;;  %v4643_v26 = vsel %vm10246_vm10, %v4635_v17, %v4642_v12  ;;  %v5129_v6 = vshrl.u32 %v5046_v43, 16 }
 0x1ff   : > { %v4943_v21 = vsel %vm10194_vm3, %v4644_v62, %v4942_v56  ;;  %v9213_v5 = vpack.c.bf16 %v4488_v58, %v4488_v58  ;;  %4941 = vst.msk [vmem:[#allocation2 + $0x1c] sm:$0xf] %vm332_vm0, %v4643_v26  ;;  %v4646_v50 = vshrl.u32 %v9212_v41, 16  ;;  %7061 = vrot.lane.b32.xlu1 %v9056_v61, %s10084_s26  ;;  %v4649_v27 = vshll.u32 %v9212_v41, 16 }
 0x200   : > { %4944 = vst [vmem:[#allocation2 + $0x20] sm:$0x1] %v4943_v21  ;;  %v5131_v51 = vrot.slane %v5129_v6, 4  ;;  %v5122_v15 = vor.u32 %v5121_v14, %v5118_v47  ;;  %v5135_v38 = vshll.u32 %v12194_v59, 16 }
 0x201   : > { %v4654_v9 = vshrl.u32 %v9213_v5, 16  ;;  %v4648_v39 = vrot.slane %v4646_v50, 7  ;;  %v4657_v35 = vshll.u32 %v9213_v5, 16 }
 0x202   : > { %v5132_v16 = vor.u32 %v5131_v51, %v12210_v1  ;;  %v5123_v56 = vrot.slane %v5122_v15, 4  ;;  %v5137_v41 = vrot.slane %v5135_v38, 5 }
 0x203   : > { %v4656_v32 = vrot.slane %v4654_v9, 7  ;;  %v4651_v28 = vor.u32 %v4649_v27, %v4648_v39  ;;  %v4652_v24 = vrot.slane %v4648_v39, 4 }
 0x204   : > { %v6259_v40 = vld [vmem:[#allocation2 + $0x18] sm:$0xf]  ;;  %v5133_v18 = vrot.slane %v5132_v16, 4  ;;  %v5128_v6 = vsel %vm10351_vm14, %v5123_v56, %v12210_v1 }
 0x205   : > { %v4659_v43 = vor.u32 %v4657_v35, %v4656_v32  ;;  %v4661_v52 = vrot.slane %v4656_v32, 4  ;;  %v4946_v60 = vsel %vm10238_vm9, %v4651_v28, %v4945_v3  ;;  %v6691_v46 = vld [vmem:[#allocation2 + $0x18] sm:$0xe]  ;;  %v6308_v0 = vshrl.u32 %v6259_v40, 16 }
 0x206   : > { %v6311_v8 = vshll.u32 %v6259_v40, 16  ;;  %4947 = vst [vmem:[#allocation2 + $0x24] sm:$0xf] %v4946_v60  ;;  %v12226_v47 = vld [vmem:[#allocation2 + $0x1c] sm:$0xf]  ;;  %v9007_v14 = vrot.slane %v6691_v46, 9  ;;  %v5138_v50 = vsel %vm10351_vm14, %v5133_v18, %v5137_v41 }
 0x207   : > { %v4660_v33 = vsel %vm10246_vm10, %v4652_v24, %v4659_v43  ;;  %v4950_v7 = vsel %vm10194_vm3, %v4661_v52, %v4949_v34  ;;  %v5654_v17 = vld [vmem:[#allocation2 + $0x1c] sm:$0xf]  ;;  %v9119_v59 = vcombine.low %v6259_v40, %v12226_v47  ;;  %v6310_v23 = vrot.slane %v6308_v0, 4  ;;  %v5653_v53 = vld [vmem:[#allocation2 + $0x18] sm:$0xf]  ;;  %v12245_v43 = vpop.f32.mrb[20].mxu1 }
 0x208   : > { %4948 = vst.msk [vmem:[#allocation2 + $0x28] sm:$0xf] %vm332_vm0, %v4660_v33  ;;  %4951 = vst [vmem:[#allocation2 + $0x2c] sm:$0x1] %v4950_v7  ;;  %v6313_v45 = vrot.slane %v6311_v8, 5  ;;  %v9072_v12 = vcombine.low %v5653_v53, %v5654_v17  ;;  %v6321_v61 = vshrl.u32 %v12226_v47, 16  ;;  %v9040_v16 = vcombine.low %v5128_v6, %v5138_v50 }
 0x209   : > { %v5684_v62 = vld [vmem:[#allocation2 + $0x20] sm:$0x1]  ;;  %v6084_v58 = vld [vmem:[#allocation2 + $0x18] sm:$0xe]  ;;  %7379 = vrot.lane.b32.xlu0 %v9119_v59, %s10084_s26  ;;  %v6156_v26 = vrot.slane %v5654_v17, 5  ;;  %v6757_v5 = vrot.slane %v12226_v47, 5 }
 0x20a   : > { %v12232_v21 = vld [vmem:[#allocation2 + $0x1c] sm:$0xf]  ;;  %7157 = vrot.lane.b32.xlu1 %v9072_v12, %s10085_s27  ;;  %v12241_v9 = vld [vmem:[#allocation2 + $0x20] sm:$0x1]  ;;  %v5477_v51 = vld [vmem:[#allocation2 + $0x18] sm:$0xe]  ;;  %v6314_v35 = vor.u32 %v6313_v45, %v6310_v23 }
 0x20b   : > { %v5555_v39 = vrot.slane %v12232_v21, 5  ;;  %v8992_v27 = vrot.slane %v6084_v58, 9  ;;  %v6158_v3 = vrot.slane %v6156_v26, 4  ;;  %v6159_v32 = vrot.slane %v5684_v62, 5  ;;  %v6291_v60 = vld [vmem:[#allocation2 + $0x20] sm:$0x1] }
 0x20c   : > { %v8977_v28 = vrot.slane %v5477_v51, 9  ;;  %v5558_v24 = vrot.slane %v12241_v9, 5  ;;  %v6317_v46 = vshll.u32 %v12226_v47, 16  ;;  %v12254_v33 = vsel %vm10253_vm11, %v9007_v14, %v6757_v5 }
 0x20d   : > { %v9433_v15 = vpop.f32.mrb[12].mxu0  ;;  %v5557_v34 = vrot.slane %v5555_v39, 4  ;;  %v6157_v52 = vsel %vm10253_vm11, %v8992_v27, %v6156_v26  ;;  %v6160_v40 = vsel %vm10253_vm11, %v6158_v3, %v6159_v32  ;;  %v6692_v38 = vld [vmem:[#allocation2 + $0x24] sm:$0xe]  ;;  %v6315_v45 = vrot.slane %v6314_v35, 4  ;;  %v12269_v26 = vpop.f32.mrb[21].mxu1 }
 0x20e   : > { %v9434_v1 = vpop.f32.mrb[13].mxu0  ;;  %v9104_v7 = vcombine.low %v6157_v52, %v6160_v40  ;;  %6981 = vrot.lane.b32.xlu1 %v9040_v16, %s10086_s28  ;;  %v5556_v47 = vsel %vm10253_vm11, %v8977_v28, %v5555_v39  ;;  %v6261_v23 = vld [vmem:[#allocation2 + $0x24] sm:$0xf]  ;;  %v6323_v12 = vrot.slane %v6321_v61, 4  ;;  %v9008_v6 = vrot.slane %v6692_v38, 9 }
 0x20f   : > { %v9435_v0 = vadd.f32 %v9434_v1, %v9433_v15  ;;  %v9436_v8 = vpop.f32.mrb[14].mxu0  ;;  %v5559_v17 = vsel %vm10253_vm11, %v5557_v34, %v5558_v24  ;;  %v12259_v56 = vld [vmem:[#allocation2 + $0x28] sm:$0xf]  ;;  %v12261_v18 = vld [vmem:[#allocation2 + $0x2c] sm:$0x1]  ;;  %v6319_v39 = vrot.slane %v6317_v46, 5 }
 0x210   : > { %v9437_v59 = vpop.f32.mrb[15].mxu0  ;;  %v6764_v53 = vrot.slane %v12259_v56, 5  ;;  %7285 = vrot.lane.b32.xlu0 %v9104_v7, %s10086_s28  ;;  %v9057_v41 = vcombine.low %v5556_v47, %v5559_v17  ;;  %v9120_v14 = vcombine.low %v6261_v23, %v12259_v56  ;;  %v6767_v51 = vrot.slane %v12261_v18, 5  ;;  %v5656_v35 = vld [vmem:[#allocation2 + $0x28] sm:$0xf] }
 0x211   : > { %v4220_v62 = vadd.f32 %v9435_v0, %v12124_v30  ;;  %v9438_v58 = vadd.f32 %v9437_v59, %v9436_v8  ;;  %v6332_v61 = vshrl.u32 %v6261_v23, 16  ;;  %v6327_v32 = vshll.u32 %v6291_v60, 16  ;;  %v5655_v40 = vld [vmem:[#allocation2 + $0x24] sm:$0xf] }
 0x212   : > { %v6766_v50 = vrot.slane %v6764_v53, 4  ;;  %7063 = vrot.lane.b32.xlu1 %v9057_v41, %s10084_s26  ;;  %v6759_v15 = vrot.slane %v6757_v5, 4  ;;  %v6765_v16 = vsel %vm10253_vm11, %v9008_v6, %v6764_v53  ;;  %v6324_v34 = vor.u32 %v6323_v12, %v6319_v39  ;;  %v6085_v38 = vld [vmem:[#allocation2 + $0x24] sm:$0xe]  ;;  %v5685_v53 = vld [vmem:[#allocation2 + $0x2c] sm:$0x1] }
 0x213   : > { %v4381_v27 = vadd.f32 %v12064_v29, %v4220_v62  ;;  %v4223_v3 = vadd.f32 %v9438_v58, %v12124_v30  ;;  %v6335_v29 = vshll.u32 %v6261_v23, 16  ;;  %v6329_v0 = vrot.slane %v6327_v32, 5  ;;  %v5047_v6 = vld [vmem:[#allocation2 + $0x18] sm:$0xf] }
 0x214   : > { %v6768_v28 = vsel %vm10253_vm11, %v6766_v50, %v6767_v51  ;;  %7381 = vrot.lane.b32.xlu0 %v9120_v14, %s10084_s26  ;;  %v6325_v46 = vrot.slane %v6324_v34, 4  ;;  %v6760_v8 = vrot.slane %v6291_v60, 5  ;;  %v9073_v5 = vcombine.low %v5655_v40, %v5656_v35  ;;  %v12293_v50 = vpop.f32.mrb[22].mxu1 }
 0x215   : > { %v4489_v24 = vmax.f32 %v4381_v27, 0.0  ;;  %v4384_v1 = vadd.f32 %v12072_v20, %v4223_v3  ;;  %v9152_v52 = vcombine.low %v6765_v16, %v6768_v28  ;;  %v12282_v59 = vrot.slane %v6332_v61, 4  ;;  %v12298_v3 = vpop.f32.mrb[23].mxu1  ;;  %v4952_v16 = vld [vmem:[#allocation2 + $0x30] sm:$0xf] }
 0x216   : > { %v6320_v47 = vsel %vm10351_vm14, %v6315_v45, %v6319_v39  ;;  %v6330_v20 = vsel %vm10351_vm14, %v6325_v46, %v6329_v0  ;;  %v6761_v23 = vsel %vm10253_vm11, %v6759_v15, %v6760_v8  ;;  %7159 = vrot.lane.b32.xlu1 %v9073_v5, %s10085_s27  ;;  %v8993_v60 = vrot.slane %v6085_v38, 9  ;;  %v12306_v38 = vld [vmem:[#allocation2 + $0x28] sm:$0xf]  ;;  %v4956_v46 = vld [vmem:[#allocation2 + $0x38] sm:$0x1] }
 0x217   : > { %v9214_v7 = vpack.c.bf16 %v4489_v24, %v4489_v24  ;;  %v4490_v17 = vmax.f32 %v4384_v1, 0.0  ;;  %7816 = vst.msk [vmem:[#allocation3 + $0x28] sm:$0xff] %vm987_vm15, %v9152_v52  ;;  %v6163_v12 = vrot.slane %v5656_v35, 5  ;;  %v12291_v41 = vrot.slane %v6335_v29, 5 }
 0x218   : > { %v9135_v14 = vcombine.low %v6320_v47, %v6330_v20  ;;  %v9151_v51 = vcombine.low %v12254_v33, %v6761_v23  ;;  %v6166_v15 = vrot.slane %v5685_v53, 5  ;;  %v5140_v28 = vshrl.u32 %v5047_v6, 16 }
 0x219   : > { %v4663_v62 = vshrl.u32 %v9214_v7, 16  ;;  %v9215_v58 = vpack.c.bf16 %v4490_v17, %v4490_v17  ;;  %v4666_v45 = vshll.u32 %v9214_v7, 16  ;;  %v6164_v39 = vsel %vm10253_vm11, %v8993_v60, %v6163_v12 }
 0x21a   : > { %v6165_v27 = vrot.slane %v6163_v12, 4  ;;  %7459 = vrot.lane.b32.xlu0 %v9135_v14, %s10085_s27  ;;  %7813 = vst.msk [vmem:[#allocation3 + $0x10] sm:$0xff] %vm987_vm15, %v9151_v51  ;;  %v5143_v34 = vshll.u32 %v5047_v6, 16  ;;  %v5149_v24 = vshll.u32 %v12232_v21, 16  ;;  %v5153_v33 = vshrl.u32 %v12232_v21, 16 }
 0x21b   : > { %v4665_v61 = vrot.slane %v4663_v62, 7  ;;  %v4671_v32 = vshrl.u32 %v9215_v58, 16  ;;  %v4674_v35 = vshll.u32 %v9215_v58, 16  ;;  %v5142_v8 = vrot.slane %v5140_v28, 4  ;;  %v12310_v21 = vld [vmem:[#allocation2 + $0x2c] sm:$0x1] }
 0x21c   : > { %v6167_v40 = vsel %vm10253_vm11, %v6165_v27, %v6166_v15  ;;  %v5145_v5 = vrot.slane %v5143_v34, 5  ;;  %v5151_v7 = vrot.slane %v5149_v24, 5  ;;  %v5155_v23 = vrot.slane %v5153_v33, 4 }
 0x21d   : > { %v4668_v1 = vor.u32 %v4666_v45, %v4665_v61  ;;  %v4669_v52 = vrot.slane %v4665_v61, 4  ;;  %v4673_v29 = vrot.slane %v4671_v32, 7  ;;  %v9105_v0 = vcombine.low %v6164_v39, %v6167_v40  ;;  %v5478_v45 = vld [vmem:[#allocation2 + $0x24] sm:$0xe] }
 0x21e   : > { %v6345_v53 = vshrl.u32 %v12259_v56, 16  ;;  %v5146_v60 = vor.u32 %v5145_v5, %v5142_v8  ;;  %v5159_v12 = vshll.u32 %v12241_v9, 16  ;;  %v5562_v62 = vrot.slane %v12306_v38, 5  ;;  %v7864_v61 = vld [vmem:[#allocation3 + $0x28] sm:$0xff] }
 0x21f   : > { %v4953_v17 = vsel %vm10238_vm9, %v4668_v1, %v4952_v16  ;;  %v4676_v47 = vor.u32 %v4674_v35, %v4673_v29  ;;  %v4678_v20 = vrot.slane %v4673_v29, 4  ;;  %7287 = vrot.lane.b32.xlu0 %v9105_v0, %s10086_s28  ;;  %v5156_v6 = vor.u32 %v5155_v23, %v5151_v7  ;;  %v12322_v32 = vld [vmem:[#allocation2 + $0x24] sm:$0xf] }
 0x220   : > { %4954 = vst [vmem:[#allocation2 + $0x30] sm:$0xf] %v4953_v17  ;;  %v5147_v51 = vrot.slane %v5146_v60, 4  ;;  %v5564_v39 = vrot.slane %v5562_v62, 4  ;;  %v5565_v27 = vrot.slane %v12310_v21, 5  ;;  %v5161_v16 = vrot.slane %v5159_v12, 5 }
 0x221   : > { %v4677_v58 = vsel %vm10246_vm10, %v4669_v52, %v4676_v47  ;;  %v4957_v14 = vsel %vm10194_vm3, %v4678_v20, %v4956_v46  ;;  %v7861_v35 = vld [vmem:[#allocation3 + $0x10] sm:$0xff]  ;;  %v5157_v15 = vrot.slane %v5156_v6, 4  ;;  %v6338_v28 = vor.u32 %v12291_v41, %v12282_v59 }
 0x222   : > { %4955 = vst.msk [vmem:[#allocation2 + $0x34] sm:$0xf] %vm332_vm0, %v4677_v58  ;;  %4958 = vst [vmem:[#allocation2 + $0x38] sm:$0x1] %v4957_v14  ;;  %v6341_v34 = vshll.u32 %v12259_v56, 16  ;;  %9699 = vmatprep.mubr.msk.bf16.mxu0 %vm987_vm15, %v7861_v35  ;;  %v5152_v33 = vsel %vm10351_vm14, %v5147_v51, %v5151_v7  ;;  %v8978_v1 = vrot.slane %v5478_v45, 9  ;;  %v5566_v59 = vsel %vm10253_vm11, %v5564_v39, %v5565_v27 }
 0x223   : > { %v9439_v9 = vpop.f32.mrb[16].mxu0  ;;  %v6347_v52 = vrot.slane %v6345_v53, 4  ;;  %v6351_v29 = vshll.u32 %v12261_v18, 16  ;;  %v5162_v0 = vsel %vm10351_vm14, %v5157_v15, %v5161_v16  ;;  %9700 = vmatmul.mubr.msk.bf16.vlgmr.msra.gmra.mrb[64].mxu0 %vm987_vm15, %v7864_v61  ;;  %v5164_v56 = vshrl.u32 %v12322_v32, 16 }
 0x224   : > { %v9440_v24 = vpop.f32.mrb[17].mxu0  ;;  %v9041_v8 = vcombine.low %v5152_v33, %v5162_v0  ;;  %v6343_v5 = vrot.slane %v6341_v34, 5  ;;  %v5563_v18 = vsel %vm10253_vm11, %v8978_v1, %v5562_v62  ;;  %v6339_v23 = vrot.slane %v6338_v28, 4 }
 0x225   : > { %v9441_v40 = vadd.f32 %v9440_v24, %v9439_v9  ;;  %v9442_v46 = vpop.f32.mrb[18].mxu0  ;;  %v9058_v53 = vcombine.low %v5563_v18, %v5566_v59  ;;  %v6353_v60 = vrot.slane %v6351_v29, 5  ;;  %v12347_v51 = vrot.slane %v5164_v56, 4 }
 0x226   : > { %v9443_v41 = vpop.f32.mrb[19].mxu0  ;;  %6983 = vrot.lane.b32.xlu1 %v9041_v8, %s10086_s28  ;;  %v6348_v45 = vor.u32 %v6347_v52, %v6343_v5  ;;  %v6344_v16 = vsel %vm10351_vm14, %v6339_v23, %v6343_v5 }
 0x227   : > { %v9444_v7 = vadd.f32 %v9443_v41, %v9442_v46  ;;  %v4228_v17 = vadd.f32 %v9441_v40, %v12124_v30  ;;  %v6263_v47 = vld [vmem:[#allocation2 + $0x30] sm:$0xf] }
 0x228   : > { %v6693_v20 = vld [vmem:[#allocation2 + $0x30] sm:$0xe]  ;;  %v6356_v61 = vshrl.u32 %v6263_v47, 16  ;;  %v6349_v1 = vrot.slane %v6348_v45, 4 }
 0x229   : > { %v4389_v12 = vadd.f32 %v12099_v25, %v4228_v17  ;;  %v4231_v58 = vadd.f32 %v9444_v7, %v12124_v30  ;;  %v12343_v14 = vld [vmem:[#allocation2 + $0x34] sm:$0xf]  ;;  %v12345_v6 = vld [vmem:[#allocation2 + $0x38] sm:$0x1]  ;;  %v9009_v39 = vrot.slane %v6693_v20, 9  ;;  %v6359_v25 = vshll.u32 %v6263_v47, 16 }
 0x22a   : > { %v6771_v62 = vrot.slane %v12343_v14, 5  ;;  %v9121_v27 = vcombine.low %v6263_v47, %v12343_v14  ;;  %v5658_v9 = vld [vmem:[#allocation2 + $0x34] sm:$0xf]  ;;  %v6086_v28 = vld [vmem:[#allocation2 + $0x30] sm:$0xe]  ;;  %7065 = vrot.lane.b32.xlu1 %v9058_v53, %s10084_s26  ;;  %v6369_v34 = vshrl.u32 %v12343_v14, 16  ;;  %v6354_v59 = vsel %vm10351_vm14, %v6349_v1, %v6353_v60 }
 0x22b   : > { %v4491_v35 = vmax.f32 %v4389_v12, 0.0  ;;  %v4392_v15 = vadd.f32 %v12105_v31, %v4231_v58  ;;  %v6774_v33 = vrot.slane %v12345_v6, 5  ;;  %v5657_v52 = vld [vmem:[#allocation2 + $0x30] sm:$0xf]  ;;  %v8994_v56 = vrot.slane %v6086_v28, 9 }
 0x22c   : > { %v6773_v24 = vrot.slane %v6771_v62, 4  ;;  %7383 = vrot.lane.b32.xlu0 %v9121_v27, %s10084_s26  ;;  %v6772_v31 = vsel %vm10253_vm11, %v9009_v39, %v6771_v62  ;;  %v9074_v46 = vcombine.low %v5657_v52, %v5658_v9  ;;  %v6170_v41 = vrot.slane %v5658_v9, 5  ;;  %v5686_v18 = vld [vmem:[#allocation2 + $0x38] sm:$0x1]  ;;  %v4959_v39 = vld [vmem:[#allocation2 + $0x3c] sm:$0xf] }
 0x22d   : > { %v9216_v29 = vpack.c.bf16 %v4491_v35, %v4491_v35  ;;  %v4492_v40 = vmax.f32 %v4392_v15, 0.0  ;;  %v12364_v47 = vrot.slane %v6356_v61, 4  ;;  %v12366_v20 = vrot.slane %v6359_v25, 5 }
 0x22e   : > { %v6775_v0 = vsel %vm10253_vm11, %v6773_v24, %v6774_v33  ;;  %v9136_v23 = vcombine.low %v6344_v16, %v6354_v59  ;;  %7161 = vrot.lane.b32.xlu1 %v9074_v46, %s10085_s27  ;;  %v6171_v53 = vsel %vm10253_vm11, %v8994_v56, %v6170_v41  ;;  %v6172_v45 = vrot.slane %v6170_v41, 4  ;;  %v4963_v16 = vld [vmem:[#allocation2 + $0x44] sm:$0x1]  ;;  %v12391_v41 = vld [vmem:[#allocation2 + $0x38] sm:$0x1] }
 0x22f   : > { %v4680_v8 = vshrl.u32 %v9216_v29, 16  ;;  %v4683_v5 = vshll.u32 %v9216_v29, 16  ;;  %v9217_v7 = vpack.c.bf16 %v4492_v40, %v4492_v40  ;;  %v9153_v17 = vcombine.low %v6772_v31, %v6775_v0  ;;  %v12379_v29 = vld [vmem:[#allocation2 + $0x34] sm:$0xf] }
 0x230   : > { %7461 = vrot.lane.b32.xlu0 %v9136_v23, %s10085_s27  ;;  %v6173_v62 = vrot.slane %v5686_v18, 5  ;;  %v5167_v27 = vshll.u32 %v12322_v32, 16  ;;  %v5173_v61 = vshll.u32 %v12306_v38, 16  ;;  %v5177_v9 = vshrl.u32 %v12306_v38, 16  ;;  %v5479_v23 = vld [vmem:[#allocation2 + $0x30] sm:$0xe] }
 0x231   : > { %v4682_v12 = vrot.slane %v4680_v8, 7  ;;  %v4688_v58 = vshrl.u32 %v9217_v7, 16  ;;  %v4691_v60 = vshll.u32 %v9217_v7, 16  ;;  %7819 = vst.msk [vmem:[#allocation3 + $0x40] sm:$0xff] %vm987_vm15, %v9153_v17  ;;  %v5183_v28 = vshll.u32 %v12310_v21, 16 }
 0x232   : > { %v6174_v24 = vsel %vm10253_vm11, %v6172_v45, %v6173_v62  ;;  %v5169_v33 = vrot.slane %v5167_v27, 5  ;;  %v5175_v1 = vrot.slane %v5173_v61, 5  ;;  %v5179_v52 = vrot.slane %v5177_v9, 4  ;;  %v5051_v9 = vld [vmem:[#allocation2 + $0x30] sm:$0xf] }
 0x233   : > { %v4685_v35 = vor.u32 %v4683_v5, %v4682_v12  ;;  %v4686_v15 = vrot.slane %v4682_v12, 4  ;;  %v4690_v25 = vrot.slane %v4688_v58, 7  ;;  %v9106_v38 = vcombine.low %v6171_v53, %v6174_v24 }
 0x234   : > { %v5170_v46 = vor.u32 %v5169_v33, %v12347_v51  ;;  %v5180_v0 = vor.u32 %v5179_v52, %v5175_v1  ;;  %v5569_v8 = vrot.slane %v12379_v29, 5  ;;  %v5185_v7 = vrot.slane %v5183_v28, 5 }
 0x235   : > { %v4960_v32 = vsel %vm10238_vm9, %v4685_v35, %v4959_v39  ;;  %v4693_v40 = vor.u32 %v4691_v60, %v4690_v25  ;;  %v4695_v31 = vrot.slane %v4690_v25, 4  ;;  %7289 = vrot.lane.b32.xlu0 %v9106_v38, %s10086_s28  ;;  %v6365_v18 = vshll.u32 %v12343_v14, 16 }
 0x236   : > { %4961 = vst [vmem:[#allocation2 + $0x3c] sm:$0xf] %v4960_v32  ;;  %v5171_v5 = vrot.slane %v5170_v46, 4  ;;  %v5181_v51 = vrot.slane %v5180_v0, 4  ;;  %v5571_v53 = vrot.slane %v5569_v8, 4  ;;  %v6362_v12 = vor.u32 %v12366_v20, %v12364_v47 }
 0x237   : > { %v12384_v59 = vpop.f32.mrb[24].mxu1  ;;  %v4694_v21 = vsel %vm10246_vm10, %v4686_v15, %v4693_v40  ;;  %v4964_v56 = vsel %vm10194_vm3, %v4695_v31, %v4963_v16  ;;  %v6371_v58 = vrot.slane %v6369_v34, 4  ;;  %v5572_v39 = vrot.slane %v12391_v41, 5 }
 0x238   : > { %4962 = vst.msk [vmem:[#allocation2 + $0x40] sm:$0xf] %vm332_vm0, %v4694_v21  ;;  %4965 = vst [vmem:[#allocation2 + $0x44] sm:$0x1] %v4964_v56  ;;  %v7867_v17 = vld [vmem:[#allocation3 + $0x40] sm:$0xff]  ;;  %v5176_v60 = vsel %vm10351_vm14, %v5171_v5, %v5175_v1  ;;  %v5186_v45 = vsel %vm10351_vm14, %v5181_v51, %v5185_v7  ;;  %v6367_v62 = vrot.slane %v6365_v18, 5 }
 0x239   : > { %9703 = vmatprep.mubr.msk.bf16.mxu0 %vm987_vm15, %v7867_v17  ;;  %v12406_v27 = vpop.f32.mrb[25].mxu1  ;;  %v9042_v61 = vcombine.low %v5176_v60, %v5186_v45  ;;  %v8979_v15 = vrot.slane %v5479_v23, 9  ;;  %v5573_v47 = vsel %vm10253_vm11, %v5571_v53, %v5572_v39  ;;  %v6375_v34 = vshll.u32 %v12345_v6, 16 }
 0x23a   : > { %v6372_v14 = vor.u32 %v6371_v58, %v6367_v62  ;;  %v5700_v20 = vshrl.u32 %v12174_v57, 16  ;;  %v6363_v16 = vrot.slane %v6362_v12, 4  ;;  %v5188_v32 = vshrl.u32 %v5051_v9, 16 }
 0x23b   : > { %6985 = vrot.lane.b32.xlu1 %v9042_v61, %s10086_s28  ;;  %v5570_v33 = vsel %vm10253_vm11, %v8979_v15, %v5569_v8  ;;  %v6377_v5 = vrot.slane %v6375_v34, 5 }
 0x23c   : > { %v9445_v35 = vpop.f32.mrb[20].mxu0  ;;  %v9059_v31 = vcombine.low %v5570_v33, %v5573_v47  ;;  %v6373_v6 = vrot.slane %v6372_v14, 4  ;;  %v6368_v18 = vsel %vm10351_vm14, %v6363_v16, %v6367_v62  ;;  %v5190_v61 = vrot.slane %v5188_v32, 4  ;;  %v12436_v14 = vpop.f32.mrb[26].mxu1 }
 0x23d   : > { %v9446_v25 = vpop.f32.mrb[21].mxu0  ;;  %v6265_v1 = vld [vmem:[#allocation2 + $0x3c] sm:$0xf] }
 0x23e   : > { %v9447_v28 = vadd.f32 %v9446_v25, %v9445_v35  ;;  %v9448_v24 = vpop.f32.mrb[22].mxu0  ;;  %v6694_v52 = vld [vmem:[#allocation2 + $0x3c] sm:$0xe]  ;;  %v6380_v17 = vshrl.u32 %v6265_v1, 16  ;;  %v6378_v45 = vsel %vm10351_vm14, %v6373_v6, %v6377_v5  ;;  %v5191_v35 = vshll.u32 %v5051_v9, 16 }
 0x23f   : > { %v9449_v40 = vpop.f32.mrb[23].mxu0  ;;  %v12415_v38 = vld [vmem:[#allocation2 + $0x40] sm:$0xf]  ;;  %v12417_v46 = vld [vmem:[#allocation2 + $0x44] sm:$0x1]  ;;  %7067 = vrot.lane.b32.xlu1 %v9059_v31, %s10084_s26  ;;  %v9010_v8 = vrot.slane %v6694_v52, 9 }
 0x240   : > { %v4236_v0 = vadd.f32 %v9447_v28, %v12124_v30  ;;  %v9450_v21 = vadd.f32 %v9449_v40, %v9448_v24  ;;  %v6778_v56 = vrot.slane %v12415_v38, 5  ;;  %v5660_v51 = vld [vmem:[#allocation2 + $0x40] sm:$0xf]  ;;  %v9122_v7 = vcombine.low %v6265_v1, %v12415_v38  ;;  %v5659_v60 = vld [vmem:[#allocation2 + $0x3c] sm:$0xf]  ;;  %v12440_v24 = vpop.f32.mrb[27].mxu1 }
 0x241   : > { %v6781_v58 = vrot.slane %v12417_v46, 5  ;;  %v9075_v39 = vcombine.low %v5659_v60, %v5660_v51  ;;  %v6087_v62 = vld [vmem:[#allocation2 + $0x3c] sm:$0xe]  ;;  %v6393_v34 = vshrl.u32 %v12415_v38, 16  ;;  %v6383_v16 = vshll.u32 %v6265_v1, 16 }
 0x242   : > { %v4397_v23 = vadd.f32 %v12095_v13, %v4236_v0  ;;  %v4239_v53 = vadd.f32 %v9450_v21, %v12124_v30  ;;  %v6780_v12 = vrot.slane %v6778_v56, 4  ;;  %7385 = vrot.lane.b32.xlu0 %v9122_v7, %s10084_s26  ;;  %v6779_v13 = vsel %vm10253_vm11, %v9010_v8, %v6778_v56  ;;  %v5687_v9 = vld [vmem:[#allocation2 + $0x44] sm:$0x1]  ;;  %v4966_v60 = vld [vmem:[#allocation2 + $0x48] sm:$0xf] }
 0x243   : > { %v9137_v28 = vcombine.low %v6368_v18, %v6378_v45  ;;  %7163 = vrot.lane.b32.xlu1 %v9075_v39, %s10085_s27  ;;  %v12442_v52 = vrot.slane %v6380_v17, 4  ;;  %v6177_v32 = vrot.slane %v5660_v51, 5  ;;  %v8995_v40 = vrot.slane %v6087_v62, 9  ;;  %v4970_v62 = vld [vmem:[#allocation2 + $0x50] sm:$0x1] }
 0x244   : > { %v4493_v15 = vmax.f32 %v4397_v23, 0.0  ;;  %v4400_v47 = vadd.f32 %v12102_v42, %v4239_v53  ;;  %v6782_v30 = vsel %vm10253_vm11, %v6780_v12, %v6781_v58  ;;  %v5193_v31 = vrot.slane %v5191_v35, 5  ;;  %v12449_v58 = vld [vmem:[#allocation2 + $0x40] sm:$0xf] }
 0x245   : > { %v9154_v25 = vcombine.low %v6779_v13, %v6782_v30  ;;  %v5197_v6 = vshll.u32 %v12379_v29, 16  ;;  %v5201_v1 = vshrl.u32 %v12379_v29, 16  ;;  %v6180_v56 = vrot.slane %v5687_v9, 5  ;;  %v12455_v13 = vld [vmem:[#allocation2 + $0x44] sm:$0x1] }
 0x246   : > { %v9218_v42 = vpack.c.bf16 %v4493_v15, %v4493_v15  ;;  %v4494_v33 = vmax.f32 %v4400_v47, 0.0  ;;  %7463 = vrot.lane.b32.xlu0 %v9137_v28, %s10085_s27  ;;  %v5207_v5 = vshll.u32 %v12391_v41, 16  ;;  %v6179_v8 = vrot.slane %v6177_v32, 4 }
 0x247   : > { %7822 = vst.msk [vmem:[#allocation3 + $0x58] sm:$0xff] %vm987_vm15, %v9154_v25  ;;  %v5194_v7 = vor.u32 %v5193_v31, %v5190_v61  ;;  %v5199_v17 = vrot.slane %v5197_v6, 5  ;;  %v5203_v18 = vrot.slane %v5201_v1, 4  ;;  %v6385_v12 = vrot.slane %v6383_v16, 5  ;;  %v5480_v31 = vld [vmem:[#allocation2 + $0x3c] sm:$0xe] }
 0x248   : > { %v4697_v0 = vshrl.u32 %v9218_v42, 16  ;;  %v9219_v21 = vpack.c.bf16 %v4494_v33, %v4494_v33  ;;  %v4700_v23 = vshll.u32 %v9218_v42, 16  ;;  %v6178_v45 = vsel %vm10253_vm11, %v8995_v40, %v6177_v32 }
 0x249   : > { %v6181_v29 = vsel %vm10253_vm11, %v6179_v8, %v6180_v56  ;;  %v5195_v39 = vrot.slane %v5194_v7, 4  ;;  %v5204_v35 = vor.u32 %v5203_v18, %v5199_v17  ;;  %v5209_v16 = vrot.slane %v5207_v5, 5  ;;  %v5053_v56 = vld [vmem:[#allocation2 + $0x3c] sm:$0xf] }
 0x24a   : > { %v4699_v51 = vrot.slane %v4697_v0, 7  ;;  %v4705_v53 = vshrl.u32 %v9219_v21, 16  ;;  %v4708_v61 = vshll.u32 %v9219_v21, 16  ;;  %v9107_v47 = vcombine.low %v6178_v45, %v6181_v29 }
 0x24b   : > { %v5205_v25 = vrot.slane %v5204_v35, 4  ;;  %v5576_v28 = vrot.slane %v12449_v58, 5  ;;  %v5200_v40 = vsel %vm10351_vm14, %v5195_v39, %v5199_v17  ;;  %v5579_v0 = vrot.slane %v12455_v13, 5 }
 0x24c   : > { %v4702_v41 = vor.u32 %v4700_v23, %v4699_v51  ;;  %v4707_v15 = vrot.slane %v4705_v53, 7  ;;  %v4703_v30 = vrot.slane %v4699_v51, 4  ;;  %7291 = vrot.lane.b32.xlu0 %v9107_v47, %s10086_s28  ;;  %v6389_v21 = vshll.u32 %v12415_v38, 16 }
 0x24d   : > { %v5210_v6 = vsel %vm10351_vm14, %v5205_v25, %v5209_v16  ;;  %v5578_v1 = vrot.slane %v5576_v28, 4  ;;  %v6386_v17 = vor.u32 %v6385_v12, %v12442_v52  ;;  %v8980_v51 = vrot.slane %v5480_v31, 9  ;;  %v12490_v25 = vld [vmem:[%s14376_s2] ss:$0 sm:$0xff] }
 0x24e   : > { %v4967_v9 = vsel %vm10238_vm9, %v4702_v41, %v4966_v60  ;;  %v4710_v42 = vor.u32 %v4708_v61, %v4707_v15  ;;  %v4712_v33 = vrot.slane %v4707_v15, 4  ;;  %v7870_v32 = vld [vmem:[#allocation3 + $0x58] sm:$0xff]  ;;  %v9043_v7 = vcombine.low %v5200_v40, %v5210_v6 }
 0x24f   : > { %4968 = vst [vmem:[#allocation2 + $0x48] sm:$0xf] %v4967_v9  ;;  %9704 = vmatmul.mubr.msk.bf16.gmra.mrb[68].mxu0 %vm987_vm15, %v7870_v32  ;;  %v5580_v23 = vsel %vm10253_vm11, %v5578_v1, %v5579_v0  ;;  %v12476_v53 = vrot.slane %v6389_v21, 5  ;;  %v6395_v60 = vrot.slane %v6393_v34, 4  ;;  %v5703_v45 = vshll.u32 %v12174_v57, 16 }
 0x250   : > { %v4711_v5 = vsel %vm10246_vm10, %v4703_v30, %v4710_v42  ;;  %v4971_v8 = vsel %vm10194_vm3, %v4712_v33, %v4970_v62  ;;  %6987 = vrot.lane.b32.xlu1 %v9043_v7, %s10086_s28  ;;  %v6399_v52 = vshll.u32 %v12417_v46, 16  ;;  %v5212_v12 = vshrl.u32 %v5053_v56, 16  ;;  %v9844_v42 = vld [vmem:[%s14377_s3] sm:$0xff]  }
 0x251   : > { %4969 = vst.msk [vmem:[#allocation2 + $0x4c] sm:$0xf] %vm332_vm0, %v4711_v5  ;;  %4972 = vst [vmem:[#allocation2 + $0x50] sm:$0x1] %v4971_v8  ;;  %v5215_v39 = vshll.u32 %v5053_v56, 16  ;;  %v5577_v15 = vsel %vm10253_vm11, %v8980_v51, %v5576_v28  ;;  %v6396_v61 = vor.u32 %v6395_v60, %v12476_v53  ;;  %v5221_v47 = vshll.u32 %v12449_v58, 16 }
 0x252   : > { %v9451_v18 = vpop.f32.mrb[24].mxu0  ;;  %v9060_v34 = vcombine.low %v5577_v15, %v5580_v23  ;;  %v6387_v30 = vrot.slane %v6386_v17, 4  ;;  %v12493_v16 = vrot.slane %v5212_v12, 4  ;;  %v9843_v28 = vld [vmem:[%s14377_s3 + $0x40] sm:$0xff]   ;;  %v12505_v33 = vrot.slane %v5700_v20, 4 }
 0x253   : > { %v9452_v29 = vpop.f32.mrb[25].mxu0  ;;  %v12495_v9 = vrot.slane %v5215_v39, 5  ;;  %v12507_v32 = vrot.slane %v5703_v45, 5  ;;  %v6401_v40 = vrot.slane %v6399_v52, 5  ;;  %v5709_v31 = vshll.u32 %v12179_v55, 16  ;;  %9529 = vmatprep.subr.bf16.mxu1 %v9843_v28  ;;  %v9846_v28 = vld [vmem:[%s14377_s3 + $0x48] sm:$0xff]  }
 0x254   : > { %v9453_v35 = vadd.f32 %v9452_v29, %v9451_v18  ;;  %v9454_v41 = vpop.f32.mrb[26].mxu0  ;;  %7069 = vrot.lane.b32.xlu1 %v9060_v34, %s10084_s26  ;;  %v6397_v56 = vrot.slane %v6396_v61, 4  ;;  %v12515_v5 = vrot.slane %v5221_v47, 5  ;;  %v6392_v8 = vsel %vm10351_vm14, %v6387_v30, %v12476_v53  ;;  %9530 = vmatpush3.bf16.msra.mxu1 %v9844_v42 }
 0x255   : > { %v9455_v38 = vpop.f32.mrb[27].mxu0  ;;  %v5225_v7 = vshrl.u32 %v12449_v58, 16  ;;  %v5218_v45 = vor.u32 %v12495_v9, %v12493_v16  ;;  %9531 = vmatprep.subr.bf16.mxu1 %v9846_v28  ;;  %v4977_v28 = vld [vmem:[#allocation2 + $0x5c] sm:$0x1] }
 0x256   : > { %v9456_v62 = vadd.f32 %v9455_v38, %v9454_v41  ;;  %v4244_v46 = vadd.f32 %v12490_v25, %v9453_v35  ;;  %v12513_v0 = vld [vmem:[#allocation2 + $0x48] sm:$0xf]  ;;  %v6402_v61 = vsel %vm10351_vm14, %v6397_v56, %v6401_v40 }
 0x257   : > { %v6695_v21 = vld [vmem:[#allocation2 + $0x48] sm:$0xe]  ;;  %v6404_v12 = vshrl.u32 %v12513_v0, 16  ;;  %v6407_v39 = vshll.u32 %v12513_v0, 16 }
 0x258   : > { %v4405_v6 = vadd.f32 %v12128_v48, %v4244_v46  ;;  %v4247_v1 = vadd.f32 %v12490_v25, %v9456_v62  ;;  %v12517_v57 = vld [vmem:[#allocation2 + $0x4c] sm:$0xf]  ;;  %v12519_v20 = vld [vmem:[#allocation2 + $0x50] sm:$0x1]  ;;  %v5231_v48 = vshll.u32 %v12455_v13, 16  ;;  %v9011_v52 = vrot.slane %v6695_v21, 9 }
 0x259   : > { %v6785_v23 = vrot.slane %v12517_v57, 5  ;;  %v12528_v60 = vld [vmem:[#allocation2 + $0x4c] sm:$0xf]  ;;  %v9123_v53 = vcombine.low %v12513_v0, %v12517_v57  ;;  %v5661_v47 = vld [vmem:[#allocation2 + $0x48] sm:$0xf]  ;;  %v6417_v34 = vshrl.u32 %v12517_v57, 16 }
 0x25a   : > { %v4495_v17 = vmax.f32 %v4405_v6, 0.0  ;;  %v4408_v18 = vadd.f32 %v12145_v10, %v4247_v1  ;;  %v9457_v51 = vpop.f32.mrb[28].mxu0  ;;  %v6788_v62 = vrot.slane %v12519_v20, 5  ;;  %v9076_v46 = vcombine.low %v5661_v47, %v12528_v60  ;;  %v9847_v21 = vld [vmem:[%s14377_s3 + $0x8] sm:$0xff]  }
 0x25b   : > { %v9458_v29 = vpop.f32.mrb[29].mxu0  ;;  %v6787_v30 = vrot.slane %v6785_v23, 4  ;;  %7387 = vrot.lane.b32.xlu0 %v9123_v53, %s10084_s26  ;;  %v6088_v47 = vld [vmem:[#allocation2 + $0x48] sm:$0xe]  ;;  %9532 = vmatpush3.bf16.msra.mxu1 %v9847_v21 }
 0x25c   : > { %v9220_v35 = vpack.c.bf16 %v4495_v17, %v4495_v17  ;;  %v4496_v41 = vmax.f32 %v4408_v18, 0.0  ;;  %v9459_v10 = vadd.f32 %v9458_v29, %v9457_v51  ;;  %v9460_v15 = vpop.f32.mrb[30].mxu0  ;;  %v12551_v18 = vrot.slane %v6404_v12, 4  ;;  %7165 = vrot.lane.b32.xlu1 %v9076_v46, %s10085_s27 }
 0x25d   : > { %v9461_v38 = vpop.f32.mrb[31].mxu0  ;;  %v6789_v17 = vsel %vm10253_vm11, %v6787_v30, %v6788_v62  ;;  %v9138_v51 = vcombine.low %v6392_v8, %v6402_v61  ;;  %v6184_v8 = vrot.slane %v12528_v60, 5  ;;  %v9849_v60 = vld [vmem:[%s14377_s3 + $0x10] sm:$0xff]  }
 0x25e   : > { %v4714_v42 = vshrl.u32 %v9220_v35, 16  ;;  %v4717_v6 = vshll.u32 %v9220_v35, 16  ;;  %v9221_v1 = vpack.c.bf16 %v4496_v41, %v4496_v41  ;;  %v4252_v40 = vadd.f32 %v12490_v25, %v9459_v10  ;;  %v5688_v10 = vld [vmem:[#allocation2 + $0x50] sm:$0x1] }
 0x25f   : > { %v9462_v56 = vadd.f32 %v9461_v38, %v9460_v15  ;;  %v6786_v41 = vsel %vm10253_vm11, %v9011_v52, %v6785_v23  ;;  %v4973_v15 = vld [vmem:[#allocation2 + $0x54] sm:$0xf]  ;;  %7465 = vrot.lane.b32.xlu0 %v9138_v51, %s10085_s27  ;;  %v6187_v21 = vrot.slane %v5688_v10, 5 }
 0x260   : > { %v4716_v29 = vrot.slane %v4714_v42, 7  ;;  %v4722_v53 = vshrl.u32 %v9221_v1, 16  ;;  %v4413_v35 = vadd.f32 %v12126_v22, %v4252_v40  ;;  %v4725_v38 = vshll.u32 %v9221_v1, 16 }
 0x261   : > { %v4255_v30 = vadd.f32 %v12490_v25, %v9462_v56  ;;  %v9155_v12 = vcombine.low %v6786_v41, %v6789_v17  ;;  %v8996_v40 = vrot.slane %v6088_v47, 9  ;;  %v6186_v1 = vrot.slane %v6184_v8, 4  ;;  %v9848_v56 = vld [vmem:[%s14377_s3 + $0x50] sm:$0xff]  }
 0x262   : > { %v4719_v61 = vor.u32 %v4717_v6, %v4716_v29  ;;  %v4720_v62 = vrot.slane %v4716_v29, 4  ;;  %v4724_v46 = vrot.slane %v4722_v53, 7  ;;  %v4497_v22 = vmax.f32 %v4413_v35, 0.0  ;;  %v9463_v42 = vpop.f32.mrb[32].mxu0  ;;  %9533 = vmatprep.subr.bf16.mxu1 %v9848_v56 }
 0x263   : > { %v4416_v23 = vadd.f32 %v12143_v49, %v4255_v30  ;;  %v9464_v52 = vpop.f32.mrb[33].mxu0  ;;  %7825 = vst.msk [vmem:[#allocation3 + $0x70] sm:$0xff] %vm987_vm15, %v9155_v12  ;;  %v6188_v10 = vsel %vm10253_vm11, %v6186_v1, %v6187_v21  ;;  %v12575_v47 = vrot.slane %v5218_v45, 4  ;;  %v6185_v12 = vsel %vm10253_vm11, %v8996_v40, %v6184_v8  ;;  %9534 = vmatpush3.bf16.msra.mxu1 %v9849_v60  ;;  %v5481_v8 = vld [vmem:[#allocation2 + $0x48] sm:$0xe] }
 0x264   : > { %v4974_v6 = vsel %vm10238_vm9, %v4719_v61, %v4973_v15  ;;  %v4727_v17 = vor.u32 %v4725_v38, %v4724_v46  ;;  %v4729_v51 = vrot.slane %v4724_v46, 4  ;;  %v9222_v49 = vpack.c.bf16 %v4497_v22, %v4497_v22  ;;  %v9466_v29 = vpop.f32.mrb[34].mxu0  ;;  %v12596_v21 = vld [vmem:[#allocation2 + $0x4c] sm:$0xf] }
 0x265   : > { %4975 = vst [vmem:[#allocation2 + $0x54] sm:$0xf] %v4974_v6  ;;  %v4498_v53 = vmax.f32 %v4416_v23, 0.0  ;;  %v9465_v35 = vadd.f32 %v9464_v52, %v9463_v42  ;;  %v9467_v41 = vpop.f32.mrb[35].mxu0  ;;  %v9108_v9 = vcombine.low %v6185_v12, %v6188_v10  ;;  %v4980_v42 = vld [vmem:[#allocation2 + $0x60] sm:$0xf] }
 0x266   : > { %v4728_v15 = vsel %vm10246_vm10, %v4720_v62, %v4727_v17  ;;  %v4978_v38 = vsel %vm10194_vm3, %v4729_v51, %v4977_v28  ;;  %v4731_v30 = vshrl.u32 %v9222_v49, 16  ;;  %v9468_v46 = vadd.f32 %v9467_v41, %v9466_v29 }
 0x267   : > { %4976 = vst.msk [vmem:[#allocation2 + $0x58] sm:$0xf] %vm332_vm0, %v4728_v15  ;;  %4979 = vst [vmem:[#allocation2 + $0x5c] sm:$0x1] %v4978_v38  ;;  %v9223_v61 = vpack.c.bf16 %v4498_v53, %v4498_v53  ;;  %v4260_v16 = vadd.f32 %v12490_v25, %v9465_v35  ;;  %v4734_v22 = vshll.u32 %v9222_v49, 16  ;;  %v5224_v62 = vsel %vm10351_vm14, %v12575_v47, %v12515_v5 }
 0x268   : > { %v4733_v45 = vrot.slane %v4731_v30, 7  ;;  %v5227_v28 = vrot.slane %v5225_v7, 4  ;;  %v4263_v40 = vadd.f32 %v12490_v25, %v9468_v46  ;;  %7293 = vrot.lane.b32.xlu0 %v9108_v9, %s10086_s28  ;;  %v5233_v1 = vrot.slane %v5231_v48, 5  ;;  %v12601_v53 = vld [vmem:[#allocation2 + $0x50] sm:$0x1] }
 0x269   : > { %v4739_v23 = vshrl.u32 %v9223_v61, 16  ;;  %v4421_v52 = vadd.f32 %v12171_v54, %v4260_v16  ;;  %v4742_v6 = vshll.u32 %v9223_v61, 16  ;;  %v8981_v13 = vrot.slane %v5481_v8, 9  ;;  %v4984_v35 = vld [vmem:[#allocation2 + $0x68] sm:$0x1] }
 0x26a   : > { %v4736_v56 = vor.u32 %v4734_v22, %v4733_v45  ;;  %v4737_v60 = vrot.slane %v4733_v45, 4  ;;  %v7873_v17 = vld [vmem:[#allocation3 + $0x70] sm:$0xff]  ;;  %v5228_v58 = vor.u32 %v5227_v28, %v12515_v5  ;;  %v9469_v7 = vpop.f32.mrb[36].mxu0  ;;  %v4424_v54 = vadd.f32 %v12190_v11, %v4263_v40 }
 0x26b   : > { %v4741_v51 = vrot.slane %v4739_v23, 7  ;;  %v4499_v49 = vmax.f32 %v4421_v52, 0.0  ;;  %9707 = vmatprep.mubr.msk.bf16.mxu0 %vm987_vm15, %v7873_v17  ;;  %v9470_v29 = vpop.f32.mrb[37].mxu0  ;;  %v5583_v5 = vrot.slane %v12596_v21, 5  ;;  %v5586_v9 = vrot.slane %v12601_v53, 5 }
 0x26c   : > { %v4981_v48 = vsel %vm10238_vm9, %v4736_v56, %v4980_v42  ;;  %v5229_v41 = vrot.slane %v5228_v58, 4  ;;  %v9471_v10 = vadd.f32 %v9470_v29, %v9469_v7  ;;  %v9472_v47 = vpop.f32.mrb[38].mxu0  ;;  %v4500_v11 = vmax.f32 %v4424_v54, 0.0  ;;  %v6696_v45 = vld [vmem:[#allocation2 + $0x54] sm:$0xe] }
 0x26d   : > { %4982 = vst [vmem:[#allocation2 + $0x60] sm:$0xf] %v4981_v48  ;;  %v4744_v15 = vor.u32 %v4742_v6, %v4741_v51  ;;  %v4746_v38 = vrot.slane %v4741_v51, 4  ;;  %v9224_v30 = vpack.c.bf16 %v4499_v49, %v4499_v49  ;;  %v9473_v12 = vpop.f32.mrb[39].mxu0  ;;  %v4987_v17 = vld [vmem:[#allocation2 + $0x6c] sm:$0xf] }
 0x26e   : > { %v5234_v61 = vsel %vm10351_vm14, %v5229_v41, %v5233_v1  ;;  %v4268_v46 = vadd.f32 %v12490_v25, %v9471_v10  ;;  %v9474_v16 = vadd.f32 %v9473_v12, %v9472_v47  ;;  %v9225_v23 = vpack.c.bf16 %v4500_v11, %v4500_v11  ;;  %v12617_v56 = vld [vmem:[#allocation2 + $0x58] sm:$0xf]  ;;  %v12623_v29 = vld [vmem:[#allocation2 + $0x5c] sm:$0x1]  ;;  %v12651_v0 = vld [vmem:[#allocation2 + $0x54] sm:$0xf] }
 0x26f   : > { %v4745_v22 = vsel %vm10246_vm10, %v4737_v60, %v4744_v15  ;;  %v4985_v28 = vsel %vm10194_vm3, %v4746_v38, %v4984_v35  ;;  %v4748_v8 = vshrl.u32 %v9224_v30, 16  ;;  %v4751_v42 = vshll.u32 %v9224_v30, 16  ;;  %v9851_v47 = vld [vmem:[%s14377_s3 + $0x58] sm:$0xff]   ;;  %v4991_v15 = vld [vmem:[#allocation2 + $0x74] sm:$0x1] }
 0x270   : > { %4983 = vst.msk [vmem:[#allocation2 + $0x64] sm:$0xf] %vm332_vm0, %v4745_v22  ;;  %4986 = vst [vmem:[#allocation2 + $0x68] sm:$0x1] %v4985_v28  ;;  %v9044_v52 = vcombine.low %v5224_v62, %v5234_v61  ;;  %v4429_v40 = vadd.f32 %v12166_v63, %v4268_v46  ;;  %v4271_v1 = vadd.f32 %v12490_v25, %v9474_v16  ;;  %v5585_v58 = vrot.slane %v5583_v5, 4  ;;  %v9852_v12 = vld [vmem:[%s14377_s3 + $0x18] sm:$0xff]  }
 0x271   : > { %v4750_v6 = vrot.slane %v4748_v8, 7  ;;  %v5584_v60 = vsel %vm10253_vm11, %v8981_v13, %v5583_v5  ;;  %v9012_v7 = vrot.slane %v6696_v45, 9  ;;  %v4756_v51 = vshrl.u32 %v9225_v23, 16  ;;  %9535 = vmatprep.subr.bf16.mxu1 %v9851_v47  ;;  %v9854_v22 = vld [vmem:[%s14377_s3 + $0x60] sm:$0xff]   ;;  %v12677_v47 = vld [vmem:[#allocation2 + $0x18] sm:$0xf] }
 0x272   : > { %v4759_v49 = vshll.u32 %v9225_v23, 16  ;;  %6989 = vrot.lane.b32.xlu1 %v9044_v52, %s10086_s28  ;;  %v4501_v54 = vmax.f32 %v4429_v40, 0.0  ;;  %v4432_v62 = vadd.f32 %v12186_v2, %v4271_v1  ;;  %v12625_v63 = vpop.f32.mrb[40].mxu0  ;;  %v5587_v41 = vsel %vm10253_vm11, %v5585_v58, %v5586_v9  ;;  %9536 = vmatpush3.bf16.msra.mxu1 %v9852_v12  ;;  %v9855_v23 = vld [vmem:[%s14377_s3 + $0x20] sm:$0xff]  }
 0x273   : > { %v4753_v48 = vor.u32 %v4751_v42, %v4750_v6  ;;  %v4754_v35 = vrot.slane %v4750_v6, 4  ;;  %v6792_v13 = vrot.slane %v12617_v56, 5  ;;  %v12630_v10 = vpop.f32.mrb[41].mxu0  ;;  %v4758_v5 = vrot.slane %v4756_v51, 7  ;;  %9537 = vmatprep.subr.bf16.mxu1 %v9854_v22  ;;  %v4998_v22 = vld [vmem:[#allocation2 + $0x80] sm:$0x1] }
 0x274   : > { %v9226_v2 = vpack.c.bf16 %v4501_v54, %v4501_v54  ;;  %v4502_v38 = vmax.f32 %v4432_v62, 0.0  ;;  %v9061_v30 = vcombine.low %v5584_v60, %v5587_v41  ;;  %v12635_v11 = vpop.f32.mrb[42].mxu0  ;;  %v6409_v61 = vrot.slane %v6407_v39, 5  ;;  %v9938_v41 = vld [vmem:[#allocation2 + $0x10] sm:$0xf] }
 0x275   : > { %v4988_v46 = vsel %vm10238_vm9, %v4753_v48, %v4987_v17  ;;  %v6794_v16 = vrot.slane %v6792_v13, 4  ;;  %v6795_v9 = vrot.slane %v12623_v29, 5  ;;  %v12645_v45 = vpop.f32.mrb[43].mxu0  ;;  %v4761_v28 = vor.u32 %v4759_v49, %v4758_v5  ;;  %v12666_v49 = vld [vmem:[#allocation2 + $0x14] sm:$0x1] }
 0x276   : > { %4989 = vst [vmem:[#allocation2 + $0x6c] sm:$0xf] %v4988_v46  ;;  %v4763_v8 = vrot.slane %v4758_v5, 4  ;;  %v4765_v42 = vshrl.u32 %v9226_v2, 16  ;;  %7071 = vrot.lane.b32.xlu1 %v9061_v30, %s10084_s26  ;;  %v6793_v39 = vsel %vm10253_vm11, %v9012_v7, %v6792_v13  ;;  %v4768_v52 = vshll.u32 %v9226_v2, 16  ;;  %9538 = vmatpush3.bf16.msra.mxu1 %v9855_v23 }
 0x277   : > { %v9227_v40 = vpack.c.bf16 %v4502_v38, %v4502_v38  ;;  %v6796_v1 = vsel %vm10253_vm11, %v6794_v16, %v6795_v9  ;;  %v9124_v6 = vcombine.low %v12651_v0, %v12617_v56  ;;  %v4762_v17 = vsel %vm10246_vm10, %v4754_v35, %v4761_v28  ;;  %v4994_v7 = vld [vmem:[#allocation2 + $0x78] sm:$0xf]  ;;  %v5663_v46 = vld [vmem:[#allocation2 + $0x54] sm:$0xf] }
 0x278   : > { %v4992_v60 = vsel %vm10194_vm3, %v4763_v8, %v4991_v15  ;;  %v4767_v58 = vrot.slane %v4765_v42, 7  ;;  %v9156_v51 = vcombine.low %v6793_v39, %v6796_v1  ;;  %4990 = vst.msk [vmem:[#allocation2 + $0x70] sm:$0xf] %vm332_vm0, %v4762_v17  ;;  %v12671_v48 = vld [vmem:[#allocation2 + $0x58] sm:$0xf]  ;;  %v12675_v35 = vrot.slane %v5709_v31, 5 }
 0x279   : > { %4993 = vst [vmem:[#allocation2 + $0x74] sm:$0x1] %v4992_v60  ;;  %v4773_v62 = vshrl.u32 %v9227_v40, 16  ;;  %7389 = vrot.lane.b32.xlu0 %v9124_v6, %s10084_s26  ;;  %v5713_v13 = vshrl.u32 %v9938_v41, 16  ;;  %v5724_v5 = vshrl.u32 %v12677_v47, 16  ;;  %v6410_v2 = vor.u32 %v6409_v61, %v12551_v18 }
 0x27a   : > { %v4770_v15 = vor.u32 %v4768_v52, %v4767_v58  ;;  %7828 = vst.msk [vmem:[#allocation3 + $0x88] sm:$0xff] %vm987_vm15, %v9156_v51  ;;  %v6413_v38 = vshll.u32 %v12517_v57, 16  ;;  %v12683_v30 = vpop.f32.mrb[44].mxu0  ;;  %v4776_v55 = vshll.u32 %v9227_v40, 16  ;;  %v6419_v31 = vrot.slane %v6417_v34, 4 }
 0x27b   : > { %v4775_v12 = vrot.slane %v4773_v62, 7  ;;  %v12687_v16 = vpop.f32.mrb[45].mxu0  ;;  %v6423_v18 = vshll.u32 %v12519_v20, 16  ;;  %v9077_v61 = vcombine.low %v5663_v46, %v12671_v48  ;;  %v4771_v42 = vrot.slane %v4767_v58, 4  ;;  %v5055_v34 = vld [vmem:[#allocation2 + $0x48] sm:$0xf] }
 0x27c   : > { %v4995_v9 = vsel %vm10238_vm9, %v4770_v15, %v4994_v7  ;;  %v6415_v28 = vrot.slane %v6413_v38, 5  ;;  %v12693_v8 = vpop.f32.mrb[46].mxu0  ;;  %v6411_v57 = vrot.slane %v6410_v2, 4  ;;  %v12697_v40 = vrot.slane %v5724_v5, 4  ;;  %v5689_v7 = vld [vmem:[#allocation2 + $0x5c] sm:$0x1] }
 0x27d   : > { %4996 = vst [vmem:[#allocation2 + $0x78] sm:$0xf] %v4995_v9  ;;  %v4778_v39 = vor.u32 %v4776_v55, %v4775_v12  ;;  %v4780_v23 = vrot.slane %v4775_v12, 4  ;;  %v12695_v52 = vpop.f32.mrb[47].mxu0  ;;  %7167 = vrot.lane.b32.xlu1 %v9077_v61, %s10085_s27  ;;  %v12701_v20 = vrot.slane %v5713_v13, 4  ;;  %v6428_v58 = vshrl.u32 %v12651_v0, 16 }
 0x27e   : > { %v6420_v6 = vor.u32 %v6419_v31, %v6415_v28  ;;  %v6191_v51 = vrot.slane %v12671_v48, 5  ;;  %v6431_v62 = vshll.u32 %v12651_v0, 16  ;;  %v6425_v5 = vrot.slane %v6423_v18, 5  ;;  %v6089_v13 = vld [vmem:[#allocation2 + $0x54] sm:$0xe]  ;;  %v12720_v18 = vpop.f32.mrb[28].mxu1 }
 0x27f   : > { %v4779_v17 = vsel %vm10246_vm10, %v4771_v42, %v4778_v39  ;;  %v4999_v60 = vsel %vm10194_vm3, %v4780_v23, %v4998_v22  ;;  %v5236_v15 = vshrl.u32 %v5055_v34, 16  ;;  %v6416_v2 = vsel %vm10351_vm14, %v6411_v57, %v6415_v28  ;;  %v12718_v22 = vld [vmem:[#allocation2 + $0x58] sm:$0xf]  ;;  %14472 = vst [vmem:[#allocation17_spill] sm:$0xff] %v12720_v18 }
 0x280   : > { %4997 = vst.msk [vmem:[#allocation2 + $0x7c] sm:$0xf] %vm332_vm0, %v4779_v17  ;;  %5000 = vst [vmem:[#allocation2 + $0x80] sm:$0x1] %v4999_v60  ;;  %v6421_v41 = vrot.slane %v6420_v6, 4  ;;  %v6193_v12 = vrot.slane %v6191_v51, 4  ;;  %v9477_v6 = vadd.f32 %v12630_v10, %v12625_v63 }
 0x281   : > { %v7876_v38 = vld [vmem:[#allocation3 + $0x88] sm:$0xff]  ;;  %v5239_v55 = vshll.u32 %v5055_v34, 16  ;;  %v5245_v31 = vshll.u32 %v12596_v21, 16  ;;  %v6194_v46 = vrot.slane %v5689_v7, 5  ;;  %v5238_v9 = vrot.slane %v5236_v15, 4 }
 0x282   : > { %v6426_v48 = vsel %vm10351_vm14, %v6421_v41, %v6425_v5  ;;  %9708 = vmatmul.mubr.msk.bf16.gmra.mrb[72].mxu0 %vm987_vm15, %v7876_v38  ;;  %v5249_v0 = vshrl.u32 %v12596_v21, 16  ;;  %v8997_v28 = vrot.slane %v6089_v13, 9  ;;  %v5255_v34 = vshll.u32 %v12601_v53, 16  ;;  %v12727_v17 = vld [vmem:[#allocation2 + $0x64] sm:$0xf]  ;;  %v12740_v38 = vpop.f32.mrb[29].mxu1 }
 0x283   : > { %v9139_v61 = vcombine.low %v6416_v2, %v6426_v48  ;;  %v5241_v42 = vrot.slane %v5239_v55, 5  ;;  %v5247_v39 = vrot.slane %v5245_v31, 5  ;;  %v6195_v23 = vsel %vm10253_vm11, %v6193_v12, %v6194_v46  ;;  %v12733_v41 = vld [vmem:[#allocation2 + $0x5c] sm:$0x1]  ;;  %v6697_v13 = vld [vmem:[#allocation2 + $0x60] sm:$0xe] }
 0x284   : > { %v5251_v57 = vrot.slane %v5249_v0, 4  ;;  %v6441_v21 = vshrl.u32 %v12617_v56, 16  ;;  %v9480_v7 = vadd.f32 %v12645_v45, %v12635_v11  ;;  %v5590_v5 = vrot.slane %v12718_v22, 5  ;;  %v5482_v10 = vld [vmem:[#allocation2 + $0x54] sm:$0xe]  ;;  %v12745_v45 = vpop.f32.mrb[30].mxu1 }
 0x285   : > { %7467 = vrot.lane.b32.xlu0 %v9139_v61, %s10085_s27  ;;  %v5242_v60 = vor.u32 %v5241_v42, %v5238_v9  ;;  %v6430_v15 = vrot.slane %v6428_v58, 4  ;;  %v6192_v53 = vsel %vm10253_vm11, %v8997_v28, %v6191_v51  ;;  %v12738_v2 = vld [vmem:[#allocation2 + $0x68] sm:$0x1]  ;;  %v6433_v12 = vrot.slane %v6431_v62, 5  ;;  %v12742_v48 = vld [vmem:[#allocation2 + $0x60] sm:$0xf] }
 0x286   : > { %v5252_v63 = vor.u32 %v5251_v57, %v5247_v39  ;;  %v9109_v55 = vcombine.low %v6192_v53, %v6195_v23  ;;  %v6799_v11 = vrot.slane %v12727_v17, 5  ;;  %14473 = vst [vmem:[#allocation18_spill] sm:$0xff] %v12745_v45  ;;  %v5257_v58 = vrot.slane %v5255_v34, 5  ;;  %v12747_v51 = vpop.f32.mrb[31].mxu1  ;;  %v9856_v23 = vld [vmem:[%s14377_s3 + $0x68] sm:$0xff]  }
 0x287   : > { %v5243_v31 = vrot.slane %v5242_v60, 4  ;;  %v5592_v9 = vrot.slane %v5590_v5, 4  ;;  %v9013_v0 = vrot.slane %v6697_v13, 9  ;;  %v8982_v61 = vrot.slane %v5482_v10, 9  ;;  %9539 = vmatprep.subr.bf16.mxu1 %v9856_v23  ;;  %v12785_v23 = vld [vmem:[#allocation2 + $0x24] sm:$0xf] }
 0x288   : > { %v5253_v46 = vrot.slane %v5252_v63, 4  ;;  %v5593_v28 = vrot.slane %v12733_v41, 5  ;;  %v6801_v62 = vrot.slane %v6799_v11, 4  ;;  %v6802_v42 = vrot.slane %v12738_v2, 5  ;;  %v5005_v45 = vld [vmem:[#allocation2 + $0x8c] sm:$0x1] }
 0x289   : > { %7295 = vrot.lane.b32.xlu0 %v9109_v55, %s10086_s28  ;;  %v5248_v57 = vsel %vm10351_vm14, %v5243_v31, %v5247_v39  ;;  %v6800_v60 = vsel %vm10253_vm11, %v9013_v0, %v6799_v11  ;;  %v9125_v13 = vcombine.low %v12742_v48, %v12727_v17  ;;  %v4276_v10 = vadd.f32 %v12490_v25, %v9477_v6  ;;  %v9857_v0 = vld [vmem:[%s14377_s3 + $0x28] sm:$0xff]  }
 0x28a   : > { %v5258_v34 = vsel %vm10351_vm14, %v5253_v46, %v5257_v58  ;;  %v6803_v63 = vsel %vm10253_vm11, %v6801_v62, %v6802_v42  ;;  %v4279_v55 = vadd.f32 %v12490_v25, %v9480_v7  ;;  %v5594_v39 = vsel %vm10253_vm11, %v5592_v9, %v5593_v28  ;;  %v9859_v42 = vld [vmem:[%s14377_s3 + $0x70] sm:$0xff]   ;;  %9540 = vmatpush3.bf16.msra.mxu1 %v9857_v0 }
 0x28b   : > { %v9045_v53 = vcombine.low %v5248_v57, %v5258_v34  ;;  %v9157_v31 = vcombine.low %v6800_v60, %v6803_v63  ;;  %v6434_v46 = vor.u32 %v6433_v12, %v6430_v15  ;;  %v6437_v58 = vshll.u32 %v12617_v56, 16  ;;  %v12770_v11 = vpop.f32.mrb[48].mxu0  ;;  %v5665_v15 = vld [vmem:[#allocation2 + $0x60] sm:$0xf]  ;;  %v5666_v12 = vld [vmem:[#allocation2 + $0x64] sm:$0xf]  ;;  %9541 = vmatprep.subr.bf16.mxu1 %v9859_v42 }
 0x28c   : > { %v4437_v6 = vadd.f32 %v12269_v26, %v4276_v10  ;;  %v4440_v7 = vadd.f32 %v12298_v3, %v4279_v55  ;;  %v6443_v62 = vrot.slane %v6441_v21, 4  ;;  %v6447_v9 = vshll.u32 %v12623_v29, 16  ;;  %v5057_v56 = vld [vmem:[#allocation2 + $0x54] sm:$0xf]  ;;  %v12780_v28 = vpop.f32.mrb[49].mxu0  ;;  %v9862_v42 = vld [vmem:[%s14377_s3 + $0x78] sm:$0xff]  }
 0x28d   : > { %6991 = vrot.lane.b32.xlu1 %v9045_v53, %s10086_s28  ;;  %7391 = vrot.lane.b32.xlu0 %v9125_v13, %s10084_s26  ;;  %v5591_v26 = vsel %vm10253_vm11, %v8982_v61, %v5590_v5  ;;  %7831 = vst.msk [vmem:[#allocation3 + $0xa0] sm:$0xff] %vm987_vm15, %v9157_v31  ;;  %v6435_v3 = vrot.slane %v6434_v46, 4  ;;  %v6439_v29 = vrot.slane %v6437_v58, 5  ;;  %v6090_v21 = vld [vmem:[#allocation2 + $0x60] sm:$0xe]  ;;  %v12791_v34 = vpop.f32.mrb[50].mxu0  ;;  %v9078_v46 = vcombine.low %v5665_v15, %v5666_v12 }
 0x28e   : > { %v9062_v60 = vcombine.low %v5591_v26, %v5594_v39  ;;  %v4503_v53 = vmax.f32 %v4437_v6, 0.0  ;;  %v4504_v63 = vmax.f32 %v4440_v7, 0.0  ;;  %v12794_v10 = vpop.f32.mrb[51].mxu0  ;;  %v9860_v5 = vld [vmem:[%s14377_s3 + $0x30] sm:$0xff]   ;;  %v6449_v31 = vrot.slane %v6447_v9, 5 }
 0x28f   : > { %v6444_v55 = vor.u32 %v6443_v62, %v6439_v29  ;;  %v5690_v58 = vld [vmem:[#allocation2 + $0x68] sm:$0x1]  ;;  %v6440_v6 = vsel %vm10351_vm14, %v6435_v3, %v6439_v29  ;;  %v6198_v7 = vrot.slane %v5666_v12, 5  ;;  %v8998_v54 = vrot.slane %v6090_v21, 9  ;;  %9542 = vmatpush3.bf16.msra.mxu1 %v9860_v5  ;;  %v9863_v62 = vld [vmem:[%s14377_s3 + $0x38] sm:$0xff]  }
 0x290   : > { %v9228_v39 = vpack.c.bf16 %v4503_v53, %v4503_v53  ;;  %v9229_v0 = vpack.c.bf16 %v4504_v63, %v4504_v63  ;;  %v5260_v57 = vshrl.u32 %v5057_v56, 16  ;;  %v5263_v1 = vshll.u32 %v5057_v56, 16  ;;  %9543 = vmatprep.subr.bf16.mxu1 %v9862_v42  ;;  %v5001_v13 = vld [vmem:[#allocation2 + $0x84] sm:$0xf] }
 0x291   : > { %7073 = vrot.lane.b32.xlu1 %v9062_v60, %s10084_s26  ;;  %v6445_v26 = vrot.slane %v6444_v55, 4  ;;  %v6201_v53 = vrot.slane %v5690_v58, 5  ;;  %v6200_v29 = vrot.slane %v6198_v7, 4  ;;  %v6199_v58 = vsel %vm10253_vm11, %v8998_v54, %v6198_v7 }
 0x292   : > { %v4782_v9 = vshrl.u32 %v9228_v39, 16  ;;  %v4785_v15 = vshll.u32 %v9228_v39, 16  ;;  %v4790_v60 = vshrl.u32 %v9229_v0, 16  ;;  %v4793_v3 = vshll.u32 %v9229_v0, 16 }
 0x293   : > { %v6450_v12 = vsel %vm10351_vm14, %v6445_v26, %v6449_v31  ;;  %v5262_v63 = vrot.slane %v5260_v57, 4  ;;  %v5265_v5 = vrot.slane %v5263_v1, 5  ;;  %v6202_v39 = vsel %vm10253_vm11, %v6200_v29, %v6201_v53  ;;  %9544 = vmatpush3.bf16.msra.mxu1 %v9863_v62  ;;  %v9941_v1 = vld [vmem:[%s14377_s3 + $0x80] sm:$0xff]   ;;  %v12832_v53 = vld [vmem:[#allocation2 + $0x68] sm:$0x1] }
 0x294   : > { %v4784_v55 = vrot.slane %v4782_v9, 7  ;;  %v4792_v21 = vrot.slane %v4790_v60, 7  ;;  %v9140_v61 = vcombine.low %v6440_v6, %v6450_v12  ;;  %v7879_v56 = vld [vmem:[#allocation3 + $0xa0] sm:$0xff]  ;;  %v5269_v31 = vshll.u32 %v12718_v22, 16  ;;  %9731 = vmatprep.subr.bf16.mxu1 %v9941_v1  ;;  %v12824_v60 = vld [vmem:[#allocation2 + $0x64] sm:$0xf] }
 0x295   : > { %7169 = vrot.lane.b32.xlu1 %v9078_v46, %s10085_s27  ;;  %9711 = vmatprep.mubr.msk.bf16.mxu0 %vm987_vm15, %v7879_v56  ;;  %v5273_v57 = vshrl.u32 %v12718_v22, 16  ;;  %v5266_v54 = vor.u32 %v5265_v5, %v5262_v63  ;;  %v5279_v9 = vshll.u32 %v12733_v41, 16  ;;  %v9483_v12 = vadd.f32 %v12687_v16, %v12683_v30  ;;  %v5483_v29 = vld [vmem:[#allocation2 + $0x60] sm:$0xe]  ;;  %v12839_v63 = vld [vmem:[#allocation2 + $0x70] sm:$0xf] }
 0x296   : > { %v4787_v0 = vor.u32 %v4785_v15, %v4784_v55  ;;  %v4788_v6 = vrot.slane %v4784_v55, 4  ;;  %v4795_v46 = vor.u32 %v4793_v3, %v4792_v21  ;;  %v4797_v42 = vrot.slane %v4792_v21, 4  ;;  %7469 = vrot.lane.b32.xlu0 %v9140_v61, %s10085_s27 }
 0x297   : > { %v5271_v7 = vrot.slane %v5269_v31, 5  ;;  %v5275_v26 = vrot.slane %v5273_v57, 4  ;;  %v9110_v15 = vcombine.low %v6199_v58, %v6202_v39  ;;  %v5267_v3 = vrot.slane %v5266_v54, 4  ;;  %v6698_v31 = vld [vmem:[#allocation2 + $0x6c] sm:$0xe] }
 0x298   : > { %v5002_v22 = vsel %vm10238_vm9, %v4787_v0, %v5001_v13  ;;  %v4796_v62 = vsel %vm10246_vm10, %v4788_v6, %v4795_v46  ;;  %v5006_v61 = vsel %vm10194_vm3, %v4797_v42, %v5005_v45  ;;  %v9486_v13 = vadd.f32 %v12695_v52, %v12693_v8  ;;  %v12850_v52 = vld [vmem:[#allocation2 + $0x74] sm:$0x1] }
 0x299   : > { %5003 = vst [vmem:[#allocation2 + $0x84] sm:$0xf] %v5002_v22  ;;  %5004 = vst.msk [vmem:[#allocation2 + $0x88] sm:$0xf] %vm332_vm0, %v4796_v62  ;;  %v5276_v41 = vor.u32 %v5275_v26, %v5271_v7  ;;  %v6465_v45 = vshrl.u32 %v12727_v17, 16  ;;  %v14474_v55 = vshrl.u32 %v12742_v48, 16  ;;  %v4284_v16 = vadd.f32 %v12490_v25, %v9483_v12 }
 0x29a   : > { %5007 = vst [vmem:[#allocation2 + $0x8c] sm:$0x1] %v5006_v61  ;;  %v14475_v56 = vshll.u32 %v12742_v48, 16  ;;  %7297 = vrot.lane.b32.xlu0 %v9110_v15, %s10086_s28  ;;  %v5597_v58 = vrot.slane %v12824_v60, 5  ;;  %v5281_v30 = vrot.slane %v5279_v9, 5  ;;  %v4287_v8 = vadd.f32 %v12490_v25, %v9486_v13 }
 0x29b   : > { %v6454_v21 = vrot.slane %v14474_v55, 4  ;;  %v5277_v39 = vrot.slane %v5276_v41, 4  ;;  %v8983_v57 = vrot.slane %v5483_v29, 9  ;;  %v5600_v6 = vrot.slane %v12832_v53, 5  ;;  %v12860_v26 = vld [vmem:[#allocation2 + $0x6c] sm:$0xf] }
 0x29c   : > { %v6457_v5 = vrot.slane %v14475_v56, 5  ;;  %v5599_v0 = vrot.slane %v5597_v58, 4  ;;  %v6806_v48 = vrot.slane %v12839_v63, 5  ;;  %v5272_v46 = vsel %vm10351_vm14, %v5267_v3, %v5271_v7 }
 0x29d   : > { %v5282_v42 = vsel %vm10351_vm14, %v5277_v39, %v5281_v30  ;;  %v4445_v1 = vadd.f32 %v12245_v43, %v4284_v16  ;;  %v4448_v54 = vadd.f32 %v12293_v50, %v4287_v8  ;;  %v9014_v9 = vrot.slane %v6698_v31, 9 }
 0x29e   : > { %v9046_v25 = vcombine.low %v5272_v46, %v5282_v42  ;;  %v6808_v22 = vrot.slane %v6806_v48, 4  ;;  %v6809_v62 = vrot.slane %v12850_v52, 5  ;;  %v5601_v41 = vsel %vm10253_vm11, %v5599_v0, %v5600_v6  ;;  %v12886_v0 = vld [vmem:[#allocation2 + $0x70] sm:$0xf]  ;;  %v5667_v42 = vld [vmem:[#allocation2 + $0x6c] sm:$0xf] }
 0x29f   : > { %v4505_v61 = vmax.f32 %v4445_v1, 0.0  ;;  %v4506_v15 = vmax.f32 %v4448_v54, 0.0  ;;  %v9126_v7 = vcombine.low %v12860_v26, %v12839_v63  ;;  %v5598_v43 = vsel %vm10253_vm11, %v8983_v57, %v5597_v58  ;;  %v12892_v1 = vpop.permute.xlu1 %6979 }
 0x2a0   : > { %6993 = vrot.lane.b32.xlu1 %v9046_v25, %s10086_s28  ;;  %v6807_v50 = vsel %vm10253_vm11, %v9014_v9, %v6806_v48  ;;  %v6810_v3 = vsel %vm10253_vm11, %v6808_v22, %v6809_v62  ;;  %v6458_v12 = vor.u32 %v6457_v5, %v6454_v21  ;;  %v6461_v56 = vshll.u32 %v12727_v17, 16  ;;  %v5008_v17 = vld [vmem:[#allocation2 + $0x90] sm:$0xf]  ;;  %v12951_v25 = vld [vmem:[#allocation2 + $0x78] sm:$0xf] }
 0x2a1   : > { %v9230_v13 = vpack.c.bf16 %v4505_v61, %v4505_v61  ;;  %v9231_v29 = vpack.c.bf16 %v4506_v15, %v4506_v15  ;;  %v9158_v55 = vcombine.low %v6807_v50, %v6810_v3  ;;  %7393 = vrot.lane.b32.xlu0 %v9126_v7, %s10084_s26  ;;  %v14476_v39 = vshll.u32 %v12677_v47, 16  ;;  %v5012_v47 = vld [vmem:[#allocation2 + $0x98] sm:$0x1]  ;;  %v5059_v50 = vld [vmem:[#allocation2 + $0x60] sm:$0xf] }
 0x2a2   : > { %v9063_v16 = vcombine.low %v5598_v43, %v5601_v41  ;;  %v6467_v8 = vrot.slane %v6465_v45, 4  ;;  %v14478_v31 = vshrl.u32 %v12785_v23, 16  ;;  %v6459_v48 = vrot.slane %v6458_v12, 4 }
 0x2a3   : > { %v12878_v30 = vrot.slane %v14476_v39, 5  ;;  %v4799_v21 = vshrl.u32 %v9230_v13, 16  ;;  %v4807_v5 = vshrl.u32 %v9231_v29, 16  ;;  %7834 = vst.msk [vmem:[#allocation3 + $0xb8] sm:$0xff] %vm987_vm15, %v9158_v55  ;;  %v12888_v6 = vpop.f32.mrb[52].mxu0  ;;  %v6463_v46 = vrot.slane %v6461_v56, 5 }
 0x2a4   : > { %v12883_v57 = vrot.slane %v14478_v31, 4  ;;  %7075 = vrot.lane.b32.xlu1 %v9063_v16, %s10084_s26  ;;  %v6471_v45 = vshll.u32 %v12738_v2, 16  ;;  %v12894_v54 = vpop.f32.mrb[53].mxu0  ;;  %v4802_v22 = vshll.u32 %v9230_v13, 16  ;;  %v4810_v61 = vshll.u32 %v9231_v29, 16 }
 0x2a5   : > { %14477 = vst [vmem:[#allocation16_spill] sm:$0xff] %v12878_v30  ;;  %v4801_v9 = vrot.slane %v4799_v21, 7  ;;  %v4809_v62 = vrot.slane %v4807_v5, 7  ;;  %v12898_v15 = vpop.f32.mrb[54].mxu0  ;;  %v6476_v41 = vshrl.u32 %v12860_v26, 16  ;;  %v6479_v7 = vshll.u32 %v12860_v26, 16 }
 0x2a6   : > { %14479 = vst [vmem:[#allocation11_spill] sm:$0xff] %v12883_v57  ;;  %v6468_v43 = vor.u32 %v6467_v8, %v6463_v46  ;;  %v9079_v2 = vcombine.low %v5667_v42, %v12886_v0  ;;  %v12903_v3 = vpop.f32.mrb[55].mxu0  ;;  %v5691_v16 = vld [vmem:[#allocation2 + $0x74] sm:$0x1]  ;;  %v6464_v13 = vsel %vm10351_vm14, %v6459_v48, %v6463_v46  ;;  %v6473_v31 = vrot.slane %v6471_v45, 5 }
 0x2a7   : > { %v4804_v12 = vor.u32 %v4802_v22, %v4801_v9  ;;  %v4805_v55 = vrot.slane %v4801_v9, 4  ;;  %v4812_v56 = vor.u32 %v4810_v61, %v4809_v62  ;;  %v4814_v39 = vrot.slane %v4809_v62, 4  ;;  %v6091_v42 = vld [vmem:[#allocation2 + $0x6c] sm:$0xe]  ;;  %v5019_v57 = vld [vmem:[#allocation2 + $0xa4] sm:$0x1] }
 0x2a8   : > { %v6469_v29 = vrot.slane %v6468_v43, 4  ;;  %7171 = vrot.lane.b32.xlu1 %v9079_v2, %s10085_s27  ;;  %v6205_v26 = vrot.slane %v12886_v0, 5  ;;  %v5284_v9 = vshrl.u32 %v5059_v50, 16  ;;  %v6208_v45 = vrot.slane %v5691_v16, 5  ;;  %v12923_v2 = vld [vmem:[#allocation2 + $0x70] sm:$0xf] }
 0x2a9   : > { %v5009_v8 = vsel %vm10238_vm9, %v4804_v12, %v5008_v17  ;;  %v4813_v21 = vsel %vm10246_vm10, %v4805_v55, %v4812_v56  ;;  %v5013_v5 = vsel %vm10194_vm3, %v4814_v39, %v5012_v47  ;;  %v5287_v22 = vshll.u32 %v5059_v50, 16  ;;  %v12918_v17 = vpop.permute.xlu1 %7059  ;;  %v13019_v30 = vld [vmem:[#allocation2 + $0x7c] sm:$0xf] }
 0x2aa   : > { %5010 = vst [vmem:[#allocation2 + $0x90] sm:$0xf] %v5009_v8  ;;  %5011 = vst.msk [vmem:[#allocation2 + $0x94] sm:$0xf] %vm332_vm0, %v4813_v21  ;;  %v6474_v48 = vsel %vm10351_vm14, %v6469_v29, %v6473_v31  ;;  %v7882_v46 = vld [vmem:[#allocation3 + $0xb8] sm:$0xff]  ;;  %v6207_v0 = vrot.slane %v6205_v26, 4  ;;  %v9489_v50 = vadd.f32 %v12780_v28, %v12770_v11  ;;  %v9492_v29 = vadd.f32 %v12794_v10, %v12791_v34 }
 0x2ab   : > { %5014 = vst [vmem:[#allocation2 + $0x98] sm:$0x1] %v5013_v5  ;;  %v9141_v62 = vcombine.low %v6464_v13, %v6474_v48  ;;  %9712 = vmatmul.mubr.msk.bf16.gmra.mrb[76].mxu0 %vm987_vm15, %v7882_v46  ;;  %v5286_v61 = vrot.slane %v5284_v9, 4  ;;  %v5293_v47 = vshll.u32 %v12824_v60, 16  ;;  %v5297_v43 = vshrl.u32 %v12824_v60, 16 }
 0x2ac   : > { %v8999_v12 = vrot.slane %v6091_v42, 9  ;;  %v6209_v55 = vsel %vm10253_vm11, %v6207_v0, %v6208_v45  ;;  %v5289_v56 = vrot.slane %v5287_v22, 5  ;;  %v5303_v13 = vshll.u32 %v12832_v53, 16  ;;  %v12933_v60 = vld [vmem:[#allocation2 + $0x7c] sm:$0xf] }
 0x2ad   : > { %7471 = vrot.lane.b32.xlu0 %v9141_v62, %s10085_s27  ;;  %v5295_v39 = vrot.slane %v5293_v47, 5  ;;  %v5299_v16 = vrot.slane %v5297_v43, 4  ;;  %v12935_v31 = vld [vmem:[#allocation2 + $0x30] sm:$0xf]  ;;  %v12940_v11 = vld [vmem:[#allocation2 + $0x74] sm:$0x1] }
 0x2ae   : > { %v6206_v21 = vsel %vm10253_vm11, %v8999_v12, %v6205_v26  ;;  %v5290_v5 = vor.u32 %v5289_v56, %v5286_v61  ;;  %v5604_v28 = vrot.slane %v12923_v2, 5  ;;  %v6699_v42 = vld [vmem:[#allocation2 + $0x78] sm:$0xe]  ;;  %v6489_v53 = vshrl.u32 %v12839_v63, 16  ;;  %v5484_v34 = vld [vmem:[#allocation2 + $0x6c] sm:$0xe]  ;;  %v12947_v61 = vpop.permute.xlu1 %7155 }
 0x2af   : > { %v9111_v9 = vcombine.low %v6206_v21, %v6209_v55  ;;  %v5300_v48 = vor.u32 %v5299_v16, %v5295_v39  ;;  %v12944_v10 = vld [vmem:[#allocation2 + $0x80] sm:$0x1]  ;;  %v9944_v0 = vld [vmem:[#allocation2 + $0x4] sm:$0xf]  ;;  %v6478_v22 = vrot.slane %v6476_v41, 4  ;;  %v6481_v62 = vrot.slane %v6479_v7, 5 }
 0x2b0   : > { %v9943_v46 = vld [vmem:[#allocation2] sm:$0xf]  ;;  %v5291_v47 = vrot.slane %v5290_v5, 4  ;;  %v6813_v26 = vrot.slane %v12933_v60, 5  ;;  %v5305_v12 = vrot.slane %v5303_v13, 5  ;;  %v5606_v56 = vrot.slane %v5604_v28, 4 }
 0x2b1   : > { %v9023_v45 = vcombine.low %v9943_v46, %v9944_v0  ;;  %7299 = vrot.lane.b32.xlu0 %v9111_v9, %s10086_s28  ;;  %v5301_v43 = vrot.slane %v5300_v48, 4  ;;  %v9015_v55 = vrot.slane %v6699_v42, 9  ;;  %v8984_v16 = vrot.slane %v5484_v34, 9  ;;  %v12967_v34 = vld [vmem:[%s14376_s2] ss:$0 sm:$0xff]  ;;  %v14499_v36 = vld [vmem:[#allocation11_spill] sm:$0xff] }
 0x2b2   : > { %v5607_v21 = vrot.slane %v12940_v11, 5  ;;  %v6815_v8 = vrot.slane %v6813_v26, 4  ;;  %v6816_v41 = vrot.slane %v12944_v10, 5  ;;  %v5296_v7 = vsel %vm10351_vm14, %v5291_v47, %v5295_v39 }
 0x2b3   : > { %v5306_v5 = vsel %vm10351_vm14, %v5301_v43, %v5305_v12  ;;  %v6814_v9 = vsel %vm10253_vm11, %v9015_v55, %v6813_v26  ;;  %v9127_v13 = vcombine.low %v12951_v25, %v12933_v60  ;;  %v4292_v39 = vadd.f32 %v12967_v34, %v9489_v50  ;;  %v12975_v12 = vpop.permute.xlu0 %7283 }
 0x2b4   : > { %v9047_v42 = vcombine.low %v5296_v7, %v5306_v5  ;;  %v6817_v48 = vsel %vm10253_vm11, %v6815_v8, %v6816_v41  ;;  %v4295_v46 = vadd.f32 %v12967_v34, %v9492_v29  ;;  %v5608_v0 = vsel %vm10253_vm11, %v5606_v56, %v5607_v21  ;;  %v5670_v41 = vld [vmem:[#allocation2 + $0x7c] sm:$0xf]  ;;  %v12981_v7 = vpop.permute.xlu1 %7061 }
 0x2b5   : > { %v9159_v47 = vcombine.low %v6814_v9, %v6817_v48  ;;  %7395 = vrot.lane.b32.xlu0 %v9127_v13, %s10084_s26  ;;  %v6482_v26 = vor.u32 %v6481_v62, %v6478_v22  ;;  %v6485_v43 = vshll.u32 %v12839_v63, 16  ;;  %v4453_v8 = vadd.f32 %v12406_v27, %v4292_v39  ;;  %v5669_v62 = vld [vmem:[#allocation2 + $0x78] sm:$0xf]  ;;  %v5061_v9 = vld [vmem:[#allocation2 + $0x6c] sm:$0xf] }
 0x2b6   : > { %6995 = vrot.lane.b32.xlu1 %v9047_v42, %s10086_s28  ;;  %v4456_v55 = vadd.f32 %v12440_v24, %v4295_v46  ;;  %v6491_v50 = vrot.slane %v6489_v53, 4  ;;  %v6495_v29 = vshll.u32 %v12850_v52, 16  ;;  %v5605_v56 = vsel %vm10253_vm11, %v8984_v16, %v5604_v28  ;;  %v6092_v27 = vld [vmem:[#allocation2 + $0x78] sm:$0xe]  ;;  %v5692_v48 = vld [vmem:[#allocation2 + $0x80] sm:$0x1] }
 0x2b7   : > { %7837 = vst.msk [vmem:[#allocation3 + $0xd0] sm:$0xff] %vm987_vm15, %v9159_v47  ;;  %v6483_v63 = vrot.slane %v6482_v26, 4  ;;  %v6487_v22 = vrot.slane %v6485_v43, 5  ;;  %v12988_v21 = vsel %vm987_vm15, %v9023_v45, %v12892_v1  ;;  %v9064_v24 = vcombine.low %v5605_v56, %v5608_v0  ;;  %v5015_v53 = vld [vmem:[#allocation2 + $0x9c] sm:$0xf] }
 0x2b8   : > { %v4507_v52 = vmax.f32 %v4453_v8, 0.0  ;;  %v4508_v5 = vmax.f32 %v4456_v55, 0.0  ;;  %v6497_v28 = vrot.slane %v6495_v29, 5  ;;  %v9080_v16 = vcombine.low %v5669_v62, %v5670_v41  ;;  %v12997_v55 = vpop.permute.xlu0 %7379 }
 0x2b9   : > { %v6492_v42 = vor.u32 %v6491_v50, %v6487_v22  ;;  %v6488_v1 = vsel %vm10351_vm14, %v6483_v63, %v6487_v22  ;;  %v6212_v45 = vrot.slane %v5670_v41, 5  ;;  %v9000_v47 = vrot.slane %v6092_v27, 9 }
 0x2ba   : > { %7077 = vrot.lane.b32.xlu1 %v9064_v24, %s10084_s26  ;;  %v9232_v39 = vpack.c.bf16 %v4507_v52, %v4507_v52  ;;  %v9233_v46 = vpack.c.bf16 %v4508_v5, %v4508_v5  ;;  %v5308_v26 = vshrl.u32 %v5061_v9, 16  ;;  %v5311_v43 = vshll.u32 %v5061_v9, 16  ;;  %v13001_v24 = vpop.permute.xlu1 %7157 }
 0x2bb   : > { %v6493_v0 = vrot.slane %v6492_v42, 4  ;;  %v12995_v8 = vpop.f32.mrb[56].mxu0  ;;  %v6215_v62 = vrot.slane %v5692_v48, 5  ;;  %v6214_v63 = vrot.slane %v6212_v45, 4 }
 0x2bc   : > { %v4816_v50 = vshrl.u32 %v9232_v39, 16  ;;  %v4819_v29 = vshll.u32 %v9232_v39, 16  ;;  %v4824_v56 = vshrl.u32 %v9233_v46, 16  ;;  %v12999_v58 = vpop.f32.mrb[57].mxu0  ;;  %v4827_v52 = vshll.u32 %v9233_v46, 16 }
 0x2bd   : > { %v6498_v41 = vsel %vm10351_vm14, %v6493_v0, %v6497_v28  ;;  %v5310_v22 = vrot.slane %v5308_v26, 4  ;;  %v13005_v27 = vpop.f32.mrb[58].mxu0  ;;  %v5313_v13 = vrot.slane %v5311_v43, 5  ;;  %v6213_v28 = vsel %vm10253_vm11, %v9000_v47, %v6212_v45  ;;  %v13021_v45 = vpop.permute.xlu0 %7285 }
 0x2be   : > { %v4818_v5 = vrot.slane %v4816_v50, 7  ;;  %v4826_v9 = vrot.slane %v4824_v56, 7  ;;  %v9142_v42 = vcombine.low %v6488_v1, %v6498_v41  ;;  %7173 = vrot.lane.b32.xlu1 %v9080_v16, %s10085_s27  ;;  %v7885_v39 = vld [vmem:[#allocation3 + $0xd0] sm:$0xff]  ;;  %v13008_v48 = vpop.f32.mrb[59].mxu0  ;;  %v6216_v46 = vsel %vm10253_vm11, %v6214_v63, %v6215_v62  ;;  %14480 = vst [vmem:[#allocation15_spill] sm:$0xff] %v13021_v45 }
 0x2bf   : > { %9715 = vmatprep.mubr.msk.bf16.mxu0 %vm987_vm15, %v7885_v39  ;;  %v5317_v0 = vshll.u32 %v12923_v2, 16  ;;  %v5321_v1 = vshrl.u32 %v12923_v2, 16  ;;  %v5314_v56 = vor.u32 %v5313_v13, %v5310_v22  ;;  %v5327_v39 = vshll.u32 %v12940_v11, 16  ;;  %v13035_v22 = vld [vmem:[#allocation2 + $0x80] sm:$0x1] }
 0x2c0   : > { %v4821_v26 = vor.u32 %v4819_v29, %v4818_v5  ;;  %v4822_v16 = vrot.slane %v4818_v5, 4  ;;  %v4829_v50 = vor.u32 %v4827_v52, %v4826_v9  ;;  %v4831_v43 = vrot.slane %v4826_v9, 4  ;;  %7473 = vrot.lane.b32.xlu0 %v9142_v42, %s10085_s27  ;;  %v13029_v52 = vpop.permute.xlu1 %6981  ;;  %v5485_v5 = vld [vmem:[#allocation2 + $0x78] sm:$0xe] }
 0x2c1   : > { %v5319_v41 = vrot.slane %v5317_v0, 5  ;;  %v5323_v18 = vrot.slane %v5321_v1, 4  ;;  %v9112_v62 = vcombine.low %v6213_v28, %v6216_v46  ;;  %v6513_v13 = vshrl.u32 %v12933_v60, 16  ;;  %v13049_v0 = vld [vmem:[#allocation2 + $0x88] sm:$0xf] }
 0x2c2   : > { %v5016_v47 = vsel %vm10238_vm9, %v4821_v26, %v5015_v53  ;;  %v4830_v2 = vsel %vm10246_vm10, %v4822_v16, %v4829_v50  ;;  %v5020_v29 = vsel %vm10194_vm3, %v4831_v43, %v5019_v57  ;;  %v5315_v11 = vrot.slane %v5314_v56, 4 }
 0x2c3   : > { %5017 = vst [vmem:[#allocation2 + $0x9c] sm:$0xf] %v5016_v47  ;;  %5018 = vst.msk [vmem:[#allocation2 + $0xa0] sm:$0xf] %vm332_vm0, %v4830_v2  ;;  %v5324_v63 = vor.u32 %v5323_v18, %v5319_v41  ;;  %v9495_v53 = vadd.f32 %v12894_v54, %v12888_v6  ;;  %v14481_v9 = vshrl.u32 %v12951_v25, 16  ;;  %v14482_v42 = vshll.u32 %v12951_v25, 16 }
 0x2c4   : > { %5021 = vst [vmem:[#allocation2 + $0xa4] sm:$0x1] %v5020_v29  ;;  %7301 = vrot.lane.b32.xlu0 %v9112_v62, %s10086_s28  ;;  %v9498_v46 = vadd.f32 %v12903_v3, %v12898_v15  ;;  %v5611_v18 = vrot.slane %v13019_v30, 5  ;;  %v5329_v54 = vrot.slane %v5327_v39, 5  ;;  %v7604_v26 = vsel %vm3656_vm1, %v12988_v21, %v12918_v17  ;;  %v6700_v25 = vld [vmem:[#allocation2 + $0x84] sm:$0xe]  ;;  %v13067_v21 = vpop.permute.xlu0 %7381 }
 0x2c5   : > { %v13039_v57 = vrot.slane %v14481_v9, 4  ;;  %v13043_v28 = vrot.slane %v14482_v42, 5  ;;  %v5325_v6 = vrot.slane %v5324_v63, 4  ;;  %v4300_v1 = vadd.f32 %v12967_v34, %v9495_v53  ;;  %v13057_v15 = vld [vmem:[#allocation2 + $0x8c] sm:$0x1]  ;;  %14483 = vst [vmem:[#allocation10_spill] sm:$0xff] %v13067_v21 }
 0x2c6   : > { %v4303_v16 = vadd.f32 %v12967_v34, %v9498_v46  ;;  %v8985_v50 = vrot.slane %v5485_v5, 9  ;;  %v5613_v43 = vrot.slane %v5611_v18, 4  ;;  %v5614_v56 = vrot.slane %v13035_v22, 5  ;;  %v13064_v2 = vld [vmem:[#allocation2 + $0x84] sm:$0xf]  ;;  %v13072_v5 = vpop.permute.xlu1 %7063 }
 0x2c7   : > { %v5320_v3 = vsel %vm10351_vm14, %v5315_v11, %v5319_v41  ;;  %v5330_v39 = vsel %vm10351_vm14, %v5325_v6, %v5329_v54  ;;  %v4461_v47 = vadd.f32 %v12384_v59, %v4300_v1  ;;  %v6820_v17 = vrot.slane %v13049_v0, 5 }
 0x2c8   : > { %v9048_v29 = vcombine.low %v5320_v3, %v5330_v39  ;;  %v4464_v62 = vadd.f32 %v12436_v14, %v4303_v16  ;;  %v9016_v63 = vrot.slane %v6700_v25, 9  ;;  %v9128_v53 = vcombine.low %v13064_v2, %v13049_v0 }
 0x2c9   : > { %v4509_v41 = vmax.f32 %v4461_v47, 0.0  ;;  %v5615_v11 = vsel %vm10253_vm11, %v5613_v43, %v5614_v56  ;;  %v6822_v59 = vrot.slane %v6820_v17, 4  ;;  %v6823_v9 = vrot.slane %v13057_v15, 5 }
 0x2ca   : > { %v13077_v42 = vpop.f32.mrb[60].mxu0  ;;  %6997 = vrot.lane.b32.xlu1 %v9048_v29, %s10086_s28  ;;  %v4510_v46 = vmax.f32 %v4464_v62, 0.0  ;;  %v5612_v14 = vsel %vm10253_vm11, %v8985_v50, %v5611_v18  ;;  %v6821_v6 = vsel %vm10253_vm11, %v9016_v63, %v6820_v17  ;;  %7397 = vrot.lane.b32.xlu0 %v9128_v53, %s10084_s26  ;;  %v13087_v54 = vsel %vm3689_vm2, %v7604_v26, %v12947_v61  ;;  %v5672_v63 = vld [vmem:[#allocation2 + $0x88] sm:$0xf]  ;;  %v13109_v53 = vpop.permute.xlu0 %7459 }
 0x2cb   : > { %v13089_v1 = vpop.f32.mrb[61].mxu0  ;;  %v9234_v25 = vpack.c.bf16 %v4509_v41, %v4509_v41  ;;  %v6824_v16 = vsel %vm10253_vm11, %v6822_v59, %v6823_v9  ;;  %v6506_v43 = vor.u32 %v13043_v28, %v13039_v57  ;;  %v6509_v18 = vshll.u32 %v12933_v60, 16  ;;  %v13111_v41 = vld [vmem:[#allocation2 + $0x3c] sm:$0xf] }
 0x2cc   : > { %v13096_v50 = vpop.f32.mrb[62].mxu0  ;;  %v14484_v56 = vshll.u32 %v12785_v23, 16  ;;  %v9235_v39 = vpack.c.bf16 %v4510_v46, %v4510_v46  ;;  %v9065_v61 = vcombine.low %v5612_v14, %v5615_v11  ;;  %v9160_v26 = vcombine.low %v6821_v6, %v6824_v16  ;;  %v13119_v46 = vpop.permute.xlu1 %7159 }
 0x2cd   : > { %v13102_v47 = vpop.f32.mrb[63].mxu0  ;;  %v14485_v17 = vshrl.u32 %v12935_v31, 16  ;;  %v4833_v57 = vshrl.u32 %v9234_v25, 16  ;;  %v6511_v28 = vrot.slane %v6509_v18, 5  ;;  %v6515_v11 = vrot.slane %v6513_v13, 4  ;;  %14487 = vst [vmem:[#allocation13_spill] sm:$0xff] %v13119_v46 }
 0x2ce   : > { %v13100_v3 = vrot.slane %v14484_v56, 5  ;;  %v4841_v59 = vshrl.u32 %v9235_v39, 16  ;;  %7079 = vrot.lane.b32.xlu1 %v9065_v61, %s10084_s26  ;;  %7840 = vst.msk [vmem:[#allocation3 + $0xe8] sm:$0xff] %vm987_vm15, %v9160_v26  ;;  %v6519_v9 = vshll.u32 %v12944_v10, 16  ;;  %v4836_v6 = vshll.u32 %v9234_v25, 16 }
 0x2cf   : > { %v13106_v29 = vrot.slane %v14485_v17, 4  ;;  %v4835_v14 = vrot.slane %v4833_v57, 7  ;;  %v6507_v16 = vrot.slane %v6506_v43, 4  ;;  %v5671_v18 = vld [vmem:[#allocation2 + $0x84] sm:$0xf]  ;;  %v5706_v56 = vor.u32 %v12507_v32, %v12505_v33 }
 0x2d0   : > { %v5022_v17 = vld [vmem:[#allocation2 + $0xa8] sm:$0xf]  ;;  %v4843_v23 = vrot.slane %v4841_v59, 7  ;;  %v4844_v62 = vshll.u32 %v9235_v39, 16  ;;  %v6516_v61 = vor.u32 %v6515_v11, %v6511_v28  ;;  %v5799_v26 = vshll.u32 %v13111_v41, 16 }
 0x2d1   : > { %14486 = vst [vmem:[#allocation14_spill] sm:$0xff] %v13106_v29  ;;  %v9081_v29 = vcombine.low %v5671_v18, %v5672_v63  ;;  %v4838_v60 = vor.u32 %v4836_v6, %v4835_v14  ;;  %v5026_v13 = vld [vmem:[#allocation2 + $0xb0] sm:$0x1]  ;;  %v6521_v21 = vrot.slane %v6519_v9, 5  ;;  %v14488_v10 = vor.u32 %v12701_v20, %v12675_v35  ;;  %v6093_v33 = vld [vmem:[#allocation2 + $0x84] sm:$0xe]  ;;  %v13134_v18 = vpop.permute.xlu0 %7287 }
 0x2d2   : > { %v4839_v25 = vrot.slane %v4835_v14, 4  ;;  %v4846_v43 = vor.u32 %v4844_v62, %v4843_v23  ;;  %v4848_v45 = vrot.slane %v4843_v23, 4  ;;  %v6517_v46 = vrot.slane %v6516_v61, 4  ;;  %v5693_v6 = vld [vmem:[#allocation2 + $0x8c] sm:$0x1] }
 0x2d3   : > { %v5717_v57 = vrot.slane %v14488_v10, 4  ;;  %7175 = vrot.lane.b32.xlu1 %v9081_v29, %s10085_s27  ;;  %v5023_v32 = vsel %vm10238_vm9, %v4838_v60, %v5022_v17  ;;  %v6512_v39 = vsel %vm10351_vm14, %v6507_v16, %v6511_v28  ;;  %v14489_v59 = vshll.u32 %v12666_v49, 16  ;;  %v5063_v20 = vld [vmem:[#allocation2 + $0x78] sm:$0xf]  ;;  %v13142_v28 = vpop.permute.xlu1 %6983 }
 0x2d4   : > { %v5707_v9 = vrot.slane %v5706_v56, 4  ;;  %5024 = vst [vmem:[#allocation2 + $0xa8] sm:$0xf] %v5023_v32  ;;  %v4847_v62 = vsel %vm10246_vm10, %v4839_v25, %v4846_v43  ;;  %v5027_v29 = vsel %vm10194_vm3, %v4848_v45, %v5026_v13  ;;  %v6522_v23 = vsel %vm10351_vm14, %v6517_v46, %v6521_v21  ;;  %v13163_v32 = vld [vmem:[#allocation2 + $0x88] sm:$0xf] }
 0x2d5   : > { %v5721_v11 = vrot.slane %v14489_v59, 5  ;;  %v6219_v14 = vrot.slane %v5672_v63, 5  ;;  %5025 = vst.msk [vmem:[#allocation2 + $0xac] sm:$0xf] %vm332_vm0, %v4847_v62  ;;  %5028 = vst [vmem:[#allocation2 + $0xb0] sm:$0x1] %v5027_v29  ;;  %v9143_v49 = vcombine.low %v6512_v39, %v6522_v23 }
 0x2d6   : > { %v7888_v16 = vld [vmem:[#allocation3 + $0xe8] sm:$0xff]  ;;  %v5712_v17 = vsel %vm10351_vm14, %v5707_v9, %v12675_v35  ;;  %v9001_v61 = vrot.slane %v6093_v33, 9  ;;  %v6222_v63 = vrot.slane %v5693_v6, 5  ;;  %v5332_v46 = vshrl.u32 %v5063_v20, 16  ;;  %v13165_v6 = vld [vmem:[#allocation2 + $0x94] sm:$0xf] }
 0x2d7   : > { %v5722_v56 = vsel %vm10351_vm14, %v5717_v57, %v5721_v11  ;;  %9716 = vmatmul.mubr.msk.bf16.gmra.mrb[80].mxu0 %vm987_vm15, %v7888_v16  ;;  %v6221_v21 = vrot.slane %v6219_v14, 4  ;;  %7475 = vrot.lane.b32.xlu0 %v9143_v49, %s10085_s27  ;;  %v5335_v13 = vshll.u32 %v5063_v20, 16  ;;  %v5341_v10 = vshll.u32 %v13019_v30, 16  ;;  %v13167_v20 = vpop.permute.xlu0 %7383 }
 0x2d8   : > { %v13151_v45 = vcombine.low %v5712_v17, %v5722_v56  ;;  %v6220_v60 = vsel %vm10253_vm11, %v9001_v61, %v6219_v14  ;;  %v5345_v57 = vshrl.u32 %v13019_v30, 16  ;;  %v5334_v25 = vrot.slane %v5332_v46, 4  ;;  %14490 = vst [vmem:[#allocation12_spill] sm:$0xff] %v13167_v20  ;;  %v9947_v14 = vld [vmem:[#allocation2 + $0x48] sm:$0xf] }
 0x2d9   : > { %v6223_v35 = vsel %vm10253_vm11, %v6221_v21, %v6222_v63  ;;  %v5351_v43 = vshll.u32 %v13035_v22, 16  ;;  %v9501_v33 = vadd.f32 %v12999_v58, %v12995_v8  ;;  %v5337_v59 = vrot.slane %v5335_v13, 5  ;;  %v13181_v8 = vpop.permute.xlu1 %7065  ;;  %v13185_v17 = vld [vmem:[#allocation2 + $0x98] sm:$0x1]  ;;  %v13189_v63 = vld [vmem:[#allocation2 + $0x8c] sm:$0x1] }
 0x2da   : > { %v9113_v39 = vcombine.low %v6220_v60, %v6223_v35  ;;  %v5343_v11 = vrot.slane %v5341_v10, 5  ;;  %v5347_v9 = vrot.slane %v5345_v57, 4  ;;  %v14491_v30 = vshll.u32 %v12935_v31, 16  ;;  %v13192_v10 = vld [vmem:[#allocation2 + $0x90] sm:$0xf] }
 0x2db   : > { %v14492_v29 = vshrl.u32 %v13111_v41, 16  ;;  %v13177_v23 = vrot.slane %v5799_v26, 5  ;;  %v9504_v58 = vadd.f32 %v13008_v48, %v13005_v27  ;;  %v5820_v49 = vshrl.u32 %v9947_v14, 16  ;;  %v6701_v41 = vld [vmem:[#allocation2 + $0x90] sm:$0xe] }
 0x2dc   : > { %v13171_v62 = vrot.slane %v14491_v30, 5  ;;  %7303 = vrot.lane.b32.xlu0 %v9113_v39, %s10086_s28  ;;  %v5338_v16 = vor.u32 %v5337_v59, %v5334_v25  ;;  %v5348_v56 = vor.u32 %v5347_v9, %v5343_v11  ;;  %v5618_v31 = vrot.slane %v13163_v32, 5  ;;  %v5486_v57 = vld [vmem:[#allocation2 + $0x84] sm:$0xe]  ;;  %v9948_v9 = vld [vmem:[#allocation2 + $0x54] sm:$0xf] }
 0x2dd   : > { %v13175_v22 = vrot.slane %v14492_v29, 4  ;;  %14494 = vst [vmem:[#allocation9_spill] sm:$0xff] %v13177_v23  ;;  %v5823_v61 = vshll.u32 %v9947_v14, 16  ;;  %v6524_v26 = vshrl.u32 %v13064_v2, 16  ;;  %v6527_v21 = vshll.u32 %v13064_v2, 16  ;;  %v13202_v14 = vpop.permute.xlu0 %7461 }
 0x2de   : > { %v6827_v27 = vrot.slane %v13165_v6, 5  ;;  %v5339_v48 = vrot.slane %v5338_v16, 4  ;;  %v5349_v46 = vrot.slane %v5348_v56, 4  ;;  %v5353_v60 = vrot.slane %v5351_v43, 5 }
 0x2df   : > { %14493 = vst [vmem:[#allocation8_spill] sm:$0xff] %v13175_v22  ;;  %v5620_v13 = vrot.slane %v5618_v31, 4  ;;  %v9017_v35 = vrot.slane %v6701_v41, 9  ;;  %v6830_v39 = vrot.slane %v13185_v17, 5  ;;  %v9129_v59 = vcombine.low %v13192_v10, %v13165_v6  ;;  %v13209_v22 = vpop.permute.xlu1 %7161 }
 0x2e0   : > { %v6829_v25 = vrot.slane %v6827_v27, 4  ;;  %v5844_v2 = vshrl.u32 %v9948_v9, 16  ;;  %v5344_v30 = vsel %vm10351_vm14, %v5339_v48, %v5343_v11  ;;  %v5354_v29 = vsel %vm10351_vm14, %v5349_v46, %v5353_v60 }
 0x2e1   : > { %v5621_v43 = vrot.slane %v13189_v63, 5  ;;  %v5847_v16 = vshll.u32 %v9948_v9, 16  ;;  %v9049_v56 = vcombine.low %v5344_v30, %v5354_v29  ;;  %v6828_v41 = vsel %vm10253_vm11, %v9017_v35, %v6827_v27  ;;  %7399 = vrot.lane.b32.xlu0 %v9129_v59, %s10084_s26  ;;  %v9949_v27 = vld [vmem:[#allocation2 + $0xc] sm:$0xf]  ;;  %v9950_v35 = vld [vmem:[#allocation2 + $0x10] sm:$0xf] }
 0x2e2   : > { %v6831_v23 = vsel %vm10253_vm11, %v6829_v25, %v6830_v39  ;;  %v8986_v11 = vrot.slane %v5486_v57, 9  ;;  %v4308_v60 = vadd.f32 %v12967_v34, %v9501_v33  ;;  %v13214_v20 = vrot.slane %v5820_v49, 4 }
 0x2e3   : > { %v5622_v48 = vsel %vm10253_vm11, %v5620_v13, %v5621_v43  ;;  %v9161_v46 = vcombine.low %v6828_v41, %v6831_v23  ;;  %v6526_v9 = vrot.slane %v6524_v26, 4  ;;  %v6529_v30 = vrot.slane %v6527_v21, 5  ;;  %6999 = vrot.lane.b32.xlu1 %v9049_v56, %s10086_s28  ;;  %v5674_v56 = vld [vmem:[#allocation2 + $0x94] sm:$0xf] }
 0x2e4   : > { %v9024_v25 = vcombine.low %v9949_v27, %v9950_v35  ;;  %v6537_v39 = vshrl.u32 %v13049_v0, 16  ;;  %v5619_v57 = vsel %vm10253_vm11, %v8986_v11, %v5618_v31  ;;  %v4469_v23 = vadd.f32 %v12740_v38, %v4308_v60  ;;  %v13234_v38 = vpop.permute.xlu0 %7289  ;;  %v6094_v35 = vld [vmem:[#allocation2 + $0x90] sm:$0xe] }
 0x2e5   : > { %7843 = vst.msk [vmem:[#allocation3 + $0x100] sm:$0xff] %vm987_vm15, %v9161_v46  ;;  %v4311_v33 = vadd.f32 %v12967_v34, %v9504_v58  ;;  %v13223_v49 = vrot.slane %v5823_v61, 5  ;;  %v13225_v26 = vrot.slane %v5844_v2, 4  ;;  %v9066_v21 = vcombine.low %v5619_v57, %v5622_v48  ;;  %v5673_v46 = vld [vmem:[#allocation2 + $0x90] sm:$0xf] }
 0x2e6   : > { %v7560_v13 = vsel %vm987_vm15, %v9024_v25, %v13029_v52  ;;  %v13229_v59 = vrot.slane %v5847_v16, 5  ;;  %v4511_v29 = vmax.f32 %v4469_v23, 0.0  ;;  %v7685_v58 = vsel %vm987_vm15, %v13151_v45, %v12975_v12  ;;  %v13245_v16 = vpop.permute.xlu1 %6985  ;;  %v5033_v25 = vld [vmem:[#allocation2 + $0xbc] sm:$0x1] }
 0x2e7   : > { %v7606_v31 = vsel %vm3656_vm1, %v7560_v13, %v12981_v7  ;;  %v4472_v43 = vadd.f32 %v12747_v51, %v4311_v33  ;;  %7081 = vrot.lane.b32.xlu1 %v9066_v21, %s10084_s26  ;;  %v6530_v61 = vor.u32 %v6529_v30, %v6526_v9  ;;  %v6533_v2 = vshll.u32 %v13049_v0, 16  ;;  %v9951_v51 = vld [vmem:[#allocation2 + $0x1c] sm:$0xf]  ;;  %v5029_v21 = vld [vmem:[#allocation2 + $0xb4] sm:$0xf] }
 0x2e8   : > { %v13242_v52 = vsel %vm3689_vm2, %v7606_v31, %v13001_v24  ;;  %v9236_v7 = vpack.c.bf16 %v4511_v29, %v4511_v29  ;;  %v5733_v41 = vshll.u32 %v9951_v51, 16  ;;  %v6539_v48 = vrot.slane %v6537_v39, 4 }
 0x2e9   : > { %v4512_v11 = vmax.f32 %v4472_v43, 0.0  ;;  %v13249_v12 = vsel %vm3656_vm1, %v7685_v58, %v12997_v55  ;;  %v6535_v45 = vrot.slane %v6533_v2, 5  ;;  %v6543_v60 = vshll.u32 %v13057_v15, 16  ;;  %v9952_v15 = vld [vmem:[#allocation2 + $0x20] sm:$0x1]  ;;  %v13258_v43 = vpop.permute.xlu0 %7385 }
 0x2ea   : > { %v9082_v24 = vcombine.low %v5673_v46, %v5674_v56  ;;  %v4850_v30 = vshrl.u32 %v9236_v7, 16  ;;  %v4853_v0 = vshll.u32 %v9236_v7, 16  ;;  %v5737_v57 = vshrl.u32 %v9951_v51, 16 }
 0x2eb   : > { %v9237_v27 = vpack.c.bf16 %v4512_v11, %v4512_v11  ;;  %v6531_v23 = vrot.slane %v6530_v61, 4  ;;  %v6540_v39 = vor.u32 %v6539_v48, %v6535_v45  ;;  %v13255_v13 = vrot.slane %v5733_v41, 5  ;;  %v5065_v61 = vld [vmem:[#allocation2 + $0x84] sm:$0xf]  ;;  %v13260_v11 = vpop.permute.xlu1 %7067  ;;  %v5694_v41 = vld [vmem:[#allocation2 + $0x98] sm:$0x1] }
 0x2ec   : > { %7177 = vrot.lane.b32.xlu1 %v9082_v24, %s10085_s27  ;;  %v7891_v33 = vld [vmem:[#allocation3 + $0x100] sm:$0xff]  ;;  %v4852_v55 = vrot.slane %v4850_v30, 7  ;;  %v5743_v29 = vshll.u32 %v9952_v15, 16  ;;  %v6545_v2 = vrot.slane %v6543_v60, 5  ;;  %v9002_v7 = vrot.slane %v6094_v35, 9 }
 0x2ed   : > { %v4858_v31 = vshrl.u32 %v9237_v27, 16  ;;  %9719 = vmatprep.mubr.msk.bf16.mxu0 %vm987_vm15, %v7891_v33  ;;  %v6541_v58 = vrot.slane %v6540_v39, 4  ;;  %v6226_v51 = vrot.slane %v5674_v56, 5  ;;  %v4861_v30 = vshll.u32 %v9237_v27, 16 }
 0x2ee   : > { %v4855_v48 = vor.u32 %v4853_v0, %v4852_v55  ;;  %v4856_v46 = vrot.slane %v4852_v55, 4  ;;  %v5739_v9 = vrot.slane %v5737_v57, 4  ;;  %v6536_v15 = vsel %vm10351_vm14, %v6531_v23, %v6535_v45 }
 0x2ef   : > { %v4860_v24 = vrot.slane %v4858_v31, 7  ;;  %v6546_v33 = vsel %vm10351_vm14, %v6541_v58, %v6545_v2  ;;  %v6227_v60 = vsel %vm10253_vm11, %v9002_v7, %v6226_v51  ;;  %v6228_v27 = vrot.slane %v6226_v51, 4  ;;  %v13277_v2 = vpop.permute.xlu0 %7463 }
 0x2f0   : > { %v5030_v56 = vsel %vm10238_vm9, %v4855_v48, %v5029_v21  ;;  %v9144_v39 = vcombine.low %v6536_v15, %v6546_v33  ;;  %v6229_v55 = vrot.slane %v5694_v41, 5  ;;  %v5356_v57 = vshrl.u32 %v5065_v61, 16 }
 0x2f1   : > { %v4863_v35 = vor.u32 %v4861_v30, %v4860_v24  ;;  %v4865_v0 = vrot.slane %v4860_v24, 4  ;;  %5031 = vst [vmem:[#allocation2 + $0xb4] sm:$0xf] %v5030_v56  ;;  %v5359_v31 = vshll.u32 %v5065_v61, 16  ;;  %v5365_v58 = vshll.u32 %v13163_v32, 16 }
 0x2f2   : > { %7477 = vrot.lane.b32.xlu0 %v9144_v39, %s10085_s27  ;;  %v5369_v21 = vshrl.u32 %v13163_v32, 16  ;;  %v6230_v7 = vsel %vm10253_vm11, %v6228_v27, %v6229_v55  ;;  %v5358_v51 = vrot.slane %v5356_v57, 4  ;;  %v5375_v48 = vshll.u32 %v13189_v63, 16  ;;  %v13298_v39 = vld [vmem:[#allocation2 + $0x98] sm:$0x1] }
 0x2f3   : > { %v4864_v45 = vsel %vm10246_vm10, %v4856_v46, %v4863_v35  ;;  %v5034_v23 = vsel %vm10194_vm3, %v4865_v0, %v5033_v25  ;;  %v5361_v61 = vrot.slane %v5359_v31, 5  ;;  %v13283_v46 = vld [vmem:[#allocation2 + $0x94] sm:$0xf]  ;;  %v13285_v25 = vpop.permute.xlu1 %7163  ;;  %v9114_v24 = vcombine.low %v6227_v60, %v6230_v7  ;;  %v5487_v27 = vld [vmem:[#allocation2 + $0x90] sm:$0xe]  ;;  %v14496_v31 = vld [vmem:[#allocation17_spill] sm:$0xff] }
 0x2f4   : > { %5032 = vst.msk [vmem:[#allocation2 + $0xb8] sm:$0xf] %vm332_vm0, %v4864_v45  ;;  %5035 = vst [vmem:[#allocation2 + $0xbc] sm:$0x1] %v5034_v23  ;;  %v5367_v30 = vrot.slane %v5365_v58, 5  ;;  %v5371_v41 = vrot.slane %v5369_v21, 4  ;;  %v9507_v32 = vadd.f32 %v13089_v1, %v13077_v42  ;;  %v5740_v15 = vor.u32 %v5739_v9, %v13255_v13  ;;  %v13310_v21 = vpop.permute.xlu0 %7291 }
 0x2f5   : > { %v5362_v33 = vor.u32 %v5361_v61, %v5358_v51  ;;  %v7764_v56 = vsel %vm3689_vm2, %v13249_v12, %v13109_v53  ;;  %v9510_v63 = vadd.f32 %v13102_v47, %v13096_v50  ;;  %v6551_v35 = vshll.u32 %v13192_v10, 16  ;;  %v13301_v1 = vld [vmem:[#allocation2 + $0xa0] sm:$0xf]  ;;  %v6702_v58 = vld [vmem:[#allocation2 + $0x9c] sm:$0xe]  ;;  %v14497_v7 = vld [vmem:[#allocation18_spill] sm:$0xff] }
 0x2f6   : > { %7305 = vrot.lane.b32.xlu0 %v9114_v24, %s10086_s28  ;;  %v5372_v60 = vor.u32 %v5371_v41, %v5367_v30  ;;  %v4316_v0 = vadd.f32 %v12967_v34, %v9507_v32  ;;  %v5625_v42 = vrot.slane %v13283_v46, 5  ;;  %8138 = vmatprep.mubr.bf16.mxu1 %v7764_v56  ;;  %v13303_v9 = vrot.slane %v5743_v29, 5  ;;  %v14495_v53 = vld [vmem:[#allocation16_spill] sm:$0xff]  ;;  %v9954_v24 = vld [vmem:[%s14377_s3 + $0x88] sm:$0xff]  }
 0x2f7   : > { %v5730_v12 = vor.u32 %v14495_v53, %v12697_v40  ;;  %v5363_v50 = vrot.slane %v5362_v33, 4  ;;  %v4319_v47 = vadd.f32 %v12967_v34, %v9510_v63  ;;  %8139 = vmatmul.mubr.bf16.vlgmr.msra.gmra.mrb[32].mxu1 %v13087_v54  ;;  %v5377_v57 = vrot.slane %v5375_v48, 5  ;;  %v9953_v29 = vld [vmem:[%s14377_s3 + $0x80] sm:$0xff]   ;;  %v13320_v48 = vpop.permute.xlu1 %6987 }
 0x2f8   : > { %v5373_v55 = vrot.slane %v5372_v60, 4  ;;  %v4477_v45 = vadd.f32 %v14496_v31, %v4316_v0  ;;  %v5627_v23 = vrot.slane %v5625_v42, 4  ;;  %9733 = vmatpush3.bf16.msra.mxu1 %v9953_v29  ;;  %v5741_v40 = vrot.slane %v5740_v15, 4  ;;  %v13317_v61 = vld [vmem:[#allocation2 + $0xa4] sm:$0x1] }
 0x2f9   : > { %v4480_v51 = vadd.f32 %v14497_v7, %v4319_v47  ;;  %v5628_v34 = vrot.slane %v13298_v39, 5  ;;  %v6834_v54 = vrot.slane %v13301_v1, 5  ;;  %9732 = vmatprep.subr.bf16.mxu1 %v9954_v24  ;;  %v5368_v41 = vsel %vm10351_vm14, %v5363_v50, %v5367_v30  ;;  %v13331_v0 = vld [vmem:[#allocation2 + $0x9c] sm:$0xf] }
 0x2fa   : > { %v5378_v32 = vsel %vm10351_vm14, %v5373_v55, %v5377_v57  ;;  %v4513_v15 = vmax.f32 %v4477_v45, 0.0  ;;  %v8987_v33 = vrot.slane %v5487_v27, 9  ;;  %v9018_v53 = vrot.slane %v6702_v58, 9  ;;  %v9955_v58 = vld [vmem:[#allocation2 + $0x28] sm:$0xf] }
 0x2fb   : > { %v9050_v56 = vcombine.low %v5368_v41, %v5378_v32  ;;  %v4514_v63 = vmax.f32 %v4480_v51, 0.0  ;;  %v5629_v60 = vsel %vm10253_vm11, %v5627_v23, %v5628_v34  ;;  %v6836_v31 = vrot.slane %v6834_v54, 4  ;;  %v13344_v34 = vpop.permute.xlu0 %7387  ;;  %v13349_v32 = vpop.permute.xlu1 %7069 }
 0x2fc   : > { %v9238_v47 = vpack.c.bf16 %v4513_v15, %v4513_v15  ;;  %v6837_v29 = vrot.slane %v13317_v61, 5  ;;  %v9130_v30 = vcombine.low %v13331_v0, %v13301_v1  ;;  %9734 = vmatpush3.bf16.msra.mxu1 %v9954_v24  ;;  %v5731_v50 = vrot.slane %v5730_v12, 4 }
 0x2fd   : > { %7001 = vrot.lane.b32.xlu1 %v9050_v56, %s10086_s28  ;;  %v9239_v27 = vpack.c.bf16 %v4514_v63, %v4514_v63  ;;  %v5626_v55 = vsel %vm10253_vm11, %v8987_v33, %v5625_v42  ;;  %v6835_v57 = vsel %vm10253_vm11, %v9018_v53, %v6834_v54  ;;  %v5757_v7 = vshll.u32 %v9955_v58, 16 }
 0x2fe   : > { %v4867_v45 = vshrl.u32 %v9238_v47, 16  ;;  %v6838_v23 = vsel %vm10253_vm11, %v6836_v31, %v6837_v29  ;;  %7401 = vrot.lane.b32.xlu0 %v9130_v30, %s10084_s26  ;;  %v5761_v51 = vshrl.u32 %v9955_v58, 16  ;;  %v5746_v12 = vsel %vm10351_vm14, %v5741_v40, %v13303_v9  ;;  %v5036_v31 = vld [vmem:[#allocation2 + $0xc0] sm:$0xf]  ;;  %v9956_v9 = vld [vmem:[#allocation2 + $0x1c] sm:$0xf] }
 0x2ff   : > { %v4875_v24 = vshrl.u32 %v9239_v27, 16  ;;  %v9067_v42 = vcombine.low %v5626_v55, %v5629_v60  ;;  %v9162_v41 = vcombine.low %v6835_v57, %v6838_v23  ;;  %v14498_v54 = vshrl.u32 %v13192_v10, 16  ;;  %v9957_v40 = vld [vmem:[#allocation2 + $0x18] sm:$0xf]  ;;  %v5040_v57 = vld [vmem:[#allocation2 + $0xc8] sm:$0x1] }
 0x300   : > { %v6553_v33 = vrot.slane %v6551_v35, 5  ;;  %v4869_v56 = vrot.slane %v4867_v45, 7  ;;  %v4870_v63 = vshll.u32 %v9238_v47, 16  ;;  %v5736_v53 = vsel %vm10351_vm14, %v5731_v50, %v13255_v13 }
 0x301   : > { %v6550_v15 = vrot.slane %v14498_v54, 4  ;;  %v4877_v29 = vrot.slane %v4875_v24, 7  ;;  %v4878_v30 = vshll.u32 %v9239_v27, 16  ;;  %7083 = vrot.lane.b32.xlu1 %v9067_v42, %s10084_s26  ;;  %7846 = vst.msk [vmem:[#allocation3 + $0x118] sm:$0xff] %vm987_vm15, %v9162_v41  ;;  %v9025_v60 = vcombine.low %v9957_v40, %v9956_v9  ;;  %v9958_v24 = vld [vmem:[#allocation2 + $0x2c] sm:$0x1] }
 0x302   : > { %v9088_v55 = vcombine.low %v5736_v53, %v5746_v12  ;;  %v4872_v10 = vor.u32 %v4870_v63, %v4869_v56  ;;  %v13358_v35 = vrot.slane %v5757_v7, 5  ;;  %v5763_v47 = vrot.slane %v5761_v51, 4  ;;  %v13367_v41 = vld [vmem:[#allocation2 + $0xa0] sm:$0xf]  ;;  %v13369_v7 = vpop.permute.xlu0 %7465  ;;  %v13381_v53 = vpop.permute.xlu1 %7165  ;;  %v14502_v40 = vld [vmem:[#allocation15_spill] sm:$0xff] }
 0x303   : > { %v4873_v45 = vrot.slane %v4869_v56, 4  ;;  %v4880_v23 = vor.u32 %v4878_v30, %v4877_v29  ;;  %v4882_v58 = vrot.slane %v4877_v29, 4  ;;  %v7563_v13 = vsel %vm987_vm15, %v9025_v60, %v13142_v28  ;;  %v14500_v56 = vld [vmem:[#allocation13_spill] sm:$0xff]  ;;  %v5675_v30 = vld [vmem:[#allocation2 + $0x9c] sm:$0xf] }
 0x304   : > { %v5037_v50 = vsel %vm10238_vm9, %v4872_v10, %v5036_v31  ;;  %v6572_v27 = vshrl.u32 %v13331_v0, 16  ;;  %v5767_v42 = vshll.u32 %v9958_v24, 16  ;;  %v7608_v12 = vsel %vm3656_vm1, %v7563_v13, %v13072_v5  ;;  %v13388_v9 = vld [vmem:[#allocation2 + $0x60] sm:$0xf] }
 0x305   : > { %5038 = vst [vmem:[#allocation2 + $0xc0] sm:$0xf] %v5037_v50  ;;  %v4881_v51 = vsel %vm10246_vm10, %v4873_v45, %v4880_v23  ;;  %v5041_v28 = vsel %vm10194_vm3, %v4882_v58, %v5040_v57  ;;  %v5754_v54 = vor.u32 %v13100_v3, %v14499_v36  ;;  %v13379_v63 = vsel %vm3689_vm2, %v7608_v12, %v14500_v56  ;;  %v5067_v58 = vld [vmem:[#allocation2 + $0x90] sm:$0xf]  ;;  %v5695_v36 = vld [vmem:[#allocation2 + $0xa4] sm:$0x1] }
 0x306   : > { %5039 = vst.msk [vmem:[#allocation2 + $0xc4] sm:$0xf] %vm332_vm0, %v4881_v51  ;;  %5042 = vst [vmem:[#allocation2 + $0xc8] sm:$0x1] %v5041_v28  ;;  %v5764_v5 = vor.u32 %v5763_v47, %v13358_v35  ;;  %v6554_v31 = vor.u32 %v6553_v33, %v6550_v15  ;;  %v6557_v37 = vshll.u32 %v13165_v6, 16  ;;  %v14501_v4 = vshrl.u32 %v13165_v6, 16  ;;  %v13405_v56 = vpop.permute.xlu0 %7293 }
 0x307   : > { %v5868_v3 = vshrl.u32 %v13388_v9, 16  ;;  %v7688_v60 = vsel %vm987_vm15, %v9088_v55, %v14502_v40  ;;  %v6567_v10 = vshll.u32 %v13185_v17, 16  ;;  %v9083_v57 = vcombine.low %v5675_v30, %v13367_v41  ;;  %v14503_v15 = vld [vmem:[#allocation10_spill] sm:$0xff]  ;;  %v13408_v40 = vpop.permute.xlu1 %6989 }
 0x308   : > { %v6563_v29 = vrot.slane %v14501_v4, 4  ;;  %v7734_v33 = vsel %vm3656_vm1, %v7688_v60, %v14503_v15  ;;  %v6559_v45 = vrot.slane %v6557_v37, 5  ;;  %v7894_v6 = vld [vmem:[#allocation3 + $0x118] sm:$0xff]  ;;  %v6233_v23 = vrot.slane %v13367_v41, 5  ;;  %v6095_v37 = vld [vmem:[#allocation2 + $0x9c] sm:$0xe] }
 0x309   : > { %v6585_v13 = vshrl.u32 %v13301_v1, 16  ;;  %v13400_v50 = vrot.slane %v6572_v27, 4  ;;  %v6575_v55 = vshll.u32 %v13331_v0, 16  ;;  %v5769_v24 = vrot.slane %v5767_v42, 5  ;;  %7179 = vrot.lane.b32.xlu1 %v9083_v57, %s10085_s27  ;;  %9720 = vmatmul.mubr.msk.bf16.gmra.mrb[84].mxu0 %vm987_vm15, %v7894_v6 }
 0x30a   : > { %v5765_v17 = vrot.slane %v5764_v5, 4  ;;  %v5755_v12 = vrot.slane %v5754_v54, 4  ;;  %v6555_v51 = vrot.slane %v6554_v31, 4  ;;  %v6564_v28 = vor.u32 %v6563_v29, %v6559_v45  ;;  %v13413_v5 = vld [vmem:[#allocation2 + $0xa0] sm:$0xf] }
 0x30b   : > { %v6569_v41 = vrot.slane %v6567_v10, 5  ;;  %v5380_v4 = vshrl.u32 %v5067_v58, 16  ;;  %v5383_v30 = vshll.u32 %v5067_v58, 16  ;;  %v5389_v27 = vshll.u32 %v13283_v46, 16 }
 0x30c   : > { %v6565_v0 = vrot.slane %v6564_v28, 4  ;;  %v6235_v42 = vrot.slane %v6233_v23, 4  ;;  %v5393_v60 = vshrl.u32 %v13283_v46, 16  ;;  %v7767_v54 = vsel %vm3689_vm2, %v7734_v33, %v13202_v14  ;;  %v13420_v46 = vld [vmem:[#allocation2 + $0xac] sm:$0xf] }
 0x30d   : > { %v6236_v31 = vrot.slane %v5695_v36, 5  ;;  %v5382_v29 = vrot.slane %v5380_v4, 4  ;;  %v5385_v57 = vrot.slane %v5383_v30, 5  ;;  %v5391_v10 = vrot.slane %v5389_v27, 5  ;;  %8146 = vmatprep.mubr.bf16.mxu1 %v7767_v54  ;;  %v6703_v30 = vld [vmem:[#allocation2 + $0xa8] sm:$0xe] }
 0x30e   : > { %v6560_v15 = vsel %vm10351_vm14, %v6555_v51, %v6559_v45  ;;  %v6570_v6 = vsel %vm10351_vm14, %v6565_v0, %v6569_v41  ;;  %v5395_v58 = vrot.slane %v5393_v60, 4  ;;  %v5399_v28 = vshll.u32 %v13298_v39, 16  ;;  %8147 = vmatmul.mubr.bf16.gmra.mrb[36].mxu1 %v13242_v52  ;;  %v13430_v39 = vld [vmem:[#allocation2 + $0xb0] sm:$0x1]  ;;  %v13432_v0 = vpop.permute.xlu0 %7389  ;;  %v13440_v60 = vld [vmem:[#allocation2 + $0xa4] sm:$0x1] }
 0x30f   : > { %v9145_v14 = vcombine.low %v6560_v15, %v6570_v6  ;;  %v9003_v33 = vrot.slane %v6095_v37, 9  ;;  %v5386_v36 = vor.u32 %v5385_v57, %v5382_v29  ;;  %v5632_v4 = vrot.slane %v13413_v5, 5  ;;  %v5488_v6 = vld [vmem:[#allocation2 + $0x9c] sm:$0xe] }
 0x310   : > { %v13424_v27 = vrot.slane %v6575_v55, 5  ;;  %v5770_v45 = vsel %vm10351_vm14, %v5765_v17, %v5769_v24  ;;  %v6237_v51 = vsel %vm10253_vm11, %v6235_v42, %v6236_v31  ;;  %v5396_v41 = vor.u32 %v5395_v58, %v5391_v10  ;;  %v13443_v17 = vpop.permute.xlu1 %7071 }
 0x311   : > { %v5760_v52 = vsel %vm10351_vm14, %v5755_v12, %v13358_v35  ;;  %7479 = vrot.lane.b32.xlu0 %v9145_v14, %s10085_s27  ;;  %v6234_v55 = vsel %vm10253_vm11, %v9003_v33, %v6233_v23  ;;  %v5387_v37 = vrot.slane %v5386_v36, 4  ;;  %v6841_v24 = vrot.slane %v13420_v46, 5  ;;  %v13454_v36 = vld [vmem:[#allocation2 + $0xa8] sm:$0xf] }
 0x312   : > { %v5397_v42 = vrot.slane %v5396_v41, 4  ;;  %v5401_v54 = vrot.slane %v5399_v28, 5  ;;  %v5634_v31 = vrot.slane %v5632_v4, 4  ;;  %v9019_v29 = vrot.slane %v6703_v30, 9 }
 0x313   : > { %v9089_v57 = vcombine.low %v5760_v52, %v5770_v45  ;;  %v9115_v15 = vcombine.low %v6234_v55, %v6237_v51  ;;  %v6843_v35 = vrot.slane %v6841_v24, 4  ;;  %v6844_v12 = vrot.slane %v13430_v39, 5  ;;  %v9960_v45 = vld [vmem:[#allocation2 + $0x34] sm:$0xf] }
 0x314   : > { %v5392_v23 = vsel %vm10351_vm14, %v5387_v37, %v5391_v10  ;;  %v5402_v58 = vsel %vm10351_vm14, %v5397_v42, %v5401_v54  ;;  %v5635_v14 = vrot.slane %v13440_v60, 5  ;;  %v6842_v33 = vsel %vm10253_vm11, %v9019_v29, %v6841_v24  ;;  %v13462_v24 = vpop.permute.xlu0 %7467  ;;  %v9961_v29 = vld [vmem:[#allocation2 + $0x28] sm:$0xf] }
 0x315   : > { %7307 = vrot.lane.b32.xlu0 %v9115_v15, %s10086_s28  ;;  %v9051_v28 = vcombine.low %v5392_v23, %v5402_v58  ;;  %v6845_v30 = vsel %vm10253_vm11, %v6843_v35, %v6844_v12  ;;  %v5781_v51 = vshll.u32 %v9960_v45, 16  ;;  %v5785_v41 = vshrl.u32 %v9960_v45, 16  ;;  %v9962_v15 = vld [vmem:[#allocation2 + $0x24] sm:$0xf]  ;;  %v13469_v12 = vpop.permute.xlu1 %7167 }
 0x316   : > { %v8988_v10 = vrot.slane %v5488_v6, 9  ;;  %v5636_v52 = vsel %vm10253_vm11, %v5634_v31, %v5635_v14  ;;  %v9131_v55 = vcombine.low %v13454_v36, %v13420_v46  ;;  %v9163_v37 = vcombine.low %v6842_v33, %v6845_v30 }
 0x317   : > { %7003 = vrot.lane.b32.xlu1 %v9051_v28, %s10086_s28  ;;  %v13465_v42 = vrot.slane %v5781_v51, 5  ;;  %v5787_v54 = vrot.slane %v5785_v41, 4  ;;  %v9026_v35 = vcombine.low %v9962_v15, %v9961_v29  ;;  %v6578_v6 = vor.u32 %v13424_v27, %v13400_v50  ;;  %v9963_v27 = vld [vmem:[#allocation2 + $0x38] sm:$0x1]  ;;  %v14505_v41 = vld [vmem:[#allocation12_spill] sm:$0xff] }
 0x318   : > { %v7691_v31 = vsel %vm987_vm15, %v9089_v57, %v13134_v18  ;;  %v5633_v23 = vsel %vm10253_vm11, %v8988_v10, %v5632_v4  ;;  %7849 = vst.msk [vmem:[#allocation3 + $0x130] sm:$0xff] %vm987_vm15, %v9163_v37  ;;  %v6581_v58 = vshll.u32 %v13301_v1, 16  ;;  %v6587_v14 = vrot.slane %v6585_v13, 4  ;;  %v14504_v57 = vld [vmem:[#allocation14_spill] sm:$0xff]  ;;  %v5678_v13 = vld [vmem:[#allocation2 + $0xac] sm:$0xf] }
 0x319   : > { %v9068_v33 = vcombine.low %v5633_v23, %v5636_v52  ;;  %7403 = vrot.lane.b32.xlu0 %v9131_v55, %s10084_s26  ;;  %v5788_v50 = vor.u32 %v5787_v54, %v13465_v42  ;;  %v5791_v28 = vshll.u32 %v9963_v27, 16  ;;  %v7566_v18 = vsel %vm987_vm15, %v9026_v35, %v13245_v16  ;;  %v5069_v52 = vld [vmem:[#allocation2 + $0x9c] sm:$0xf]  ;;  %v13502_v54 = vpop.permute.xlu0 %7295  ;;  %v6096_v27 = vld [vmem:[#allocation2 + $0xa8] sm:$0xe] }
 0x31a   : > { %v5778_v4 = vor.u32 %v13171_v62, %v14504_v57  ;;  %v7610_v30 = vsel %vm3656_vm1, %v7566_v18, %v13181_v8  ;;  %v6583_v45 = vrot.slane %v6581_v58, 5  ;;  %v6591_v1 = vshll.u32 %v13317_v61, 16  ;;  %v13504_v58 = vpop.permute.xlu1 %6991 }
 0x31b   : > { %v13490_v51 = vrot.slane %v5868_v3, 4  ;;  %v7736_v10 = vsel %vm3656_vm1, %v7691_v31, %v14505_v41  ;;  %7085 = vrot.lane.b32.xlu1 %v9068_v33, %s10084_s26  ;;  %v13497_v16 = vsel %vm3689_vm2, %v7610_v30, %v13209_v22  ;;  %v6579_v62 = vrot.slane %v6578_v6, 4  ;;  %v5677_v3 = vld [vmem:[#allocation2 + $0xa8] sm:$0xf]  ;;  %v5696_v31 = vld [vmem:[#allocation2 + $0xb0] sm:$0x1] }
 0x31c   : > { %v6596_v61 = vshrl.u32 %v13454_v36, 16  ;;  %v6599_v55 = vshll.u32 %v13454_v36, 16  ;;  %v6588_v37 = vor.u32 %v6587_v14, %v6583_v45  ;;  %v5789_v29 = vrot.slane %v5788_v50, 4  ;;  %v13514_v41 = vld [vmem:[#allocation2 + $0xac] sm:$0xf] }
 0x31d   : > { %v5793_v15 = vrot.slane %v5791_v28, 5  ;;  %v9084_v35 = vcombine.low %v5677_v3, %v5678_v13  ;;  %v6240_v23 = vrot.slane %v5678_v13, 5  ;;  %v5779_v22 = vrot.slane %v5778_v4, 4 }
 0x31e   : > { %v6589_v6 = vrot.slane %v6588_v37, 4  ;;  %v6593_v33 = vrot.slane %v6591_v1, 5  ;;  %v5404_v18 = vshrl.u32 %v5069_v52, 16  ;;  %v6584_v57 = vsel %vm10351_vm14, %v6579_v62, %v6583_v45 }
 0x31f   : > { %7181 = vrot.lane.b32.xlu1 %v9084_v35, %s10085_s27  ;;  %v7897_v36 = vld [vmem:[#allocation3 + $0x130] sm:$0xff]  ;;  %v6242_v14 = vrot.slane %v6240_v23, 4  ;;  %v5407_v30 = vshll.u32 %v5069_v52, 16  ;;  %v5413_v50 = vshll.u32 %v13413_v5, 16  ;;  %v6243_v4 = vrot.slane %v5696_v31, 5  ;;  %v13521_v31 = vpop.permute.xlu0 %7391 }
 0x320   : > { %v6594_v28 = vsel %vm10351_vm14, %v6589_v6, %v6593_v33  ;;  %9723 = vmatprep.mubr.msk.bf16.mxu0 %vm987_vm15, %v7897_v36  ;;  %v5406_v13 = vrot.slane %v5404_v18, 4  ;;  %v5417_v1 = vshrl.u32 %v13413_v5, 16  ;;  %v5794_v45 = vsel %vm10351_vm14, %v5789_v29, %v5793_v15  ;;  %v5489_v33 = vld [vmem:[#allocation2 + $0xa8] sm:$0xe]  ;;  %v13530_v18 = vld [vmem:[#allocation2 + $0xb8] sm:$0xf] }
 0x321   : > { %v9146_v62 = vcombine.low %v6584_v57, %v6594_v28  ;;  %v9004_v37 = vrot.slane %v6096_v27, 9  ;;  %v5409_v3 = vrot.slane %v5407_v30, 5  ;;  %v6244_v52 = vsel %vm10253_vm11, %v6242_v14, %v6243_v4  ;;  %v13532_v57 = vpop.permute.xlu1 %7073 }
 0x322   : > { %v5415_v35 = vrot.slane %v5413_v50, 5  ;;  %v5419_v47 = vrot.slane %v5417_v1, 4  ;;  %v5423_v6 = vshll.u32 %v13440_v60, 16  ;;  %v5784_v5 = vsel %vm10351_vm14, %v5779_v22, %v13465_v42  ;;  %v13536_v50 = vld [vmem:[#allocation2 + $0xb0] sm:$0x1] }
 0x323   : > { %7481 = vrot.lane.b32.xlu0 %v9146_v62, %s10085_s27  ;;  %v5410_v29 = vor.u32 %v5409_v3, %v5406_v13  ;;  %v7770_v15 = vsel %vm3689_vm2, %v7736_v10, %v13277_v2  ;;  %v5639_v27 = vrot.slane %v13514_v41, 5  ;;  %v6598_v60 = vrot.slane %v6596_v61, 4  ;;  %v6704_v42 = vld [vmem:[#allocation2 + $0xb4] sm:$0xe]  ;;  %v13538_v10 = vld [vmem:[#allocation2 + $0xbc] sm:$0x1] }
 0x324   : > { %v9090_v36 = vcombine.low %v5784_v5, %v5794_v45  ;;  %v6241_v14 = vsel %vm10253_vm11, %v9004_v37, %v6240_v23  ;;  %v5420_v30 = vor.u32 %v5419_v47, %v5415_v35  ;;  %8154 = vmatprep.mubr.bf16.mxu1 %v7770_v15  ;;  %v8989_v4 = vrot.slane %v5489_v33, 9  ;;  %v9964_v15 = vld [vmem:[#allocation2 + $0x40] sm:$0xf] }
 0x325   : > { %v9116_v22 = vcombine.low %v6241_v14, %v6244_v52  ;;  %v5411_v28 = vrot.slane %v5410_v29, 4  ;;  %v5641_v2 = vrot.slane %v5639_v27, 4  ;;  %8155 = vmatmul.mubr.bf16.gmra.mrb[40].mxu1 %v13379_v63  ;;  %v6601_v13 = vrot.slane %v6599_v55, 5  ;;  %v13552_v55 = vld [vmem:[#allocation2 + $0xb4] sm:$0xf] }
 0x326   : > { %v5421_v1 = vrot.slane %v5420_v30, 4  ;;  %v5425_v61 = vrot.slane %v5423_v6, 5  ;;  %v6848_v45 = vrot.slane %v13530_v18, 5  ;;  %v7694_v47 = vsel %vm987_vm15, %v9090_v36, %v13234_v38  ;;  %v13555_v38 = vpop.permute.xlu0 %7469 }
 0x327   : > { %7309 = vrot.lane.b32.xlu0 %v9116_v22, %s10086_s28  ;;  %v5640_v23 = vsel %vm10253_vm11, %v8989_v4, %v5639_v27  ;;  %v5642_v62 = vrot.slane %v13536_v50, 5  ;;  %v9020_v37 = vrot.slane %v6704_v42, 9  ;;  %v5416_v3 = vsel %vm10351_vm14, %v5411_v28, %v5415_v35  ;;  %v13561_v35 = vpop.permute.xlu1 %7169  ;;  %v14506_v42 = vld [vmem:[#allocation8_spill] sm:$0xff]  ;;  %v14507_v22 = vld [vmem:[#allocation9_spill] sm:$0xff] }
 0x328   : > { %v5426_v63 = vsel %vm10351_vm14, %v5421_v1, %v5425_v61  ;;  %v6850_v52 = vrot.slane %v6848_v45, 4  ;;  %v6851_v6 = vrot.slane %v13538_v10, 5  ;;  %v9132_v29 = vcombine.low %v13552_v55, %v13530_v18  ;;  %v9965_v1 = vld [vmem:[#allocation2 + $0x34] sm:$0xf]  ;;  %v9966_v61 = vld [vmem:[#allocation2 + $0x30] sm:$0xf] }
 0x329   : > { %v9052_v33 = vcombine.low %v5416_v3, %v5426_v63  ;;  %v5643_v5 = vsel %vm10253_vm11, %v5641_v2, %v5642_v62  ;;  %v5805_v27 = vshll.u32 %v9964_v15, 16  ;;  %v6849_v36 = vsel %vm10253_vm11, %v9020_v37, %v6848_v45  ;;  %v9967_v37 = vld [vmem:[#allocation2 + $0x44] sm:$0x1] }
 0x32a   : > { %v6852_v14 = vsel %vm10253_vm11, %v6850_v52, %v6851_v6  ;;  %v5809_v30 = vshrl.u32 %v9964_v15, 16  ;;  %v5802_v28 = vor.u32 %v14507_v22, %v14506_v42  ;;  %v9027_v62 = vcombine.low %v9966_v61, %v9965_v1 }
 0x32b   : > { %7005 = vrot.lane.b32.xlu1 %v9052_v33, %s10086_s28  ;;  %v9164_v4 = vcombine.low %v6849_v36, %v6852_v14  ;;  %7405 = vrot.lane.b32.xlu0 %v9132_v29, %s10084_s26  ;;  %v13571_v2 = vrot.slane %v5805_v27, 5  ;;  %v6602_v3 = vor.u32 %v6601_v13, %v6598_v60  ;;  %v9069_v63 = vcombine.low %v5640_v23, %v5643_v5  ;;  %v5680_v5 = vld [vmem:[#allocation2 + $0xb8] sm:$0xf]  ;;  %v5071_v14 = vld [vmem:[#allocation2 + $0xa8] sm:$0xf] }
 0x32c   : > { %v5811_v45 = vrot.slane %v5809_v30, 4  ;;  %v5815_v8 = vshll.u32 %v9967_v37, 16  ;;  %v6605_v52 = vshll.u32 %v13420_v46, 16  ;;  %v5803_v6 = vrot.slane %v5802_v28, 4  ;;  %v13583_v30 = vpop.permute.xlu0 %7297  ;;  %v6097_v28 = vld [vmem:[#allocation2 + $0xb4] sm:$0xe] }
 0x32d   : > { %7852 = vst.msk [vmem:[#allocation3 + $0x148] sm:$0xff] %vm987_vm15, %v9164_v4  ;;  %v7569_v33 = vsel %vm987_vm15, %v9027_v62, %v13320_v48  ;;  %v14508_v29 = vshrl.u32 %v13420_v46, 16  ;;  %v6615_v27 = vshll.u32 %v13430_v39, 16  ;;  %v6603_v13 = vrot.slane %v6602_v3, 4  ;;  %v5679_v39 = vld [vmem:[#allocation2 + $0xb4] sm:$0xf]  ;;  %v13597_v4 = vpop.permute.xlu1 %6993 }
 0x32e   : > { %v5812_v36 = vor.u32 %v5811_v45, %v13571_v2  ;;  %v7612_v60 = vsel %vm3656_vm1, %v7569_v33, %v13260_v11  ;;  %v6607_v23 = vrot.slane %v6605_v52, 5  ;;  %v14509_v42 = vshll.u32 %v13388_v9, 16  ;;  %v5697_v3 = vld [vmem:[#allocation2 + $0xbc] sm:$0x1] }
 0x32f   : > { %v6611_v15 = vrot.slane %v14508_v29, 4  ;;  %v7738_v48 = vsel %vm3656_vm1, %v7694_v47, %v13258_v43  ;;  %7087 = vrot.lane.b32.xlu1 %v9069_v63, %s10084_s26  ;;  %v6620_v46 = vshrl.u32 %v13552_v55, 16  ;;  %v13595_v11 = vsel %vm3689_vm2, %v7612_v60, %v13285_v25 }
 0x330   : > { %v13587_v22 = vrot.slane %v14509_v42, 5  ;;  %v6623_v1 = vshll.u32 %v13552_v55, 16  ;;  %v5813_v9 = vrot.slane %v5812_v36, 4  ;;  %v5817_v61 = vrot.slane %v5815_v8, 5 }
 0x331   : > { %v6612_v62 = vor.u32 %v6611_v15, %v6607_v23  ;;  %v5808_v43 = vsel %vm10351_vm14, %v5803_v6, %v13571_v2  ;;  %v6617_v47 = vrot.slane %v6615_v27, 5  ;;  %v9085_v63 = vcombine.low %v5679_v39, %v5680_v5 }
 0x332   : > { %v6247_v45 = vrot.slane %v5680_v5, 5  ;;  %v6608_v25 = vsel %vm10351_vm14, %v6603_v13, %v6607_v23  ;;  %v9005_v52 = vrot.slane %v6097_v28, 9  ;;  %v5428_v33 = vshrl.u32 %v5071_v14, 16  ;;  %v5073_v23 = vld [vmem:[#allocation2 + $0xb4] sm:$0xf]  ;;  %v13612_v5 = vpop.permute.xlu0 %7393 }
 0x333   : > { %v6613_v37 = vrot.slane %v6612_v62, 4  ;;  %v5818_v29 = vsel %vm10351_vm14, %v5813_v9, %v5817_v61  ;;  %7183 = vrot.lane.b32.xlu1 %v9085_v63, %s10085_s27  ;;  %v6250_v15 = vrot.slane %v5697_v3, 5  ;;  %v5431_v36 = vshll.u32 %v5071_v14, 16  ;;  %v13619_v9 = vld [vmem:[#allocation2 + $0xb8] sm:$0xf]  ;;  %v13621_v61 = vpop.permute.xlu1 %7075 }
 0x334   : > { %v6249_v8 = vrot.slane %v6247_v45, 4  ;;  %v7900_v6 = vld [vmem:[#allocation3 + $0x148] sm:$0xff]  ;;  %v5430_v27 = vrot.slane %v5428_v33, 4  ;;  %v5437_v60 = vshll.u32 %v13514_v41, 16  ;;  %v5441_v13 = vshrl.u32 %v13514_v41, 16 }
 0x335   : > { %v6618_v2 = vsel %vm10351_vm14, %v6613_v37, %v6617_v47  ;;  %9724 = vmatmul.mubr.msk.bf16.gmra.mrb[88].mxu0 %vm987_vm15, %v7900_v6  ;;  %v6248_v39 = vsel %vm10253_vm11, %v9005_v52, %v6247_v45  ;;  %v5433_v28 = vrot.slane %v5431_v36, 5  ;;  %v9091_v62 = vcombine.low %v5808_v43, %v5818_v29  ;;  %v13623_v63 = vld [vmem:[#allocation2 + $0xbc] sm:$0x1] }
 0x336   : > { %v9147_v42 = vcombine.low %v6608_v25, %v6618_v2  ;;  %v6251_v14 = vsel %vm10253_vm11, %v6249_v8, %v6250_v15  ;;  %v5439_v41 = vrot.slane %v5437_v60, 5  ;;  %v5443_v47 = vrot.slane %v5441_v13, 4 }
 0x337   : > { %v9117_v3 = vcombine.low %v6248_v39, %v6251_v14  ;;  %v5434_v25 = vor.u32 %v5433_v28, %v5430_v27  ;;  %v5447_v37 = vshll.u32 %v13536_v50, 16  ;;  %v7773_v45 = vsel %vm3689_vm2, %v7738_v48, %v13369_v7  ;;  %v13633_v7 = vld [vmem:[#allocation2 + $0xc4] sm:$0xf]  ;;  %v13635_v48 = vpop.permute.xlu0 %7471  ;;  %v13647_v28 = vpop.permute.xlu1 %7171 }
 0x338   : > { %7483 = vrot.lane.b32.xlu0 %v9147_v42, %s10085_s27  ;;  %v5452_v52 = vshrl.u32 %v5073_v23, 16  ;;  %v5444_v33 = vor.u32 %v5443_v47, %v5439_v41  ;;  %v5455_v8 = vshll.u32 %v5073_v23, 16  ;;  %v5461_v15 = vshll.u32 %v13619_v9, 16  ;;  %8162 = vmatprep.mubr.bf16.mxu1 %v7773_v45 }
 0x339   : > { %v5465_v43 = vshrl.u32 %v13619_v9, 16  ;;  %v5435_v29 = vrot.slane %v5434_v25, 4  ;;  %v5449_v36 = vrot.slane %v5447_v37, 5  ;;  %v5471_v6 = vshll.u32 %v13623_v63, 16  ;;  %8163 = vmatmul.mubr.bf16.gmra.mrb[44].mxu1 %v13497_v16  ;;  %v6287_v16 = vld [vmem:[#allocation2 + $0xc0] sm:$0xf] }
 0x33a   : > { %v5454_v2 = vrot.slane %v5452_v52, 4  ;;  %v5445_v27 = vrot.slane %v5444_v33, 4  ;;  %v5457_v50 = vrot.slane %v5455_v8, 5  ;;  %v5463_v60 = vrot.slane %v5461_v15, 5 }
 0x33b   : > { %v5467_v13 = vrot.slane %v5465_v43, 4  ;;  %v6633_v23 = vshrl.u32 %v13530_v18, 16  ;;  %v13640_v42 = vrot.slane %v6620_v46, 4  ;;  %v13642_v39 = vrot.slane %v6623_v1, 5  ;;  %v13653_v46 = vld [vmem:[#allocation2 + $0xc0] sm:$0xe] }
 0x33c   : > { %v7697_v14 = vsel %vm987_vm15, %v9091_v62, %v13310_v21  ;;  %7311 = vrot.lane.b32.xlu0 %v9117_v3, %s10086_s28  ;;  %v5440_v47 = vsel %vm10351_vm14, %v5435_v29, %v5439_v41  ;;  %v5450_v25 = vsel %vm10351_vm14, %v5445_v27, %v5449_v36  ;;  %v5458_v37 = vor.u32 %v5457_v50, %v5454_v2  ;;  %v9968_v43 = vld [vmem:[#allocation2 + $0x4c] sm:$0xf] }
 0x33d   : > { %v5468_v55 = vor.u32 %v5467_v13, %v5463_v60  ;;  %v13657_v1 = vsel %vm3656_vm1, %v7697_v14, %v13344_v34  ;;  %v9053_v21 = vcombine.low %v5440_v47, %v5450_v25  ;;  %v5473_v62 = vrot.slane %v5471_v6, 5  ;;  %v9969_v6 = vld [vmem:[#allocation2 + $0x50] sm:$0x1]  ;;  %v5490_v13 = vld [vmem:[#allocation2 + $0xb4] sm:$0xe]  ;;  %v13670_v14 = vpop.permute.xlu0 %7299 }
 0x33e   : > { %v9133_v3 = vcombine.low %v6287_v16, %v13633_v7  ;;  %v5459_v45 = vrot.slane %v5458_v37, 4  ;;  %v6644_v33 = vshrl.u32 %v6287_v16, 16  ;;  %v6647_v8 = vshll.u32 %v6287_v16, 16  ;;  %v9970_v37 = vld [vmem:[#allocation2 + $0x40] sm:$0xf] }
 0x33f   : > { %v5469_v52 = vrot.slane %v5468_v55, 4  ;;  %7007 = vrot.lane.b32.xlu1 %v9053_v21, %s10086_s28  ;;  %v9021_v41 = vrot.slane %v13653_v46, 9  ;;  %v6855_v15 = vrot.slane %v13633_v7, 5  ;;  %v5829_v29 = vshll.u32 %v9968_v43, 16  ;;  %v9971_v55 = vld [vmem:[#allocation2 + $0x3c] sm:$0xf]  ;;  %v13672_v21 = vpop.permute.xlu1 %6995 }
 0x340   : > { %7407 = vrot.lane.b32.xlu0 %v9133_v3, %s10084_s26  ;;  %v5833_v34 = vshrl.u32 %v9968_v43, 16  ;;  %v5464_v36 = vsel %vm10351_vm14, %v5459_v45, %v5463_v60  ;;  %v5839_v27 = vshll.u32 %v9969_v6, 16  ;;  %v5826_v50 = vor.u32 %v13223_v49, %v13214_v20 }
 0x341   : > { %v5474_v2 = vsel %vm10351_vm14, %v5469_v52, %v5473_v62  ;;  %v5831_v47 = vrot.slane %v5829_v29, 5  ;;  %v9028_v46 = vcombine.low %v9971_v55, %v9970_v37  ;;  %v13674_v60 = vrot.slane %v6644_v33, 4  ;;  %v13679_v52 = vpop.f32.mrb[64].mxu0  ;;  %v13709_v37 = vpop.permute.xlu0 %7395 }
 0x342   : > { %v9054_v16 = vcombine.low %v5464_v36, %v5474_v2  ;;  %v5835_v25 = vrot.slane %v5833_v34, 4  ;;  %v13676_v3 = vrot.slane %v6647_v8, 5  ;;  %v5841_v62 = vrot.slane %v5839_v27, 5  ;;  %v13686_v34 = vpop.f32.mrb[65].mxu0  ;;  %v13691_v2 = vld [vmem:[#allocation2 + $0xc4] sm:$0xf] }
 0x343   : > { %v5646_v45 = vrot.slane %v13619_v9, 5  ;;  %v7572_v49 = vsel %vm987_vm15, %v9028_v46, %v13408_v40  ;;  %v8990_v43 = vrot.slane %v5490_v13, 9  ;;  %v6626_v29 = vor.u32 %v13642_v39, %v13640_v42  ;;  %v13693_v6 = vpop.f32.mrb[66].mxu0 }
 0x344   : > { %7009 = vrot.lane.b32.xlu1 %v9054_v16, %s10086_s28  ;;  %v5836_v20 = vor.u32 %v5835_v25, %v5831_v47  ;;  %v5827_v33 = vrot.slane %v5826_v50, 4  ;;  %v7614_v8 = vsel %vm3656_vm1, %v7572_v49, %v13349_v32  ;;  %v5649_v9 = vrot.slane %v13623_v63, 5  ;;  %v13702_v50 = vpop.f32.mrb[67].mxu0  ;;  %v6098_v25 = vld [vmem:[#allocation2 + $0xc0] sm:$0xe] }
 0x345   : > { %v5648_v36 = vrot.slane %v5646_v45, 4  ;;  %v13697_v40 = vsel %vm3689_vm2, %v7614_v8, %v13381_v53  ;;  %v5647_v42 = vsel %vm10253_vm11, %v8990_v43, %v5646_v45  ;;  %v6629_v39 = vshll.u32 %v13530_v18, 16  ;;  %v13711_v53 = vpop.f32.mrb[68].mxu0  ;;  %v13718_v43 = vpop.permute.xlu1 %7077 }
 0x346   : > { %v5837_v27 = vrot.slane %v5836_v20, 4  ;;  %v6627_v63 = vrot.slane %v6626_v29, 4  ;;  %v6635_v13 = vrot.slane %v6633_v23, 4  ;;  %v6639_v16 = vshll.u32 %v13538_v10, 16  ;;  %14510 = vst [vmem:[#allocation7_spill] sm:$0xff] %v13711_v53  ;;  %v13720_v18 = vpop.f32.mrb[69].mxu0 }
 0x347   : > { %v5650_v32 = vsel %vm10253_vm11, %v5648_v36, %v5649_v9  ;;  %v6631_v45 = vrot.slane %v6629_v39, 5  ;;  %v13715_v20 = vld [vmem:[#allocation2 + $0xc8] sm:$0x1]  ;;  %v6254_v49 = vrot.slane %v13691_v2, 5  ;;  %14511 = vst [vmem:[#allocation16_spill] sm:$0xff] %v13720_v18  ;;  %v6657_v10 = vshrl.u32 %v13633_v7, 16 }
 0x348   : > { %v5842_v55 = vsel %vm10351_vm14, %v5837_v27, %v5841_v62  ;;  %v9070_v46 = vcombine.low %v5647_v42, %v5650_v32  ;;  %v6856_v23 = vsel %vm10253_vm11, %v9021_v41, %v6855_v15  ;;  %v6857_v29 = vrot.slane %v6855_v15, 4  ;;  %v13727_v62 = vpop.f32.mrb[70].mxu0  ;;  %v13730_v39 = vld [vmem:[#allocation2 + $0xc0] sm:$0xf] }
 0x349   : > { %v5832_v8 = vsel %vm10351_vm14, %v5827_v33, %v5831_v47  ;;  %v6636_v9 = vor.u32 %v6635_v13, %v6631_v45  ;;  %v9006_v27 = vrot.slane %v6098_v25, 9  ;;  %v6256_v42 = vrot.slane %v6254_v49, 4  ;;  %v13732_v32 = vpop.f32.mrb[71].mxu0  ;;  %v6305_v47 = vld [vmem:[#allocation2 + $0xc8] sm:$0x1] }
 0x34a   : > { %v9092_v36 = vcombine.low %v5832_v8, %v5842_v55  ;;  %7089 = vrot.lane.b32.xlu1 %v9070_v46, %s10084_s26  ;;  %v6641_v53 = vrot.slane %v6639_v16, 5  ;;  %v6257_v18 = vrot.slane %v13715_v20, 5  ;;  %v9086_v41 = vcombine.low %v13730_v39, %v13691_v2 }
 0x34b   : > { %v7776_v15 = vsel %vm3689_vm2, %v13657_v1, %v13462_v24  ;;  %v6632_v13 = vsel %vm10351_vm14, %v6627_v63, %v6631_v45  ;;  %v6637_v25 = vrot.slane %v6636_v9, 4  ;;  %v6650_v16 = vor.u32 %v13676_v3, %v13674_v60  ;;  %v13761_v45 = vpop.permute.xlu1 %7173 }
 0x34c   : > { %v7700_v33 = vsel %vm987_vm15, %v9092_v36, %v13405_v56  ;;  %8170 = vmatprep.mubr.bf16.mxu1 %v7776_v15  ;;  %v6255_v46 = vsel %vm10253_vm11, %v9006_v27, %v6254_v49  ;;  %v6258_v24 = vsel %vm10253_vm11, %v6256_v42, %v6257_v18  ;;  %v6653_v56 = vshll.u32 %v13633_v7, 16  ;;  %v9972_v18 = vld [vmem:[#allocation2 + $0x58] sm:$0xf] }
 0x34d   : > { %v13748_v55 = vsel %vm3656_vm1, %v7700_v33, %v13432_v0  ;;  %8171 = vmatmul.mubr.bf16.gmra.mrb[48].mxu1 %v13595_v11  ;;  %v6642_v1 = vsel %vm10351_vm14, %v6637_v25, %v6641_v53  ;;  %v6651_v60 = vrot.slane %v6650_v16, 4  ;;  %v6659_v3 = vrot.slane %v6657_v10, 4  ;;  %v13759_v0 = vpop.permute.xlu0 %7473  ;;  %v9973_v11 = vld [vmem:[#allocation2 + $0x5c] sm:$0x1] }
 0x34e   : > { %7185 = vrot.lane.b32.xlu1 %v9086_v41, %s10085_s27  ;;  %v6663_v63 = vshll.u32 %v6305_v47, 16  ;;  %v9148_v49 = vcombine.low %v6632_v13, %v6642_v1  ;;  %v6655_v8 = vrot.slane %v6653_v56, 5  ;;  %v6858_v36 = vrot.slane %v6305_v47, 5  ;;  %v13765_v41 = vld [vmem:[#allocation2 + $0xcc] sm:$0xf] }
 0x34f   : > { %v5853_v9 = vshll.u32 %v9972_v18, 16  ;;  %v9118_v7 = vcombine.low %v6255_v46, %v6258_v24  ;;  %v5857_v27 = vshrl.u32 %v9972_v18, 16  ;;  %v5863_v42 = vshll.u32 %v9973_v11, 16  ;;  %v9974_v56 = vld [vmem:[#allocation2 + $0x4c] sm:$0xf] }
 0x350   : > { %v5850_v53 = vor.u32 %v13229_v59, %v13225_v26  ;;  %7485 = vrot.lane.b32.xlu0 %v9148_v49, %s10085_s27  ;;  %v6660_v10 = vor.u32 %v6659_v3, %v6655_v8  ;;  %v6665_v15 = vrot.slane %v6663_v63, 5  ;;  %v6859_v33 = vsel %vm10253_vm11, %v6857_v29, %v6858_v36  ;;  %v9975_v1 = vld [vmem:[#allocation2 + $0x48] sm:$0xf]  ;;  %v9976_v63 = vld [vmem:[#allocation2 + $0xd0] sm:$0xf] }
 0x351   : > { %v5855_v13 = vrot.slane %v5853_v9, 5  ;;  %v6656_v47 = vsel %vm10351_vm14, %v6651_v60, %v6655_v8  ;;  %v9165_v25 = vcombine.low %v6856_v23, %v6859_v33  ;;  %v5859_v16 = vrot.slane %v5857_v27, 4  ;;  %v13777_v23 = vpop.permute.xlu0 %7301  ;;  %v13779_v8 = vpop.permute.xlu1 %6997 }
 0x352   : > { %v5851_v46 = vrot.slane %v5850_v53, 4  ;;  %v6661_v24 = vrot.slane %v6660_v10, 4  ;;  %v9029_v26 = vcombine.low %v9975_v1, %v9974_v56  ;;  %v6668_v59 = vshrl.u32 %v13765_v41, 16 }
 0x353   : > { %v6671_v49 = vshll.u32 %v13765_v41, 16  ;;  %7855 = vst.msk [vmem:[#allocation3 + $0x160] sm:$0xff] %vm987_vm15, %v9165_v25  ;;  %v5860_v3 = vor.u32 %v5859_v16, %v5855_v13  ;;  %v5865_v44 = vrot.slane %v5863_v42, 5  ;;  %v6677_v60 = vshll.u32 %v9976_v63, 16  ;;  %v9977_v16 = vld [vmem:[#allocation2 + $0xd4] sm:$0x1] }
 0x354   : > { %v5856_v29 = vsel %vm10351_vm14, %v5851_v46, %v5855_v13  ;;  %7313 = vrot.lane.b32.xlu0 %v9118_v7, %s10086_s28  ;;  %v6666_v36 = vsel %vm10351_vm14, %v6661_v24, %v6665_v15  ;;  %v7575_v18 = vsel %vm987_vm15, %v9029_v26, %v13504_v58  ;;  %v6670_v9 = vrot.slane %v6668_v59, 4  ;;  %s9240_s28 = sshll.u32 %s10161_s13, 10  ;;  %s10087_s13 = smov [#allocation4]  }
 0x355   : > { %v6673_v27 = vrot.slane %v6671_v49, 5  ;;  %v9149_v11 = vcombine.low %v6656_v47, %v6666_v36  ;;  %v5861_v42 = vrot.slane %v5860_v3, 4  ;;  %v7616_v53 = vsel %vm3656_vm1, %v7575_v18, %v13443_v17  ;;  %v13788_v33 = vpop.f32.mrb[72].mxu0  ;;  %v9978_v17 = vld [vmem:[#allocation2 + $0x64] sm:$0xf]  ;;  %s14331_s23 = scalar_lea.hbm %s14383_s9, %s9240_s28  ;;  %s10023_s14 = sshll.u32 %s10087_s13, 4  ;;  %s10024_s14 = int_to_ptr.vmem [resolvable:$false] %s10023_s14 }
 0x356   : > { %v6679_v10 = vrot.slane %v6677_v60, 5  ;;  %v7654_v13 = vsel %vm3689_vm2, %v7616_v53, %v13469_v12  ;;  %v6681_v25 = vshrl.u32 %v9976_v63, 16  ;;  %v6687_v15 = vshll.u32 %v9977_v16, 16  ;;  %v13792_v46 = vpop.f32.mrb[73].mxu0  ;;  %v9979_v36 = vld [vmem:[#allocation2 + $0x68] sm:$0x1] }
 0x357   : > { %v6674_v7 = vor.u32 %v6673_v27, %v6670_v9  ;;  %v5866_v58 = vsel %vm10351_vm14, %v5861_v42, %v5865_v44  ;;  %v7779_v47 = vsel %vm3689_vm2, %v13748_v55, %v13555_v38  ;;  %v5877_v24 = vshll.u32 %v9978_v17, 16  ;;  %v13799_v1 = vpop.f32.mrb[74].mxu0  ;;  %v13808_v55 = vpop.permute.xlu0 %7397  ;;  %v9980_v27 = vld [vmem:[#allocation2 + $0x58] sm:$0xf]  ;;  %s10025_s16 = scalar_lea.vmem %s10024_s14, 2048 }
 0x358   : > { %v5881_v56 = vshrl.u32 %v9978_v17, 16  ;;  %7487 = vrot.lane.b32.xlu0 %v9149_v11, %s10085_s27  ;;  %v9093_v12 = vcombine.low %v5856_v29, %v5866_v58  ;;  %v9134_v26 = vcombine.low %v13765_v41, %v9976_v63  ;;  %v6683_v49 = vrot.slane %v6681_v25, 4  ;;  %8178 = vmatprep.mubr.bf16.mxu1 %v7779_v47  ;;  %v13803_v3 = vpop.f32.mrb[75].mxu0  ;;  %v13810_v9 = vpop.permute.xlu1 %7079  ;;  %v9981_v11 = vld [vmem:[#allocation2 + $0x54] sm:$0xf] }
 0x359   : > { %v6675_v59 = vrot.slane %v6674_v7, 4  ;;  %v5879_v44 = vrot.slane %v5877_v24, 5  ;;  %v5887_v18 = vshll.u32 %v9979_v36, 16  ;;  %v5874_v38 = vor.u32 %v13587_v22, %v13490_v51  ;;  %8179 = vmatmul.mubr.bf16.gmra.mrb[52].mxu1 %v13697_v40  ;;  %v9985_v36 = vld [vmem:[#allocation2 + $0x6c] sm:$0xf] }
 0x35a   : > { %v5883_v60 = vrot.slane %v5881_v56, 4  ;;  %v7703_v41 = vsel %vm987_vm15, %v9093_v12, %v13502_v54  ;;  %v6684_v29 = vor.u32 %v6683_v49, %v6679_v10  ;;  %v6689_v63 = vrot.slane %v6687_v15, 5  ;;  %v9983_v12 = vld [vmem:[#allocation2 + $0x60] sm:$0xf]  ;;  %v7903_v19 = vld [vmem:[#allocation3 + $0x160] sm:$0xff] }
 0x35b   : > { %v9030_v42 = vcombine.low %v9981_v11, %v9980_v27  ;;  %v7744_v53 = vsel %vm3656_vm1, %v7703_v41, %v13521_v31  ;;  %v5875_v25 = vrot.slane %v5874_v38, 4  ;;  %v6680_v51 = vsel %vm10351_vm14, %v6675_v59, %v6679_v10  ;;  %v9984_v59 = vld [vmem:[#allocation2 + $0x70] sm:$0xf] }
 0x35c   : > { %v5884_v7 = vor.u32 %v5883_v60, %v5879_v44  ;;  %7409 = vrot.lane.b32.xlu0 %v9134_v26, %s10084_s26  ;;  %v6685_v22 = vrot.slane %v6684_v29, 4  ;;  %v7782_v54 = vsel %vm3689_vm2, %v7744_v53, %v13635_v48  ;;  %v5889_v15 = vrot.slane %v5887_v18, 5  ;;  %v13833_v48 = vpop.permute.xlu0 %7475  ;;  %v13835_v24 = vpop.permute.xlu1 %7175 }
 0x35d   : > { %v7578_v40 = vsel %vm987_vm15, %v9030_v42, %v13597_v4  ;;  %8186 = vmatprep.mubr.bf16.mxu1 %v7782_v54  ;;  %v5880_v4 = vsel %vm10351_vm14, %v5875_v25, %v5879_v44  ;;  %v5901_v49 = vshll.u32 %v9984_v59, 16  ;;  %v5905_v60 = vshrl.u32 %v9984_v59, 16  ;;  %v9988_v42 = vld [vmem:[#allocation2 + $0x6c] sm:$0xf] }
 0x35e   : > { %v5885_v16 = vrot.slane %v5884_v7, 4  ;;  %v7618_v58 = vsel %vm3656_vm1, %v7578_v40, %v13532_v57  ;;  %v6690_v31 = vsel %vm10351_vm14, %v6685_v22, %v6689_v63  ;;  %v9982_v57 = vld [vmem:[#allocation2 + $0x64] sm:$0xf]  ;;  %v5892_v18 = vshrl.u32 %v9985_v36, 16  ;;  %v9986_v63 = vld [vmem:[#allocation2 + $0x7c] sm:$0xf] }
 0x35f   : > { %v7657_v47 = vsel %vm3689_vm2, %v7618_v58, %v13561_v35  ;;  %v9150_v10 = vcombine.low %v6680_v51, %v6690_v31  ;;  %v9031_v26 = vcombine.low %v9983_v12, %v9982_v57  ;;  %v5895_v38 = vshll.u32 %v9985_v36, 16  ;;  %v9369_v57 = vld [vmem:[%s10224_s25 + $0x8] sm:$0xff]   ;;  %v9991_v36 = vld [vmem:[#allocation2 + $0x80] sm:$0x1] }
 0x360   : > { %v5890_v17 = vsel %vm10351_vm14, %v5885_v16, %v5889_v15  ;;  %v5925_v27 = vshll.u32 %v9986_v63, 16  ;;  %v5929_v11 = vshrl.u32 %v9986_v63, 16  ;;  %v13852_v7 = vpop.permute.xlu0 %7303  ;;  %v5903_v51 = vrot.slane %v5901_v49, 5 }
 0x361   : > { %v9094_v56 = vcombine.low %v5880_v4, %v5890_v17  ;;  %7489 = vrot.lane.b32.xlu0 %v9150_v10, %s10085_s27  ;;  %8187 = vmatmul.mubr.bf16.gmra.mrb[56].mxu1 %v7654_v13  ;;  %v7581_v44 = vsel %vm987_vm15, %v9031_v26, %v13672_v21  ;;  %v9987_v21 = vld [vmem:[#allocation2 + $0x70] sm:$0xf]  ;;  %v5907_v22 = vrot.slane %v5905_v60, 4  ;;  %v5894_v40 = vrot.slane %v5892_v18, 4  ;;  %v9242_v10 = vld [vmem:[%s10224_s25] sm:$0xff]  }
 0x362   : > { %v7620_v29 = vsel %vm3656_vm1, %v7581_v44, %v13621_v61  ;;  %v9032_v53 = vcombine.low %v9988_v42, %v9987_v21  ;;  %v9989_v61 = vld [vmem:[#allocation2 + $0x78] sm:$0xf]  ;;  %v5897_v54 = vrot.slane %v5895_v38, 5  ;;  %v5927_v16 = vrot.slane %v5925_v27, 5  ;;  %v9990_v26 = vld [vmem:[#allocation2 + $0x74] sm:$0x1] }
 0x363   : > { %v7706_v35 = vsel %vm987_vm15, %v9094_v56, %v13583_v30  ;;  %v13848_v13 = vsel %vm3689_vm2, %v7620_v29, %v13647_v28  ;;  %v5916_v25 = vshrl.u32 %v9989_v61, 16  ;;  %v5919_v28 = vshll.u32 %v9989_v61, 16  ;;  %v9370_v38 = vld [vmem:[%s10224_s25 + $0x10] sm:$0xff]  }
 0x364   : > { %v7746_v41 = vsel %vm3656_vm1, %v7706_v35, %v13612_v5  ;;  %v13854_v5 = vpop.permute.xlu1 %6999  ;;  %v5931_v15 = vrot.slane %v5929_v11, 4  ;;  %v5908_v56 = vor.u32 %v5907_v22, %v5903_v51  ;;  %v13866_v12 = vpop.permute.xlu0 %7399  ;;  %v5911_v35 = vshll.u32 %v9990_v26, 16  ;;  %v9992_v11 = vld [vmem:[#allocation2 + $0x84] sm:$0xf] }
 0x365   : > { %v7785_v30 = vsel %vm3689_vm2, %v7746_v41, %v13759_v0  ;;  %v7584_v0 = vsel %vm987_vm15, %v9032_v53, %v13779_v8  ;;  %v5918_v17 = vrot.slane %v5916_v25, 4  ;;  %v5921_v4 = vrot.slane %v5919_v28, 5 }
 0x366   : > { %8194 = vmatprep.mubr.bf16.mxu1 %v7785_v30  ;;  %v7622_v58 = vsel %vm3656_vm1, %v7584_v0, %v13718_v43  ;;  %v5898_v59 = vor.u32 %v5897_v54, %v5894_v40  ;;  %v5932_v49 = vor.u32 %v5931_v15, %v5927_v16  ;;  %v9243_v43 = vunpack.c.l.bf16 %v9242_v10  ;;  %v9371_v54 = vld [vmem:[%s10224_s25 + $0x18] sm:$0xff]  }
 0x367   : > { %v13862_v31 = vsel %vm3689_vm2, %v7622_v58, %v13761_v45  ;;  %v9244_v60 = vunpack.c.h.bf16 %v9242_v10  ;;  %v9247_v44 = vunpack.c.l.bf16 %v9369_v57  ;;  %v5909_v45 = vrot.slane %v5908_v56, 4 }
 0x368   : > { %v13868_v8 = vpop.permute.xlu1 %7081  ;;  %v5935_v18 = vshll.u32 %v9991_v36, 16  ;;  %v9248_v41 = vunpack.c.h.bf16 %v9369_v57  ;;  %v5913_v29 = vrot.slane %v5911_v35, 5  ;;  %v5899_v30 = vrot.slane %v5898_v59, 4  ;;  %v7478_v25 = vpop.permute.xlu0 %7477  ;;  %v9372_v59 = vld [vmem:[%s10224_s25 + $0x20] sm:$0xff]  }
 0x369   : > { %8195 = vmatmul.mubr.bf16.gmra.mrb[60].mxu1 %v7657_v47  ;;  %v5922_v47 = vor.u32 %v5921_v4, %v5918_v17  ;;  %v5933_v63 = vrot.slane %v5932_v49, 4  ;;  %v988_v27 = vsel %vm987_vm15, %v9243_v43, 0.0  ;;  %v5940_v21 = vshrl.u32 %v9992_v11, 16 }
 0x36a   : > { %v9251_v42 = vunpack.c.l.bf16 %v9370_v38  ;;  %v989_v53 = vsel %vm987_vm15, %v9244_v60, 0.0  ;;  %v991_v61 = vsel %vm987_vm15, %v9247_v44, 0.0  ;;  %v5914_v22 = vsel %vm10351_vm14, %v5909_v45, %v5913_v29  ;;  %v13889_v45 = vld [vmem:[%s10224_s25 + $0x28] sm:$0xff]  }
 0x36b   : > { %v5937_v40 = vrot.slane %v5935_v18, 5  ;;  %v5923_v0 = vrot.slane %v5922_v47, 4  ;;  %v990_v15 = vadd.f32 %v989_v53, %v988_v27  ;;  %v5943_v58 = vshll.u32 %v9992_v11, 16 }
 0x36c   : > { %v13874_v28 = vpop.permute.xlu1 %7177  ;;  %v9252_v10 = vunpack.c.h.bf16 %v9370_v38  ;;  %v993_v17 = vsel %vm987_vm15, %v9248_v41, 0.0  ;;  %v5904_v4 = vsel %vm10351_vm14, %v5899_v30, %v5903_v51  ;;  %v9255_v35 = vunpack.c.l.bf16 %v9371_v54  ;;  %v13894_v41 = vpop.permute.xlu0 %7305  ;;  %v13898_v30 = vld [vmem:[#allocation2 + $0x90] sm:$0xf] }
 0x36d   : > { %v5938_v56 = vsel %vm10351_vm14, %v5933_v63, %v5937_v40  ;;  %v992_v57 = vadd.f32 %v991_v61, %v990_v15  ;;  %v9095_v26 = vcombine.low %v5904_v4, %v5914_v22  ;;  %v995_v49 = vsel %vm987_vm15, %v9251_v42, 0.0 }
 0x36e   : > { %v5942_v43 = vrot.slane %v5940_v21, 4  ;;  %v5928_v60 = vsel %vm10351_vm14, %v5923_v0, %v5927_v16  ;;  %v9256_v44 = vunpack.c.h.bf16 %v9371_v54  ;;  %v5945_v18 = vrot.slane %v5943_v58, 5  ;;  %v9994_v0 = vld [vmem:[#allocation2 + $0x88] sm:$0xf] }
 0x36f   : > { %v994_v36 = vadd.f32 %v993_v17, %v992_v57  ;;  %v7709_v51 = vsel %vm987_vm15, %v9095_v26, %v13670_v14  ;;  %v9096_v47 = vcombine.low %v5928_v60, %v5938_v56  ;;  %v997_v38 = vsel %vm987_vm15, %v9252_v10, 0.0  ;;  %v9996_v10 = vld [vmem:[#allocation2 + $0x78] sm:$0xf] }
 0x370   : > { %v13896_v29 = vpop.permute.xlu1 %7001  ;;  %v5964_v63 = vshrl.u32 %v13898_v30, 16  ;;  %v7748_v16 = vsel %vm3656_vm1, %v7709_v51, %v13709_v37  ;;  %v9259_v27 = vunpack.c.l.bf16 %v9372_v59  ;;  %v9260_v14 = vunpack.c.h.bf16 %v9372_v59  ;;  %v13919_v60 = vpop.permute.xlu0 %7401 }
 0x371   : > { %v996_v11 = vadd.f32 %v995_v49, %v994_v36  ;;  %v7712_v21 = vsel %vm987_vm15, %v9096_v47, %v13777_v23  ;;  %v9263_v42 = vunpack.c.l.bf16 %v13889_v45  ;;  %v999_v53 = vsel %vm987_vm15, %v9255_v35, 0.0  ;;  %v9995_v23 = vld [vmem:[#allocation2 + $0x7c] sm:$0xf]  ;;  %v9997_v49 = vld [vmem:[#allocation2 + $0x8c] sm:$0x1] }
 0x372   : > { %v1001_v22 = vsel %vm987_vm15, %v9256_v44, 0.0  ;;  %v7788_v40 = vsel %vm3689_vm2, %v7748_v16, %v13833_v48  ;;  %v5949_v54 = vshll.u32 %v9994_v0, 16  ;;  %v7750_v37 = vsel %vm3656_vm1, %v7712_v21, %v13808_v55  ;;  %v9374_v48 = vld [vmem:[%s10224_s25 + $0x30] sm:$0xff]  }
 0x373   : > { %v998_v61 = vadd.f32 %v997_v38, %v996_v11  ;;  %v5953_v15 = vshrl.u32 %v9994_v0, 16  ;;  %v5946_v58 = vor.u32 %v5945_v18, %v5942_v43  ;;  %v9033_v17 = vcombine.low %v9996_v10, %v9995_v23  ;;  %8202 = vmatprep.mubr.bf16.mxu1 %v7788_v40 }
 0x374   : > { %v9264_v4 = vunpack.c.h.bf16 %v13889_v45  ;;  %v5951_v57 = vrot.slane %v5949_v54, 5  ;;  %8203 = vmatmul.mubr.bf16.gmra.mrb[64].mxu1 %v13848_v13  ;;  %v7791_v26 = vsel %vm3689_vm2, %v7750_v37, %v7478_v25  ;;  %v1003_v35 = vsel %vm987_vm15, %v9259_v27, 0.0  ;;  %v13921_v44 = vpop.permute.xlu1 %7083  ;;  %v9998_v25 = vld [vmem:[#allocation2 + $0x94] sm:$0xf] }
 0x375   : > { %v1000_v56 = vadd.f32 %v999_v53, %v998_v61  ;;  %v5955_v59 = vrot.slane %v5953_v15, 4  ;;  %v5959_v55 = vshll.u32 %v9997_v49, 16  ;;  %v7587_v43 = vsel %vm987_vm15, %v9033_v17, %v13854_v5  ;;  %8210 = vmatprep.mubr.bf16.mxu1 %v7791_v26  ;;  %v10000_v53 = vld [vmem:[#allocation2 + $0x84] sm:$0xf] }
 0x376   : > { %v1005_v36 = vsel %vm987_vm15, %v9260_v14, 0.0  ;;  %v7624_v13 = vsel %vm3656_vm1, %v7587_v43, %v13810_v9  ;;  %v5973_v18 = vshll.u32 %v9998_v25, 16  ;;  %v5947_v47 = vrot.slane %v5946_v58, 4  ;;  %v9999_v14 = vld [vmem:[#allocation2 + $0x88] sm:$0xf] }
 0x377   : > { %v1002_v45 = vadd.f32 %v1001_v22, %v1000_v56  ;;  %v5956_v51 = vor.u32 %v5955_v59, %v5951_v57  ;;  %v13928_v38 = vsel %vm3689_vm2, %v7624_v13, %v13835_v24  ;;  %v5977_v5 = vshrl.u32 %v9998_v25, 16  ;;  %v9375_v24 = vld [vmem:[%s10224_s25 + $0x38] sm:$0xff]  }
 0x378   : > { %v5967_v27 = vshll.u32 %v13898_v30, 16  ;;  %v9267_v11 = vunpack.c.l.bf16 %v9374_v48  ;;  %v9034_v61 = vcombine.low %v10000_v53, %v9999_v14  ;;  %v9268_v22 = vunpack.c.h.bf16 %v9374_v48 }
 0x379   : > { %v1004_v21 = vadd.f32 %v1003_v35, %v1002_v45  ;;  %v1007_v40 = vsel %vm987_vm15, %v9263_v42, 0.0  ;;  %v5957_v0 = vrot.slane %v5956_v51, 4  ;;  %v5961_v54 = vrot.slane %v5959_v55, 5 }
 0x37a   : > { %v1009_v58 = vsel %vm987_vm15, %v9264_v4, 0.0  ;;  %v13940_v23 = vrot.slane %v5973_v18, 5  ;;  %v7590_v10 = vsel %vm987_vm15, %v9034_v61, %v13896_v29  ;;  %v5952_v42 = vsel %vm10351_vm14, %v5947_v47, %v5951_v57  ;;  %v10001_v47 = vld [vmem:[#allocation2 + $0x94] sm:$0xf] }
 0x37b   : > { %v1006_v15 = vadd.f32 %v1005_v36, %v1004_v21  ;;  %v5962_v56 = vsel %vm10351_vm14, %v5957_v0, %v5961_v54  ;;  %v5979_v26 = vrot.slane %v5977_v5, 4  ;;  %v7626_v48 = vsel %vm3656_vm1, %v7590_v10, %v13868_v8  ;;  %v7180_v4 = vpop.permute.xlu1 %7179  ;;  %v9376_v36 = vld [vmem:[%s10224_s25 + $0x40] sm:$0xff]   ;;  %v10003_v21 = vld [vmem:[#allocation2 + $0x98] sm:$0x1] }
 0x37c   : > { %v5966_v59 = vrot.slane %v5964_v63, 4  ;;  %v9097_v29 = vcombine.low %v5952_v42, %v5962_v56  ;;  %8211 = vmatmul.mubr.bf16.gmra.mrb[68].mxu1 %v13862_v31  ;;  %v5969_v55 = vrot.slane %v5967_v27, 5  ;;  %v9271_v43 = vunpack.c.l.bf16 %v9375_v24 }
 0x37d   : > { %v1008_v49 = vadd.f32 %v1007_v40, %v1006_v15  ;;  %v1011_v45 = vsel %vm987_vm15, %v9267_v11, 0.0  ;;  %v13958_v57 = vsel %vm3689_vm2, %v7626_v48, %v13874_v28  ;;  %v9272_v25 = vunpack.c.h.bf16 %v9375_v24  ;;  %v10002_v28 = vld [vmem:[#allocation2 + $0x90] sm:$0xf] }
 0x37e   : > { %v13930_v16 = vpop.f32.mrb[76].mxu0  ;;  %v7715_v8 = vsel %vm987_vm15, %v9097_v29, %v13852_v7  ;;  %v1013_v30 = vsel %vm987_vm15, %v9268_v22, 0.0  ;;  %v5980_v63 = vor.u32 %v5979_v26, %v13940_v23  ;;  %v9035_v5 = vcombine.low %v10002_v28, %v10001_v47  ;;  %v10005_v47 = vld [vmem:[#allocation2 + $0x9c] sm:$0xf] }
 0x37f   : > { %v13933_v9 = vpop.f32.mrb[77].mxu0  ;;  %v1010_v13 = vadd.f32 %v1009_v58, %v1008_v49  ;;  %v7752_v31 = vsel %vm3656_vm1, %v7715_v8, %v13866_v12  ;;  %v9275_v27 = vunpack.c.l.bf16 %v9376_v36  ;;  %v1015_v11 = vsel %vm987_vm15, %v9271_v43, 0.0  ;;  %v9377_v12 = vld [vmem:[%s10224_s25 + $0x48] sm:$0xff]  }
 0x380   : > { %v13936_v37 = vpop.f32.mrb[78].mxu0  ;;  %v5983_v7 = vshll.u32 %v10003_v21, 16  ;;  %v5970_v14 = vor.u32 %v5969_v55, %v5966_v59  ;;  %v9276_v0 = vunpack.c.h.bf16 %v9376_v36  ;;  %v1017_v54 = vsel %vm987_vm15, %v9272_v25, 0.0 }
 0x381   : > { %v13944_v17 = vpop.f32.mrb[79].mxu0  ;;  %v1012_v18 = vadd.f32 %v1011_v45, %v1010_v13  ;;  %v5981_v24 = vrot.slane %v5980_v63, 4  ;;  %v9279_v56 = vunpack.c.l.bf16 %v9377_v12  ;;  %v1019_v42 = vsel %vm987_vm15, %v9275_v27, 0.0  ;;  %v9379_v13 = vld [vmem:[%s10224_s25 + $0x58] sm:$0xff]   ;;  %v10004_v63 = vld [vmem:[#allocation2 + $0xa0] sm:$0xf] }
 0x382   : > { %v5985_v26 = vrot.slane %v5983_v7, 5  ;;  %v5971_v48 = vrot.slane %v5970_v14, 4  ;;  %v9280_v49 = vunpack.c.h.bf16 %v9377_v12  ;;  %v1021_v29 = vsel %vm987_vm15, %v9276_v0, 0.0 }
 0x383   : > { %v7480_v35 = vpop.permute.xlu0 %7479  ;;  %v1014_v22 = vadd.f32 %v1013_v30, %v1012_v18  ;;  %v5997_v18 = vshll.u32 %v10004_v63, 16  ;;  %v5988_v28 = vshrl.u32 %v10005_v47, 16  ;;  %v9287_v21 = vunpack.c.l.bf16 %v9379_v13 }
 0x384   : > { %v7794_v51 = vsel %vm3689_vm2, %v7752_v31, %v7480_v35  ;;  %v9378_v35 = vld [vmem:[%s10224_s25 + $0x50] sm:$0xff]   ;;  %v5976_v45 = vsel %vm10351_vm14, %v5971_v48, %v13940_v23  ;;  %v1025_v31 = vsel %vm987_vm15, %v9280_v49, 0.0  ;;  %vm1060_vm0 = vcmask 254976  }
 0x385   : > { %8218 = vmatprep.mubr.bf16.mxu1 %v7794_v51  ;;  %v1016_v58 = vadd.f32 %v1015_v11, %v1014_v22  ;;  %v9283_v43 = vunpack.c.l.bf16 %v9378_v35  ;;  %v9284_v30 = vunpack.c.h.bf16 %v9378_v35  ;;  %v6001_v51 = vshrl.u32 %v10004_v63, 16 }
 0x386   : > { %8219 = vmatmul.mubr.bf16.gmra.mrb[72].mxu1 %v13928_v38  ;;  %v1023_v38 = vsel %vm987_vm15, %v9279_v56, 0.0  ;;  %v5991_v11 = vshll.u32 %v10005_v47, 16 }
 0x387   : > { %v13969_v53 = vpop.permute.xlu0 %7307  ;;  %v1018_v59 = vadd.f32 %v1017_v54, %v1016_v58  ;;  %v1027_v23 = vsel %vm987_vm15, %v9283_v43, 0.0  ;;  %v1029_v0 = vsel %vm987_vm15, %v9284_v30, 0.0  ;;  %v5999_v54 = vrot.slane %v5997_v18, 5 }
 0x388   : > { %v5990_v58 = vrot.slane %v5988_v28, 4  ;;  %v5993_v56 = vrot.slane %v5991_v11, 5 }
 0x389   : > { %v7004_v61 = vpop.permute.xlu1 %7003 }
 0x38a   : > { %v7593_v40 = vsel %vm987_vm15, %v9035_v5, %v7004_v61  ;;  %v9380_v61 = vld [vmem:[%s10224_s25 + $0x60] sm:$0xff]  }
 0x38b   : > { %v7628_v15 = vsel %vm3656_vm1, %v7593_v40, %v13921_v44  ;;  %v5986_v44 = vsel %vm10351_vm14, %v5981_v24, %v5985_v26  ;;  %v13985_v55 = vpop.permute.xlu0 %7403  ;;  %v9288_v40 = vunpack.c.h.bf16 %v9379_v13  ;;  %v6003_v24 = vrot.slane %v6001_v51, 4  ;;  %v9381_v26 = vld [vmem:[%s10224_s25 + $0x68] sm:$0xff]  }
 0x38c   : > { %v13977_v10 = vsel %vm3689_vm2, %v7628_v15, %v7180_v4  ;;  %v1020_v4 = vadd.f32 %v1019_v42, %v1018_v59  ;;  %v9098_v25 = vcombine.low %v5976_v45, %v5986_v44  ;;  %v9291_v42 = vunpack.c.l.bf16 %v9380_v61  ;;  %v10006_v44 = vld [vmem:[#allocation2 + $0xa0] sm:$0xf] }
 0x38d   : > { %v7086_v36 = vpop.permute.xlu1 %7085  ;;  %v9292_v35 = vunpack.c.h.bf16 %v9380_v61  ;;  %v1033_v59 = vsel %vm987_vm15, %v9288_v40, 0.0  ;;  %v6004_v49 = vor.u32 %v6003_v24, %v5999_v54  ;;  %v9296_v51 = vunpack.c.h.bf16 %v9381_v26  ;;  %v9383_v61 = vld [vmem:[%s10224_s25 + $0x78] sm:$0xff]  }
 0x38e   : > { %v1022_v8 = vadd.f32 %v1021_v29, %v1020_v4  ;;  %v7718_v27 = vsel %vm987_vm15, %v9098_v25, %v13894_v41  ;;  %v10007_v4 = vld [vmem:[#allocation2 + $0x9c] sm:$0xf]  ;;  %v1035_v45 = vsel %vm987_vm15, %v9291_v42, 0.0 }
 0x38f   : > { %v7754_v7 = vsel %vm3656_vm1, %v7718_v27, %v13919_v60  ;;  %v1031_v60 = vsel %vm987_vm15, %v9287_v21, 0.0  ;;  %v9036_v43 = vcombine.low %v10007_v4, %v10006_v44  ;;  %v1037_v47 = vsel %vm987_vm15, %v9292_v35, 0.0 }
 0x390   : > { %v1024_v5 = vadd.f32 %v1023_v38, %v1022_v8  ;;  %v9295_v38 = vunpack.c.l.bf16 %v9381_v26  ;;  %v5994_v8 = vor.u32 %v5993_v56, %v5990_v58  ;;  %v6005_v28 = vrot.slane %v6004_v49, 4 }
 0x391   : > { %v7182_v15 = vpop.permute.xlu1 %7181  ;;  %v1041_v40 = vsel %vm987_vm15, %v9296_v51, 0.0  ;;  %v9304_v26 = vunpack.c.h.bf16 %v9383_v61 }
 0x392   : > { %v1026_v12 = vadd.f32 %v1025_v31, %v1024_v5  ;;  %v9382_v31 = vld [vmem:[%s10224_s25 + $0x70] sm:$0xff]  }
 0x393   : > { %v9299_v21 = vunpack.c.l.bf16 %v9382_v31 }
 0x394   : > { %v1028_v41 = vadd.f32 %v1027_v23, %v1026_v12  ;;  %v1039_v23 = vsel %vm987_vm15, %v9295_v38, 0.0  ;;  %v1049_v38 = vsel %vm987_vm15, %v9304_v26, 0.0 }
 0x395   : > { %v7482_v14 = vpop.permute.xlu0 %7481 }
 0x396   : > { %v7797_v22 = vsel %vm3689_vm2, %v7754_v7, %v7482_v14  ;;  %v1030_v48 = vadd.f32 %v1029_v0, %v1028_v41  ;;  %v5995_v14 = vrot.slane %v5994_v8, 4  ;;  %v9303_v41 = vunpack.c.l.bf16 %v9383_v61 }
 0x397   : > { %8226 = vmatprep.mubr.bf16.mxu1 %v7797_v22  ;;  %v9300_v22 = vunpack.c.h.bf16 %v9382_v31 }
 0x398   : > { %8227 = vmatmul.mubr.bf16.gmra.mrb[76].mxu1 %v13958_v57  ;;  %v1032_v29 = vadd.f32 %v1031_v60, %v1030_v48  ;;  %v10008_v57 = vld [vmem:[#allocation2 + $0xa4] sm:$0x1]  ;;  %v6000_v58 = vsel %vm10351_vm14, %v5995_v14, %v5999_v54  ;;  %v1047_v49 = vsel %vm987_vm15, %v9303_v41, 0.0  ;;  %v10013_v41 = vld [vmem:[#allocation2 + $0xb8] sm:$0xf] }
 0x399   : > { %v6007_v13 = vshll.u32 %v10008_v57, 16  ;;  %v14006_v25 = vpop.permute.xlu0 %7309  ;;  %v1045_v48 = vsel %vm987_vm15, %v9300_v22, 0.0 }
 0x39a   : > { %v1034_v63 = vadd.f32 %v1033_v59, %v1032_v29 }
 0x39b   : > { %v6009_v7 = vrot.slane %v6007_v13, 5 }
 0x39c   : > { %v1036_v27 = vadd.f32 %v1035_v45, %v1034_v63  ;;  %v10009_v45 = vld [vmem:[#allocation2 + $0xac] sm:$0xf]  ;;  %v10010_v63 = vld [vmem:[#allocation2 + $0xa8] sm:$0xf] }
 0x39d   : > { %v7006_v30 = vpop.permute.xlu1 %7005  ;;  %v6010_v0 = vsel %vm10351_vm14, %v6005_v28, %v6009_v7  ;;  %v14020_v24 = vpop.permute.xlu0 %7405  ;;  %v6021_v57 = vshll.u32 %v10009_v45, 16  ;;  %v6025_v13 = vshrl.u32 %v10009_v45, 16  ;;  %v6015_v51 = vshll.u32 %v10010_v63, 16 }
 0x39e   : > { %v7596_v18 = vsel %vm987_vm15, %v9036_v43, %v7006_v30  ;;  %v1038_v12 = vadd.f32 %v1037_v47, %v1036_v27  ;;  %v9099_v60 = vcombine.low %v6000_v58, %v6010_v0  ;;  %v6049_v58 = vshrl.u32 %v10013_v41, 16 }
 0x39f   : > { %v7630_v5 = vsel %vm3656_vm1, %v7596_v18, %v7086_v36  ;;  %v6012_v18 = vshrl.u32 %v10010_v63, 16  ;;  %v6023_v28 = vrot.slane %v6021_v57, 5 }
 0x3a0   : > { %v14013_v11 = vsel %vm3689_vm2, %v7630_v5, %v7182_v15  ;;  %v1040_v36 = vadd.f32 %v1039_v23, %v1038_v12  ;;  %v1043_v15 = vsel %vm987_vm15, %v9299_v21, 0.0  ;;  %v7721_v59 = vsel %vm987_vm15, %v9099_v60, %v13969_v53  ;;  %v10011_v21 = vld [vmem:[#allocation2 + $0xac] sm:$0xf]  ;;  %v10012_v23 = vld [vmem:[#allocation2 + $0xa8] sm:$0xf] }
 0x3a1   : > { %v7088_v56 = vpop.permute.xlu1 %7087  ;;  %v7756_v29 = vsel %vm3656_vm1, %v7721_v59, %v13985_v55  ;;  %v6027_v5 = vrot.slane %v6025_v13, 4  ;;  %v9037_v7 = vcombine.low %v10012_v23, %v10011_v21  ;;  %v6014_v61 = vrot.slane %v6012_v18, 4  ;;  %v10014_v60 = vld [vmem:[#allocation2 + $0xb4] sm:$0xf] }
 0x3a2   : > { %v1042_v42 = vadd.f32 %v1041_v40, %v1040_v36  ;;  %v6017_v12 = vrot.slane %v6015_v51, 5  ;;  %v6036_v26 = vshrl.u32 %v10014_v60, 16  ;;  %v10016_v23 = vld [vmem:[#allocation2 + $0xb4] sm:$0xf] }
 0x3a3   : > { %v6028_v40 = vor.u32 %v6027_v5, %v6023_v28 }
 0x3a4   : > { %v1044_v35 = vadd.f32 %v1043_v15, %v1042_v42  ;;  %v6045_v15 = vshll.u32 %v10013_v41, 16  ;;  %v6038_v57 = vrot.slane %v6036_v26, 4 }
 0x3a5   : > { %v7184_v8 = vpop.permute.xlu1 %7183 }
 0x3a6   : > { %v1046_v4 = vadd.f32 %v1045_v48, %v1044_v35  ;;  %v6039_v35 = vshll.u32 %v10014_v60, 16  ;;  %v6047_v45 = vrot.slane %v6045_v15, 5  ;;  %v6060_v15 = vshrl.u32 %v13730_v39, 16 }
 0x3a8   : > { %v1048_v53 = vadd.f32 %v1047_v49, %v1046_v4  ;;  %v10015_v49 = vld [vmem:[#allocation2 + $0xb0] sm:$0x1]  ;;  %v6041_v13 = vrot.slane %v6039_v35, 5 }
 0x3aa   : > { %v7484_v44 = vpop.permute.xlu0 %7483  ;;  %v14032_v54 = vpop.f32.mrb[80].mxu0  ;;  %v1050_v47 = vadd.f32 %v1049_v38, %v1048_v53  ;;  %v6029_v38 = vrot.slane %v6028_v40, 4 }
 0x3ab   : > { %v7800_v43 = vsel %vm3689_vm2, %v7756_v29, %v7484_v44  ;;  %v14035_v30 = vpop.f32.mrb[81].mxu0  ;;  %v6031_v29 = vshll.u32 %v10015_v49, 16  ;;  %v6018_v44 = vor.u32 %v6017_v12, %v6014_v61  ;;  %v10018_v61 = vld [vmem:[#allocation2 + $0xbc] sm:$0x1] }
 0x3ac   : > { %8234 = vmatprep.mubr.bf16.mxu1 %v7800_v43  ;;  %v14038_v31 = vpop.f32.mrb[82].mxu0  ;;  %v1051_v27 = vrot.slane %v1050_v47, 4  ;;  %v6055_v12 = vshll.u32 %v10018_v61, 16 }
 0x3ad   : > { %8235 = vmatmul.mubr.bf16.gmra.mrb[80].mxu1 %v13977_v10  ;;  %v14040_v55 = vpop.f32.mrb[83].mxu0  ;;  %v6033_v63 = vrot.slane %v6031_v29, 5  ;;  %v6019_v18 = vrot.slane %v6018_v44, 4 }
 0x3ae   : > { %v1052_v22 = vadd.f32 %v1051_v27, %v1050_v47  ;;  %v7312_v4 = vpop.permute.xlu0 %7311 }
 0x3af   : > { %v6034_v5 = vsel %vm10351_vm14, %v6029_v38, %v6033_v63 }
 0x3b0   : > { %v1053_v36 = vrot.slane %v1052_v22, 2 }
 0x3b1   : > { %v7008_v14 = vpop.permute.xlu1 %7007 }
 0x3b2   : > { %v7599_v10 = vsel %vm987_vm15, %v9037_v7, %v7008_v14  ;;  %v1054_v59 = vadd.f32 %v1053_v36, %v1052_v22  ;;  %v7408_v21 = vpop.permute.xlu0 %7407  ;;  %v10017_v7 = vld [vmem:[#allocation2 + $0xb8] sm:$0xf]  ;;  %v6069_v22 = vshll.u32 %v13691_v2, 16  ;;  %v6042_v36 = vor.u32 %v6041_v13, %v6038_v57 }
 0x3b3   : > { %v7632_v0 = vsel %vm3656_vm1, %v7599_v10, %v7088_v56  ;;  %v6051_v56 = vrot.slane %v6049_v58, 4  ;;  %v9038_v14 = vcombine.low %v10016_v23, %v10017_v7  ;;  %v6073_v10 = vshrl.u32 %v13691_v2, 16 }
 0x3b4   : > { %v14045_v42 = vsel %vm3689_vm2, %v7632_v0, %v7184_v8  ;;  %v1055_v43 = vrot.slane %v1054_v59, 1  ;;  %v1058_v8 = vld [vmem:[%s14379_s5] sm:$0x3]  ;;  %v6024_v0 = vsel %vm10351_vm14, %v6019_v18, %v6023_v28  ;;  %v6063_v58 = vshll.u32 %v13730_v39, 16 }
 0x3b5   : > { %v6052_v27 = vor.u32 %v6051_v56, %v6047_v45  ;;  %v9100_v60 = vcombine.low %v6024_v0, %v6034_v5  ;;  %v6071_v29 = vrot.slane %v6069_v22, 5  ;;  %v6075_v44 = vrot.slane %v6073_v10, 4 }
 0x3b6   : > { %v7010_v48 = vpop.permute.xlu1 %7009  ;;  %v1056_v53 = vadd.f32 %v1055_v43, %v1054_v59  ;;  %v6057_v43 = vrot.slane %v6055_v12, 5  ;;  %v6043_v39 = vrot.slane %v6042_v36, 4  ;;  %v6062_v56 = vrot.slane %v6060_v15, 4 }
 0x3b7   : > { %v7602_v41 = vsel %vm987_vm15, %v9038_v14, %v7010_v48  ;;  %v6053_v49 = vrot.slane %v6052_v27, 4  ;;  %v7724_v28 = vsel %vm987_vm15, %v9100_v60, %v14006_v25  ;;  %v6065_v57 = vrot.slane %v6063_v58, 5 }
 0x3b8   : > { %v1057_v47 = vmul.f32 0.00390625, %v1056_v53  ;;  %v7758_v48 = vsel %vm3656_vm1, %v7724_v28, %v14020_v24  ;;  %v6076_v63 = vor.u32 %v6075_v44, %v6071_v29  ;;  %v6048_v25 = vsel %vm10351_vm14, %v6043_v39, %v6047_v45 }
 0x3b9   : > { %v6058_v53 = vsel %vm10351_vm14, %v6053_v49, %v6057_v43  ;;  %v6079_v24 = vshll.u32 %v13715_v20, 16  ;;  %v7906_v49 = vld [vmem:[#allocation3 + $0x178] sm:$0xff] }
 0x3ba   : > { %v1059_v40 = vmul.f32 %v1058_v8, %v1057_v47  ;;  %v9101_v8 = vcombine.low %v6048_v25, %v6058_v53  ;;  %v6077_v5 = vrot.slane %v6076_v63, 4 }
 0x3bb   : > { %v6081_v14 = vrot.slane %v6079_v24, 5 }
 0x3bc   : > { %v7090_v51 = vpop.permute.xlu1 %7089  ;;  %v1061_v59 = vsel %vm1060_vm0, %v1059_v40, 0.0  ;;  %v7727_v47 = vsel %vm987_vm15, %v9101_v8, %v7312_v4 }
 0x3bd   : > { %v7634_v26 = vsel %vm3656_vm1, %v7602_v41, %v7090_v51  ;;  %1062 = vadd.xlane.f32.xlu0 %v1061_v59  ;;  %v6066_v51 = vor.u32 %v6065_v57, %v6062_v56  ;;  %v7760_v27 = vsel %vm3656_vm1, %v7727_v47, %v7408_v21  ;;  %v6082_v4 = vsel %vm10351_vm14, %v6077_v5, %v6081_v14  ;;  %v14512_v5 = vld [vmem:[#allocation16_spill] sm:$0xff] }
 0x3bf   : > { %v6067_v61 = vrot.slane %v6066_v51, 4 }
 0x3c0   : > { %v7186_v35 = vpop.permute.xlu1 %7185 }
 0x3c1   : > { %v7681_v2 = vsel %vm3689_vm2, %v7634_v26, %v7186_v35  ;;  %v6072_v36 = vsel %vm10351_vm14, %v6067_v61, %v6071_v29 }
 0x3c2   : > { %v7486_v38 = vpop.permute.xlu0 %7485  ;;  %v9102_v41 = vcombine.low %v6072_v36, %v6082_v4 }
 0x3c3   : > { %v7803_v13 = vsel %vm3689_vm2, %v7758_v48, %v7486_v38 }
 0x3c4   : > { %8242 = vmatprep.mubr.bf16.mxu1 %v7803_v13 }
 0x3c5   : > { %8243 = vmatmul.mubr.bf16.gmra.mrb[84].mxu1 %v14013_v11  ;;  %v14079_v11 = vld [vmem:[%s14378_s4] ss:$0 sm:$0xff] }
 0x3c6   : > { %v7314_v18 = vpop.permute.xlu0 %7313 }
 0x3c7   : > { %v7730_v60 = vsel %vm987_vm15, %v9102_v41, %v7314_v18 }
 0x3ca   : > { %v7488_v23 = vpop.permute.xlu0 %7487  ;;  %v9545_v7 = vpop.f32.mrb[32].mxu1 }
 0x3cb   : > { %v7806_v12 = vsel %vm3689_vm2, %v7760_v27, %v7488_v23  ;;  %v9546_v45 = vpop.f32.mrb[33].mxu1 }
 0x3cc   : > { %8250 = vmatprep.mubr.bf16.mxu1 %v7806_v12  ;;  %v9547_v20 = vadd.f32 %v9546_v45, %v9545_v7  ;;  %v9548_v22 = vpop.f32.mrb[34].mxu1 }
 0x3cd   : > { %8251 = vmatmul.mubr.bf16.gmra.mrb[88].mxu1 %v14045_v42  ;;  %v9549_v21 = vpop.f32.mrb[35].mxu1 }
 0x3ce   : > { %v7410_v10 = vpop.permute.xlu0 %7409  ;;  %v8141_v40 = vadd.f32 %v9547_v20, %v14079_v11  ;;  %v9550_v0 = vadd.f32 %v9549_v21, %v9548_v22 }
 0x3cf   : > { %v7762_v42 = vsel %vm3656_vm1, %v7730_v60, %v7410_v10 }
 0x3d0   : > { %v14088_v15 = vadd.f32 %v13686_v34, %v8141_v40  ;;  %v8144_v58 = vadd.f32 %v9550_v0, %v14079_v11  ;;  %v14513_v40 = vld [vmem:[#allocation7_spill] sm:$0xff] }
 0x3d2   : > { %v14093_v26 = vadd.f32 %v13702_v50, %v8144_v58 }
 0x3d3   : > { %v7490_v35 = vpop.permute.xlu0 %7489 }
 0x3d4   : > { %v7809_v59 = vsel %vm3689_vm2, %v7762_v42, %v7490_v35 }
 0x3d5   : > { %8258 = vmatprep.mubr.bf16.mxu1 %v7809_v59 }
 0x3d6   : > { %8259 = vmatmul.mubr.bf16.gmra.mrb[92].mxu1 %v7681_v2 }
 0x3d7   : > { %9727 = vmatprep.mubr.msk.bf16.mxu1 %vm987_vm15, %v7903_v19 }
 0x3dc   : > { %v14098_v34 = vpop.f32.mrb[84].mxu0 }
 0x3dd   : > { %v14100_v28 = vpop.f32.mrb[85].mxu0 }
 0x3de   : > { %9728 = vmatmul.mubr.msk.bf16.vlgmr.msra.gmra.mrb[96].mxu1 %vm987_vm15, %v7906_v49  ;;  %v14103_v29 = vpop.f32.mrb[86].mxu0 }
 0x3df   : > { %v14105_v50 = vpop.f32.mrb[87].mxu0 }
 0x3e1   : > { %v9551_v44 = vpop.f32.mrb[36].mxu1 }
 0x3e2   : > { %v9552_v48 = vpop.f32.mrb[37].mxu1 }
 0x3e3   : > { %v9553_v43 = vadd.f32 %v9552_v48, %v9551_v44  ;;  %v9554_v39 = vpop.f32.mrb[38].mxu1 }
 0x3e4   : > { %v9555_v38 = vpop.f32.mrb[39].mxu1 }
 0x3e5   : > { %v8149_v2 = vadd.f32 %v9553_v43, %v14079_v11  ;;  %v9556_v56 = vadd.f32 %v9555_v38, %v9554_v39 }
 0x3e7   : > { %v14109_v57 = vadd.f32 %v13679_v52, %v8149_v2  ;;  %v8152_v13 = vadd.f32 %v9556_v56, %v14079_v11 }
 0x3e9   : > { %v14113_v53 = vadd.f32 %v13693_v6, %v8152_v13 }
 0x3f8   : > { %v9557_v63 = vpop.f32.mrb[40].mxu1 }
 0x3f9   : > { %v9558_v25 = vpop.f32.mrb[41].mxu1 }
 0x3fa   : > { %v9559_v18 = vadd.f32 %v9558_v25, %v9557_v63  ;;  %v9560_v8 = vpop.f32.mrb[42].mxu1 }
 0x3fb   : > { %v9561_v24 = vpop.f32.mrb[43].mxu1 }
 0x3fc   : > { %v8157_v51 = vadd.f32 %v9559_v18, %v14079_v11  ;;  %v9562_v47 = vadd.f32 %v9561_v24, %v9560_v8 }
 0x3fe   : > { %v14117_v27 = vadd.f32 %v14512_v5, %v8157_v51  ;;  %v8160_v23 = vadd.f32 %v9562_v47, %v14079_v11 }
 0x400   : > { %v14121_v52 = vadd.f32 %v13732_v32, %v8160_v23 }
 0x408   : > { %v14123_v7 = vpop.f32.mrb[88].mxu0 }
 0x409   : > { %v14125_v6 = vpop.f32.mrb[89].mxu0 }
 0x40a   : > { %v14127_v14 = vpop.f32.mrb[90].mxu0 }
 0x40b   : > { %v14129_v61 = vpop.f32.mrb[91].mxu0 }
 0x40c   : > { %v9563_v12 = vpop.f32.mrb[44].mxu1 }
 0x40d   : > { %v9564_v45 = vpop.f32.mrb[45].mxu1 }
 0x40e   : > { %v9565_v20 = vadd.f32 %v9564_v45, %v9563_v12  ;;  %v9566_v22 = vpop.f32.mrb[46].mxu1 }
 0x40f   : > { %v9567_v4 = vpop.f32.mrb[47].mxu1 }
 0x410   : > { %v8165_v21 = vadd.f32 %v9565_v20, %v14079_v11  ;;  %v9568_v10 = vadd.f32 %v9567_v4, %v9566_v22 }
 0x412   : > { %v14133_v0 = vadd.f32 %v14513_v40, %v8165_v21  ;;  %v8168_v32 = vadd.f32 %v9568_v10, %v14079_v11 }
 0x414   : > { %v14137_v36 = vadd.f32 %v13727_v62, %v8168_v32 }
 0x420   : > { %v9569_v41 = vpop.f32.mrb[48].mxu1 }
 0x421   : > { %v9570_v58 = vpop.f32.mrb[49].mxu1 }
 0x422   : > { %v9571_v60 = vadd.f32 %v9570_v58, %v9569_v41  ;;  %v9572_v42 = vpop.f32.mrb[50].mxu1 }
 0x423   : > { %v9573_v35 = vpop.f32.mrb[51].mxu1 }
 0x424   : > { %v8173_v59 = vadd.f32 %v9571_v60, %v14079_v11  ;;  %v9574_v19 = vadd.f32 %v9573_v35, %v9572_v42 }
 0x426   : > { %v14141_v49 = vadd.f32 %v13792_v46, %v8173_v59  ;;  %v8176_v44 = vadd.f32 %v9574_v19, %v14079_v11 }
 0x428   : > { %v14145_v48 = vadd.f32 %v13803_v3, %v8176_v44 }
 0x42c   : > { %v9575_v43 = vpop.f32.mrb[52].mxu1 }
 0x42d   : > { %v9576_v39 = vpop.f32.mrb[53].mxu1 }
 0x42e   : > { %v9577_v62 = vadd.f32 %v9576_v39, %v9575_v43  ;;  %v9578_v38 = vpop.f32.mrb[54].mxu1 }
 0x42f   : > { %v9579_v2 = vpop.f32.mrb[55].mxu1 }
 0x430   : > { %v8181_v56 = vadd.f32 %v9577_v62, %v14079_v11  ;;  %v9580_v13 = vadd.f32 %v9579_v2, %v9578_v38 }
 0x432   : > { %v14149_v63 = vadd.f32 %v13788_v33, %v8181_v56  ;;  %v8184_v25 = vadd.f32 %v9580_v13, %v14079_v11 }
 0x434   : > { %v14153_v46 = vadd.f32 %v13799_v1, %v8184_v25  ;;  %v9581_v18 = vpop.f32.mrb[56].mxu1 }
 0x435   : > { %v9582_v8 = vpop.f32.mrb[57].mxu1 }
 0x436   : > { %v9583_v3 = vadd.f32 %v9582_v8, %v9581_v18  ;;  %v9584_v24 = vpop.f32.mrb[58].mxu1 }
 0x437   : > { %v9585_v51 = vpop.f32.mrb[59].mxu1 }
 0x438   : > { %v8189_v47 = vadd.f32 %v9583_v3, %v14079_v11  ;;  %v9586_v5 = vadd.f32 %v9585_v51, %v9584_v24 }
 0x43a   : > { %v14157_v23 = vadd.f32 %v13933_v9, %v8189_v47  ;;  %v8192_v12 = vadd.f32 %v9586_v5, %v14079_v11 }
 0x43c   : > { %v14161_v33 = vadd.f32 %v13944_v17, %v8192_v12  ;;  %v9587_v45 = vpop.f32.mrb[60].mxu1  ;;  %v1064_v17 = vld [vmem:[%s14380_s6] sm:$0x3] }
 0x43d   : > { %v9588_v20 = vpop.f32.mrb[61].mxu1 }
 0x43e   : > { %v9589_v1 = vadd.f32 %v9588_v20, %v9587_v45  ;;  %v9590_v22 = vpop.f32.mrb[62].mxu1 }
 0x43f   : > { %v9591_v4 = vpop.f32.mrb[63].mxu1 }
 0x440   : > { %v8197_v21 = vadd.f32 %v9589_v1, %v14079_v11  ;;  %v9592_v10 = vadd.f32 %v9591_v4, %v9590_v22 }
 0x442   : > { %v14165_v40 = vadd.f32 %v13930_v16, %v8197_v21  ;;  %v8200_v32 = vadd.f32 %v9592_v10, %v14079_v11 }
 0x444   : > { %v14169_v9 = vadd.f32 %v13936_v37, %v8200_v32 }
 0x447   : > { %v9593_v60 = vpop.f32.mrb[64].mxu1 }
 0x448   : > { %v9594_v42 = vpop.f32.mrb[65].mxu1 }
 0x449   : > { %v9595_v59 = vadd.f32 %v9594_v42, %v9593_v60  ;;  %v9596_v19 = vpop.f32.mrb[66].mxu1 }
 0x44a   : > { %v1063_v41 = vpop.xlane.xlu0 %1062  ;;  %v9597_v44 = vpop.f32.mrb[67].mxu1 }
 0x44b   : > { %v1065_v58 = vadd.f32 %v1064_v17, %v1063_v41  ;;  %v8205_v16 = vadd.f32 %v9595_v59, %v14079_v11  ;;  %v9598_v43 = vadd.f32 %v9597_v44, %v9596_v19 }
 0x44d   : > { %v1066_v35 = vmax.f32 %v1065_v58, 0.0  ;;  %v14176_v39 = vadd.f32 %v14035_v30, %v8205_v16  ;;  %v8208_v37 = vadd.f32 %v9598_v43, %v14079_v11 }
 0x44f   : > { %1070 = vperm.xlu1 %9780, %v1066_v35   ;;  %v14180_v62 = vadd.f32 %v14040_v55, %v8208_v37  ;;  %v9599_v38 = vpop.f32.mrb[68].mxu1 }
 0x450   : > { %v9600_v2 = vpop.f32.mrb[69].mxu1 }
 0x451   : > { %v9601_v56 = vadd.f32 %v9600_v2, %v9599_v38  ;;  %v9602_v13 = vpop.f32.mrb[70].mxu1 }
 0x452   : > { %v9603_v25 = vpop.f32.mrb[71].mxu1 }
 0x453   : > { %v8213_v18 = vadd.f32 %v9601_v56, %v14079_v11  ;;  %v9604_v8 = vadd.f32 %v9603_v25, %v9602_v13 }
 0x455   : > { %v14184_v3 = vadd.f32 %v14032_v54, %v8213_v18  ;;  %v8216_v24 = vadd.f32 %v9604_v8, %v14079_v11 }
 0x457   : > { %v14188_v30 = vadd.f32 %v14038_v31, %v8216_v24 }
 0x459   : > { %v9605_v51 = vpop.f32.mrb[72].mxu1 }
 0x45a   : > { %v9606_v47 = vpop.f32.mrb[73].mxu1 }
 0x45b   : > { %v9607_v55 = vadd.f32 %v9606_v47, %v9605_v51  ;;  %v9608_v5 = vpop.f32.mrb[74].mxu1 }
 0x45c   : > { %v9609_v12 = vpop.f32.mrb[75].mxu1 }
 0x45d   : > { %v8221_v45 = vadd.f32 %v9607_v55, %v14079_v11  ;;  %v9610_v20 = vadd.f32 %v9609_v12, %v9608_v5 }
 0x45f   : > { %v14192_v1 = vadd.f32 %v14100_v28, %v8221_v45  ;;  %v8224_v22 = vadd.f32 %v9610_v20, %v14079_v11 }
 0x461   : > { %v14196_v54 = vadd.f32 %v14105_v50, %v8224_v22 }
 0x46b   : > { %v9611_v4 = vpop.f32.mrb[76].mxu1 }
 0x46c   : > { %v9612_v21 = vpop.f32.mrb[77].mxu1 }
 0x46d   : > { %v9613_v31 = vadd.f32 %v9612_v21, %v9611_v4  ;;  %v9614_v10 = vpop.f32.mrb[78].mxu1 }
 0x46e   : > { %v9615_v32 = vpop.f32.mrb[79].mxu1 }
 0x46f   : > { %v8229_v17 = vadd.f32 %v9613_v31, %v14079_v11  ;;  %v9616_v41 = vadd.f32 %v9615_v32, %v9614_v10 }
 0x471   : > { %v14200_v58 = vadd.f32 %v14098_v34, %v8229_v17  ;;  %v8232_v60 = vadd.f32 %v9616_v41, %v14079_v11 }
 0x473   : > { %v14204_v28 = vadd.f32 %v14103_v29, %v8232_v60 }
 0x480   : > { %v9617_v42 = vpop.f32.mrb[80].mxu1 }
 0x481   : > { %v9618_v35 = vpop.f32.mrb[81].mxu1 }
 0x482   : > { %v9619_v50 = vadd.f32 %v9618_v35, %v9617_v42  ;;  %v9620_v59 = vpop.f32.mrb[82].mxu1 }
 0x483   : > { %v9621_v19 = vpop.f32.mrb[83].mxu1 }
 0x484   : > { %v8237_v44 = vadd.f32 %v9619_v50, %v14079_v11  ;;  %v9622_v16 = vadd.f32 %v9621_v19, %v9620_v59 }
 0x486   : > { %v14208_v43 = vadd.f32 %v14125_v6, %v8237_v44  ;;  %v8240_v37 = vadd.f32 %v9622_v16, %v14079_v11  ;;  %v1067_v44 = vld [vmem:[%s14381_s7] sm:$0x3] }
 0x488   : > { %v14212_v34 = vadd.f32 %v14129_v61, %v8240_v37 }
 0x498   : > { %v9623_v38 = vpop.f32.mrb[84].mxu1 }
 0x499   : > { %v9624_v2 = vpop.f32.mrb[85].mxu1 }
 0x49a   : > { %v9625_v29 = vadd.f32 %v9624_v2, %v9623_v38  ;;  %v9626_v56 = vpop.f32.mrb[86].mxu1 }
 0x49b   : > { %v9627_v13 = vpop.f32.mrb[87].mxu1 }
 0x49c   : > { %v8245_v25 = vadd.f32 %v9625_v29, %v14079_v11  ;;  %v9628_v18 = vadd.f32 %v9627_v13, %v9626_v56 }
 0x49e   : > { %v14216_v8 = vadd.f32 %v14123_v7, %v8245_v25  ;;  %v8248_v24 = vadd.f32 %v9628_v18, %v14079_v11  ;;  %v1081_v25 = vld [vmem:[%s14382_s8] sm:$0x1] }
 0x4a0   : > { %v14220_v6 = vadd.f32 %v14127_v14, %v8248_v24  ;;  %v9629_v51 = vpop.f32.mrb[88].mxu1 }
 0x4a1   : > { %v9630_v47 = vpop.f32.mrb[89].mxu1 }
 0x4a2   : > { %v9631_v61 = vadd.f32 %v9630_v47, %v9629_v51  ;;  %v9632_v55 = vpop.f32.mrb[90].mxu1 }
 0x4a3   : > { %v9633_v5 = vpop.f32.mrb[91].mxu1 }
 0x4a4   : > { %v9634_v12 = vadd.f32 %v9633_v5, %v9632_v55  ;;  %v8253_v32 = vadd.f32 %v9631_v61, %v14079_v11  ;;  %v8428_v55 = vlaneseq }
 0x4a6   : > { %v8256_v35 = vadd.f32 %v9634_v12, %v14079_v11  ;;  %v8429_v5 = vshrl.u32 %v8428_v55, 7 }
 0x4a8   : > { %v8430_v12 = vsub.s32 0, %v8429_v5 }
 0x4a9   : > { %v9635_v45 = vpop.f32.mrb[92].mxu1 }
 0x4aa   : > { %v9636_v20 = vpop.f32.mrb[93].mxu1 }
 0x4ab   : > { %v9637_v22 = vadd.f32 %v9636_v20, %v9635_v45  ;;  %v9638_v4 = vpop.f32.mrb[94].mxu1 }
 0x4ac   : > { %v9639_v21 = vpop.f32.mrb[95].mxu1 }
 0x4ad   : > { %v9640_v31 = vadd.f32 %v9639_v21, %v9638_v4  ;;  %v8261_v7 = vadd.f32 %v9637_v22, %v14079_v11  ;;  %v9306_v22 = vld [vmem:[%s10224_s25] sm:$0xff]  }
 0x4ae   : > { %v9391_v4 = vld [vmem:[%s10224_s25 + $0x40] sm:$0xff]  }
 0x4af   : > { %v8264_v41 = vadd.f32 %v9640_v31, %v14079_v11  ;;  %v9307_v31 = vunpack.c.l.bf16 %v9306_v22 }
 0x4b1   : > { %v9729_v10 = vpop.f32.mrb[96].mxu1 }
 0x4b2   : > { %v14224_v17 = vadd.f32 %v9729_v10, %v8261_v7  ;;  %v8413_v14 = vpop.f32.mrb[97].mxu1  ;;  %v9339_v7 = vunpack.c.l.bf16 %v9391_v4 }
 0x4b3   : > { %v14227_v60 = vadd.f32 %v8413_v14, %v8253_v32  ;;  %v9730_v42 = vpop.f32.mrb[98].mxu1 }
 0x4b4   : > { %v14230_v50 = vadd.f32 %v9730_v42, %v8264_v41  ;;  %v8416_v59 = vpop.f32.mrb[99].mxu1  ;;  %v9308_v41 = vunpack.c.h.bf16 %v9306_v22  ;;  %v9384_v42 = vld [vmem:[%s10224_s25 + $0x8] sm:$0xff]  }
 0x4b5   : > { %v14232_v19 = vadd.f32 %v8416_v59, %v8256_v35 }
 0x4ce   : > { %v1071_v16 = vpop.permute.xlu1 %1070 }
 0x4cf   : > { %v1073_v37 = vmul.f32 %v1071_v16, %v1067_v44  ;;  %v9340_v44 = vunpack.c.h.bf16 %v9391_v4  ;;  %v9392_v16 = vld [vmem:[%s10224_s25 + $0x48] sm:$0xff]   ;;  %v9394_v4 = vld [vmem:[%s10224_s25 + $0x58] sm:$0xff]  }
 0x4d1   : > { %v1074_v38 = vsel %vm1060_vm0, %v1073_v37, 0.0  ;;  %v9311_v37 = vunpack.c.l.bf16 %v9384_v42 }
 0x4d2   : > { %v1075_v2 = vrot.slane %v1074_v38, 4 }
 0x4d4   : > { %v1076_v29 = vadd.f32 %v1075_v2, %v1074_v38  ;;  %v9343_v2 = vunpack.c.l.bf16 %v9392_v16 }
 0x4d6   : > { %v1077_v56 = vrot.slane %v1076_v29, 2 }
 0x4d8   : > { %v1078_v13 = vadd.f32 %v1077_v56, %v1076_v29  ;;  %v9312_v56 = vunpack.c.h.bf16 %v9384_v42 }
 0x4da   : > { %v1079_v11 = vrot.slane %v1078_v13, 1 }
 0x4dc   : > { %v1080_v18 = vadd.f32 %v1079_v11, %v1078_v13  ;;  %v9385_v13 = vld [vmem:[%s10224_s25 + $0x10] sm:$0xff]  }
 0x4dd   : > { %v9316_v5 = vunpack.c.h.bf16 %v9385_v13 }
 0x4de   : > { %v1082_v24 = vadd.f32 %v1081_v25, %v1080_v18  ;;  %v9344_v25 = vunpack.c.h.bf16 %v9392_v16  ;;  %v9393_v18 = vld [vmem:[%s10224_s25 + $0x50] sm:$0xff]  }
 0x4df   : > { %v9348_v22 = vunpack.c.h.bf16 %v9393_v18 }
 0x4e0   : > { %v8715_v51 = vmul.f32 -1.442695, %v1082_v24 }
 0x4e2   : > { %9870 = vpow2.f32 %v8715_v51  ;;  %v9315_v51 = vunpack.c.l.bf16 %v9385_v13 }
 0x4ec   : > { %v9871_v47 = vpop.eup %9870 }
 0x4ed   : > { %v1086_v61 = vadd.f32 1.0, %v9871_v47 }
 0x4ef   : > { %9872 = vrcp.f32 %v1086_v61  ;;  %v9347_v61 = vunpack.c.l.bf16 %v9393_v18 }
 0x4f9   : > { %v9873_v45 = vpop.eup %9872 }
 0x4fa   : > { %v14241_v20 = vrot.slane %v9873_v45, %v8430_v12  ;;  %v9386_v12 = vld [vmem:[%s10224_s25 + $0x18] sm:$0xff]  }
 0x4fc   : > { %v8432_v21 = vmul.f32 %v14241_v20, %v14088_v15  ;;  %v8433_v10 = vmul.f32 %v14241_v20, %v14093_v26  ;;  %v8448_v32 = vmul.f32 %v14241_v20, %v14176_v39  ;;  %v8449_v59 = vmul.f32 %v14241_v20, %v14180_v62 }
 0x4fd   : > { %v8434_v15 = vmul.f32 %v14241_v20, %v14109_v57  ;;  %v8450_v39 = vmul.f32 %v14241_v20, %v14184_v3  ;;  %v8435_v29 = vmul.f32 %v14241_v20, %v14113_v53  ;;  %v8451_v57 = vmul.f32 %v14241_v20, %v14188_v30 }
 0x4fe   : > { %v8528_v14 = vadd.f32 %v9307_v31, %v8432_v21  ;;  %v8544_v35 = vadd.f32 %v9339_v7, %v8448_v32  ;;  %v8529_v26 = vadd.f32 %v9308_v41, %v8433_v10  ;;  %v8545_v38 = vadd.f32 %v9340_v44, %v8449_v59  ;;  %v9387_v41 = vld [vmem:[%s10224_s25 + $0x20] sm:$0xff]  }
 0x4ff   : > { %v8530_v62 = vadd.f32 %v9311_v37, %v8434_v15  ;;  %v8546_v11 = vadd.f32 %v9343_v2, %v8450_v39  ;;  %v8436_v24 = vmul.f32 %v14241_v20, %v14117_v27  ;;  %v8531_v3 = vadd.f32 %v9312_v56, %v8435_v29  ;;  %v9395_v59 = vld [vmem:[%s10224_s25 + $0x60] sm:$0xff]   ;;  %v9388_v39 = vld [vmem:[%s10224_s25 + $0x28] sm:$0xff]  }
 0x500   : > { %8560 = vxpose.xlu1.b32.start [1/16] (narrow) %v8528_v14, 32  ;;  %8592 = vxpose.xlu0.b32.start [1/16] (narrow) %v8544_v35, 32  ;;  %v8547_v53 = vadd.f32 %v9344_v25, %v8451_v57  ;;  %v8452_v47 = vmul.f32 %v14241_v20, %v14192_v1  ;;  %v8437_v55 = vmul.f32 %v14241_v20, %v14121_v52  ;;  %v9319_v31 = vunpack.c.l.bf16 %v9386_v12 }
 0x501   : > { %v8532_v30 = vadd.f32 %v9315_v51, %v8436_v24  ;;  %v8453_v27 = vmul.f32 %v14241_v20, %v14196_v54  ;;  %v8438_v21 = vmul.f32 %v14241_v20, %v14133_v0  ;;  %v8454_v7 = vmul.f32 %v14241_v20, %v14200_v58  ;;  %v9389_v24 = vld [vmem:[%s10224_s25 + $0x30] sm:$0xff]  }
 0x502   : > { %v8548_v45 = vadd.f32 %v9347_v61, %v8452_v47  ;;  %v8533_v1 = vadd.f32 %v9316_v5, %v8437_v55  ;;  %v9351_v10 = vunpack.c.l.bf16 %v9394_v4  ;;  %v8439_v32 = vmul.f32 %v14241_v20, %v14137_v36 }
 0x503   : > { %v8549_v52 = vadd.f32 %v9348_v22, %v8453_v27  ;;  %v8534_v54 = vadd.f32 %v9319_v31, %v8438_v21  ;;  %v9320_v14 = vunpack.c.h.bf16 %v9386_v12  ;;  %v8455_v0 = vmul.f32 %v14241_v20, %v14204_v28 }
 0x504   : > { %8561 = vxpose.xlu1.b32.cont [2/16] (narrow) %v8529_v26, 32  ;;  %8593 = vxpose.xlu0.b32.cont [2/16] (narrow) %v8545_v38, 32  ;;  %v8550_v42 = vadd.f32 %v9351_v10, %v8454_v7  ;;  %v9352_v35 = vunpack.c.h.bf16 %v9394_v4  ;;  %v8440_v44 = vmul.f32 %v14241_v20, %v14141_v49  ;;  %v9323_v16 = vunpack.c.l.bf16 %v9387_v41  ;;  %v9398_v4 = vld [vmem:[%s10224_s25 + $0x78] sm:$0xff]  }
 0x505   : > { %v8535_v58 = vadd.f32 %v9320_v14, %v8439_v32  ;;  %v8456_v15 = vmul.f32 %v14241_v20, %v14208_v43  ;;  %v9355_v26 = vunpack.c.l.bf16 %v9395_v59  ;;  %v8441_v37 = vmul.f32 %v14241_v20, %v14145_v48 }
 0x506   : > { %v8551_v36 = vadd.f32 %v9352_v35, %v8455_v0  ;;  %v8536_v28 = vadd.f32 %v9323_v16, %v8440_v44  ;;  %v9324_v38 = vunpack.c.h.bf16 %v9387_v41  ;;  %v8457_v49 = vmul.f32 %v14241_v20, %v14212_v34 }
 0x507   : > { %v8552_v2 = vadd.f32 %v9355_v26, %v8456_v15  ;;  %v9356_v29 = vunpack.c.h.bf16 %v9395_v59  ;;  %v8442_v56 = vmul.f32 %v14241_v20, %v14149_v63  ;;  %v9327_v13 = vunpack.c.l.bf16 %v9388_v39 }
 0x508   : > { %8562 = vxpose.xlu1.b32.cont [3/16] (narrow) %v8530_v62, 32  ;;  %8594 = vxpose.xlu0.b32.cont [3/16] (narrow) %v8546_v11, 32  ;;  %v9396_v62 = vld [vmem:[%s10224_s25 + $0x68] sm:$0xff]   ;;  %v8537_v43 = vadd.f32 %v9324_v38, %v8441_v37  ;;  %v8458_v11 = vmul.f32 %v14241_v20, %v14216_v8  ;;  %v8443_v25 = vmul.f32 %v14241_v20, %v14153_v46  ;;  %v9328_v18 = vunpack.c.h.bf16 %v9388_v39 }
 0x509   : > { %v8553_v48 = vadd.f32 %v9356_v29, %v8457_v49  ;;  %v9359_v57 = vunpack.c.l.bf16 %v9396_v62  ;;  %v8538_v34 = vadd.f32 %v9327_v13, %v8442_v56  ;;  %v8459_v63 = vmul.f32 %v14241_v20, %v14220_v6 }
 0x50a   : > { %v9360_v51 = vunpack.c.h.bf16 %v9396_v62  ;;  %v8444_v47 = vmul.f32 %v14241_v20, %v14157_v23  ;;  %v8539_v8 = vadd.f32 %v9328_v18, %v8443_v25  ;;  %v9331_v61 = vunpack.c.l.bf16 %v9389_v24 }
 0x50b   : > { %v8460_v46 = vmul.f32 %v14241_v20, %v14227_v60  ;;  %v8445_v5 = vmul.f32 %v14241_v20, %v14161_v33  ;;  %v9332_v12 = vunpack.c.h.bf16 %v9389_v24  ;;  %v8461_v23 = vmul.f32 %v14241_v20, %v14232_v19 }
 0x50c   : > { %8563 = vxpose.xlu1.b32.cont [4/16] (narrow) %v8531_v3, 32  ;;  %8595 = vxpose.xlu0.b32.cont [4/16] (narrow) %v8547_v53, 32  ;;  %v8554_v3 = vadd.f32 %v9359_v57, %v8458_v11  ;;  %v9397_v53 = vld [vmem:[%s10224_s25 + $0x70] sm:$0xff]   ;;  %v8555_v55 = vadd.f32 %v9360_v51, %v8459_v63  ;;  %v8540_v6 = vadd.f32 %v9331_v61, %v8444_v47 }
 0x50d   : > { %v9364_v22 = vunpack.c.h.bf16 %v9397_v53  ;;  %v8446_v60 = vmul.f32 %v14241_v20, %v14165_v40  ;;  %v8541_v21 = vadd.f32 %v9332_v12, %v8445_v5  ;;  %v8462_v33 = vmul.f32 %v14241_v20, %v14224_v17 }
 0x50e   : > { %v8447_v19 = vmul.f32 %v14241_v20, %v14169_v9  ;;  %v8463_v32 = vmul.f32 %v14241_v20, %v14230_v50  ;;  %v14514_v17 = vmov 0  }
 0x50f   : > { %v8557_v31 = vadd.f32 %v9364_v22, %v8461_v23 }
 0x510   : > { %8564 = vxpose.xlu1.b32.cont [5/16] (narrow) %v8532_v30, 32  ;;  %8596 = vxpose.xlu0.b32.cont [5/16] (narrow) %v8548_v45, 32  ;;  %v9363_v30 = vunpack.c.l.bf16 %v9397_v53  ;;  %v9390_v45 = vld [vmem:[%s10224_s25 + $0x38] sm:$0xff]   ;;  %s323_s25 = sand.u32 1, %s10073_s10  }
 0x511   : > { %v9336_v10 = vunpack.c.h.bf16 %v9390_v45  ;;  %s8712_s17 = sshll.u32 %s323_s25, 6  ;;  %s14333_s24 = scalar_lea.sflag [#allocation5], %s323_s25 }
 0x512   : > { %v8556_v27 = vadd.f32 %v9363_v30, %v8460_v46  ;;  %s325_s26 = scalar_lea.vmem [#allocation4], %s8712_s17 }
 0x513   : > { %v8543_v14 = vadd.f32 %v9336_v10, %v8447_v19  ;;  %s8646_s27 = sshll.u32 %s325_s26, 4  ;;  %s14326_s27 = int_to_ptr.vmem [resolvable:$true] %s8646_s27 }
 0x514   : > { %8565 = vxpose.xlu1.b32.cont [6/16] (narrow) %v8533_v1, 32  ;;  %8597 = vxpose.xlu0.b32.cont [6/16] (narrow) %v8549_v52, 32  ;;  %v9335_v1 = vunpack.c.l.bf16 %v9390_v45  ;;  %v9367_v52 = vunpack.c.l.bf16 %v9398_v4  ;;  %s10019_s29 = scalar_lea.vmem %s14326_s27, 1024  ;;  %p10026_p0 = scmp.lt.s32.totalorder %s14326_s27, %s10024_s14 }
 0x515   : > { %p10020_p11 = scmp.ne.s32.totalorder %s14326_s27, %s10019_s29  ;;  %p10027_p1 = scmp.lt.s32.totalorder %s10025_s16, %s10019_s29 }
 0x516   : > { %v8542_v7 = vadd.f32 %v9335_v1, %v8446_v60  ;;  %v8558_v40 = vadd.f32 %v9367_v52, %v8462_v33 }
 0x517   : > { %p10021_p12 = pnand %p10020_p11, %p10178_p5  ;;  %p10028_p2 = por %p10027_p1, %p10026_p0 }
 0x518   : > { %8566 = vxpose.xlu1.b32.cont [7/16] (narrow) %v8534_v54, 32  ;;  %8598 = vxpose.xlu0.b32.cont [7/16] (narrow) %v8550_v42, 32  ;;  %v9368_v54 = vunpack.c.h.bf16 %v9398_v4 }
 0x519   : > { %p10022_p13 = pneg %p10021_p12 }
 0x51a   : > { %v8559_v41 = vadd.f32 %v9368_v54, %v8463_v32 }
 0x51b   : > { %p10029_p3 = pnand %p10028_p2, %p10022_p13 }
 0x51c   : > { %8567 = vxpose.xlu1.b32.cont [8/16] (narrow) %v8535_v58, 32  ;;  %8599 = vxpose.xlu0.b32.cont [8/16] (narrow) %v8551_v36, 32 }
 0x520   : > { %8568 = vxpose.xlu1.b32.cont [9/16] (narrow) %v8536_v28, 32  ;;  %8600 = vxpose.xlu0.b32.cont [9/16] (narrow) %v8552_v2, 32 }
 0x524   : > { %8569 = vxpose.xlu1.b32.cont [10/16] (narrow) %v8537_v43, 32  ;;  %8601 = vxpose.xlu0.b32.cont [10/16] (narrow) %v8553_v48, 32 }
 0x528   : > { %8570 = vxpose.xlu1.b32.cont [11/16] (narrow) %v8538_v34, 32  ;;  %8602 = vxpose.xlu0.b32.cont [11/16] (narrow) %v8554_v3, 32 }
 0x52c   : > { %8571 = vxpose.xlu1.b32.cont [12/16] (narrow) %v8539_v8, 32  ;;  %8603 = vxpose.xlu0.b32.cont [12/16] (narrow) %v8555_v55, 32 }
 0x530   : > { %8572 = vxpose.xlu1.b32.cont [13/16] (narrow) %v8540_v6, 32  ;;  %8604 = vxpose.xlu0.b32.cont [13/16] (narrow) %v8556_v27, 32 }
 0x534   : > { %8573 = vxpose.xlu1.b32.cont [14/16] (narrow) %v8541_v21, 32  ;;  %8605 = vxpose.xlu0.b32.cont [14/16] (narrow) %v8557_v31, 32 }
 0x538   : > { %8574 = vxpose.xlu1.b32.cont [15/16] (narrow) %v8542_v7, 32  ;;  %8606 = vxpose.xlu0.b32.cont [15/16] (narrow) %v8558_v40, 32 }
 0x53c   : > { %8575 = vxpose.xlu1.b32.end [16/16] (narrow) %v8543_v14, 32  ;;  %8607 = vxpose.xlu0.b32.end [16/16] (narrow) %v8559_v41, 32 }
 0x565   : > { %9781 = vset.pattern.permute.xlu0 %v14514_v17 }
 0x580   : > { %v8576_v9 = vpop.trf.xlu1  ;;  %v8608_v42 = vpop.trf.xlu0 }
 0x581   : > { %8624 = vst [vmem:[%s325_s26] sm:$0xff] %v8576_v9  ;;  %8625 = vst [vmem:[%s325_s26 + $0x8] sm:$0xff] %v8608_v42 }
 0x584   : > { %v8577_v0 = vpop.trf.xlu1  ;;  %v8609_v50 = vpop.trf.xlu0 }
 0x585   : > { %8626 = vst [vmem:[%s325_s26 + $0x10] sm:$0xff] %v8577_v0  ;;  %8627 = vst [vmem:[%s325_s26 + $0x18] sm:$0xff] %v8609_v50 }
 0x588   : > { %v8578_v20 = vpop.trf.xlu1  ;;  %v8610_v35 = vpop.trf.xlu0 }
 0x589   : > { %8628 = vst [vmem:[%s325_s26 + $0x20] sm:$0xff] %v8578_v20  ;;  %8629 = vst [vmem:[%s325_s26 + $0x28] sm:$0xff] %v8610_v35 }
 0x58c   : > { %v8579_v59 = vpop.trf.xlu1  ;;  %v8611_v44 = vpop.trf.xlu0 }
 0x58d   : > { %8630 = vst [vmem:[%s325_s26 + $0x30] sm:$0xff] %v8579_v59  ;;  %8631 = vst [vmem:[%s325_s26 + $0x38] sm:$0xff] %v8611_v44 }
 0x58e   : > { %10032 = shalt.err (!%p10029_p3)
}
 0x58f   : > { %s10033_s25 = scalar_lea.hbm %s14331_s23, 1024  ;;  %s10037_s28 = scalar_lea.hbm %s14383_s9, 2048 }
 0x590   : > { %p10034_p4 = scmp.ne.s32.totalorder %s14331_s23, %s10033_s25  ;;  %p10038_p9 = scmp.lt.u32.totalorder %s14331_s23, %s14383_s9 }
 0x591   : > { %p10039_p10 = scmp.lt.u32.totalorder %s10037_s28, %s10033_s25  ;;  %p10041_p12 = scmp.lt.u32.totalorder %s10033_s25, %s14331_s23 }
 0x592   : > { %p10035_p7 = pnand %p10034_p4, %p10178_p5 }
 0x593   : > { %p10040_p11 = por %p10039_p10, %p10038_p9 }
 0x594   : > { %p10036_p8 = pneg %p10035_p7 }
 0x595   : > { %p10042_p13 = por %p10041_p12, %p10040_p11 }
 0x597   : > { %p10043_p0 = pnand %p10042_p13, %p10036_p8 }
 0x599   : > { %10046 = shalt.err (!%p10043_p0)
}
 0x59a   : > { %s10088_s29 = smov 256   ;;  %s10089_s13 = smov 16  }
 0x59b   : > { %9735 = dma.vmem_to_hbm [thread:$0]  (%p10178_p5), %s14326_s27, 1024, %s14331_s23, %s14333_s24, %s10088_s29, %s10088_s29, %s10089_s13  }
 0x59c PF: > { %p9741_p1 = scmp.ge.s32.totalorder %s10081_s12, 2  ;;  %s8661_s14 = sand.u32 1, %s10069_s30  }
 0x59d   : > { %s8662_s16 = scalar_lea.sflag [#allocation5], %s8661_s14 }
 0x59e   : > { %p9738_p2 = pnand %p9741_p1, %p10182_p6 }
 0x5a0   : > { %10064 = dma.done.wait (!%p9738_p2), %s8662_s16, 1024  }
 0x5a1   : > { %10066 = vsyncadd (!%p9738_p2), %s8662_s16, 4294966272  ;;  %p19_p3 = scmp.ge.s32.totalorder %s10165_s15, 4   ;;  %s14515_s30 = smov %s10073_s10 }
 0x5a2   : > { %s14516_s10 = smov %s10077_s11  ;;  %s14517_s11 = smov %s10176_s18 }
 0x5a3   : > { %s14518_s12 = smov %s10165_s15  ;;  %21 = sbr.rel (!%p19_p3) target bundleno = 3 (0x3), region = 94 }
 0x5aa   :  { %8667 = vsyncpa [#allocation5], 1 }
 0x5ab   :  { %8669 = vsyncpa [#allocation5 + $0x1], 1 }

</bundles_post_ra>
